<compile_context>
chip_gen: v5e
topology: v5e:2x2
jax: 0.10.0
libtpu: 0.0.40
codegen_flags: <defaults>
</compile_context>

<pallas_src>
import jax
import jax.numpy as jnp
from jax.experimental import pallas as pl
from jax.experimental.pallas import tpu as pltpu

BN_EPS = 1e-5  # PyTorch BatchNorm2d default eps


def _full_spec(shape):
    nd = len(shape)
    return pl.BlockSpec(shape, lambda i, nd=nd: (0,) * nd)


def _down_fused_kernel(xpad_ref, w1_ref, g1_ref, be1_ref, w2_ref, g2_ref, be2_ref,
                       out_ref, val_ref, idx_ref, pad_ref):
    N, Hp, Wp, Cin = xpad_ref.shape
    H, W = Hp - 2, Wp - 2
    C1 = out_ref.shape[-1]
    NHW = N * H * W
    inv_nhw = 1.0 / float(NHW)
    Ho, Wo = H // 2, W // 2

    def conv3x3(src, cin, w_ref):
        # im2col: one (NHW, 9*cin) slab -> a single K = 9*cin MXU matmul (bf16 x bf16 -> f32).
        slab = jnp.concatenate(
            [src[:, dy:dy + H, dx:dx + W, :] for dy in range(3) for dx in range(3)],
            axis=-1).reshape(NHW, 9 * cin)
        return jnp.dot(slab, w_ref[...], preferred_element_type=jnp.float32)

    def bn_relu(y, g_ref, be_ref):
        # One-pass batch statistics (biased variance), f32 accumulation, folded scale/shift.
        s = jnp.sum(y, axis=0, keepdims=True)
        q = jnp.sum(y * y, axis=0, keepdims=True)
        m = s * inv_nhw
        v = q * inv_nhw - m * m
        scale = g_ref[...] * jax.lax.rsqrt(v + BN_EPS)
        shift = be_ref[...] - m * scale
        return jnp.maximum(y * scale + shift, 0.0)

    # ---- conv1 + BN + ReLU (conv bias omitted: it cancels under the BN mean subtraction) ----
    y = bn_relu(conv3x3(xpad_ref[...], Cin, w1_ref), g1_ref, be1_ref)

    # ---- re-pad intermediate into bf16 VMEM scratch; zero only the 1-pixel halo ----
    pad_ref[:, 0:1, :, :] = jnp.zeros((N, 1, Wp, C1), pad_ref.dtype)
    pad_ref[:, H + 1:H + 2, :, :] = jnp.zeros((N, 1, Wp, C1), pad_ref.dtype)
    pad_ref[:, :, 0:1, :] = jnp.zeros((N, Hp, 1, C1), pad_ref.dtype)
    pad_ref[:, :, W + 1:W + 2, :] = jnp.zeros((N, Hp, 1, C1), pad_ref.dtype)
    pad_ref[:, 1:H + 1, 1:W + 1, :] = y.reshape(N, H, W, C1).astype(pad_ref.dtype)

    # ---- conv2 + BN + ReLU ----
    y2 = bn_relu(conv3x3(pad_ref[...], C1, w2_ref), g2_ref, be2_ref)

    # ---- feature-map output (also used as VMEM staging for the fused pool) ----
    out_ref[...] = y2.reshape(N, H, W, C1)

    # ---- fused MaxPool2d(2, return_indices=True) ----
    # Even/odd input columns via sublane-strided reads of the VMEM-resident output,
    # even/odd input rows via leading-dim reshapes (layout-free).
    even_w = out_ref[:, :, pl.ds(0, Wo, 2), :]          # (N, H, Wo, C1): w = 0, 2, ...
    odd_w = out_ref[:, :, pl.ds(1, Wo, 2), :]           # (N, H, Wo, C1): w = 1, 3, ...
    ew = even_w.reshape(N * Ho, 2, Wo, C1)
    ow = odd_w.reshape(N * Ho, 2, Wo, C1)
    v00 = ew[:, 0].reshape(N, Ho, Wo, C1)
    v01 = ow[:, 0].reshape(N, Ho, Wo, C1)
    v10 = ew[:, 1].reshape(N, Ho, Wo, C1)
    v11 = ow[:, 1].reshape(N, Ho, Wo, C1)

    # Window scan order (0,0),(0,1),(1,0),(1,1) with strict '>' replicates PyTorch's
    # first-max tie-breaking. Track the flat in-window offset dy*W + dx directly.
    best_v = v00
    best_off = jnp.zeros(best_v.shape, jnp.int32)
    for vk, off in ((v01, 1), (v10, W), (v11, W + 1)):
        take = vk > best_v
        best_v = jnp.where(take, vk, best_v)
        best_off = jnp.where(take, jnp.int32(off), best_off)

    row = jax.lax.broadcasted_iota(jnp.int32, best_v.shape, 1)   # ho
    col = jax.lax.broadcasted_iota(jnp.int32, best_v.shape, 2)   # wo
    val_ref[...] = best_v
    # PyTorch MaxPool2d(return_indices=True): flat index into the H*W input plane.
    idx_ref[...] = (2 * row) * W + 2 * col + best_off


def down_forward(x_nchw, params):
    N, Cin, H, W = x_nchw.shape
    C1 = params["w1"].shape[-1]
    # TODO(synk): PyTorch MaxPool2d floors odd spatial sizes; this kernel assumes H, W even.
    assert H % 2 == 0 and W % 2 == 0

    x = jnp.transpose(x_nchw, (0, 2, 3, 1)).astype(jnp.bfloat16)    # NHWC, bf16 activations
    xpad = jnp.pad(x, ((0, 0), (1, 1), (1, 1), (0, 0)))             # spatial pad 1

    # (3,3,Cin,C1) conv weights flattened to (9*Cin, C1): one matmul per conv.
    w1f = params["w1"].reshape(9 * Cin, C1).astype(jnp.bfloat16)
    w2f = params["w2"].reshape(9 * C1, C1).astype(jnp.bfloat16)
    # Conv biases b1/b2 are intentionally unused: a per-channel constant added before
    # BatchNorm cancels exactly against the batch-mean subtraction (numerically identical).

    ins = (xpad, w1f, params["g1"], params["be1"], w2f, params["g2"], params["be2"])
    Ho, Wo = H // 2, W // 2
    out_shapes = (jax.ShapeDtypeStruct((N, H, W, C1), jnp.float32),
                  jax.ShapeDtypeStruct((N, Ho, Wo, C1), jnp.float32),
                  jax.ShapeDtypeStruct((N, Ho, Wo, C1), jnp.int32))

    x_feat, val, idx = pl.pallas_call(
        _down_fused_kernel,
        out_shape=out_shapes,
        grid_spec=pltpu.PrefetchScalarGridSpec(
            num_scalar_prefetch=0,
            grid=(1,),
            in_specs=[_full_spec(a.shape) for a in ins],
            out_specs=[_full_spec(s.shape) for s in out_shapes],
            scratch_shapes=[pltpu.VMEM((N, H + 2, W + 2, C1), jnp.bfloat16)]),
        compiler_params=pltpu.CompilerParams(dimension_semantics=("arbitrary",)),
    )(*ins)
    # TODO(synk): for production UNet sizes on v7x (64 MiB VMEM, 2 TensorCores) this
    # single-block kernel should be row-tiled with multi-pass accumulated BN statistics.

    to_nchw = lambda a: jnp.transpose(a, (0, 3, 1, 2))
    return to_nchw(x_feat), to_nchw(val), to_nchw(idx)


def init_params(key, inC, outC):
    # Deterministic synthetic params. PyTorch conv weight is (outC, inC, 3, 3);
    # stored here as (3, 3, inC, outC) for the channels-last matmul formulation.
    ks = jax.random.split(key, 4)
    w1 = jax.random.normal(ks[0], (3, 3, inC, outC), jnp.float32) * 0.1
    b1 = jax.random.normal(ks[1], (1, outC), jnp.float32) * 0.1   # unused: cancels under BN
    w2 = jax.random.normal(ks[2], (3, 3, outC, outC), jnp.float32) * 0.1
    b2 = jax.random.normal(ks[3], (1, outC), jnp.float32) * 0.1   # unused: cancels under BN
    g1 = jnp.ones((1, outC), jnp.float32)    # BatchNorm2d default init: gamma=1
    be1 = jnp.zeros((1, outC), jnp.float32)  # beta=0
    g2 = jnp.ones((1, outC), jnp.float32)
    be2 = jnp.zeros((1, outC), jnp.float32)
    return dict(w1=w1, b1=b1, g1=g1, be1=be1, w2=w2, b2=b2, g2=g2, be2=be2)


if __name__ == "__main__":
    key = jax.random.PRNGKey(0)
    kx, kp = jax.random.split(key)
    N, inC, outC, H, W = 2, 4, 8, 16, 16
    x = jax.random.normal(kx, (N, inC, H, W), jnp.float32)   # NCHW like PyTorch
    params = init_params(kp, inC, outC)

    x_feat, x_pool, ind = jax.block_until_ready(down_forward(x, params))

    assert x_feat.shape == (N, outC, H, W)
    assert x_pool.shape == (N, outC, H // 2, W // 2)
    assert ind.shape == (N, outC, H // 2, W // 2)
    assert ind.dtype == jnp.int32
    # TODO(synk): PyTorch returns int64 pooling indices; int32 used here (TPU-native).

    # Self-consistency checks of the fused pool against the returned feature map (exact).
    ref_pool = jnp.max(x_feat.reshape(N, outC, H // 2, 2, W // 2, 2), axis=(3, 5))
    assert jnp.array_equal(ref_pool, x_pool)
    gathered = jnp.take_along_axis(x_feat.reshape(N, outC, H * W),
                                   ind.reshape(N, outC, -1), axis=-1)
    assert jnp.array_equal(gathered.reshape(x_pool.shape), x_pool)

    print("KERNEL_OK")
</pallas_src>

<mosaic_0001>
module attributes {stable_mosaic.version = 11 : i64} {
  func.func @_down_fused_kernel(%arg0: i32, %arg1: memref<2x18x18x4xbf16, #tpu.memory_space<vmem>>, %arg2: memref<36x8xbf16, #tpu.memory_space<vmem>>, %arg3: memref<1x8xf32, #tpu.memory_space<vmem>>, %arg4: memref<1x8xf32, #tpu.memory_space<vmem>>, %arg5: memref<72x8xbf16, #tpu.memory_space<vmem>>, %arg6: memref<1x8xf32, #tpu.memory_space<vmem>>, %arg7: memref<1x8xf32, #tpu.memory_space<vmem>>, %arg8: memref<2x16x16x8xf32, #tpu.memory_space<vmem>>, %arg9: memref<2x8x8x8xf32, #tpu.memory_space<vmem>>, %arg10: memref<2x8x8x8xi32, #tpu.memory_space<vmem>>, %arg11: memref<2x18x18x8xbf16, #tpu.memory_space<vmem>>) attributes {dimension_semantics = [#tpu.dimension_semantics<arbitrary>], iteration_bounds = array<i64: 1>, scalar_prefetch = 0 : i64, scratch_operands = 1 : i64, tpu.core_type = #tpu.core_type<tc>, window_params = [{pipeline_mode = #tpu.pipeline_mode<synchronous>, transform_indices = @transform_0, window_bounds = array<i64: 2, 18, 18, 4>}, {pipeline_mode = #tpu.pipeline_mode<synchronous>, transform_indices = @transform_1, window_bounds = array<i64: 36, 8>}, {pipeline_mode = #tpu.pipeline_mode<synchronous>, transform_indices = @transform_2, window_bounds = array<i64: 1, 8>}, {pipeline_mode = #tpu.pipeline_mode<synchronous>, transform_indices = @transform_3, window_bounds = array<i64: 1, 8>}, {pipeline_mode = #tpu.pipeline_mode<synchronous>, transform_indices = @transform_4, window_bounds = array<i64: 72, 8>}, {pipeline_mode = #tpu.pipeline_mode<synchronous>, transform_indices = @transform_5, window_bounds = array<i64: 1, 8>}, {pipeline_mode = #tpu.pipeline_mode<synchronous>, transform_indices = @transform_6, window_bounds = array<i64: 1, 8>}, {pipeline_mode = #tpu.pipeline_mode<synchronous>, transform_indices = @transform_7, window_bounds = array<i64: 2, 16, 16, 8>}, {pipeline_mode = #tpu.pipeline_mode<synchronous>, transform_indices = @transform_8, window_bounds = array<i64: 2, 8, 8, 8>}, {pipeline_mode = #tpu.pipeline_mode<synchronous>, transform_indices = @transform_9, window_bounds = array<i64: 2, 8, 8, 8>}]} {
    %c0 = arith.constant 0 : index
    %c0_0 = arith.constant 0 : index
    %c0_1 = arith.constant 0 : index
    %c0_2 = arith.constant 0 : index
    %0 = vector.load %arg1[%c0, %c0_0, %c0_1, %c0_2] : memref<2x18x18x4xbf16, #tpu.memory_space<vmem>>, vector<2x18x18x4xbf16>
    %1 = vector.extract_strided_slice %0 {offsets = [0, 0, 0, 0], sizes = [2, 16, 16, 4], strides = [1, 1, 1, 1]} : vector<2x18x18x4xbf16> to vector<2x16x16x4xbf16>
    %2 = vector.extract_strided_slice %0 {offsets = [0, 0, 1, 0], sizes = [2, 16, 16, 4], strides = [1, 1, 1, 1]} : vector<2x18x18x4xbf16> to vector<2x16x16x4xbf16>
    %3 = vector.extract_strided_slice %0 {offsets = [0, 0, 2, 0], sizes = [2, 16, 16, 4], strides = [1, 1, 1, 1]} : vector<2x18x18x4xbf16> to vector<2x16x16x4xbf16>
    %4 = vector.extract_strided_slice %0 {offsets = [0, 1, 0, 0], sizes = [2, 16, 16, 4], strides = [1, 1, 1, 1]} : vector<2x18x18x4xbf16> to vector<2x16x16x4xbf16>
    %5 = vector.extract_strided_slice %0 {offsets = [0, 1, 1, 0], sizes = [2, 16, 16, 4], strides = [1, 1, 1, 1]} : vector<2x18x18x4xbf16> to vector<2x16x16x4xbf16>
    %6 = vector.extract_strided_slice %0 {offsets = [0, 1, 2, 0], sizes = [2, 16, 16, 4], strides = [1, 1, 1, 1]} : vector<2x18x18x4xbf16> to vector<2x16x16x4xbf16>
    %7 = vector.extract_strided_slice %0 {offsets = [0, 2, 0, 0], sizes = [2, 16, 16, 4], strides = [1, 1, 1, 1]} : vector<2x18x18x4xbf16> to vector<2x16x16x4xbf16>
    %8 = vector.extract_strided_slice %0 {offsets = [0, 2, 1, 0], sizes = [2, 16, 16, 4], strides = [1, 1, 1, 1]} : vector<2x18x18x4xbf16> to vector<2x16x16x4xbf16>
    %9 = vector.extract_strided_slice %0 {offsets = [0, 2, 2, 0], sizes = [2, 16, 16, 4], strides = [1, 1, 1, 1]} : vector<2x18x18x4xbf16> to vector<2x16x16x4xbf16>
    %10 = tpu.concatenate %1, %2, %3, %4, %5, %6, %7, %8, %9 in 3 : vector<2x16x16x4xbf16>, vector<2x16x16x4xbf16>, vector<2x16x16x4xbf16>, vector<2x16x16x4xbf16>, vector<2x16x16x4xbf16>, vector<2x16x16x4xbf16>, vector<2x16x16x4xbf16>, vector<2x16x16x4xbf16>, vector<2x16x16x4xbf16> -> vector<2x16x16x36xbf16>
    %11 = vector.shape_cast %10 : vector<2x16x16x36xbf16> to vector<512x36xbf16>
    %c0_3 = arith.constant 0 : index
    %c0_4 = arith.constant 0 : index
    %12 = vector.load %arg2[%c0_3, %c0_4] : memref<36x8xbf16, #tpu.memory_space<vmem>>, vector<36x8xbf16>
    %cst = arith.constant dense<0.000000e+00> : vector<512x8xf32>
    %13 = tpu.matmul %11, %12, %cst {dimension_numbers = #tpu.dot_dimension_numbers<[1], [0], [0], [1], [0, 0, 1, 1], [], []>} : vector<512x36xbf16>, vector<36x8xbf16>, vector<512x8xf32> -> vector<512x8xf32>
    %cst_5 = arith.constant dense<0.000000e+00> : vector<8xf32>
    %14 = vector.multi_reduction <add>, %13, %cst_5 [0] : vector<512x8xf32> to vector<8xf32>
    %15 = vector.shape_cast %14 : vector<8xf32> to vector<1x8xf32>
    %16 = arith.mulf %13, %13 : vector<512x8xf32>
    %cst_6 = arith.constant dense<0.000000e+00> : vector<8xf32>
    %17 = vector.multi_reduction <add>, %16, %cst_6 [0] : vector<512x8xf32> to vector<8xf32>
    %18 = vector.shape_cast %17 : vector<8xf32> to vector<1x8xf32>
    %cst_7 = arith.constant 0.001953125 : f32
    %19 = vector.broadcast %cst_7 : f32 to vector<1x8xf32>
    %20 = arith.mulf %15, %19 : vector<1x8xf32>
    %cst_8 = arith.constant 0.001953125 : f32
    %21 = vector.broadcast %cst_8 : f32 to vector<1x8xf32>
    %22 = arith.mulf %18, %21 : vector<1x8xf32>
    %23 = arith.mulf %20, %20 : vector<1x8xf32>
    %24 = arith.subf %22, %23 : vector<1x8xf32>
    %c0_9 = arith.constant 0 : index
    %c0_10 = arith.constant 0 : index
    %25 = vector.load %arg3[%c0_9, %c0_10] : memref<1x8xf32, #tpu.memory_space<vmem>>, vector<1x8xf32>
    %cst_11 = arith.constant 9.99999974E-6 : f32
    %26 = vector.broadcast %cst_11 : f32 to vector<1x8xf32>
    %27 = arith.addf %24, %26 : vector<1x8xf32>
    %28 = math.rsqrt %27 : vector<1x8xf32>
    %29 = arith.mulf %25, %28 : vector<1x8xf32>
    %c0_12 = arith.constant 0 : index
    %c0_13 = arith.constant 0 : index
    %30 = vector.load %arg4[%c0_12, %c0_13] : memref<1x8xf32, #tpu.memory_space<vmem>>, vector<1x8xf32>
    %31 = arith.mulf %20, %29 : vector<1x8xf32>
    %32 = arith.subf %30, %31 : vector<1x8xf32>
    %33 = vector.broadcast %29 : vector<1x8xf32> to vector<512x8xf32>
    %34 = arith.mulf %13, %33 : vector<512x8xf32>
    %35 = vector.broadcast %32 : vector<1x8xf32> to vector<512x8xf32>
    %36 = arith.addf %34, %35 : vector<512x8xf32>
    %cst_14 = arith.constant 0.000000e+00 : f32
    %37 = vector.broadcast %cst_14 : f32 to vector<512x8xf32>
    %38 = arith.maximumf %36, %37 : vector<512x8xf32>
    %cst_15 = arith.constant 0.000000e+00 : bf16
    %39 = vector.broadcast %cst_15 : bf16 to vector<2x1x18x8xbf16>
    %c0_16 = arith.constant 0 : index
    %c0_17 = arith.constant 0 : index
    %c0_18 = arith.constant 0 : index
    %c0_19 = arith.constant 0 : index
    %40 = vector.load %arg11[%c0_16, %c0_17, %c0_18, %c0_19] : memref<2x18x18x8xbf16, #tpu.memory_space<vmem>>, vector<2x1x18x8xbf16>
    tpu.vector_store %arg11[%c0_16, %c0_17, %c0_18, %c0_19], %39 {strides = array<i32>} : memref<2x18x18x8xbf16, #tpu.memory_space<vmem>>, vector<2x1x18x8xbf16>,
    %cst_20 = arith.constant 0.000000e+00 : bf16
    %41 = vector.broadcast %cst_20 : bf16 to vector<2x1x18x8xbf16>
    %c0_21 = arith.constant 0 : index
    %c17 = arith.constant 17 : index
    %c0_22 = arith.constant 0 : index
    %c0_23 = arith.constant 0 : index
    %42 = vector.load %arg11[%c0_21, %c17, %c0_22, %c0_23] : memref<2x18x18x8xbf16, #tpu.memory_space<vmem>>, vector<2x1x18x8xbf16>
    tpu.vector_store %arg11[%c0_21, %c17, %c0_22, %c0_23], %41 {strides = array<i32>} : memref<2x18x18x8xbf16, #tpu.memory_space<vmem>>, vector<2x1x18x8xbf16>,
    %cst_24 = arith.constant 0.000000e+00 : bf16
    %43 = vector.broadcast %cst_24 : bf16 to vector<2x18x1x8xbf16>
    %c0_25 = arith.constant 0 : index
    %c0_26 = arith.constant 0 : index
    %c0_27 = arith.constant 0 : index
    %c0_28 = arith.constant 0 : index
    %44 = vector.load %arg11[%c0_25, %c0_26, %c0_27, %c0_28] : memref<2x18x18x8xbf16, #tpu.memory_space<vmem>>, vector<2x18x1x8xbf16>
    tpu.vector_store %arg11[%c0_25, %c0_26, %c0_27, %c0_28], %43 {strides = array<i32>} : memref<2x18x18x8xbf16, #tpu.memory_space<vmem>>, vector<2x18x1x8xbf16>,
    %cst_29 = arith.constant 0.000000e+00 : bf16
    %45 = vector.broadcast %cst_29 : bf16 to vector<2x18x1x8xbf16>
    %c0_30 = arith.constant 0 : index
    %c0_31 = arith.constant 0 : index
    %c17_32 = arith.constant 17 : index
    %c0_33 = arith.constant 0 : index
    %46 = vector.load %arg11[%c0_30, %c0_31, %c17_32, %c0_33] : memref<2x18x18x8xbf16, #tpu.memory_space<vmem>>, vector<2x18x1x8xbf16>
    tpu.vector_store %arg11[%c0_30, %c0_31, %c17_32, %c0_33], %45 {strides = array<i32>} : memref<2x18x18x8xbf16, #tpu.memory_space<vmem>>, vector<2x18x1x8xbf16>,
    %47 = vector.shape_cast %38 : vector<512x8xf32> to vector<2x16x16x8xf32>
    %48 = arith.truncf %47 : vector<2x16x16x8xf32> to vector<2x16x16x8xbf16>
    %c0_34 = arith.constant 0 : index
    %c1 = arith.constant 1 : index
    %c1_35 = arith.constant 1 : index
    %c0_36 = arith.constant 0 : index
    %49 = vector.load %arg11[%c0_34, %c1, %c1_35, %c0_36] : memref<2x18x18x8xbf16, #tpu.memory_space<vmem>>, vector<2x16x16x8xbf16>
    tpu.vector_store %arg11[%c0_34, %c1, %c1_35, %c0_36], %48 {strides = array<i32>} : memref<2x18x18x8xbf16, #tpu.memory_space<vmem>>, vector<2x16x16x8xbf16>,
    %c0_37 = arith.constant 0 : index
    %c0_38 = arith.constant 0 : index
    %c0_39 = arith.constant 0 : index
    %c0_40 = arith.constant 0 : index
    %50 = vector.load %arg11[%c0_37, %c0_38, %c0_39, %c0_40] : memref<2x18x18x8xbf16, #tpu.memory_space<vmem>>, vector<2x18x18x8xbf16>
    %51 = vector.extract_strided_slice %50 {offsets = [0, 0, 0, 0], sizes = [2, 16, 16, 8], strides = [1, 1, 1, 1]} : vector<2x18x18x8xbf16> to vector<2x16x16x8xbf16>
    %52 = vector.extract_strided_slice %50 {offsets = [0, 0, 1, 0], sizes = [2, 16, 16, 8], strides = [1, 1, 1, 1]} : vector<2x18x18x8xbf16> to vector<2x16x16x8xbf16>
    %53 = vector.extract_strided_slice %50 {offsets = [0, 0, 2, 0], sizes = [2, 16, 16, 8], strides = [1, 1, 1, 1]} : vector<2x18x18x8xbf16> to vector<2x16x16x8xbf16>
    %54 = vector.extract_strided_slice %50 {offsets = [0, 1, 0, 0], sizes = [2, 16, 16, 8], strides = [1, 1, 1, 1]} : vector<2x18x18x8xbf16> to vector<2x16x16x8xbf16>
    %55 = vector.extract_strided_slice %50 {offsets = [0, 1, 1, 0], sizes = [2, 16, 16, 8], strides = [1, 1, 1, 1]} : vector<2x18x18x8xbf16> to vector<2x16x16x8xbf16>
    %56 = vector.extract_strided_slice %50 {offsets = [0, 1, 2, 0], sizes = [2, 16, 16, 8], strides = [1, 1, 1, 1]} : vector<2x18x18x8xbf16> to vector<2x16x16x8xbf16>
    %57 = vector.extract_strided_slice %50 {offsets = [0, 2, 0, 0], sizes = [2, 16, 16, 8], strides = [1, 1, 1, 1]} : vector<2x18x18x8xbf16> to vector<2x16x16x8xbf16>
    %58 = vector.extract_strided_slice %50 {offsets = [0, 2, 1, 0], sizes = [2, 16, 16, 8], strides = [1, 1, 1, 1]} : vector<2x18x18x8xbf16> to vector<2x16x16x8xbf16>
    %59 = vector.extract_strided_slice %50 {offsets = [0, 2, 2, 0], sizes = [2, 16, 16, 8], strides = [1, 1, 1, 1]} : vector<2x18x18x8xbf16> to vector<2x16x16x8xbf16>
    %60 = tpu.concatenate %51, %52, %53, %54, %55, %56, %57, %58, %59 in 3 : vector<2x16x16x8xbf16>, vector<2x16x16x8xbf16>, vector<2x16x16x8xbf16>, vector<2x16x16x8xbf16>, vector<2x16x16x8xbf16>, vector<2x16x16x8xbf16>, vector<2x16x16x8xbf16>, vector<2x16x16x8xbf16>, vector<2x16x16x8xbf16> -> vector<2x16x16x72xbf16>
    %61 = vector.shape_cast %60 : vector<2x16x16x72xbf16> to vector<512x72xbf16>
    %c0_41 = arith.constant 0 : index
    %c0_42 = arith.constant 0 : index
    %62 = vector.load %arg5[%c0_41, %c0_42] : memref<72x8xbf16, #tpu.memory_space<vmem>>, vector<72x8xbf16>
    %cst_43 = arith.constant dense<0.000000e+00> : vector<512x8xf32>
    %63 = tpu.matmul %61, %62, %cst_43 {dimension_numbers = #tpu.dot_dimension_numbers<[1], [0], [0], [1], [0, 0, 1, 1], [], []>} : vector<512x72xbf16>, vector<72x8xbf16>, vector<512x8xf32> -> vector<512x8xf32>
    %cst_44 = arith.constant dense<0.000000e+00> : vector<8xf32>
    %64 = vector.multi_reduction <add>, %63, %cst_44 [0] : vector<512x8xf32> to vector<8xf32>
    %65 = vector.shape_cast %64 : vector<8xf32> to vector<1x8xf32>
    %66 = arith.mulf %63, %63 : vector<512x8xf32>
    %cst_45 = arith.constant dense<0.000000e+00> : vector<8xf32>
    %67 = vector.multi_reduction <add>, %66, %cst_45 [0] : vector<512x8xf32> to vector<8xf32>
    %68 = vector.shape_cast %67 : vector<8xf32> to vector<1x8xf32>
    %cst_46 = arith.constant 0.001953125 : f32
    %69 = vector.broadcast %cst_46 : f32 to vector<1x8xf32>
    %70 = arith.mulf %65, %69 : vector<1x8xf32>
    %cst_47 = arith.constant 0.001953125 : f32
    %71 = vector.broadcast %cst_47 : f32 to vector<1x8xf32>
    %72 = arith.mulf %68, %71 : vector<1x8xf32>
    %73 = arith.mulf %70, %70 : vector<1x8xf32>
    %74 = arith.subf %72, %73 : vector<1x8xf32>
    %c0_48 = arith.constant 0 : index
    %c0_49 = arith.constant 0 : index
    %75 = vector.load %arg6[%c0_48, %c0_49] : memref<1x8xf32, #tpu.memory_space<vmem>>, vector<1x8xf32>
    %cst_50 = arith.constant 9.99999974E-6 : f32
    %76 = vector.broadcast %cst_50 : f32 to vector<1x8xf32>
    %77 = arith.addf %74, %76 : vector<1x8xf32>
    %78 = math.rsqrt %77 : vector<1x8xf32>
    %79 = arith.mulf %75, %78 : vector<1x8xf32>
    %c0_51 = arith.constant 0 : index
    %c0_52 = arith.constant 0 : index
    %80 = vector.load %arg7[%c0_51, %c0_52] : memref<1x8xf32, #tpu.memory_space<vmem>>, vector<1x8xf32>
    %81 = arith.mulf %70, %79 : vector<1x8xf32>
    %82 = arith.subf %80, %81 : vector<1x8xf32>
    %83 = vector.broadcast %79 : vector<1x8xf32> to vector<512x8xf32>
    %84 = arith.mulf %63, %83 : vector<512x8xf32>
    %85 = vector.broadcast %82 : vector<1x8xf32> to vector<512x8xf32>
    %86 = arith.addf %84, %85 : vector<512x8xf32>
    %cst_53 = arith.constant 0.000000e+00 : f32
    %87 = vector.broadcast %cst_53 : f32 to vector<512x8xf32>
    %88 = arith.maximumf %86, %87 : vector<512x8xf32>
    %89 = vector.shape_cast %88 : vector<512x8xf32> to vector<2x16x16x8xf32>
    %c0_54 = arith.constant 0 : index
    %c0_55 = arith.constant 0 : index
    %c0_56 = arith.constant 0 : index
    %c0_57 = arith.constant 0 : index
    %90 = vector.load %arg8[%c0_54, %c0_55, %c0_56, %c0_57] : memref<2x16x16x8xf32, #tpu.memory_space<vmem>>, vector<2x16x16x8xf32>
    tpu.vector_store %arg8[%c0_54, %c0_55, %c0_56, %c0_57], %89 {strides = array<i32>} : memref<2x16x16x8xf32, #tpu.memory_space<vmem>>, vector<2x16x16x8xf32>,
    %c0_58 = arith.constant 0 : index
    %c0_59 = arith.constant 0 : index
    %c0_60 = arith.constant 0 : index
    %c0_61 = arith.constant 0 : index
    %91 = tpu.strided_load %arg8[%c0_58, %c0_59, %c0_60, %c0_61] {strides = array<i32: 1, 1, 2, 1>} : memref<2x16x16x8xf32, #tpu.memory_space<vmem>>, vector<2x16x8x8xf32>
    %c0_62 = arith.constant 0 : index
    %c0_63 = arith.constant 0 : index
    %c1_64 = arith.constant 1 : index
    %c0_65 = arith.constant 0 : index
    %92 = tpu.strided_load %arg8[%c0_62, %c0_63, %c1_64, %c0_65] {strides = array<i32: 1, 1, 2, 1>} : memref<2x16x16x8xf32, #tpu.memory_space<vmem>>, vector<2x16x8x8xf32>
    %93 = vector.shape_cast %91 : vector<2x16x8x8xf32> to vector<16x2x8x8xf32>
    %94 = vector.shape_cast %92 : vector<2x16x8x8xf32> to vector<16x2x8x8xf32>
    %95 = vector.extract_strided_slice %93 {offsets = [0, 0, 0, 0], sizes = [16, 1, 8, 8], strides = [1, 1, 1, 1]} : vector<16x2x8x8xf32> to vector<16x1x8x8xf32>
    %96 = vector.shape_cast %95 : vector<16x1x8x8xf32> to vector<16x8x8xf32>
    %97 = vector.shape_cast %96 : vector<16x8x8xf32> to vector<2x8x8x8xf32>
    %98 = vector.extract_strided_slice %94 {offsets = [0, 0, 0, 0], sizes = [16, 1, 8, 8], strides = [1, 1, 1, 1]} : vector<16x2x8x8xf32> to vector<16x1x8x8xf32>
    %99 = vector.shape_cast %98 : vector<16x1x8x8xf32> to vector<16x8x8xf32>
    %100 = vector.shape_cast %99 : vector<16x8x8xf32> to vector<2x8x8x8xf32>
    %101 = vector.extract_strided_slice %93 {offsets = [0, 1, 0, 0], sizes = [16, 1, 8, 8], strides = [1, 1, 1, 1]} : vector<16x2x8x8xf32> to vector<16x1x8x8xf32>
    %102 = vector.shape_cast %101 : vector<16x1x8x8xf32> to vector<16x8x8xf32>
    %103 = vector.shape_cast %102 : vector<16x8x8xf32> to vector<2x8x8x8xf32>
    %104 = vector.extract_strided_slice %94 {offsets = [0, 1, 0, 0], sizes = [16, 1, 8, 8], strides = [1, 1, 1, 1]} : vector<16x2x8x8xf32> to vector<16x1x8x8xf32>
    %105 = vector.shape_cast %104 : vector<16x1x8x8xf32> to vector<16x8x8xf32>
    %106 = vector.shape_cast %105 : vector<16x8x8xf32> to vector<2x8x8x8xf32>
    %c0_i32 = arith.constant 0 : i32
    %107 = vector.broadcast %c0_i32 : i32 to vector<2x8x8x8xi32>
    %108 = arith.cmpf ogt, %100, %97 : vector<2x8x8x8xf32>
    %109 = arith.select %108, %100, %97 : vector<2x8x8x8xi1>, vector<2x8x8x8xf32>
    %c1_i32 = arith.constant 1 : i32
    %110 = vector.broadcast %c1_i32 : i32 to vector<2x8x8x8xi32>
    %111 = arith.select %108, %110, %107 : vector<2x8x8x8xi1>, vector<2x8x8x8xi32>
    %112 = arith.cmpf ogt, %103, %109 : vector<2x8x8x8xf32>
    %113 = arith.select %112, %103, %109 : vector<2x8x8x8xi1>, vector<2x8x8x8xf32>
    %c16_i32 = arith.constant 16 : i32
    %114 = vector.broadcast %c16_i32 : i32 to vector<2x8x8x8xi32>
    %115 = arith.select %112, %114, %111 : vector<2x8x8x8xi1>, vector<2x8x8x8xi32>
    %116 = arith.cmpf ogt, %106, %113 : vector<2x8x8x8xf32>
    %117 = arith.select %116, %106, %113 : vector<2x8x8x8xi1>, vector<2x8x8x8xf32>
    %c17_i32 = arith.constant 17 : i32
    %118 = vector.broadcast %c17_i32 : i32 to vector<2x8x8x8xi32>
    %119 = arith.select %116, %118, %115 : vector<2x8x8x8xi1>, vector<2x8x8x8xi32>
    %120 = tpu.iota {dimensions = array<i32: 1>} : vector<2x8x8x8xi32>
    %121 = tpu.iota {dimensions = array<i32: 2>} : vector<2x8x8x8xi32>
    %c0_66 = arith.constant 0 : index
    %c0_67 = arith.constant 0 : index
    %c0_68 = arith.constant 0 : index
    %c0_69 = arith.constant 0 : index
    %122 = vector.load %arg9[%c0_66, %c0_67, %c0_68, %c0_69] : memref<2x8x8x8xf32, #tpu.memory_space<vmem>>, vector<2x8x8x8xf32>
    tpu.vector_store %arg9[%c0_66, %c0_67, %c0_68, %c0_69], %117 {strides = array<i32>} : memref<2x8x8x8xf32, #tpu.memory_space<vmem>>, vector<2x8x8x8xf32>,
    %c2_i32 = arith.constant 2 : i32
    %123 = vector.broadcast %c2_i32 : i32 to vector<2x8x8x8xi32>
    %124 = arith.muli %123, %120 : vector<2x8x8x8xi32>
    %c16_i32_70 = arith.constant 16 : i32
    %125 = vector.broadcast %c16_i32_70 : i32 to vector<2x8x8x8xi32>
    %126 = arith.muli %124, %125 : vector<2x8x8x8xi32>
    %c2_i32_71 = arith.constant 2 : i32
    %127 = vector.broadcast %c2_i32_71 : i32 to vector<2x8x8x8xi32>
    %128 = arith.muli %127, %121 : vector<2x8x8x8xi32>
    %129 = arith.addi %126, %128 : vector<2x8x8x8xi32>
    %130 = arith.addi %129, %119 : vector<2x8x8x8xi32>
    %c0_72 = arith.constant 0 : index
    %c0_73 = arith.constant 0 : index
    %c0_74 = arith.constant 0 : index
    %c0_75 = arith.constant 0 : index
    %131 = vector.load %arg10[%c0_72, %c0_73, %c0_74, %c0_75] : memref<2x8x8x8xi32, #tpu.memory_space<vmem>>, vector<2x8x8x8xi32>
    tpu.vector_store %arg10[%c0_72, %c0_73, %c0_74, %c0_75], %130 {strides = array<i32>} : memref<2x8x8x8xi32, #tpu.memory_space<vmem>>, vector<2x8x8x8xi32>,
    return
  }
  func.func @transform_0(%arg0: i32) -> (i32, i32, i32, i32) {
    %c0_i32 = arith.constant 0 : i32
    %c0_i32_0 = arith.constant 0 : i32
    %c0_i32_1 = arith.constant 0 : i32
    %c0_i32_2 = arith.constant 0 : i32
    %c0_i32_3 = arith.constant 0 : i32
    return %c0_i32, %c0_i32_0, %c0_i32_1, %c0_i32_2 : i32, i32, i32, i32
  }
  func.func @transform_1(%arg0: i32) -> (i32, i32) {
    %c0_i32 = arith.constant 0 : i32
    %c0_i32_0 = arith.constant 0 : i32
    %c0_i32_1 = arith.constant 0 : i32
    return %c0_i32, %c0_i32_0 : i32, i32
  }
  func.func @transform_2(%arg0: i32) -> (i32, i32) {
    %c0_i32 = arith.constant 0 : i32
    %c0_i32_0 = arith.constant 0 : i32
    %c0_i32_1 = arith.constant 0 : i32
    return %c0_i32, %c0_i32_0 : i32, i32
  }
  func.func @transform_3(%arg0: i32) -> (i32, i32) {
    %c0_i32 = arith.constant 0 : i32
    %c0_i32_0 = arith.constant 0 : i32
    %c0_i32_1 = arith.constant 0 : i32
    return %c0_i32, %c0_i32_0 : i32, i32
  }
  func.func @transform_4(%arg0: i32) -> (i32, i32) {
    %c0_i32 = arith.constant 0 : i32
    %c0_i32_0 = arith.constant 0 : i32
    %c0_i32_1 = arith.constant 0 : i32
    return %c0_i32, %c0_i32_0 : i32, i32
  }
  func.func @transform_5(%arg0: i32) -> (i32, i32) {
    %c0_i32 = arith.constant 0 : i32
    %c0_i32_0 = arith.constant 0 : i32
    %c0_i32_1 = arith.constant 0 : i32
    return %c0_i32, %c0_i32_0 : i32, i32
  }
  func.func @transform_6(%arg0: i32) -> (i32, i32) {
    %c0_i32 = arith.constant 0 : i32
    %c0_i32_0 = arith.constant 0 : i32
    %c0_i32_1 = arith.constant 0 : i32
    return %c0_i32, %c0_i32_0 : i32, i32
  }
  func.func @transform_7(%arg0: i32) -> (i32, i32, i32, i32) {
    %c0_i32 = arith.constant 0 : i32
    %c0_i32_0 = arith.constant 0 : i32
    %c0_i32_1 = arith.constant 0 : i32
    %c0_i32_2 = arith.constant 0 : i32
    %c0_i32_3 = arith.constant 0 : i32
    return %c0_i32, %c0_i32_0, %c0_i32_1, %c0_i32_2 : i32, i32, i32, i32
  }
  func.func @transform_8(%arg0: i32) -> (i32, i32, i32, i32) {
    %c0_i32 = arith.constant 0 : i32
    %c0_i32_0 = arith.constant 0 : i32
    %c0_i32_1 = arith.constant 0 : i32
    %c0_i32_2 = arith.constant 0 : i32
    %c0_i32_3 = arith.constant 0 : i32
    return %c0_i32, %c0_i32_0, %c0_i32_1, %c0_i32_2 : i32, i32, i32, i32
  }
  func.func @transform_9(%arg0: i32) -> (i32, i32, i32, i32) {
    %c0_i32 = arith.constant 0 : i32
    %c0_i32_0 = arith.constant 0 : i32
    %c0_i32_1 = arith.constant 0 : i32
    %c0_i32_2 = arith.constant 0 : i32
    %c0_i32_3 = arith.constant 0 : i32
    return %c0_i32, %c0_i32_0, %c0_i32_1, %c0_i32_2 : i32, i32, i32, i32
  }
}

</mosaic_0001>

<bundles_post_ra>
// kernel: tpu_custom_call.1
= control target key start
LH: loop header
LB: loop body
LE: loop exit
PB: predicated region body
PF: predicated region fallthrough
CT: control target
= control target key end

     0   :  { %15 = vsyncpa [#allocation4], 0  ;;  %vm396_vm0 = vsmask.f32 7424  ;;  %s7858_s14 = smov 4   ;;  %s15928_s0 = inlined_call_operand.vmem [shape: bf16[2,18,18,4], index: 0, kind: input, shape index: {}]   ;;  %s15929_s1 = inlined_call_operand.vmem [shape: bf16[36,8], index: 1, kind: input, shape index: {}]   ;;  %s15930_s2 = inlined_call_operand.vmem [shape: f32[1,8], index: 2, kind: input, shape index: {}]   ;;  %s15931_s3 = inlined_call_operand.vmem [shape: f32[1,8], index: 3, kind: input, shape index: {}]   ;;  %s15932_s4 = inlined_call_operand.vmem [shape: bf16[72,8], index: 4, kind: input, shape index: {}]   ;;  %s15933_s5 = inlined_call_operand.vmem [shape: f32[1,8], index: 5, kind: input, shape index: {}]   ;;  %s15934_s6 = inlined_call_operand.vmem [shape: f32[1,8], index: 6, kind: input, shape index: {}]   ;;  %s15935_s7 = inlined_call_operand.vmem [shape: f32[2,16,16,8], index: 7, kind: output, shape index: {0}]   ;;  %s15936_s8 = inlined_call_operand.hbm [shape: f32[2,8,8,8], index: 8, kind: output, shape index: {1}]   ;;  %s15937_s9 = inlined_call_operand.hbm [shape: s32[2,8,8,8], index: 9, kind: output, shape index: {2}]  }
   0x1   :  { %v7927_v0 = vld [vmem:[%s15928_s0 + $0x30] sm:$0xff]  ;;  %v46_v1 = vld [vmem:[%s15928_s0 + $0x38] sm:$0x1]  ;;  %v40_v4 = vld [vmem:[%s15928_s0 + $0x20] sm:$0x1] }
   0x2   :  { %v336_v2 = vunpack.c.l.b16 %v46_v1  ;;  %v7935_v3 = vld [vmem:[%s15928_s0 + $0x18] sm:$0xff]  ;;  %v7943_v5 = vld [vmem:[%s15928_s0] sm:$0xff]  ;;  %v446_v6 = vshrl.u32 %v7927_v0, 16  ;;  %v448_v7 = vshll.u32 %v7927_v0, 16  ;;  %v334_v8 = vunpack.c.l.b16 %v40_v4  ;;  %v34_v9 = vld [vmem:[%s15928_s0 + $0x8] sm:$0x1] }
   0x3   :  { %v422_v11 = vshrl.u32 %v7935_v3, 16  ;;  %v424_v12 = vshll.u32 %v7935_v3, 16  ;;  %v332_v13 = vunpack.c.l.b16 %v34_v9  ;;  %v49_v14 = vld [vmem:[%s15928_s0 + $0x44] sm:$0x1]  ;;  %v398_v17 = vshrl.u32 %v7943_v5, 16  ;;  %v7964_v19 = vld [vmem:[%s15928_s0 + $0x3c] sm:$0xff] }
   0x4   :  { %v7950_v10 = vpack.c.b16 %v336_v2, %v336_v2  ;;  %v450_v15 = vrot.slane %v448_v7, 1  ;;  %v7957_v16 = vpack.c.b16 %v334_v8, %v334_v8  ;;  %v400_v18 = vshll.u32 %v7943_v5, 16  ;;  %v43_v24 = vld [vmem:[%s15928_s0 + $0x2c] sm:$0x1]  ;;  %v7977_v29 = vld [vmem:[%s15928_s0 + $0x24] sm:$0xff]  ;;  %v8022_v58 = vld [vmem:[%s15928_s0 + $0x54] sm:$0xff] }
   0x5   :  { %v426_v21 = vrot.slane %v424_v12, 1  ;;  %v7967_v22 = vpack.c.b16 %v332_v13, %v332_v13  ;;  %v337_v23 = vunpack.c.l.b16 %v49_v14  ;;  %v458_v28 = vshrl.u32 %v7964_v19, 16  ;;  %v7986_v38 = vld [vmem:[%s15928_s0 + $0xc] sm:$0xff]  ;;  %v37_v39 = vld [vmem:[%s15928_s0 + $0x14] sm:$0x1]  ;;  %v7999_v44 = vld [vmem:[%s15928_s0 + $0x60] sm:$0xff] }
   0x6   :  { %v453_v20 = vshll.u32 %v7950_v10, 16  ;;  %v451_v25 = vor.u32 %v450_v15, %v446_v6  ;;  %v429_v26 = vshll.u32 %v7957_v16, 16  ;;  %v402_v27 = vrot.slane %v400_v18, 1  ;;  %v58_v49 = vld [vmem:[%s15928_s0 + $0x68] sm:$0x1] }
   0x7   :  { %v427_v31 = vor.u32 %v426_v21, %v422_v11  ;;  %v405_v32 = vshll.u32 %v7967_v22, 16  ;;  %v7980_v33 = vpack.c.b16 %v337_v23, %v337_v23  ;;  %v460_v36 = vshll.u32 %v7964_v19, 16  ;;  %v55_v59 = vld [vmem:[%s15928_s0 + $0x5c] sm:$0x1]  ;;  %v8037_v7 = vld [vmem:[%s15928_s0 + $0x48] sm:$0xff] }
   0x8   :  { %v455_v30 = vrot.slane %v453_v20, 1  ;;  %v431_v34 = vrot.slane %v429_v26, 1  ;;  %v403_v35 = vor.u32 %v402_v27, %v398_v17  ;;  %v335_v37 = vunpack.c.l.b16 %v43_v24  ;;  %v52_v13 = vld [vmem:[%s15928_s0 + $0x50] sm:$0x1] }
   0x9   :  { %v407_v41 = vrot.slane %v405_v32, 1  ;;  %v465_v42 = vshll.u32 %v7980_v33, 16  ;;  %v434_v43 = vshrl.u32 %v7977_v29, 16  ;;  %v462_v46 = vrot.slane %v460_v36, 1 }
   0xa   :  { %v7992_v40 = vsel %vm396_vm0, %v451_v25, %v455_v30  ;;  %v8004_v45 = vsel %vm396_vm0, %v427_v31, %v431_v34  ;;  %v8006_v47 = vpack.c.b16 %v335_v37, %v335_v37  ;;  %v436_v48 = vshll.u32 %v7977_v29, 16 }
   0xb   :  { %16396 = vst [vmem:[#allocation9_spill] sm:$0xff] %v7992_v40  ;;  %789 = vrot.lane.b32.xlu2 %v7992_v40, %s7858_s14  ;;  %785 = vrot.lane.b32.xlu1 %v8004_v45, %s7858_s14  ;;  %v408_v50 = vsel %vm396_vm0, %v403_v35, %v407_v41  ;;  %v467_v51 = vrot.slane %v465_v42, 1  ;;  %v333_v52 = vunpack.c.l.b16 %v37_v39  ;;  %v410_v53 = vshrl.u32 %v7986_v38, 16 }
   0xc   :  { %16397 = vst [vmem:[#allocation10_spill] sm:$0xff] %v8004_v45  ;;  %781 = vrot.lane.b32.xlu0 %v408_v50, %s7858_s14  ;;  %v463_v54 = vor.u32 %v462_v46, %v458_v28  ;;  %v438_v55 = vrot.slane %v436_v48, 1  ;;  %v441_v56 = vshll.u32 %v8006_v47, 16  ;;  %v412_v57 = vshll.u32 %v7986_v38, 16 }
   0xd   :  { %v8027_v60 = vpack.c.b16 %v333_v52, %v333_v52  ;;  %v340_v61 = vunpack.c.l.b16 %v58_v49  ;;  %v494_v62 = vshrl.u32 %v7999_v44, 16  ;;  %v496_v63 = vshll.u32 %v7999_v44, 16 }
   0xe   :  { %v8032_v1 = vsel %vm396_vm0, %v463_v54, %v467_v51  ;;  %v439_v2 = vor.u32 %v438_v55, %v434_v43  ;;  %v443_v4 = vrot.slane %v441_v56, 1  ;;  %v414_v6 = vrot.slane %v412_v57, 1 }
   0xf   :  { %16398 = vst [vmem:[#allocation11_spill] sm:$0xff] %v8032_v1  ;;  %v417_v8 = vshll.u32 %v8027_v60, 16  ;;  %v8040_v9 = vpack.c.b16 %v340_v61, %v340_v61  ;;  %v498_v11 = vrot.slane %v496_v63, 1  ;;  %v339_v12 = vunpack.c.l.b16 %v55_v59 }
  0x10   :  { %16 = vsyncpa [#allocation6], 0  ;;  %v8046_v14 = vsel %vm396_vm0, %v439_v2, %v443_v4  ;;  %v415_v15 = vor.u32 %v414_v6, %v410_v53  ;;  %v482_v17 = vshrl.u32 %v8022_v58, 16  ;;  %v484_v18 = vshll.u32 %v8022_v58, 16  ;;  %v67_v20 = vld [vmem:[%s15928_s0 + $0x8c] sm:$0x1] }
  0x11   :  { %16399 = vst [vmem:[#allocation12_spill] sm:$0xff] %v8046_v14  ;;  %v419_v21 = vrot.slane %v417_v8, 1  ;;  %v499_v23 = vor.u32 %v498_v11, %v494_v62  ;;  %v501_v24 = vshll.u32 %v8040_v9, 16  ;;  %v8054_v25 = vpack.c.b16 %v339_v12, %v339_v12  ;;  %v8059_v26 = vld [vmem:[%s15928_s0 + $0x84] sm:$0xff]  ;;  %v8074_v37 = vld [vmem:[%s15928_s0 + $0x78] sm:$0xff]  ;;  %v8090_v51 = vld [vmem:[%s15928_s0 + $0x6c] sm:$0xff] }
  0x12   :  { %v486_v27 = vrot.slane %v484_v18, 1  ;;  %v338_v28 = vunpack.c.l.b16 %v52_v13  ;;  %v470_v30 = vshrl.u32 %v8037_v7, 16  ;;  %v472_v31 = vshll.u32 %v8037_v7, 16  ;;  %v64_v39 = vld [vmem:[%s15928_s0 + $0x80] sm:$0x1]  ;;  %v8113_v11 = vld [vmem:[%s15928_s0 + $0xa8] sm:$0xff] }
  0x13   :  { %791 = vrot.lane.b32.xlu2 %v8032_v1, %s7858_s14  ;;  %787 = vrot.lane.b32.xlu1 %v8046_v14, %s7858_s14  ;;  %v8068_v32 = vsel %vm396_vm0, %v415_v15, %v419_v21  ;;  %v503_v34 = vrot.slane %v501_v24, 1  ;;  %v489_v35 = vshll.u32 %v8054_v25, 16  ;;  %v343_v36 = vunpack.c.l.b16 %v67_v20  ;;  %v61_v52 = vld [vmem:[%s15928_s0 + $0x74] sm:$0x1]  ;;  %v76_v63 = vld [vmem:[%s15928_s0 + $0xb0] sm:$0x1] }
  0x14   :  { %16400 = vst [vmem:[#allocation13_spill] sm:$0xff] %v8068_v32  ;;  %783 = vrot.lane.b32.xlu0 %v8068_v32, %s7858_s14  ;;  %v487_v41 = vor.u32 %v486_v27, %v482_v17  ;;  %v8081_v42 = vpack.c.b16 %v338_v28, %v338_v28  ;;  %v474_v43 = vrot.slane %v472_v31, 1  ;;  %v530_v49 = vshrl.u32 %v8059_v26, 16  ;;  %v8120_v17 = vld [vmem:[%s15928_s0 + $0x9c] sm:$0xff]  ;;  %v73_v24 = vld [vmem:[%s15928_s0 + $0xa4] sm:$0x1] }
  0x15   :  { %v491_v46 = vrot.slane %v489_v35, 1  ;;  %v8083_v48 = vpack.c.b16 %v343_v36, %v343_v36  ;;  %v532_v50 = vshll.u32 %v8059_v26, 16  ;;  %v8096_v53 = vsel %vm396_vm0, %v499_v23, %v503_v34  ;;  %v8242_v40 = vld [vmem:[%s15928_s0 + $0xf0] sm:$0xff]  ;;  %s7859_s17 = smov 8   ;;  %s7860_s19 = smov 12  }
  0x16   :  { %16401 = vst [vmem:[#allocation14_spill] sm:$0xff] %v8096_v53  ;;  %v475_v54 = vor.u32 %v474_v43, %v470_v30  ;;  %v477_v55 = vshll.u32 %v8081_v42, 16  ;;  %v342_v56 = vunpack.c.l.b16 %v64_v39  ;;  %v518_v61 = vshrl.u32 %v8074_v37, 16  ;;  %v70_v43 = vld [vmem:[%s15928_s0 + $0x98] sm:$0x1]  ;;  %v8268_v45 = vld [vmem:[%s15928_s0 + $0x12c] sm:$0xff] }
  0x17   :  { %v534_v57 = vrot.slane %v532_v50, 1  ;;  %v537_v59 = vshll.u32 %v8083_v48, 16  ;;  %v520_v62 = vshll.u32 %v8074_v37, 16  ;;  %v8106_v2 = vsel %vm396_vm0, %v487_v41, %v491_v46  ;;  %v8144_v41 = vld [vmem:[%s15928_s0 + $0x90] sm:$0xff]  ;;  %16416 = vst [vmem:[#allocation29_spill] sm:$0xff] %v8268_v45  ;;  %s7861_s30 = smov 16  }
  0x18   :  { %16402 = vst [vmem:[#allocation15_spill] sm:$0xff] %v8106_v2  ;;  %v479_v4 = vrot.slane %v477_v55, 1  ;;  %v8108_v6 = vpack.c.b16 %v342_v56, %v342_v56  ;;  %v341_v8 = vunpack.c.l.b16 %v61_v52  ;;  %v506_v13 = vshrl.u32 %v8090_v51, 16  ;;  %s7862_s15 = smov 20   ;;  %s7863_s16 = smov 32  }
  0x19   :  { %v522_v12 = vrot.slane %v520_v62, 1  ;;  %v508_v15 = vshll.u32 %v8090_v51, 16  ;;  %v346_v23 = vunpack.c.l.b16 %v76_v63  ;;  %v535_v27 = vor.u32 %v534_v57, %v530_v49  ;;  %s7865_s18 = smov 24   ;;  %s7869_s27 = smov 40  }
  0x1a   :  { %v8125_v18 = vsel %vm396_vm0, %v475_v54, %v479_v4  ;;  %v525_v20 = vshll.u32 %v8108_v6, 16  ;;  %v8128_v21 = vpack.c.b16 %v341_v8, %v341_v8  ;;  %v539_v28 = vrot.slane %v537_v59, 1  ;;  %v8154_v54 = vld [vmem:[%s15928_s0 + $0xe4] sm:$0xff]  ;;  %s7870_s28 = smov 64   ;;  %s7164_s12 = sshll.u32 %s15936_s8, 4  ;;  %s7165_s12 = int_to_ptr.hbm [resolvable:$true] %s7164_s12 }
  0x1b   :  { %797 = vrot.lane.b32.xlu2 %v8096_v53, %s7858_s14  ;;  %16403 = vst [vmem:[#allocation16_spill] sm:$0xff] %v8125_v18  ;;  %795 = vrot.lane.b32.xlu1 %v8106_v2, %s7858_s14  ;;  %v523_v30 = vor.u32 %v522_v12, %v518_v61  ;;  %v510_v31 = vrot.slane %v508_v15, 1  ;;  %v8138_v36 = vpack.c.b16 %v346_v23, %v346_v23  ;;  %v568_v39 = vshll.u32 %v8113_v11, 16  ;;  %v91_v61 = vld [vmem:[%s15928_s0 + $0xec] sm:$0x1]  ;;  %v8177_v23 = vld [vmem:[%s15928_s0 + $0xd8] sm:$0xff] }
  0x1c   :  { %793 = vrot.lane.b32.xlu0 %v8125_v18, %s7858_s14  ;;  %v527_v34 = vrot.slane %v525_v20, 1  ;;  %v513_v35 = vshll.u32 %v8128_v21, 16  ;;  %v566_v49 = vshrl.u32 %v8113_v11, 16  ;;  %v345_v50 = vunpack.c.l.b16 %v73_v24  ;;  %16407 = vst [vmem:[#allocation20_spill] sm:$0xff] %v8177_v23  ;;  %v88_v24 = vld [vmem:[%s15928_s0 + $0xe0] sm:$0x1] }
  0x1d   :  { %v511_v46 = vor.u32 %v510_v31, %v506_v13  ;;  %v556_v52 = vshll.u32 %v8120_v17, 16  ;;  %v570_v56 = vrot.slane %v568_v39, 1  ;;  %v573_v57 = vshll.u32 %v8138_v36, 16  ;;  %s7872_s8 = smov 128   ;;  %s7177_s21 = sshll.u32 %s15937_s9, 4  ;;  %s7178_s21 = int_to_ptr.hbm [resolvable:$true] %s7177_s21 }
  0x1e   :  { %v515_v55 = vrot.slane %v513_v35, 1  ;;  %v554_v59 = vshrl.u32 %v8120_v17, 16  ;;  %v8162_v62 = vsel %vm396_vm0, %v535_v27, %v539_v28  ;;  %v8164_v63 = vpack.c.b16 %v345_v50, %v345_v50 }
  0x1f   :  { %16404 = vst [vmem:[#allocation17_spill] sm:$0xff] %v8162_v62  ;;  %v558_v4 = vrot.slane %v556_v52, 1  ;;  %v344_v8 = vunpack.c.l.b16 %v70_v43  ;;  %v8167_v12 = vsel %vm396_vm0, %v523_v30, %v527_v34  ;;  %v542_v15 = vshrl.u32 %v8144_v41, 16 }
  0x20   :  { %16405 = vst [vmem:[#allocation18_spill] sm:$0xff] %v8167_v12  ;;  %v8170_v13 = vsel %vm396_vm0, %v511_v46, %v515_v55  ;;  %v544_v20 = vshll.u32 %v8144_v41, 16  ;;  %v571_v27 = vor.u32 %v570_v56, %v566_v49  ;;  %v561_v28 = vshll.u32 %v8164_v63, 16  ;;  %v8196_v55 = vld [vmem:[%s15928_s0 + $0xb4] sm:$0xff]  ;;  %v79_v56 = vld [vmem:[%s15928_s0 + $0xbc] sm:$0x1] }
  0x21   :  { %16406 = vst [vmem:[#allocation19_spill] sm:$0xff] %v8170_v13  ;;  %v8183_v30 = vpack.c.b16 %v344_v8, %v344_v8  ;;  %v349_v31 = vunpack.c.l.b16 %v91_v61  ;;  %v575_v34 = vrot.slane %v573_v57, 1  ;;  %v559_v35 = vor.u32 %v558_v4, %v554_v59 }
  0x22   :  { %v546_v39 = vrot.slane %v544_v20, 1  ;;  %v604_v43 = vshll.u32 %v8154_v54, 16  ;;  %v563_v46 = vrot.slane %v561_v28, 1  ;;  %v348_v52 = vunpack.c.l.b16 %v88_v24  ;;  %v100_v24 = vld [vmem:[%s15928_s0 + $0x110] sm:$0x1] }
  0x23   :  { %803 = vrot.lane.b32.xlu2 %v8162_v62, %s7858_s14  ;;  %801 = vrot.lane.b32.xlu1 %v8167_v12, %s7858_s14  ;;  %v549_v50 = vshll.u32 %v8183_v30, 16  ;;  %v8191_v49 = vpack.c.b16 %v349_v31, %v349_v31  ;;  %v602_v57 = vshrl.u32 %v8154_v54, 16  ;;  %v592_v59 = vshll.u32 %v8177_v23, 16  ;;  %v8214_v12 = vld [vmem:[%s15928_s0 + $0x108] sm:$0xff] }
  0x24   :  { %799 = vrot.lane.b32.xlu0 %v8170_v13, %s7858_s14  ;;  %v547_v61 = vor.u32 %v546_v39, %v542_v15  ;;  %v606_v8 = vrot.slane %v604_v43, 1  ;;  %v8205_v20 = vpack.c.b16 %v348_v52, %v348_v52  ;;  %v347_v31 = vunpack.c.l.b16 %v79_v56  ;;  %16409 = vst [vmem:[#allocation22_spill] sm:$0xff] %v8214_v12  ;;  %v97_v52 = vld [vmem:[%s15928_s0 + $0x104] sm:$0x1] }
  0x25   :  { %v551_v4 = vrot.slane %v549_v50, 1  ;;  %v609_v28 = vshll.u32 %v8191_v49, 16  ;;  %v8217_v62 = vsel %vm396_vm0, %v571_v27, %v575_v34  ;;  %v8220_v15 = vsel %vm396_vm0, %v559_v35, %v563_v46  ;;  %v8227_v50 = vld [vmem:[%s15928_s0 + $0xfc] sm:$0xff] }
  0x26   :  { %16408 = vst [vmem:[#allocation21_spill] sm:$0xff] %v8205_v20  ;;  %v590_v39 = vshrl.u32 %v8177_v23, 16  ;;  %v580_v43 = vshll.u32 %v8196_v55, 16  ;;  %v594_v56 = vrot.slane %v592_v59, 1  ;;  %v597_v27 = vshll.u32 %v8205_v20, 16 }
  0x27   :  { %16410 = vst [vmem:[#allocation23_spill] sm:$0xff] %v8217_v62  ;;  %v8233_v34 = vpack.c.b16 %v347_v31, %v347_v31  ;;  %v352_v35 = vunpack.c.l.b16 %v100_v24  ;;  %v8236_v46 = vsel %vm396_vm0, %v547_v61, %v551_v4  ;;  %v607_v2 = vor.u32 %v606_v8, %v602_v57  ;;  %v94_v59 = vld [vmem:[%s15928_s0 + $0xf8] sm:$0x1] }
  0x28   :  { %16411 = vst [vmem:[#allocation24_spill] sm:$0xff] %v8220_v15  ;;  %v578_v53 = vshrl.u32 %v8196_v55, 16  ;;  %v582_v13 = vrot.slane %v580_v43, 1  ;;  %v611_v24 = vrot.slane %v609_v28, 1  ;;  %v640_v57 = vshll.u32 %v8214_v12, 16 }
  0x29   :  { %16412 = vst [vmem:[#allocation25_spill] sm:$0xff] %v8227_v50  ;;  %v585_v61 = vshll.u32 %v8233_v34, 16  ;;  %v351_v4 = vunpack.c.l.b16 %v97_v52  ;;  %v8253_v8 = vpack.c.b16 %v352_v35, %v352_v35  ;;  %v628_v31 = vshll.u32 %v8227_v50, 16 }
  0x2a   :  { %16413 = vst [vmem:[#allocation26_spill] sm:$0xff] %v8236_v46  ;;  %v595_v43 = vor.u32 %v594_v56, %v590_v39  ;;  %v599_v1 = vrot.slane %v597_v27, 1  ;;  %v350_v28 = vunpack.c.l.b16 %v94_v59  ;;  %v583_v52 = vor.u32 %v582_v13, %v578_v53  ;;  %v106_v53 = vld [vmem:[%s15928_s0 + $0x128] sm:$0x1] }
  0x2b   :  { %809 = vrot.lane.b32.xlu2 %v8217_v62, %s7858_s14  ;;  %807 = vrot.lane.b32.xlu1 %v8220_v15, %s7858_s14  ;;  %16414 = vst [vmem:[#allocation27_spill] sm:$0xff] %v8253_v8  ;;  %v8258_v18 = vpack.c.b16 %v351_v4, %v351_v4  ;;  %v109_v62 = vld [vmem:[%s15928_s0 + $0x134] sm:$0x1]  ;;  %v587_v32 = vrot.slane %v585_v61, 1  ;;  %v638_v15 = vshrl.u32 %v8214_v12, 16  ;;  %v616_v35 = vshll.u32 %v8242_v40, 16 }
  0x2c   :  { %805 = vrot.lane.b32.xlu0 %v8236_v46, %s7858_s14  ;;  %v8271_v39 = vsel %vm396_vm0, %v607_v2, %v611_v24  ;;  %v642_v56 = vrot.slane %v640_v57, 1  ;;  %v626_v27 = vshrl.u32 %v8227_v50, 16  ;;  %v8274_v59 = vpack.c.b16 %v350_v28, %v350_v28  ;;  %v8286_v57 = vld [vmem:[%s15928_s0 + $0x120] sm:$0xff]  ;;  %v103_v28 = vld [vmem:[%s15928_s0 + $0x11c] sm:$0x1] }
  0x2d   :  { %16415 = vst [vmem:[#allocation28_spill] sm:$0xff] %v8258_v18  ;;  %v645_v13 = vshll.u32 %v8253_v8, 16  ;;  %v630_v61 = vrot.slane %v628_v31, 1  ;;  %v633_v4 = vshll.u32 %v8258_v18, 16  ;;  %v355_v46 = vunpack.c.l.b16 %v109_v62 }
  0x2e   :  { %16417 = vst [vmem:[#allocation30_spill] sm:$0xff] %v8271_v39  ;;  %v600_v14 = vsel %vm396_vm0, %v595_v43, %v599_v1  ;;  %v614_v2 = vshrl.u32 %v8242_v40, 16  ;;  %v618_v24 = vrot.slane %v616_v35, 1  ;;  %v8292_v50 = vsel %vm396_vm0, %v583_v52, %v587_v32  ;;  %v8299_v43 = vld [vmem:[%s15928_s0 + $0x114] sm:$0xff] }
  0x2f   :  { %16418 = vst [vmem:[#allocation31_spill] sm:$0xff] %v8286_v57  ;;  %v621_v31 = vshll.u32 %v8274_v59, 16  ;;  %v676_v62 = vshll.u32 %v8268_v45, 16  ;;  %v354_v1 = vunpack.c.l.b16 %v106_v53  ;;  %v643_v35 = vor.u32 %v642_v56, %v638_v15  ;;  %v118_v53 = vld [vmem:[%s15928_s0 + $0x158] sm:$0x1] }
  0x30   :  { %16419 = vst [vmem:[#allocation32_spill] sm:$0xff] %v8292_v50  ;;  %v8303_v18 = vpack.c.b16 %v355_v46, %v355_v46  ;;  %v647_v32 = vrot.slane %v645_v13, 1  ;;  %v631_v52 = vor.u32 %v630_v61, %v626_v27  ;;  %v635_v8 = vrot.slane %v633_v4, 1  ;;  %v115_v13 = vld [vmem:[%s15928_s0 + $0x14c] sm:$0x1]  ;;  %v8325_v4 = vld [vmem:[%s15928_s0 + $0x150] sm:$0xff] }
  0x31   :  { %v353_v12 = vunpack.c.l.b16 %v103_v28  ;;  %v619_v20 = vor.u32 %v618_v24, %v614_v2  ;;  %v674_v23 = vshrl.u32 %v8268_v45, 16  ;;  %v664_v15 = vshll.u32 %v8286_v57, 16  ;;  %16423 = vst [vmem:[#allocation36_spill] sm:$0xff] %v8325_v4 }
  0x32   :  { %16420 = vst [vmem:[#allocation33_spill] sm:$0xff] %v8303_v18  ;;  %v623_v46 = vrot.slane %v621_v31, 1  ;;  %v652_v27 = vshll.u32 %v8299_v43, 16  ;;  %v681_v61 = vshll.u32 %v8303_v18, 16  ;;  %v358_v2 = vunpack.c.l.b16 %v118_v53  ;;  %v8337_v31 = vld [vmem:[%s15928_s0 + $0x144] sm:$0xff]  ;;  %v8351_v18 = vld [vmem:[%s15928_s0 + $0x138] sm:$0xff] }
  0x33   :  { %815 = vrot.lane.b32.xlu2 %v8271_v39, %s7858_s14  ;;  %813 = vrot.lane.b32.xlu1 %v600_v14, %s7858_s14  ;;  %v8312_v39 = vpack.c.b16 %v354_v1, %v354_v1  ;;  %v678_v14 = vrot.slane %v676_v62, 1  ;;  %v8315_v56 = vpack.c.b16 %v353_v12, %v353_v12  ;;  %v8328_v24 = vsel %vm396_vm0, %v643_v35, %v647_v32  ;;  %v112_v62 = vld [vmem:[%s15928_s0 + $0x140] sm:$0x1] }
  0x34   :  { %811 = vrot.lane.b32.xlu0 %v8292_v50, %s7858_s14  ;;  %16424 = vst [vmem:[#allocation37_spill] sm:$0xff] %v8328_v24  ;;  %v8331_v12 = vsel %vm396_vm0, %v631_v52, %v635_v8  ;;  %v662_v28 = vshrl.u32 %v8286_v57, 16  ;;  %v666_v1 = vrot.slane %v664_v15, 1  ;;  %v650_v35 = vshrl.u32 %v8299_v43, 16 }
  0x35   :  { %16421 = vst [vmem:[#allocation34_spill] sm:$0xff] %v8312_v39  ;;  %v669_v53 = vshll.u32 %v8312_v39, 16  ;;  %v357_v32 = vunpack.c.l.b16 %v115_v13  ;;  %v8345_v8 = vsel %vm396_vm0, %v619_v20, %v623_v46  ;;  %v679_v52 = vor.u32 %v678_v14, %v674_v23 }
  0x36   :  { %16422 = vst [vmem:[#allocation35_spill] sm:$0xff] %v8315_v56  ;;  %v654_v50 = vrot.slane %v652_v27, 1  ;;  %v657_v57 = vshll.u32 %v8315_v56, 16  ;;  %v683_v15 = vrot.slane %v681_v61, 1  ;;  %v8355_v39 = vpack.c.b16 %v358_v2, %v358_v2  ;;  %v127_v27 = vld [vmem:[%s15928_s0 + $0x17c] sm:$0x1] }
  0x37   :  { %16425 = vst [vmem:[#allocation38_spill] sm:$0xff] %v8331_v12  ;;  %v712_v13 = vshll.u32 %v8325_v4, 16  ;;  %v356_v45 = vunpack.c.l.b16 %v112_v62  ;;  %v8360_v23 = vpack.c.b16 %v357_v32, %v357_v32  ;;  %v700_v20 = vshll.u32 %v8337_v31, 16  ;;  %v124_v32 = vld [vmem:[%s15928_s0 + $0x170] sm:$0x1] }
  0x38   :  { %16426 = vst [vmem:[#allocation39_spill] sm:$0xff] %v8337_v31  ;;  %v667_v46 = vor.u32 %v666_v1, %v662_v28  ;;  %v671_v14 = vrot.slane %v669_v53, 1  ;;  %v655_v61 = vor.u32 %v654_v50, %v650_v35  ;;  %v659_v2 = vrot.slane %v657_v57, 1  ;;  %v121_v50 = vld [vmem:[%s15928_s0 + $0x164] sm:$0x1] }
  0x39   :  { %16427 = vst [vmem:[#allocation40_spill] sm:$0xff] %v8345_v8  ;;  %v688_v62 = vshll.u32 %v8351_v18, 16  ;;  %v710_v28 = vshrl.u32 %v8325_v4, 16  ;;  %v714_v1 = vrot.slane %v712_v13, 1  ;;  %v717_v53 = vshll.u32 %v8355_v39, 16 }
  0x3a   :  { %16428 = vst [vmem:[#allocation41_spill] sm:$0xff] %v8351_v18  ;;  %v702_v57 = vrot.slane %v700_v20, 1  ;;  %v705_v35 = vshll.u32 %v8360_v23, 16  ;;  %v686_v13 = vshrl.u32 %v8351_v18, 16  ;;  %v8399_v20 = vsel %vm396_vm0, %v655_v61, %v659_v2 }
  0x3b   :  { %821 = vrot.lane.b32.xlu2 %v8328_v24, %s7858_s14  ;;  %16429 = vst [vmem:[#allocation42_spill] sm:$0xff] %v8355_v39  ;;  %819 = vrot.lane.b32.xlu1 %v8331_v12, %s7858_s14  ;;  %v8368_v24 = vpack.c.b16 %v356_v45, %v356_v45  ;;  %v8375_v12 = vsel %vm396_vm0, %v679_v52, %v683_v15  ;;  %v698_v45 = vshrl.u32 %v8337_v31, 16  ;;  %v361_v52 = vunpack.c.l.b16 %v127_v27  ;;  %v8396_v39 = vld [vmem:[%s15928_s0 + $0x168] sm:$0xff]  ;;  %v8405_v27 = vld [vmem:[%s15928_s0 + $0x15c] sm:$0xff] }
  0x3c   :  { %16430 = vst [vmem:[#allocation43_spill] sm:$0xff] %v8360_v23  ;;  %817 = vrot.lane.b32.xlu0 %v8345_v8, %s7858_s14  ;;  %v8387_v8 = vld [vmem:[%s15928_s0 + $0x174] sm:$0xff]  ;;  %v8390_v15 = vsel %vm396_vm0, %v667_v46, %v671_v14  ;;  %v360_v31 = vunpack.c.l.b16 %v124_v32  ;;  %v690_v23 = vrot.slane %v688_v62, 1  ;;  %v359_v46 = vunpack.c.l.b16 %v121_v50 }
  0x3d   :  { %16431 = vst [vmem:[#allocation44_spill] sm:$0xff] %v8368_v24  ;;  %v693_v4 = vshll.u32 %v8368_v24, 16  ;;  %v715_v14 = vor.u32 %v714_v1, %v710_v28  ;;  %v719_v18 = vrot.slane %v717_v53, 1  ;;  %v703_v32 = vor.u32 %v702_v57, %v698_v45  ;;  %v133_v53 = vld [vmem:[%s15928_s0 + $0x194] sm:$0x1] }
  0x3e   :  { %16432 = vst [vmem:[#allocation45_spill] sm:$0xff] %v8375_v12  ;;  %v707_v61 = vrot.slane %v705_v35, 1  ;;  %v8411_v2 = vpack.c.b16 %v361_v52, %v361_v52  ;;  %v748_v62 = vshll.u32 %v8387_v8, 16  ;;  %v8416_v24 = vpack.c.b16 %v360_v31, %v360_v31  ;;  %v130_v31 = vld [vmem:[%s15928_s0 + $0x188] sm:$0x1] }
  0x3f   :  { %16433 = vst [vmem:[#allocation46_spill] sm:$0xff] %v8387_v8  ;;  %v736_v50 = vshll.u32 %v8396_v39, 16  ;;  %v691_v56 = vor.u32 %v690_v23, %v686_v13  ;;  %v8419_v28 = vpack.c.b16 %v359_v46, %v359_v46  ;;  %v724_v1 = vshll.u32 %v8405_v27, 16 }
  0x40   :  { %16434 = vst [vmem:[#allocation47_spill] sm:$0xff] %v8390_v15  ;;  %v8426_v45 = vsel %vm396_vm0, %v715_v14, %v719_v18  ;;  %v746_v57 = vshrl.u32 %v8387_v8, 16  ;;  %v8433_v23 = vsel %vm396_vm0, %v703_v32, %v707_v61  ;;  %v753_v35 = vshll.u32 %v8411_v2, 16  ;;  %v8442_v14 = vld [vmem:[%s15928_s0 + $0x18c] sm:$0xff] }
  0x41   :  { %16435 = vst [vmem:[#allocation48_spill] sm:$0xff] %v8396_v39  ;;  %v734_v52 = vshrl.u32 %v8396_v39, 16  ;;  %v738_v13 = vrot.slane %v736_v50, 1  ;;  %v741_v46 = vshll.u32 %v8416_v24, 16  ;;  %v722_v18 = vshrl.u32 %v8405_v27, 16 }
  0x42   :  { %16436 = vst [vmem:[#allocation49_spill] sm:$0xff] %v8399_v20  ;;  %v726_v32 = vrot.slane %v724_v1, 1  ;;  %v729_v61 = vshll.u32 %v8419_v28, 16  ;;  %v362_v50 = vunpack.c.l.b16 %v130_v31  ;;  %v772_v39 = vshll.u32 %v8442_v14, 16 }
  0x43   :  { %827 = vrot.lane.b32.xlu2 %v8375_v12, %s7858_s14  ;;  %825 = vrot.lane.b32.xlu1 %v8390_v15, %s7858_s14  ;;  %16437 = vst [vmem:[#allocation50_spill] sm:$0xff] %v8411_v2  ;;  %v695_v12 = vrot.slane %v693_v4, 1  ;;  %v750_v4 = vrot.slane %v748_v62, 1  ;;  %v363_v15 = vunpack.c.l.b16 %v133_v53  ;;  %v8451_v62 = vld [vmem:[%s15928_s0 + $0x180] sm:$0xff]  ;;  %v755_v53 = vrot.slane %v753_v35, 1 }
  0x44   :  { %823 = vrot.lane.b32.xlu0 %v8399_v20, %s7858_s14  ;;  %16438 = vst [vmem:[#allocation51_spill] sm:$0xff] %v8416_v24  ;;  %v727_v2 = vor.u32 %v726_v32, %v722_v18  ;;  %v731_v8 = vrot.slane %v729_v61, 1  ;;  %v8462_v31 = vpack.c.b16 %v362_v50, %v362_v50  ;;  %v774_v35 = vrot.slane %v772_v39, 1 }
  0x45   :  { %16439 = vst [vmem:[#allocation52_spill] sm:$0xff] %v8419_v28  ;;  %v8445_v20 = vsel %vm396_vm0, %v691_v56, %v695_v12  ;;  %v751_v24 = vor.u32 %v750_v4, %v746_v57  ;;  %v739_v56 = vor.u32 %v738_v13, %v734_v52  ;;  %v743_v12 = vrot.slane %v741_v46, 1 }
  0x46   :  { %16440 = vst [vmem:[#allocation53_spill] sm:$0xff] %v8426_v45  ;;  %v8459_v1 = vpack.c.b16 %v363_v15, %v363_v15  ;;  %v770_v4 = vshrl.u32 %v8442_v14, 16  ;;  %v8474_v52 = vsel %vm396_vm0, %v727_v2, %v731_v8  ;;  %v758_v13 = vshrl.u32 %v8451_v62, 16 }
  0x47   :  { %v8466_v28 = vsel %vm396_vm0, %v751_v24, %v755_v53  ;;  %v8469_v57 = vsel %vm396_vm0, %v739_v56, %v743_v12  ;;  %16443 = vst [vmem:[#allocation56_spill] sm:$0xff] %v8474_v52  ;;  %v765_v18 = vshll.u32 %v8462_v31, 16  ;;  %v846_v24 = vrot.slane %v7943_v5, 1 }
  0x48   :  { %16441 = vst [vmem:[#allocation54_spill] sm:$0xff] %v8466_v28  ;;  %v777_v15 = vshll.u32 %v8459_v1, 16  ;;  %v847_v39 = vrot.slane %v7967_v22, 1  ;;  %v775_v8 = vor.u32 %v774_v35, %v770_v4  ;;  %vm845_vm1 = vcmask 1046528  }
  0x49   :  { %16442 = vst [vmem:[#allocation55_spill] sm:$0xff] %v8469_v57  ;;  %v855_v5 = vrot.slane %v7977_v29, 1  ;;  %v856_v22 = vrot.slane %v8006_v47, 1  ;;  %v852_v56 = vrot.slane %v7935_v3, 1  ;;  %v853_v12 = vrot.slane %v7957_v16, 1 }
  0x4a   :  { %v779_v2 = vrot.slane %v777_v15, 1  ;;  %v848_v61 = vsel %vm845_vm1, %v846_v24, %v847_v39  ;;  %v849_v4 = vrot.slane %v7986_v38, 1  ;;  %v850_v35 = vrot.slane %v8027_v60, 1 }
  0x4b   :  { %833 = vrot.lane.b32.xlu2 %v8426_v45, %s7858_s14  ;;  %831 = vrot.lane.b32.xlu1 %v8433_v23, %s7858_s14  ;;  %v760_v45 = vshll.u32 %v8451_v62, 16  ;;  %v8505_v15 = vsel %vm845_vm1, %v855_v5, %v856_v22  ;;  %v864_v3 = vrot.slane %v8037_v7, 1  ;;  %v865_v16 = vrot.slane %v8081_v42, 1 }
  0x4c   :  { %829 = vrot.lane.b32.xlu0 %v8445_v20, %s7858_s14  ;;  %v8488_v50 = vsel %vm396_vm0, %v775_v8, %v779_v2  ;;  %v8511_v29 = vsel %vm845_vm1, %v849_v4, %v850_v35  ;;  %v861_v60 = vrot.slane %v7964_v19, 1  ;;  %v859_v24 = vrot.slane %v7950_v10, 1 }
  0x4d   :  { %v762_v46 = vrot.slane %v760_v45, 1  ;;  %v767_v45 = vrot.slane %v765_v18, 1  ;;  %16444 = vst [vmem:[#allocation57_spill] sm:$0xff] %v8488_v50  ;;  %v858_v18 = vrot.slane %v7927_v0, 1  ;;  %v8528_v39 = vsel %vm845_vm1, %v864_v3, %v865_v16 }
  0x4e   :  { %v873_v19 = vrot.slane %v8090_v51, 1  ;;  %v874_v0 = vrot.slane %v8128_v21, 1  ;;  %v871_v2 = vrot.slane %v8040_v9, 1  ;;  %v882_v9 = vrot.slane %v8144_v41, 1 }
  0x4f   :  { %v763_v32 = vor.u32 %v762_v46, %v758_v13  ;;  %v8508_v13 = vsel %vm845_vm1, %v852_v56, %v853_v12  ;;  %v862_v46 = vrot.slane %v7980_v33, 1  ;;  %v8534_v42 = vsel %vm845_vm1, %v858_v18, %v859_v24 }
  0x50   :  { %v870_v33 = vrot.slane %v7999_v44, 1  ;;  %v883_v22 = vrot.slane %v8183_v30, 1  ;;  %v879_v56 = vrot.slane %v8059_v26, 1  ;;  %v880_v12 = vrot.slane %v8083_v48, 1 }
  0x51   :  { %v8491_v53 = vsel %vm396_vm0, %v763_v32, %v767_v45  ;;  %v8531_v8 = vsel %vm845_vm1, %v861_v60, %v862_v46  ;;  %v867_v32 = vrot.slane %v8022_v58, 1  ;;  %v868_v45 = vrot.slane %v8054_v25, 1 }
  0x52   :  { %16445 = vst [vmem:[#allocation58_spill] sm:$0xff] %v8491_v53  ;;  %v8554_v5 = vsel %vm845_vm1, %v870_v33, %v871_v2  ;;  %v876_v4 = vrot.slane %v8074_v37, 1  ;;  %v877_v35 = vrot.slane %v8108_v6, 1  ;;  %v8574_v3 = vsel %vm845_vm1, %v882_v9, %v883_v22 }
  0x53   :  { %839 = vrot.lane.b32.xlu2 %v8466_v28, %s7858_s14  ;;  %837 = vrot.lane.b32.xlu1 %v8469_v57, %s7858_s14  ;;  %v8557_v21 = vsel %vm845_vm1, %v867_v32, %v868_v45  ;;  %v8577_v16 = vsel %vm845_vm1, %v879_v56, %v880_v12  ;;  %v891_v48 = vrot.slane %v8196_v55, 1  ;;  %v892_v60 = vrot.slane %v8233_v34, 1  ;;  %v16454_v12 = vld [vmem:[#allocation20_spill] sm:$0xff] }
  0x54   :  { %835 = vrot.lane.b32.xlu0 %v8474_v52, %s7858_s14  ;;  %v8580_v30 = vsel %vm845_vm1, %v876_v4, %v877_v35  ;;  %v888_v46 = vrot.slane %v8113_v11, 1  ;;  %v889_v18 = vrot.slane %v8138_v36, 1  ;;  %v900_v36 = vrot.slane %v8242_v40, 1  ;;  %v16455_v35 = vld [vmem:[#allocation21_spill] sm:$0xff] }
  0x55   :  { %v8601_v2 = vsel %vm845_vm1, %v891_v48, %v892_v60  ;;  %v897_v9 = vrot.slane %v8154_v54, 1  ;;  %v898_v22 = vrot.slane %v8191_v49, 1  ;;  %v894_v4 = vrot.slane %v16454_v12, 1 }
  0x56   :  { %v8604_v34 = vsel %vm845_vm1, %v888_v46, %v889_v18  ;;  %v895_v48 = vrot.slane %v16455_v35, 1  ;;  %v909_v49 = vrot.slane %v8299_v43, 1  ;;  %vm2087_vm2 = vcmask 1041408  }
  0x57   :  { %vm1482_vm3 = vcmask 31744   ;;  %vm1547_vm4 = vcmask 64512   ;;  %vm1612_vm5 = vcmask 97280   ;;  %vm1742_vm6 = vcmask 162816  }
  0x58   :  { %v896_v18 = vsel %vm845_vm1, %v894_v4, %v895_v48  ;;  %v16463_v4 = vld [vmem:[#allocation25_spill] sm:$0xff]  ;;  %vm1677_vm7 = vcmask 130048   ;;  %vm1872_vm8 = vcmask 228352   ;;  %vm1807_vm9 = vcmask 195584  }
  0x59   :  { %v903_v48 = vrot.slane %v16463_v4, 1  ;;  %vm1937_vm10 = vcmask 261120   ;;  %vm2022_vm11 = vcmask 293888   ;;  %vm2811_vm12 = vcmask 57344  }
  0x5a   :  { %vm2824_vm13 = vsmask.f32 256  ;;  %vm2934_vm15 = vsmask.f32 7938 }
  0x5b   :  { %942 = vrot.lane.b32.xlu2 %v848_v61, %s7859_s17  ;;  %843 = vrot.lane.b32.xlu1 %v8488_v50, %s7858_s14  ;;  %v8551_v61 = vsel %vm845_vm1, %v873_v19, %v874_v0  ;;  %v885_v19 = vrot.slane %v8120_v17, 1  ;;  %v886_v0 = vrot.slane %v8164_v63, 1  ;;  %v901_v63 = vrot.slane %v8274_v59, 1  ;;  %vm9638_vm14 = vmand %vm2811_vm12, %vm2824_vm13 }
  0x5c   :  { %841 = vrot.lane.b32.xlu0 %v8491_v53, %s7858_s14  ;;  %v8631_v59 = vsel %vm845_vm1, %v897_v9, %v898_v22  ;;  %v16461_v9 = vld [vmem:[#allocation27_spill] sm:$0xff]  ;;  %s7864_s14 = smov 28  }
  0x5d   :  { %v8607_v32 = vsel %vm845_vm1, %v885_v19, %v886_v0  ;;  %v8628_v46 = vsel %vm845_vm1, %v900_v36, %v901_v63  ;;  %v16458_v19 = vld [vmem:[#allocation35_spill] sm:$0xff]  ;;  %v16460_v36 = vld [vmem:[#allocation22_spill] sm:$0xff]  ;;  %v907_v22 = vrot.slane %v16461_v9, 1  ;;  %v16469_v9 = vld [vmem:[#allocation41_spill] sm:$0xff] }
  0x5e   :  { %16457 = vst [vmem:[#allocation21_spill] sm:$0xff] %v8628_v46  ;;  %v910_v0 = vrot.slane %v16458_v19, 1  ;;  %v906_v63 = vrot.slane %v16460_v36, 1 }
  0x60   :  { %v8655_v19 = vsel %vm845_vm1, %v906_v63, %v907_v22  ;;  %v16473_v22 = vld [vmem:[#allocation33_spill] sm:$0xff] }
  0x63   :  { %948 = vrot.lane.b32.xlu2 %v8505_v15, %s7859_s17  ;;  %946 = vrot.lane.b32.xlu1 %v8508_v13, %s7859_s17 }
  0x64   :  { %944 = vrot.lane.b32.xlu0 %v8511_v29, %s7859_s17 }
  0x65   :  { %v8521_v47 = vpop.permute.xlu2 %789 }
  0x66   :  { %16446 = vst [vmem:[#allocation59_spill] sm:$0xff] %v8521_v47 }
  0x6b   :  { %954 = vrot.lane.b32.xlu2 %v8528_v39, %s7859_s17  ;;  %952 = vrot.lane.b32.xlu1 %v8531_v8, %s7859_s17 }
  0x6c   :  { %950 = vrot.lane.b32.xlu0 %v8534_v42, %s7859_s17 }
  0x6d   :  { %v8544_v10 = vpop.permute.xlu2 %791 }
  0x6e   :  { %16447 = vst [vmem:[#allocation60_spill] sm:$0xff] %v8544_v10  ;;  %v8652_v10 = vsel %vm845_vm1, %v909_v49, %v910_v0  ;;  %v16472_v0 = vld [vmem:[#allocation29_spill] sm:$0xff] }
  0x6f   :  { %16466 = vst [vmem:[#allocation25_spill] sm:$0xff] %v8652_v10  ;;  %v915_v63 = vrot.slane %v16472_v0, 1 }
  0x73   :  { %960 = vrot.lane.b32.xlu2 %v8551_v61, %s7859_s17  ;;  %958 = vrot.lane.b32.xlu1 %v8554_v5, %s7859_s17 }
  0x74   :  { %956 = vrot.lane.b32.xlu0 %v8557_v21, %s7859_s17 }
  0x75   :  { %v8567_v25 = vpop.permute.xlu2 %797 }
  0x76   :  { %16448 = vst [vmem:[#allocation61_spill] sm:$0xff] %v8567_v25 }
  0x7b   :  { %966 = vrot.lane.b32.xlu2 %v8574_v3, %s7859_s17  ;;  %964 = vrot.lane.b32.xlu1 %v8577_v16, %s7859_s17 }
  0x7c   :  { %962 = vrot.lane.b32.xlu0 %v8580_v30, %s7859_s17 }
  0x7d   :  { %v8590_v6 = vpop.permute.xlu2 %803  ;;  %v8594_v24 = vpop.permute.xlu1 %785 }
  0x7e   :  { %16449 = vst [vmem:[#allocation62_spill] sm:$0xff] %v8590_v6  ;;  %v8598_v33 = vpop.permute.xlu0 %781 }
  0x7f   :  { %16450 = vst [vmem:[#allocation63_spill] sm:$0xff] %v8594_v24 }
  0x80   :  { %16451 = vst [vmem:[#allocation64_spill] sm:$0xff] %v8598_v33 }
  0x83   :  { %972 = vrot.lane.b32.xlu2 %v8601_v2, %s7859_s17  ;;  %970 = vrot.lane.b32.xlu1 %v8604_v34, %s7859_s17 }
  0x84   :  { %968 = vrot.lane.b32.xlu0 %v8607_v32, %s7859_s17 }
  0x85   :  { %v8617_v45 = vpop.permute.xlu2 %809  ;;  %v8621_v56 = vpop.permute.xlu1 %787 }
  0x86   :  { %16452 = vst [vmem:[#allocation65_spill] sm:$0xff] %v8617_v45  ;;  %v8625_v60 = vpop.permute.xlu0 %783  ;;  %v16464_v45 = vld [vmem:[#allocation28_spill] sm:$0xff] }
  0x87   :  { %16453 = vst [vmem:[#allocation66_spill] sm:$0xff] %v8621_v56  ;;  %v904_v6 = vrot.slane %v16464_v45, 1  ;;  %v16470_v45 = vld [vmem:[#allocation44_spill] sm:$0xff]  ;;  %v16476_v56 = vld [vmem:[#allocation34_spill] sm:$0xff] }
  0x88   :  { %16456 = vst [vmem:[#allocation20_spill] sm:$0xff] %v8625_v60  ;;  %v913_v24 = vrot.slane %v16476_v56, 1  ;;  %v16481_v56 = vld [vmem:[#allocation52_spill] sm:$0xff] }
  0x89   :  { %16467 = vst [vmem:[#allocation28_spill] sm:$0xff] %v8655_v19 }
  0x8b   :  { %978 = vrot.lane.b32.xlu2 %v8628_v46, %s7859_s17  ;;  %976 = vrot.lane.b32.xlu1 %v8631_v59, %s7859_s17 }
  0x8c   :  { %974 = vrot.lane.b32.xlu0 %v896_v18, %s7859_s17  ;;  %v8658_v18 = vsel %vm845_vm1, %v903_v48, %v904_v6  ;;  %v916_v6 = vrot.slane %v16473_v22, 1  ;;  %v927_v22 = vrot.slane %v8405_v27, 1 }
  0x8d   :  { %v8641_v12 = vpop.permute.xlu2 %815  ;;  %v8645_v35 = vpop.permute.xlu1 %795  ;;  %16468 = vst [vmem:[#allocation67_spill] sm:$0xff] %v8658_v18 }
  0x8e   :  { %16459 = vst [vmem:[#allocation35_spill] sm:$0xff] %v8641_v12  ;;  %v8649_v25 = vpop.permute.xlu0 %793  ;;  %v919_v12 = vrot.slane %v16470_v45, 1  ;;  %v8682_v45 = vsel %vm845_vm1, %v915_v63, %v916_v6  ;;  %v16484_v6 = vld [vmem:[#allocation42_spill] sm:$0xff] }
  0x8f   :  { %16462 = vst [vmem:[#allocation22_spill] sm:$0xff] %v8645_v35  ;;  %v918_v35 = vrot.slane %v16469_v9, 1 }
  0x90   :  { %16465 = vst [vmem:[#allocation27_spill] sm:$0xff] %v8649_v25  ;;  %v16475_v25 = vld [vmem:[#allocation31_spill] sm:$0xff] }
  0x91   :  { %v912_v47 = vrot.slane %v16475_v25, 1  ;;  %v8679_v33 = vsel %vm845_vm1, %v918_v35, %v919_v12  ;;  %16479 = vst [vmem:[#allocation31_spill] sm:$0xff] %v8682_v45  ;;  %v16483_v35 = vld [vmem:[#allocation36_spill] sm:$0xff] }
  0x92   :  { %16478 = vst [vmem:[#allocation33_spill] sm:$0xff] %v8679_v33  ;;  %v924_v63 = vrot.slane %v16483_v35, 1 }
  0x93   :  { %984 = vrot.lane.b32.xlu2 %v8652_v10, %s7859_s17  ;;  %982 = vrot.lane.b32.xlu1 %v8655_v19, %s7859_s17  ;;  %v16487_v19 = vld [vmem:[#allocation43_spill] sm:$0xff] }
  0x94   :  { %980 = vrot.lane.b32.xlu0 %v8658_v18, %s7859_s17  ;;  %v922_v10 = vrot.slane %v16487_v19, 1  ;;  %v937_v19 = vrot.slane %v8462_v31, 1 }
  0x95   :  { %v8668_v49 = vpop.permute.xlu2 %821  ;;  %v8672_v48 = vpop.permute.xlu1 %801 }
  0x96   :  { %16471 = vst [vmem:[#allocation41_spill] sm:$0xff] %v8668_v49  ;;  %v8676_v60 = vpop.permute.xlu0 %799  ;;  %v8685_v49 = vsel %vm845_vm1, %v912_v47, %v913_v24  ;;  %v925_v47 = vrot.slane %v16484_v6, 1  ;;  %v936_v6 = vrot.slane %v8451_v62, 1 }
  0x97   :  { %16474 = vst [vmem:[#allocation44_spill] sm:$0xff] %v8672_v48  ;;  %v928_v48 = vrot.slane %v16481_v56, 1 }
  0x98   :  { %16477 = vst [vmem:[#allocation29_spill] sm:$0xff] %v8676_v60  ;;  %v16486_v60 = vld [vmem:[#allocation39_spill] sm:$0xff]  ;;  %v8709_v56 = vsel %vm845_vm1, %v924_v63, %v925_v47  ;;  %v16494_v47 = vld [vmem:[#allocation50_spill] sm:$0xff]  ;;  %v8733_v18 = vsel %vm845_vm1, %v936_v6, %v937_v19  ;;  %v939_v6 = vrot.slane %v8442_v14, 1  ;;  %v940_v19 = vrot.slane %v8459_v1, 1 }
  0x99   :  { %16480 = vst [vmem:[#allocation34_spill] sm:$0xff] %v8685_v49  ;;  %v8706_v46 = vsel %vm845_vm1, %v927_v22, %v928_v48  ;;  %v16493_v22 = vld [vmem:[#allocation46_spill] sm:$0xff] }
  0x9a   :  { %16489 = vst [vmem:[#allocation39_spill] sm:$0xff] %v8706_v46  ;;  %v933_v63 = vrot.slane %v16493_v22, 1 }
  0x9b   :  { %990 = vrot.lane.b32.xlu2 %v8679_v33, %s7859_s17  ;;  %988 = vrot.lane.b32.xlu1 %v8682_v45, %s7859_s17  ;;  %v921_v33 = vrot.slane %v16486_v60, 1  ;;  %16490 = vst [vmem:[#allocation43_spill] sm:$0xff] %v8709_v56 }
  0x9c   :  { %986 = vrot.lane.b32.xlu0 %v8685_v49, %s7859_s17 }
  0x9d   :  { %v8695_v12 = vpop.permute.xlu2 %827  ;;  %v8699_v24 = vpop.permute.xlu1 %807 }
  0x9e   :  { %16482 = vst [vmem:[#allocation52_spill] sm:$0xff] %v8695_v12  ;;  %v8703_v45 = vpop.permute.xlu0 %805  ;;  %v8712_v12 = vsel %vm845_vm1, %v921_v33, %v922_v10  ;;  %v934_v10 = vrot.slane %v16494_v47, 1 }
  0x9f   :  { %16485 = vst [vmem:[#allocation36_spill] sm:$0xff] %v8699_v24  ;;  %v16496_v24 = vld [vmem:[#allocation48_spill] sm:$0xff] }
  0xa0   :  { %16488 = vst [vmem:[#allocation42_spill] sm:$0xff] %v8703_v45  ;;  %v930_v45 = vrot.slane %v16496_v24, 1  ;;  %v8736_v31 = vsel %vm845_vm1, %v933_v63, %v934_v10 }
  0xa1   :  { %16491 = vst [vmem:[#allocation68_spill] sm:$0xff] %v8712_v12 }
  0xa2   :  { %16499 = vst [vmem:[#allocation48_spill] sm:$0xff] %v8733_v18 }
  0xa3   :  { %996 = vrot.lane.b32.xlu2 %v8706_v46, %s7859_s17  ;;  %994 = vrot.lane.b32.xlu1 %v8709_v56, %s7859_s17  ;;  %v16497_v46 = vld [vmem:[#allocation51_spill] sm:$0xff] }
  0xa4   :  { %992 = vrot.lane.b32.xlu0 %v8712_v12, %s7859_s17  ;;  %v931_v49 = vrot.slane %v16497_v46, 1  ;;  %16500 = vst [vmem:[#allocation51_spill] sm:$0xff] %v8736_v31 }
  0xa5   :  { %v8722_v48 = vpop.permute.xlu2 %833  ;;  %v8726_v33 = vpop.permute.xlu1 %813 }
  0xa6   :  { %16492 = vst [vmem:[#allocation69_spill] sm:$0xff] %v8722_v48  ;;  %v8730_v56 = vpop.permute.xlu0 %811  ;;  %v8739_v48 = vsel %vm845_vm1, %v930_v45, %v931_v49  ;;  %v8756_v49 = vsel %vm845_vm1, %v939_v6, %v940_v19  ;;  %v8761_v45 = vld [vmem:[%s15928_s0 + $0x18] sm:$0xff] }
  0xa7   :  { %16495 = vst [vmem:[#allocation46_spill] sm:$0xff] %v8726_v33  ;;  %v8778_v19 = vld [vmem:[%s15928_s0 + $0x3c] sm:$0xff] }
  0xa8   :  { %16498 = vst [vmem:[#allocation50_spill] sm:$0xff] %v8730_v56 }
  0xa9   :  { %16501 = vst [vmem:[#allocation70_spill] sm:$0xff] %v8739_v48 }
  0xaa   :  { %16505 = vst [vmem:[#allocation74_spill] sm:$0xff] %v8756_v49 }
  0xab   :  { %1002 = vrot.lane.b32.xlu2 %v8733_v18, %s7859_s17  ;;  %1000 = vrot.lane.b32.xlu1 %v8736_v31, %s7859_s17 }
  0xac   :  { %998 = vrot.lane.b32.xlu0 %v8739_v48, %s7859_s17 }
  0xad   :  { %v8747_v46 = vpop.permute.xlu2 %839  ;;  %v8749_v47 = vpop.permute.xlu1 %819 }
  0xae   :  { %16502 = vst [vmem:[#allocation71_spill] sm:$0xff] %v8747_v46  ;;  %v8753_v63 = vpop.permute.xlu0 %817  ;;  %v8792_v46 = vld [vmem:[%s15928_s0 + $0x24] sm:$0xff] }
  0xaf   :  { %16503 = vst [vmem:[#allocation72_spill] sm:$0xff] %v8749_v47 }
  0xb0   :  { %16504 = vst [vmem:[#allocation73_spill] sm:$0xff] %v8753_v63 }
  0xb3   :  { %1018 = vrot.lane.b32.xlu2 %v8761_v45, %s7860_s19  ;;  %1016 = vrot.lane.b32.xlu1 %v7986_v38, %s7860_s19  ;;  %v8785_v38 = vld [vmem:[%s15928_s0 + $0x30] sm:$0xff] }
  0xb4   :  { %1004 = vrot.lane.b32.xlu0 %v8756_v49, %s7859_s17 }
  0xb5   :  { %v8769_v1 = vpop.permute.xlu2 %942  ;;  %v8771_v10 = vpop.permute.xlu1 %825 }
  0xb6   :  { %16506 = vst [vmem:[#allocation75_spill] sm:$0xff] %v8771_v10  ;;  %v8773_v6 = vpop.permute.xlu0 %823 }
  0xb7   :  { %16507 = vst [vmem:[#allocation76_spill] sm:$0xff] %v8773_v6  ;;  %v16553_v6 = vld [vmem:[#allocation17_spill] sm:$0xff] }
  0xbb   :  { %1024 = vrot.lane.b32.xlu2 %v8778_v19, %s7860_s19  ;;  %1022 = vrot.lane.b32.xlu1 %v8785_v38, %s7860_s19 }
  0xbc   :  { %1020 = vrot.lane.b32.xlu0 %v8792_v46, %s7860_s19 }
  0xbd   :  { %v8796_v33 = vpop.permute.xlu2 %948  ;;  %v8798_v56 = vpop.permute.xlu1 %831 }
  0xbe   :  { %16508 = vst [vmem:[#allocation77_spill] sm:$0xff] %v8798_v56  ;;  %v8800_v49 = vpop.permute.xlu0 %829  ;;  %v16542_v56 = vld [vmem:[#allocation9_spill] sm:$0xff] }
  0xbf   :  { %16509 = vst [vmem:[#allocation78_spill] sm:$0xff] %v8800_v49  ;;  %v16546_v49 = vld [vmem:[#allocation19_spill] sm:$0xff] }
  0xc3   :  { %1030 = vrot.lane.b32.xlu2 %v7999_v44, %s7860_s19  ;;  %1028 = vrot.lane.b32.xlu1 %v8022_v58, %s7860_s19 }
  0xc4   :  { %1026 = vrot.lane.b32.xlu0 %v8037_v7, %s7860_s19 }
  0xc5   :  { %v8808_v18 = vpop.permute.xlu2 %954  ;;  %v8810_v10 = vpop.permute.xlu1 %837 }
  0xc6   :  { %16510 = vst [vmem:[#allocation79_spill] sm:$0xff] %v8808_v18  ;;  %v8812_v31 = vpop.permute.xlu0 %835 }
  0xc7   :  { %16511 = vst [vmem:[#allocation80_spill] sm:$0xff] %v8810_v10  ;;  %v8906_v10 = vld [vmem:[%s15928_s0 + $0x198] sm:$0xff] }
  0xc8   :  { %16512 = vst [vmem:[#allocation81_spill] sm:$0xff] %v8812_v31  ;;  %v16537_v31 = vld [vmem:[#allocation13_spill] sm:$0xff] }
  0xcb   :  { %1036 = vrot.lane.b32.xlu2 %v8059_v26, %s7860_s19  ;;  %1034 = vrot.lane.b32.xlu1 %v8074_v37, %s7860_s19 }
  0xcc   :  { %1032 = vrot.lane.b32.xlu0 %v8090_v51, %s7860_s19 }
  0xcd   :  { %v8820_v44 = vpop.permute.xlu2 %960  ;;  %v8822_v58 = vpop.permute.xlu1 %843 }
  0xce   :  { %16513 = vst [vmem:[#allocation82_spill] sm:$0xff] %v8820_v44  ;;  %v8824_v7 = vpop.permute.xlu0 %841  ;;  %v16554_v44 = vld [vmem:[#allocation18_spill] sm:$0xff] }
  0xcf   :  { %16514 = vst [vmem:[#allocation83_spill] sm:$0xff] %v8822_v58  ;;  %v8841_v58 = vld [vmem:[%s15928_s0 + $0xc0] sm:$0xff] }
  0xd0   :  { %16515 = vst [vmem:[#allocation84_spill] sm:$0xff] %v8824_v7 }
  0xd3   :  { %1042 = vrot.lane.b32.xlu2 %v8113_v11, %s7860_s19  ;;  %1040 = vrot.lane.b32.xlu1 %v8120_v17, %s7860_s19 }
  0xd4   :  { %1038 = vrot.lane.b32.xlu0 %v8144_v41, %s7860_s19 }
  0xd5   :  { %v8832_v26 = vpop.permute.xlu2 %966  ;;  %v8834_v37 = vpop.permute.xlu1 %946 }
  0xd6   :  { %16516 = vst [vmem:[#allocation85_spill] sm:$0xff] %v8832_v26  ;;  %v8836_v51 = vpop.permute.xlu0 %944  ;;  %v16547_v26 = vld [vmem:[#allocation14_spill] sm:$0xff] }
  0xdb   :  { %1048 = vrot.lane.b32.xlu2 %v8154_v54, %s7860_s19  ;;  %1046 = vrot.lane.b32.xlu1 %v8841_v58, %s7860_s19 }
  0xdc   :  { %1044 = vrot.lane.b32.xlu0 %v8196_v55, %s7860_s19 }
  0xdd   :  { %v8849_v11 = vpop.permute.xlu2 %972  ;;  %v8851_v17 = vpop.permute.xlu1 %952 }
  0xde   :  { %16517 = vst [vmem:[#allocation86_spill] sm:$0xff] %v8849_v11  ;;  %v8853_v41 = vpop.permute.xlu0 %950 }
  0xdf   :  { %16518 = vst [vmem:[#allocation87_spill] sm:$0xff] %v8851_v17  ;;  %v16578_v17 = vld [vmem:[#allocation53_spill] sm:$0xff] }
  0xe0   :  { %16519 = vst [vmem:[#allocation88_spill] sm:$0xff] %v8853_v41 }
  0xe3   :  { %1054 = vrot.lane.b32.xlu2 %v16460_v36, %s7860_s19  ;;  %1052 = vrot.lane.b32.xlu1 %v16463_v4, %s7860_s19 }
  0xe4   :  { %1050 = vrot.lane.b32.xlu0 %v8242_v40, %s7860_s19 }
  0xe5   :  { %v8861_v54 = vpop.permute.xlu2 %978  ;;  %v8863_v7 = vpop.permute.xlu1 %958 }
  0xe6   :  { %16520 = vst [vmem:[#allocation89_spill] sm:$0xff] %v8861_v54  ;;  %v8865_v55 = vpop.permute.xlu0 %956 }
  0xe7   :  { %16521 = vst [vmem:[#allocation90_spill] sm:$0xff] %v8863_v7 }
  0xe8   :  { %16522 = vst [vmem:[#allocation91_spill] sm:$0xff] %v8865_v55  ;;  %v16558_v55 = vld [vmem:[#allocation23_spill] sm:$0xff] }
  0xeb   :  { %1060 = vrot.lane.b32.xlu2 %v16472_v0, %s7860_s19  ;;  %1058 = vrot.lane.b32.xlu1 %v16475_v25, %s7860_s19 }
  0xec   :  { %1056 = vrot.lane.b32.xlu0 %v8299_v43, %s7860_s19 }
  0xed   :  { %v8873_v36 = vpop.permute.xlu2 %984  ;;  %v8875_v4 = vpop.permute.xlu1 %964 }
  0xee   :  { %16523 = vst [vmem:[#allocation92_spill] sm:$0xff] %v8873_v36  ;;  %v8877_v40 = vpop.permute.xlu0 %962  ;;  %v16552_v36 = vld [vmem:[#allocation26_spill] sm:$0xff] }
  0xef   :  { %16524 = vst [vmem:[#allocation93_spill] sm:$0xff] %v8875_v4 }
  0xf0   :  { %16525 = vst [vmem:[#allocation94_spill] sm:$0xff] %v8877_v40 }
  0xf3   :  { %1066 = vrot.lane.b32.xlu2 %v16483_v35, %s7860_s19  ;;  %1064 = vrot.lane.b32.xlu1 %v16486_v60, %s7860_s19 }
  0xf4   :  { %1062 = vrot.lane.b32.xlu0 %v16469_v9, %s7860_s19 }
  0xf5   :  { %v8885_v0 = vpop.permute.xlu2 %990  ;;  %v8887_v25 = vpop.permute.xlu1 %970 }
  0xf6   :  { %16526 = vst [vmem:[#allocation95_spill] sm:$0xff] %v8885_v0  ;;  %v8889_v43 = vpop.permute.xlu0 %968 }
  0xf7   :  { %16527 = vst [vmem:[#allocation96_spill] sm:$0xff] %v8887_v25  ;;  %v16541_v25 = vld [vmem:[#allocation11_spill] sm:$0xff] }
  0xf8   :  { %16528 = vst [vmem:[#allocation97_spill] sm:$0xff] %v8889_v43 }
  0xfb   :  { %1072 = vrot.lane.b32.xlu2 %v16493_v22, %s7860_s19  ;;  %1070 = vrot.lane.b32.xlu1 %v16496_v24, %s7860_s19 }
  0xfc   :  { %1068 = vrot.lane.b32.xlu0 %v8405_v27, %s7860_s19 }
  0xfd   :  { %v8897_v35 = vpop.permute.xlu2 %996  ;;  %v8899_v60 = vpop.permute.xlu1 %976 }
  0xfe   :  { %16529 = vst [vmem:[#allocation98_spill] sm:$0xff] %v8897_v35  ;;  %v8901_v9 = vpop.permute.xlu0 %974  ;;  %v16536_v35 = vld [vmem:[#allocation10_spill] sm:$0xff] }
  0xff   :  { %16530 = vst [vmem:[#allocation99_spill] sm:$0xff] %v8899_v60  ;;  %v16562_v60 = vld [vmem:[#allocation40_spill] sm:$0xff] }
 0x100   :  { %16531 = vst [vmem:[#allocation100_spill] sm:$0xff] %v8901_v9  ;;  %v16535_v9 = vld [vmem:[#allocation12_spill] sm:$0xff] }
 0x103   :  { %1078 = vrot.lane.b32.xlu2 %v8906_v10, %s7860_s19  ;;  %1076 = vrot.lane.b32.xlu1 %v8442_v14, %s7860_s19 }
 0x104   :  { %1074 = vrot.lane.b32.xlu0 %v8451_v62, %s7860_s19 }
 0x105   :  { %v8914_v27 = vpop.permute.xlu2 %1002  ;;  %v8916_v24 = vpop.permute.xlu1 %982 }
 0x106   :  { %16532 = vst [vmem:[#allocation101_spill] sm:$0xff] %v8914_v27  ;;  %v8918_v22 = vpop.permute.xlu0 %980  ;;  %v16540_v27 = vld [vmem:[#allocation16_spill] sm:$0xff] }
 0x107   :  { %16533 = vst [vmem:[#allocation102_spill] sm:$0xff] %v8916_v24 }
 0x108   :  { %16534 = vst [vmem:[#allocation103_spill] sm:$0xff] %v8918_v22 }
 0x10b   :  { %1114 = vrot.lane.b32.xlu2 %v16535_v9, %s7861_s30  ;;  %1112 = vrot.lane.b32.xlu1 %v16536_v35, %s7861_s30 }
 0x10c   :  { %1110 = vrot.lane.b32.xlu0 %v16537_v31, %s7861_s30 }
 0x10d   :  { %v8926_v14 = vpop.permute.xlu2 %1018  ;;  %v8928_v11 = vpop.permute.xlu1 %988 }
 0x10e   :  { %16538 = vst [vmem:[#allocation12_spill] sm:$0xff] %v8928_v11  ;;  %v8930_v62 = vpop.permute.xlu0 %986  ;;  %v16548_v11 = vld [vmem:[#allocation15_spill] sm:$0xff] }
 0x10f   :  { %16539 = vst [vmem:[#allocation10_spill] sm:$0xff] %v8930_v62 }
 0x113   :  { %1120 = vrot.lane.b32.xlu2 %v16540_v27, %s7861_s30  ;;  %1118 = vrot.lane.b32.xlu1 %v16541_v25, %s7861_s30 }
 0x114   :  { %1116 = vrot.lane.b32.xlu0 %v16542_v56, %s7861_s30 }
 0x115   :  { %v8938_v43 = vpop.permute.xlu2 %1024  ;;  %v8940_v0 = vpop.permute.xlu1 %994 }
 0x116   :  { %16543 = vst [vmem:[#allocation13_spill] sm:$0xff] %v8938_v43  ;;  %v8942_v31 = vpop.permute.xlu0 %992 }
 0x117   :  { %16544 = vst [vmem:[#allocation16_spill] sm:$0xff] %v8940_v0  ;;  %v82_v0 = vld [vmem:[%s15928_s0 + $0xc8] sm:$0x1] }
 0x118   :  { %16545 = vst [vmem:[#allocation11_spill] sm:$0xff] %v8942_v31  ;;  %v1082_v31 = vunpack.c.l.b16 %v82_v0  ;;  %v1087_v0 = vshrl.u32 %v8841_v58, 16 }
 0x11b   :  { %1126 = vrot.lane.b32.xlu2 %v16546_v49, %s7861_s30  ;;  %1124 = vrot.lane.b32.xlu1 %v16547_v26, %s7861_s30 }
 0x11c   :  { %1122 = vrot.lane.b32.xlu0 %v16548_v11, %s7861_s30 }
 0x11d   :  { %v8950_v4 = vpop.permute.xlu2 %1030  ;;  %v8952_v62 = vpop.permute.xlu1 %1000 }
 0x11e   :  { %16549 = vst [vmem:[#allocation9_spill] sm:$0xff] %v8950_v4  ;;  %v8954_v40 = vpop.permute.xlu0 %998  ;;  %v16557_v4 = vld [vmem:[#allocation32_spill] sm:$0xff] }
 0x11f   :  { %16550 = vst [vmem:[#allocation19_spill] sm:$0xff] %v8952_v62  ;;  %v8969_v62 = vpack.c.b16 %v1082_v31, %v1082_v31 }
 0x120   :  { %16551 = vst [vmem:[#allocation14_spill] sm:$0xff] %v8954_v40  ;;  %v1089_v40 = vshll.u32 %v8841_v58, 16 }
 0x121   :  { %v1094_v47 = vshll.u32 %v8969_v62, 16 }
 0x122   :  { %v1091_v22 = vrot.slane %v1089_v40, 1 }
 0x123   :  { %1132 = vrot.lane.b32.xlu2 %v16552_v36, %s7861_s30  ;;  %1130 = vrot.lane.b32.xlu1 %v16553_v6, %s7861_s30 }
 0x124   :  { %1128 = vrot.lane.b32.xlu0 %v16554_v44, %s7861_s30  ;;  %v1092_v63 = vor.u32 %v1091_v22, %v1087_v0 }
 0x125   :  { %v8965_v48 = vpop.permute.xlu2 %1036  ;;  %v8967_v24 = vpop.permute.xlu1 %1016 }
 0x126   :  { %16555 = vst [vmem:[#allocation15_spill] sm:$0xff] %v8965_v48  ;;  %v8972_v7 = vpop.permute.xlu0 %1004  ;;  %v16559_v48 = vld [vmem:[#allocation24_spill] sm:$0xff] }
 0x127   :  { %16556 = vst [vmem:[#allocation26_spill] sm:$0xff] %v8972_v7  ;;  %v1096_v7 = vrot.slane %v1094_v47, 1  ;;  %v16567_v47 = vld [vmem:[#allocation49_spill] sm:$0xff] }
 0x129   :  { %v8989_v40 = vsel %vm396_vm0, %v1092_v63, %v1096_v7  ;;  %v16568_v63 = vld [vmem:[#allocation37_spill] sm:$0xff]  ;;  %v16569_v7 = vld [vmem:[#allocation38_spill] sm:$0xff] }
 0x12a   :  { %16561 = vst [vmem:[#allocation18_spill] sm:$0xff] %v8989_v40 }
 0x12b   :  { %1138 = vrot.lane.b32.xlu2 %v16557_v4, %s7861_s30  ;;  %1136 = vrot.lane.b32.xlu1 %v16558_v55, %s7861_s30  ;;  %v16563_v4 = vld [vmem:[#allocation30_spill] sm:$0xff] }
 0x12c   :  { %1134 = vrot.lane.b32.xlu0 %v16559_v48, %s7861_s30 }
 0x12d   :  { %v8982_v31 = vpop.permute.xlu2 %1042  ;;  %v8984_v54 = vpop.permute.xlu1 %1022 }
 0x12e   :  { %16560 = vst [vmem:[#allocation17_spill] sm:$0xff] %v8982_v31  ;;  %v8986_v18 = vpop.permute.xlu0 %1020 }
 0x133   :  { %1144 = vrot.lane.b32.xlu2 %v16562_v60, %s7861_s30  ;;  %1142 = vrot.lane.b32.xlu1 %v16563_v4, %s7861_s30 }
 0x134   :  { %1140 = vrot.lane.b32.xlu0 %v8989_v40, %s7861_s30  ;;  %v16574_v40 = vld [vmem:[#allocation47_spill] sm:$0xff] }
 0x135   :  { %v8997_v55 = vpop.permute.xlu2 %1048  ;;  %v8999_v31 = vpop.permute.xlu1 %1028 }
 0x136   :  { %16564 = vst [vmem:[#allocation24_spill] sm:$0xff] %v8997_v55  ;;  %v9001_v22 = vpop.permute.xlu0 %1026  ;;  %v16573_v55 = vld [vmem:[#allocation45_spill] sm:$0xff] }
 0x137   :  { %16565 = vst [vmem:[#allocation30_spill] sm:$0xff] %v8999_v31 }
 0x138   :  { %16566 = vst [vmem:[#allocation104_spill] sm:$0xff] %v9001_v22 }
 0x13b   :  { %1150 = vrot.lane.b32.xlu2 %v16567_v47, %s7861_s30  ;;  %1148 = vrot.lane.b32.xlu1 %v16568_v63, %s7861_s30 }
 0x13c   :  { %1146 = vrot.lane.b32.xlu0 %v16569_v7, %s7861_s30 }
 0x13d   :  { %v9009_v0 = vpop.permute.xlu2 %1054  ;;  %v9011_v4 = vpop.permute.xlu1 %1034 }
 0x13e   :  { %16570 = vst [vmem:[#allocation49_spill] sm:$0xff] %v9009_v0  ;;  %v9013_v60 = vpop.permute.xlu0 %1032  ;;  %v136_v0 = vld [vmem:[%s15928_s0 + $0x1a0] sm:$0x1] }
 0x13f   :  { %16571 = vst [vmem:[#allocation37_spill] sm:$0xff] %v9011_v4 }
 0x140   :  { %16572 = vst [vmem:[#allocation38_spill] sm:$0xff] %v9013_v60  ;;  %v1083_v60 = vunpack.c.l.b16 %v136_v0  ;;  %v1099_v0 = vshrl.u32 %v8906_v10, 16 }
 0x143   :  { %1156 = vrot.lane.b32.xlu2 %v8445_v20, %s7861_s30  ;;  %1154 = vrot.lane.b32.xlu1 %v16573_v55, %s7861_s30 }
 0x144   :  { %1152 = vrot.lane.b32.xlu0 %v16574_v40, %s7861_s30 }
 0x145   :  { %v9021_v31 = vpop.permute.xlu2 %1060  ;;  %v9023_v22 = vpop.permute.xlu1 %1040 }
 0x146   :  { %16575 = vst [vmem:[#allocation45_spill] sm:$0xff] %v9021_v31  ;;  %v9028_v4 = vpop.permute.xlu0 %1038  ;;  %v9038_v31 = vpack.c.b16 %v1083_v60, %v1083_v60 }
 0x147   :  { %16576 = vst [vmem:[#allocation47_spill] sm:$0xff] %v9023_v22  ;;  %v1101_v22 = vshll.u32 %v8906_v10, 16 }
 0x148   :  { %16577 = vst [vmem:[#allocation105_spill] sm:$0xff] %v9028_v4 }
 0x149   :  { %16580 = vst [vmem:[#allocation107_spill] sm:$0xff] %v9038_v31  ;;  %v1103_v4 = vrot.slane %v1101_v22, 1 }
 0x14b   :  { %1162 = vrot.lane.b32.xlu2 %v8474_v52, %s7861_s30  ;;  %1160 = vrot.lane.b32.xlu1 %v16578_v17, %s7861_s30  ;;  %v1106_v52 = vshll.u32 %v9038_v31, 16 }
 0x14c   :  { %1158 = vrot.lane.b32.xlu0 %v8433_v23, %s7861_s30 }
 0x14d   :  { %v9036_v12 = vpop.permute.xlu2 %1066  ;;  %v9041_v43 = vpop.permute.xlu1 %1046 }
 0x14e   :  { %16579 = vst [vmem:[#allocation106_spill] sm:$0xff] %v9036_v12  ;;  %v9043_v41 = vpop.permute.xlu0 %1044  ;;  %v1104_v12 = vor.u32 %v1103_v4, %v1099_v0 }
 0x14f   :  { %16581 = vst [vmem:[#allocation108_spill] sm:$0xff] %v9041_v43  ;;  %v1108_v43 = vrot.slane %v1106_v52, 1 }
 0x150   :  { %16582 = vst [vmem:[#allocation109_spill] sm:$0xff] %v9043_v41 }
 0x151   :  { %v9060_v10 = vsel %vm396_vm0, %v1104_v12, %v1108_v43 }
 0x152   :  { %16584 = vst [vmem:[#allocation111_spill] sm:$0xff] %v9060_v10 }
 0x153   :  { %1168 = vrot.lane.b32.xlu2 %v8491_v53, %s7861_s30  ;;  %1166 = vrot.lane.b32.xlu1 %v8466_v28, %s7861_s30  ;;  %v1175_v53 = vrot.slane %v8969_v62, 1 }
 0x154   :  { %1164 = vrot.lane.b32.xlu0 %v8469_v57, %s7861_s30 }
 0x155   :  { %v9053_v60 = vpop.permute.xlu2 %1072  ;;  %v9055_v17 = vpop.permute.xlu1 %1052 }
 0x156   :  { %16583 = vst [vmem:[#allocation110_spill] sm:$0xff] %v9053_v60  ;;  %v9057_v41 = vpop.permute.xlu0 %1050 }
 0x15b   :  { %1180 = vrot.lane.b32.xlu2 %v8511_v29, %s7862_s15  ;;  %1172 = vrot.lane.b32.xlu1 %v9060_v10, %s7861_s30 }
 0x15c   :  { %1170 = vrot.lane.b32.xlu0 %v8488_v50, %s7861_s30 }
 0x15d   :  { %v9068_v22 = vpop.permute.xlu2 %1078  ;;  %v9070_v52 = vpop.permute.xlu1 %1058 }
 0x15e   :  { %16585 = vst [vmem:[#allocation112_spill] sm:$0xff] %v9068_v22  ;;  %v9072_v4 = vpop.permute.xlu0 %1056 }
 0x15f   :  { %16586 = vst [vmem:[#allocation113_spill] sm:$0xff] %v9070_v52 }
 0x160   :  { %16587 = vst [vmem:[#allocation114_spill] sm:$0xff] %v9072_v4 }
 0x163   :  { %1186 = vrot.lane.b32.xlu2 %v8534_v42, %s7862_s15  ;;  %1184 = vrot.lane.b32.xlu1 %v8505_v15, %s7862_s15 }
 0x164   :  { %1182 = vrot.lane.b32.xlu0 %v8508_v13, %s7862_s15 }
 0x165   :  { %v9080_v29 = vpop.permute.xlu2 %1114  ;;  %v9082_v12 = vpop.permute.xlu1 %1064 }
 0x166   :  { %16588 = vst [vmem:[#allocation115_spill] sm:$0xff] %v9082_v12  ;;  %v9084_v43 = vpop.permute.xlu0 %1062 }
 0x167   :  { %16589 = vst [vmem:[#allocation116_spill] sm:$0xff] %v9084_v43 }
 0x16b   :  { %1192 = vrot.lane.b32.xlu2 %v8557_v21, %s7862_s15  ;;  %1190 = vrot.lane.b32.xlu1 %v8528_v39, %s7862_s15 }
 0x16c   :  { %1188 = vrot.lane.b32.xlu0 %v8531_v8, %s7862_s15 }
 0x16d   :  { %v9092_v0 = vpop.permute.xlu2 %1120  ;;  %v9094_v22 = vpop.permute.xlu1 %1070 }
 0x16e   :  { %16590 = vst [vmem:[#allocation117_spill] sm:$0xff] %v9094_v22  ;;  %v9096_v60 = vpop.permute.xlu0 %1068 }
 0x16f   :  { %16591 = vst [vmem:[#allocation118_spill] sm:$0xff] %v9096_v60 }
 0x173   :  { %1198 = vrot.lane.b32.xlu2 %v8580_v30, %s7862_s15  ;;  %1196 = vrot.lane.b32.xlu1 %v8551_v61, %s7862_s15 }
 0x174   :  { %1194 = vrot.lane.b32.xlu0 %v8554_v5, %s7862_s15 }
 0x175   :  { %v9104_v12 = vpop.permute.xlu2 %1126  ;;  %v9106_v10 = vpop.permute.xlu1 %1076 }
 0x176   :  { %16592 = vst [vmem:[#allocation119_spill] sm:$0xff] %v9104_v12  ;;  %v9108_v43 = vpop.permute.xlu0 %1074 }
 0x177   :  { %16593 = vst [vmem:[#allocation120_spill] sm:$0xff] %v9106_v10 }
 0x178   :  { %16594 = vst [vmem:[#allocation121_spill] sm:$0xff] %v9108_v43 }
 0x17b   :  { %1418 = vrot.lane.b32.xlu2 %v8508_v13, %s7863_s16  ;;  %1348 = vrot.lane.b32.xlu1 %v16536_v35, %s7864_s14 }
 0x17c   :  { %1254 = vrot.lane.b32.xlu0 %v8761_v45, %s7865_s18 }
 0x17d   :  { %v9116_v22 = vpop.permute.xlu2 %1132  ;;  %v9118_v60 = vpop.permute.xlu1 %1112 }
 0x17e   :  { %16595 = vst [vmem:[#allocation122_spill] sm:$0xff] %v9116_v22  ;;  %v9120_v31 = vpop.permute.xlu0 %1110 }
 0x183   :  { %1256 = vrot.lane.b32.xlu2 %v8792_v46, %s7865_s18  ;;  %1202 = vrot.lane.b32.xlu1 %v8574_v3, %s7862_s15 }
 0x184   :  { %1200 = vrot.lane.b32.xlu0 %v8577_v16, %s7862_s15 }
 0x185   :  { %v9128_v13 = vpop.permute.xlu2 %1138  ;;  %v9130_v35 = vpop.permute.xlu1 %1118 }
 0x186   :  { %16596 = vst [vmem:[#allocation123_spill] sm:$0xff] %v9128_v13  ;;  %v9132_v10 = vpop.permute.xlu0 %1116  ;;  %v1174_v13 = vrot.slane %v8841_v58, 1 }
 0x188   :  { %v9161_v28 = vsel %vm845_vm1, %v1174_v13, %v1175_v53  ;;  %v16606_v13 = vld [vmem:[#allocation67_spill] sm:$0xff] }
 0x18b   :  { %1204 = vrot.lane.b32.xlu2 %v8607_v32, %s7862_s15  ;;  %1420 = vrot.lane.b32.xlu1 %v8505_v15, %s7863_s16 }
 0x18c   :  { %1350 = vrot.lane.b32.xlu0 %v16535_v9, %s7864_s14 }
 0x18d   :  { %v9140_v43 = vpop.permute.xlu2 %1144  ;;  %v9142_v50 = vpop.permute.xlu1 %1124 }
 0x18e   :  { %v9144_v22 = vpop.permute.xlu0 %1122 }
 0x193   :  { %1258 = vrot.lane.b32.xlu2 %v8785_v38, %s7865_s18  ;;  %1208 = vrot.lane.b32.xlu1 %v8601_v2, %s7862_s15 }
 0x194   :  { %1206 = vrot.lane.b32.xlu0 %v8604_v34, %s7862_s15 }
 0x195   :  { %v9154_v15 = vpop.permute.xlu2 %1150  ;;  %v9156_v9 = vpop.permute.xlu1 %1130 }
 0x196   :  { %16597 = vst [vmem:[#allocation124_spill] sm:$0xff] %v9154_v15  ;;  %v9158_v52 = vpop.permute.xlu0 %1128 }
 0x197   :  { %16598 = vst [vmem:[#allocation125_spill] sm:$0xff] %v9156_v9 }
 0x198   :  { %16599 = vst [vmem:[#allocation126_spill] sm:$0xff] %v9158_v52  ;;  %v9238_v52 = vld [vmem:[%s15928_s0 + $0x54] sm:$0xff] }
 0x19b   :  { %1210 = vrot.lane.b32.xlu2 %v9161_v28, %s7862_s15  ;;  %1422 = vrot.lane.b32.xlu1 %v8534_v42, %s7863_s16 }
 0x19c   :  { %1352 = vrot.lane.b32.xlu0 %v16542_v56, %s7864_s14 }
 0x19d   :  { %v9169_v62 = vpop.permute.xlu2 %1156  ;;  %v9171_v57 = vpop.permute.xlu1 %1136 }
 0x19e   :  { %16600 = vst [vmem:[#allocation127_spill] sm:$0xff] %v9169_v62  ;;  %v9173_v15 = vpop.permute.xlu0 %1134 }
 0x19f   :  { %16601 = vst [vmem:[#allocation128_spill] sm:$0xff] %v9171_v57  ;;  %v16607_v57 = vld [vmem:[#allocation21_spill] sm:$0xff] }
 0x1a0   :  { %16602 = vst [vmem:[#allocation129_spill] sm:$0xff] %v9173_v15 }
 0x1a3   :  { %1354 = vrot.lane.b32.xlu2 %v16541_v25, %s7864_s14  ;;  %1260 = vrot.lane.b32.xlu1 %v8778_v19, %s7865_s18 }
 0x1a4   :  { %1212 = vrot.lane.b32.xlu0 %v8631_v59, %s7862_s15 }
 0x1a5   :  { %v9181_v53 = vpop.permute.xlu2 %1162  ;;  %v9183_v42 = vpop.permute.xlu1 %1142 }
 0x1a6   :  { %16603 = vst [vmem:[#allocation130_spill] sm:$0xff] %v9181_v53  ;;  %v9185_v56 = vpop.permute.xlu0 %1140  ;;  %v16611_v53 = vld [vmem:[#allocation34_spill] sm:$0xff] }
 0x1a7   :  { %16604 = vst [vmem:[#allocation131_spill] sm:$0xff] %v9183_v42  ;;  %v9206_v42 = vld [vmem:[%s15928_s0 + $0x48] sm:$0xff] }
 0x1a8   :  { %16605 = vst [vmem:[#allocation132_spill] sm:$0xff] %v9185_v56 }
 0x1ab   :  { %1216 = vrot.lane.b32.xlu2 %v16606_v13, %s7862_s15  ;;  %1214 = vrot.lane.b32.xlu1 %v16607_v57, %s7862_s15 }
 0x1ac   :  { %1424 = vrot.lane.b32.xlu0 %v8531_v8, %s7863_s16 }
 0x1ad   :  { %v9193_v25 = vpop.permute.xlu2 %1168  ;;  %v9195_v15 = vpop.permute.xlu1 %1148 }
 0x1ae   :  { %16608 = vst [vmem:[#allocation67_spill] sm:$0xff] %v9193_v25  ;;  %v9197_v59 = vpop.permute.xlu0 %1146 }
 0x1b3   :  { %1426 = vrot.lane.b32.xlu2 %v8528_v39, %s7863_s16  ;;  %1356 = vrot.lane.b32.xlu1 %v16540_v27, %s7864_s14  ;;  %v16612_v39 = vld [vmem:[#allocation25_spill] sm:$0xff]  ;;  %v16613_v27 = vld [vmem:[#allocation28_spill] sm:$0xff] }
 0x1b4   :  { %1262 = vrot.lane.b32.xlu0 %v9206_v42, %s7865_s18 }
 0x1b5   :  { %v9210_v8 = vpop.permute.xlu2 %1180  ;;  %v9212_v25 = vpop.permute.xlu1 %1154 }
 0x1b6   :  { %16609 = vst [vmem:[#allocation133_spill] sm:$0xff] %v9212_v25  ;;  %v9214_v56 = vpop.permute.xlu0 %1152  ;;  %v2006_v25 = vld [vmem:[%s15929_s1 + $0x10] sm:$0x3] }
 0x1b7   :  { %16610 = vst [vmem:[#allocation134_spill] sm:$0xff] %v9214_v56  ;;  %v2016_v56 = vunpack.c.l.b16 %v2006_v25 }
 0x1bb   :  { %1222 = vrot.lane.b32.xlu2 %v16611_v53, %s7862_s15  ;;  %1220 = vrot.lane.b32.xlu1 %v16612_v39, %s7862_s15 }
 0x1bc   :  { %1218 = vrot.lane.b32.xlu0 %v16613_v27, %s7862_s15 }
 0x1bd   :  { %v9222_v62 = vpop.permute.xlu2 %1186  ;;  %v9224_v9 = vpop.permute.xlu1 %1160 }
 0x1be   :  { %16614 = vst [vmem:[#allocation34_spill] sm:$0xff] %v9224_v9  ;;  %v9226_v57 = vpop.permute.xlu0 %1158 }
 0x1bf   :  { %16615 = vst [vmem:[#allocation25_spill] sm:$0xff] %v9226_v57  ;;  %v2019_v57 = vpack.c.b16 %v2016_v56, %v2016_v56  ;;  %v9258_v56 = vld [vmem:[%s15928_s0 + $0xfc] sm:$0xff] }
 0x1c3   :  { %1428 = vrot.lane.b32.xlu2 %v8557_v21, %s7863_s16  ;;  %1358 = vrot.lane.b32.xlu1 %v16548_v11, %s7864_s14  ;;  %v2089_v21 = vsel %vm2087_vm2, %v2019_v57, 0  ;;  %v7672_v11 = vld [vmem:[%s15929_s1 + $0x8] sm:$0xff]  ;;  %vm9664_vm2 = vmand %vm2811_vm12, %vm2934_vm15 }
 0x1c4   :  { %1264 = vrot.lane.b32.xlu0 %v9238_v52, %s7865_s18  ;;  %2096 = vmatpush.bf16.msra.mxu0 %v2089_v21 }
 0x1c5   :  { %v9242_v9 = vpop.permute.xlu2 %1192  ;;  %v9244_v4 = vpop.permute.xlu1 %1166  ;;  %7713 = vmatpush.bf16.msra.mxu3 %v2089_v21 }
 0x1c6   :  { %16616 = vst [vmem:[#allocation28_spill] sm:$0xff] %v9244_v4  ;;  %v9246_v12 = vpop.permute.xlu0 %1164 }
 0x1c7   :  { %16617 = vst [vmem:[#allocation135_spill] sm:$0xff] %v9246_v12 }
 0x1c8   :  { %2097 = vmatpush.bf16.msra.mxu0 %v7672_v11 }
 0x1c9   :  { %7714 = vmatpush.bf16.msra.mxu3 %v7672_v11 }
 0x1cb   :  { %1452 = vrot.lane.b32.xlu2 %v16606_v13, %s7863_s16  ;;  %1382 = vrot.lane.b32.xlu1 %v16569_v7, %s7864_s14  ;;  %v7671_v13 = vld [vmem:[%s15929_s1] sm:$0xff]  ;;  %s7873_s1 = smov [#allocation5]  }
 0x1cc   :  { %1288 = vrot.lane.b32.xlu0 %v9258_v56, %s7865_s18  ;;  %2098 = vmatpush.bf16.msra.mxu0 %v7671_v13  ;;  %v9278_v7 = vld [vmem:[%s15928_s0 + $0x60] sm:$0xff]  ;;  %s7175_s13 = sshll.u32 %s7873_s1, 4  ;;  %s7176_s13 = int_to_ptr.vmem [resolvable:$true] %s7175_s13 }
 0x1cd   :  { %v9262_v57 = vpop.permute.xlu2 %1198  ;;  %v9264_v25 = vpop.permute.xlu1 %1172  ;;  %7715 = vmatpush.bf16.msra.mxu3 %v7671_v13 }
 0x1ce   :  { %16618 = vst [vmem:[#allocation136_spill] sm:$0xff] %v9262_v57  ;;  %v9269_v21 = vpop.permute.xlu0 %1170 }
 0x1cf   :  { %16619 = vst [vmem:[#allocation137_spill] sm:$0xff] %v9264_v25 }
 0x1d0   :  { %16620 = vst [vmem:[#allocation138_spill] sm:$0xff] %v9269_v21 }
 0x1d3   :  { %1430 = vrot.lane.b32.xlu2 %v8554_v5, %s7863_s16  ;;  %1360 = vrot.lane.b32.xlu1 %v16547_v26, %s7864_s14  ;;  %v9291_v5 = vld [vmem:[%s15928_s0 + $0x108] sm:$0xff] }
 0x1d4   :  { %1266 = vrot.lane.b32.xlu0 %v9278_v7, %s7865_s18  ;;  %16621 = vst [vmem:[#allocation139_spill] sm:$0xff] %v9291_v5 }
 0x1d5   :  { %v1419_v11 = vpop.permute.xlu2 %1418  ;;  %v9282_v25 = vpop.permute.xlu1 %1184 }
 0x1d6   :  { %v1183_v21 = vpop.permute.xlu0 %1182 }
 0x1db   :  { %1454 = vrot.lane.b32.xlu2 %v16613_v27, %s7863_s16  ;;  %1384 = vrot.lane.b32.xlu1 %v16568_v63, %s7864_s14  ;;  %v9306_v63 = vld [vmem:[%s15928_s0 + $0x6c] sm:$0xff] }
 0x1dc   :  { %1290 = vrot.lane.b32.xlu0 %v9291_v5, %s7865_s18  ;;  %16622 = vst [vmem:[#allocation140_spill] sm:$0xff] %v9306_v63 }
 0x1dd   :  { %v1257_v26 = vpop.permute.xlu2 %1256  ;;  %v9295_v13 = vpop.permute.xlu1 %1190 }
 0x1de   :  { %v9297_v4 = vpop.permute.xlu0 %1188 }
 0x1e3   :  { %1432 = vrot.lane.b32.xlu2 %v8551_v61, %s7863_s16  ;;  %1362 = vrot.lane.b32.xlu1 %v16546_v49, %s7864_s14  ;;  %v7751_v61 = vld [vmem:[%s15928_s0] sm:$0xff]  ;;  %v16625_v49 = vld [vmem:[#allocation64_spill] sm:$0xff] }
 0x1e4   :  { %1268 = vrot.lane.b32.xlu0 %v9306_v63, %s7865_s18  ;;  %v1484_v5 = vsel %vm1482_vm3, %v7751_v61, %v16625_v49 }
 0x1e5   :  { %v9310_v27 = vpop.permute.xlu2 %1204  ;;  %v9312_v12 = vpop.permute.xlu1 %1196  ;;  %v1549_v63 = vsel %vm1547_vm4, %v1484_v5, %v8769_v1 }
 0x1e6   :  { %16623 = vst [vmem:[#allocation141_spill] sm:$0xff] %v9310_v27  ;;  %v9314_v57 = vpop.permute.xlu0 %1194  ;;  %v1614_v27 = vsel %vm1612_vm5, %v1549_v63, %v8967_v24 }
 0x1e7   :  { %16624 = vst [vmem:[#allocation142_spill] sm:$0xff] %v9312_v12  ;;  %v9332_v12 = vld [vmem:[%s15928_s0 + $0x114] sm:$0xff]  ;;  %v1679_v1 = vsel %vm1677_vm7, %v1614_v27, %v9120_v31 }
 0x1e8   :  { %v9351_v31 = vld [vmem:[%s15928_s0 + $0x78] sm:$0xff] }
 0x1eb   :  { %1456 = vrot.lane.b32.xlu2 %v16612_v39, %s7863_s16  ;;  %1386 = vrot.lane.b32.xlu1 %v16567_v47, %s7864_s14  ;;  %v1744_v47 = vsel %vm1742_vm6, %v1679_v1, %v9210_v8  ;;  %v16626_v1 = vld [vmem:[#allocation20_spill] sm:$0xff] }
 0x1ec   :  { %1292 = vrot.lane.b32.xlu0 %v9332_v12, %s7865_s18 }
 0x1ed   :  { %v1259_v39 = vpop.permute.xlu2 %1258  ;;  %v1349_v5 = vpop.permute.xlu1 %1348 }
 0x1ee   :  { %v1255_v24 = vpop.permute.xlu0 %1254 }
 0x1ef   :  { %v1809_v63 = vsel %vm1807_vm9, %v1744_v47, %v1255_v24 }
 0x1f0   :  { %v1874_v61 = vsel %vm1872_vm8, %v1809_v63, %v1349_v5  ;;  %v9379_v63 = vld [vmem:[%s15928_s0 + $0x120] sm:$0xff] }
 0x1f1   :  { %v1939_v49 = vsel %vm1937_vm10, %v1874_v61, %v1419_v11 }
 0x1f2   :  { %7348 = vmatmul.msk.bf16.vlgmr.msra.gmra.mxu0 %vm2022_vm11, %v1939_v49 }
 0x1f3   :  { %1434 = vrot.lane.b32.xlu2 %v8580_v30, %s7863_s16  ;;  %1364 = vrot.lane.b32.xlu1 %v16554_v44, %s7864_s14  ;;  %v7754_v30 = vld [vmem:[%s15928_s0 + $0xc] sm:$0xff] }
 0x1f4   :  { %1270 = vrot.lane.b32.xlu0 %v9351_v31, %s7865_s18  ;;  %v1486_v44 = vsel %vm1482_vm3, %v7754_v30, %v16626_v1 }
 0x1f5   :  { %v9355_v8 = vpop.permute.xlu2 %1210  ;;  %v9357_v27 = vpop.permute.xlu1 %1202  ;;  %v1551_v5 = vsel %vm1547_vm4, %v1486_v44, %v8836_v51  ;;  %v16627_v44 = vld [vmem:[#allocation63_spill] sm:$0xff] }
 0x1f6   :  { %v9359_v11 = vpop.permute.xlu0 %1200  ;;  %v1616_v47 = vsel %vm1612_vm5, %v1551_v5, %v8926_v14  ;;  %v16628_v5 = vld [vmem:[#allocation31_spill] sm:$0xff] }
 0x1f7   :  { %v1681_v24 = vsel %vm1677_vm7, %v1616_v47, %v9118_v60  ;;  %v9395_v60 = vld [vmem:[%s15928_s0 + $0x84] sm:$0xff] }
 0x1fb   :  { %1458 = vrot.lane.b32.xlu2 %v16611_v53, %s7863_s16  ;;  %1388 = vrot.lane.b32.xlu1 %v16574_v40, %s7864_s14  ;;  %v1746_v53 = vsel %vm1742_vm6, %v1681_v24, %v1183_v21 }
 0x1fc   :  { %1294 = vrot.lane.b32.xlu0 %v9379_v63, %s7865_s18  ;;  %v1811_v14 = vsel %vm1807_vm9, %v1746_v53, %v1257_v26  ;;  %v9421_v53 = vld [vmem:[%s15928_s0 + $0x12c] sm:$0xff] }
 0x1fd   :  { %v1355_v51 = vpop.permute.xlu2 %1354  ;;  %v1421_v61 = vpop.permute.xlu1 %1420 }
 0x1fe   :  { %v1351_v49 = vpop.permute.xlu0 %1350 }
 0x1ff   :  { %v1876_v40 = vsel %vm1872_vm8, %v1811_v14, %v1351_v49 }
 0x200   :  { %v1941_v30 = vsel %vm1937_vm10, %v1876_v40, %v1421_v61 }
 0x202   :  { %7349 = vmatmul.msk.bf16.gmra.mxu0 %vm2022_vm11, %v1941_v30  ;;  %v16629_v30 = vld [vmem:[#allocation66_spill] sm:$0xff] }
 0x203   :  { %1436 = vrot.lane.b32.xlu2 %v8577_v16, %s7863_s16  ;;  %1366 = vrot.lane.b32.xlu1 %v16553_v6, %s7864_s14  ;;  %v1488_v16 = vsel %vm1482_vm3, %v8761_v45, %v16627_v44 }
 0x204   :  { %1272 = vrot.lane.b32.xlu0 %v9395_v60, %s7865_s18  ;;  %v1553_v6 = vsel %vm1547_vm4, %v1488_v16, %v8834_v37 }
 0x205   :  { %v9399_v21 = vpop.permute.xlu2 %1216  ;;  %v9401_v26 = vpop.permute.xlu1 %1208  ;;  %v1618_v47 = vsel %vm1612_vm5, %v1553_v6, %v8986_v18  ;;  %v9460_v6 = vld [vmem:[%s15928_s0 + $0x138] sm:$0xff] }
 0x206   :  { %v9403_v1 = vpop.permute.xlu0 %1206  ;;  %v1683_v24 = vsel %vm1677_vm7, %v1618_v47, %v9080_v29 }
 0x207   :  { %v1748_v37 = vsel %vm1742_vm6, %v1683_v24, %v9282_v25  ;;  %v9438_v25 = vld [vmem:[%s15928_s0 + $0x90] sm:$0xff] }
 0x208   :  { %v1813_v18 = vsel %vm1807_vm9, %v1748_v37, %v1259_v39 }
 0x20b   :  { %1460 = vrot.lane.b32.xlu2 %v16628_v5, %s7863_s16  ;;  %1390 = vrot.lane.b32.xlu1 %v16573_v55, %s7864_s14 }
 0x20c   :  { %1296 = vrot.lane.b32.xlu0 %v9421_v53, %s7865_s18 }
 0x20d   :  { %v1427_v45 = vpop.permute.xlu2 %1426  ;;  %v1423_v61 = vpop.permute.xlu1 %1422 }
 0x20e   :  { %v1353_v14 = vpop.permute.xlu0 %1352 }
 0x20f   :  { %v1878_v55 = vsel %vm1872_vm8, %v1813_v18, %v1353_v14 }
 0x210   :  { %v1943_v29 = vsel %vm1937_vm10, %v1878_v55, %v1423_v61  ;;  %v16631_v61 = vld [vmem:[#allocation59_spill] sm:$0xff]  ;;  %v16632_v55 = vld [vmem:[#allocation88_spill] sm:$0xff] }
 0x211   :  { %v1492_v18 = vsel %vm1482_vm3, %v8785_v38, %v16631_v61 }
 0x212   :  { %7350 = vmatmul.msk.bf16.gmra.mxu0 %vm2022_vm11, %v1943_v29  ;;  %v16633_v29 = vld [vmem:[#allocation13_spill] sm:$0xff] }
 0x213   :  { %1438 = vrot.lane.b32.xlu2 %v8574_v3, %s7863_s16  ;;  %1368 = vrot.lane.b32.xlu1 %v16552_v36, %s7864_s14  ;;  %v1490_v3 = vsel %vm1482_vm3, %v8792_v46, %v16629_v30 }
 0x214   :  { %1274 = vrot.lane.b32.xlu0 %v9438_v25, %s7865_s18  ;;  %v1555_v36 = vsel %vm1547_vm4, %v1490_v3, %v8796_v33 }
 0x215   :  { %v9442_v39 = vpop.permute.xlu2 %1222  ;;  %v1261_v49 = vpop.permute.xlu1 %1260  ;;  %v1620_v44 = vsel %vm1612_vm5, %v1555_v36, %v8984_v54  ;;  %v9497_v36 = vld [vmem:[%s15928_s0 + $0x144] sm:$0xff] }
 0x216   :  { %v9444_v40 = vpop.permute.xlu0 %1212  ;;  %v1685_v16 = vsel %vm1677_vm7, %v1620_v44, %v9132_v10 }
 0x217   :  { %v1750_v33 = vsel %vm1742_vm6, %v1685_v16, %v9222_v62  ;;  %v9477_v62 = vld [vmem:[%s15928_s0 + $0x9c] sm:$0xff] }
 0x21b   :  { %1392 = vrot.lane.b32.xlu2 %v8445_v20, %s7864_s14  ;;  %1298 = vrot.lane.b32.xlu1 %v9460_v6, %s7865_s18  ;;  %v1815_v20 = vsel %vm1807_vm9, %v1750_v33, %v1261_v49 }
 0x21c   :  { %1224 = vrot.lane.b32.xlu0 %v16628_v5, %s7862_s15  ;;  %v1880_v10 = vsel %vm1872_vm8, %v1815_v20, %v1355_v51  ;;  %v16630_v5 = vld [vmem:[#allocation33_spill] sm:$0xff]  ;;  %v9518_v20 = vld [vmem:[%s15928_s0 + $0xa8] sm:$0xff] }
 0x21d   :  { %v1429_v46 = vpop.permute.xlu2 %1428  ;;  %v1215_v54 = vpop.permute.xlu1 %1214 }
 0x21e   :  { %v1425_v47 = vpop.permute.xlu0 %1424 }
 0x21f   :  { %v1945_v24 = vsel %vm1937_vm10, %v1880_v10, %v1425_v47 }
 0x222   :  { %7351 = vmatmul.msk.bf16.gmra.mxu0 %vm2022_vm11, %v1945_v24  ;;  %v16635_v24 = vld [vmem:[#allocation60_spill] sm:$0xff] }
 0x223   :  { %1370 = vrot.lane.b32.xlu2 %v16559_v48, %s7864_s14  ;;  %1276 = vrot.lane.b32.xlu1 %v9477_v62, %s7865_s18  ;;  %v1557_v48 = vsel %vm1547_vm4, %v1492_v18, %v16632_v55  ;;  %v16637_v18 = vld [vmem:[#allocation104_spill] sm:$0xff] }
 0x224   :  { %1462 = vrot.lane.b32.xlu0 %v16630_v5, %s7863_s16  ;;  %v1622_v49 = vsel %vm1612_vm5, %v1557_v48, %v16633_v29  ;;  %v16638_v48 = vld [vmem:[#allocation35_spill] sm:$0xff] }
 0x225   :  { %v1453_v37 = vpop.permute.xlu2 %1452  ;;  %v1357_v51 = vpop.permute.xlu1 %1356  ;;  %v1687_v30 = vsel %vm1677_vm7, %v1622_v49, %v9130_v35  ;;  %v16639_v49 = vld [vmem:[#allocation99_spill] sm:$0xff] }
 0x226   :  { %v1263_v14 = vpop.permute.xlu0 %1262  ;;  %v1752_v3 = vsel %vm1742_vm6, %v1687_v30, %v9297_v4 }
 0x227   :  { %v1817_v38 = vsel %vm1807_vm9, %v1752_v3, %v1263_v14 }
 0x228   :  { %v1882_v16 = vsel %vm1872_vm8, %v1817_v38, %v1357_v51  ;;  %v16636_v51 = vld [vmem:[#allocation87_spill] sm:$0xff] }
 0x229   :  { %v1947_v33 = vsel %vm1937_vm10, %v1882_v16, %v1427_v45  ;;  %v1494_v45 = vsel %vm1482_vm3, %v8778_v19, %v16635_v24  ;;  %v16640_v38 = vld [vmem:[#allocation23_spill] sm:$0xff] }
 0x22a   :  { %v1559_v61 = vsel %vm1547_vm4, %v1494_v45, %v16636_v51 }
 0x22b   :  { %1300 = vrot.lane.b32.xlu2 %v9497_v36, %s7865_s18  ;;  %1226 = vrot.lane.b32.xlu1 %v16630_v5, %s7862_s15  ;;  %v1624_v14 = vsel %vm1612_vm5, %v1559_v61, %v16637_v18  ;;  %v16643_v61 = vld [vmem:[#allocation27_spill] sm:$0xff] }
 0x22c   :  { %1440 = vrot.lane.b32.xlu0 %v8607_v32, %s7863_s16  ;;  %v16634_v32 = vld [vmem:[#allocation68_spill] sm:$0xff]  ;;  %v1689_v55 = vsel %vm1677_vm7, %v1624_v14, %v9092_v0  ;;  %v1496_v18 = vsel %vm1482_vm3, %v9206_v42, %v16643_v61 }
 0x22d   :  { %v9506_v35 = vpop.permute.xlu2 %1430  ;;  %v9508_v44 = vpop.permute.xlu1 %1220  ;;  %v1754_v19 = vsel %vm1742_vm6, %v1689_v55, %v9295_v13  ;;  %v16644_v55 = vld [vmem:[#allocation79_spill] sm:$0xff] }
 0x22e   :  { %v9510_v4 = vpop.permute.xlu0 %1218 }
 0x232   :  { %7352 = vmatmul.msk.bf16.gmra.mxu0 %vm2022_vm11, %v1947_v33 }
 0x233   :  { %1278 = vrot.lane.b32.xlu2 %v9518_v20, %s7865_s18  ;;  %1464 = vrot.lane.b32.xlu1 %v16634_v32, %s7863_s16 }
 0x234   :  { %1394 = vrot.lane.b32.xlu0 %v8433_v23, %s7864_s14  ;;  %v7763_v23 = vld [vmem:[%s15928_s0 + $0xe4] sm:$0xff] }
 0x235   :  { %v1455_v47 = vpop.permute.xlu2 %1454  ;;  %v1359_v10 = vpop.permute.xlu1 %1358  ;;  %v1518_v29 = vsel %vm1482_vm3, %v7763_v23, %v16638_v48  ;;  %v1561_v23 = vsel %vm1547_vm4, %v1496_v18, %v16644_v55  ;;  %v16645_v48 = vld [vmem:[#allocation30_spill] sm:$0xff] }
 0x236   :  { %v1265_v5 = vpop.permute.xlu0 %1264  ;;  %v1583_v30 = vsel %vm1547_vm4, %v1518_v29, %v16639_v49  ;;  %v1626_v29 = vsel %vm1612_vm5, %v1561_v23, %v16645_v48  ;;  %v9590_v49 = vld [vmem:[%s15928_s0 + $0xf0] sm:$0xff]  ;;  %v16654_v48 = vld [vmem:[#allocation91_spill] sm:$0xff] }
 0x237   :  { %v1819_v3 = vsel %vm1807_vm9, %v1754_v19, %v1265_v5  ;;  %v1648_v0 = vsel %vm1612_vm5, %v1583_v30, %v9057_v41  ;;  %v1691_v19 = vsel %vm1677_vm7, %v1626_v29, %v9144_v22  ;;  %v16646_v30 = vld [vmem:[#allocation73_spill] sm:$0xff] }
 0x238   :  { %v1713_v13 = vsel %vm1677_vm7, %v1648_v0, %v9140_v43  ;;  %v1884_v45 = vsel %vm1872_vm8, %v1819_v3, %v1359_v10  ;;  %v16641_v43 = vld [vmem:[#allocation53_spill] sm:$0xff]  ;;  %v1520_v3 = vsel %vm1482_vm3, %v9590_v49, %v16646_v30  ;;  %v1756_v42 = vsel %vm1742_vm6, %v1691_v19, %v9242_v9 }
 0x239   :  { %v1949_v41 = vsel %vm1937_vm10, %v1884_v45, %v1429_v46  ;;  %v9572_v10 = vld [vmem:[%s15928_s0 + $0x150] sm:$0xff] }
 0x23a   :  { %v16647_v0 = vld [vmem:[#allocation89_spill] sm:$0xff] }
 0x23b   :  { %1228 = vrot.lane.b32.xlu2 %v16634_v32, %s7862_s15  ;;  %1442 = vrot.lane.b32.xlu1 %v8604_v34, %s7863_s16  ;;  %v1778_v32 = vsel %vm1742_vm6, %v1713_v13, %v1215_v54  ;;  %v16642_v54 = vld [vmem:[#allocation43_spill] sm:$0xff]  ;;  %v16655_v19 = vld [vmem:[#allocation9_spill] sm:$0xff] }
 0x23c   :  { %1372 = vrot.lane.b32.xlu0 %v16640_v38, %s7864_s14  ;;  %v1585_v38 = vsel %vm1547_vm4, %v1520_v3, %v16647_v0  ;;  %v16656_v3 = vld [vmem:[#allocation72_spill] sm:$0xff] }
 0x23d   :  { %v9553_v16 = vpop.permute.xlu2 %1432  ;;  %v1383_v33 = vpop.permute.xlu1 %1382  ;;  %v1650_v22 = vsel %vm1612_vm5, %v1585_v38, %v9055_v17  ;;  %v2939_v38 = vld [vmem:[#allocation2 + $0x14] sm:$0x1] }
 0x23e   :  { %v1289_v24 = vpop.permute.xlu0 %1288 }
 0x23f   :  { %v1843_v5 = vsel %vm1807_vm9, %v1778_v32, %v1289_v24  ;;  %v9609_v32 = vld [vmem:[%s15928_s0 + $0xb4] sm:$0xff]  ;;  %v1715_v24 = vsel %vm1677_vm7, %v1650_v22, %v9197_v59  ;;  %v2829_v59 = vld [vmem:[#allocation2 + $0xc] sm:$0x1] }
 0x240   :  { %v1908_v34 = vsel %vm1872_vm8, %v1843_v5, %v1383_v33  ;;  %v16648_v33 = vld [vmem:[#allocation32_spill] sm:$0xff]  ;;  %v2830_v61 = vsel %vm9638_vm14, 0, %v2829_v59 }
 0x241   :  { %v1973_v51 = vsel %vm1937_vm10, %v1908_v34, %v1453_v37  ;;  %2831 = vst [vmem:[#allocation2 + $0xc] sm:$0x1] %v2830_v61 }
 0x242   :  { %7353 = vmatmul.msk.bf16.gmra.mxu0 %vm2022_vm11, %v1949_v41  ;;  %7365 = vmatmul.msk.bf16.vlgmr.msra.gmra.mxu3 %vm2022_vm11, %v1973_v51 }
 0x243   :  { %1396 = vrot.lane.b32.xlu1 %v16641_v43, %s7864_s14  ;;  %1466 = vrot.lane.b32.xlu2 %v16642_v54, %s7863_s16 }
 0x244   :  { %1302 = vrot.lane.b32.xlu0 %v9572_v10, %s7865_s18 }
 0x245   :  { %v9576_v46 = vpop.permute.xlu2 %1456  ;;  %v1361_v37 = vpop.permute.xlu1 %1360 }
 0x246   :  { %v1267_v14 = vpop.permute.xlu0 %1266 }
 0x247   :  { %v1821_v13 = vsel %vm1807_vm9, %v1756_v42, %v1267_v14  ;;  %v16653_v14 = vld [vmem:[#allocation22_spill] sm:$0xff]  ;;  %v1522_v42 = vsel %vm1482_vm3, %v9258_v56, %v16656_v3  ;;  %v2940_v56 = vsel %vm9664_vm2, 0, %v2939_v38 }
 0x248   :  { %v1886_v17 = vsel %vm1872_vm8, %v1821_v13, %v1361_v37  ;;  %v16649_v37 = vld [vmem:[#allocation56_spill] sm:$0xff]  ;;  %v1498_v55 = vsel %vm1482_vm3, %v9238_v52, %v16653_v14  ;;  %v16657_v52 = vmov 0  ;;  %v16660_v13 = vld [vmem:[#allocation103_spill] sm:$0xff]  ;;  %2941 = vst [vmem:[#allocation2 + $0x14] sm:$0x1] %v2940_v56 }
 0x249   :  { %v1951_v51 = vsel %vm1937_vm10, %v1886_v17, %v9506_v35  ;;  %v16650_v35 = vmov 0  ;;  %v1563_v29 = vsel %vm1547_vm4, %v1498_v55, %v16654_v48  ;;  %v16658_v52 = vsel %vm9664_vm2, 4294967295, %v16657_v52  ;;  %v16669_v56 = vld [vmem:[#allocation139_spill] sm:$0xff] }
 0x24a   :  { %v16651_v35 = vsel %vm9638_vm14, 4294967295, %v16650_v35  ;;  %v1628_v30 = vsel %vm1612_vm5, %v1563_v29, %v16655_v19  ;;  %16659 = vst [vmem:[#allocation20_spill] sm:$0xff] %v16658_v52  ;;  %v16664_v29 = vld [vmem:[#allocation61_spill] sm:$0xff] }
 0x24b   :  { %1374 = vrot.lane.b32.xlu1 %v16648_v33, %s7864_s14  ;;  %1444 = vrot.lane.b32.xlu2 %v8601_v2, %s7863_s16  ;;  %v1780_v2 = vsel %vm1742_vm6, %v1715_v24, %v9399_v21  ;;  %v9630_v21 = vld [vmem:[%s15928_s0 + $0x15c] sm:$0xff]  ;;  %16652 = vst [vmem:[#allocation64_spill] sm:$0xff] %v16651_v35  ;;  %v1587_v33 = vsel %vm1547_vm4, %v1522_v42, %v16660_v13 }
 0x24c   :  { %1280 = vrot.lane.b32.xlu0 %v9609_v32, %s7865_s18  ;;  %v1500_v19 = vsel %vm1482_vm3, %v9278_v7, %v16664_v29  ;;  %v16666_v42 = vld [vmem:[#allocation38_spill] sm:$0xff] }
 0x24d   :  { %v9613_v9 = vpop.permute.xlu2 %1434  ;;  %v1385_v45 = vpop.permute.xlu1 %1384 }
 0x24e   :  { %v1291_v5 = vpop.permute.xlu0 %1290 }
 0x24f   :  { %v1845_v34 = vsel %vm1807_vm9, %v1780_v2, %v1291_v5 }
 0x250   :  { %v1910_v41 = vsel %vm1872_vm8, %v1845_v34, %v1385_v45  ;;  %v16663_v45 = vld [vmem:[#allocation39_spill] sm:$0xff] }
 0x251   :  { %v1975_v43 = vsel %vm1937_vm10, %v1910_v41, %v1455_v47 }
 0x252   :  { %7354 = vmatmul.msk.bf16.gmra.mxu0 %vm2022_vm11, %v1951_v51  ;;  %7366 = vmatmul.msk.bf16.gmra.mxu3 %vm2022_vm11, %v1975_v43  ;;  %v85_v51 = vld [vmem:[%s15928_s0 + $0xd4] sm:$0x1] }
 0x253   :  { %1304 = vrot.lane.b32.xlu1 %v9630_v21, %s7865_s18  ;;  %1398 = vrot.lane.b32.xlu2 %v16649_v37, %s7864_s14  ;;  %v1320_v61 = vunpack.c.l.b16 %v85_v51  ;;  %v16673_v51 = vld [vmem:[#allocation114_spill] sm:$0xff] }
 0x254   :  { %1230 = vrot.lane.b32.xlu0 %v16642_v54, %s7862_s15  ;;  %v1693_v54 = vsel %vm1677_vm7, %v1628_v30, %v9142_v50  ;;  %v16661_v50 = vld [vmem:[#allocation18_spill] sm:$0xff] }
 0x255   :  { %v9644_v47 = vpop.permute.xlu2 %1458  ;;  %v1363_v18 = vpop.permute.xlu1 %1362  ;;  %v1758_v0 = vsel %vm1742_vm6, %v1693_v54, %v9314_v57  ;;  %v16662_v57 = vld [vmem:[#allocation49_spill] sm:$0xff]  ;;  %v16665_v54 = vld [vmem:[#allocation90_spill] sm:$0xff] }
 0x256   :  { %v1269_v23 = vpop.permute.xlu0 %1268  ;;  %v1652_v24 = vsel %vm1612_vm5, %v1587_v33, %v16662_v57  ;;  %v1565_v3 = vsel %vm1547_vm4, %v1500_v19, %v16665_v54 }
 0x257   :  { %v1823_v22 = vsel %vm1807_vm9, %v1758_v0, %v1269_v23  ;;  %v1717_v5 = vsel %vm1677_vm7, %v1652_v24, %v9195_v15  ;;  %v1322_v23 = vpack.c.b16 %v1320_v61, %v1320_v61  ;;  %v16667_v0 = vld [vmem:[#allocation119_spill] sm:$0xff]  ;;  %v16670_v24 = vld [vmem:[#allocation142_spill] sm:$0xff] }
 0x258   :  { %v1888_v41 = vsel %vm1872_vm8, %v1823_v22, %v1363_v18  ;;  %v9707_v18 = vld [vmem:[%s15928_s0 + $0x168] sm:$0xff] }
 0x259   :  { %v1953_v37 = vsel %vm1937_vm10, %v1888_v41, %v9553_v16  ;;  %v2832_v16 = vld [vmem:[#allocation2 + $0x18] sm:$0x1]  ;;  %v1332_v22 = vshll.u32 %v1322_v23, 16  ;;  %v1413_v61 = vrot.slane %v1322_v23, 1 }
 0x25a   :  { %v2833_v14 = vsel %vm9638_vm14, 0, %v2832_v16  ;;  %v16675_v16 = vld [vmem:[#allocation124_spill] sm:$0xff] }
 0x25b   :  { %1282 = vrot.lane.b32.xlu1 %v8841_v58, %s7865_s18  ;;  %1376 = vrot.lane.b32.xlu2 %v16661_v50, %s7864_s14  ;;  %v1782_v58 = vsel %vm1742_vm6, %v1717_v5, %v9510_v4  ;;  %v7652_v4 = vld [vmem:[%s15928_s0 + $0xcc] sm:$0xff]  ;;  %2834 = vst [vmem:[#allocation2 + $0x18] sm:$0x1] %v2833_v14  ;;  %v16671_v5 = vld [vmem:[#allocation102_spill] sm:$0xff]  ;;  %v1334_v19 = vrot.slane %v1332_v22, 1 }
 0x25c   :  { %1468 = vrot.lane.b32.xlu0 %v16663_v45, %s7863_s16  ;;  %v1327_v48 = vshll.u32 %v7652_v4, 16  ;;  %v1325_v13 = vshrl.u32 %v7652_v4, 16  ;;  %v16668_v50 = vld [vmem:[#allocation41_spill] sm:$0xff] }
 0x25d   :  { %v9681_v2 = vpop.permute.xlu2 %1436  ;;  %v1387_v17 = vpop.permute.xlu1 %1386  ;;  %v1524_v57 = vsel %vm1482_vm3, %v16669_v56, %v16668_v50 }
 0x25e   :  { %v1293_v34 = vpop.permute.xlu0 %1292  ;;  %v1329_v33 = vrot.slane %v1327_v48, 1 }
 0x25f   :  { %v1847_v43 = vsel %vm1807_vm9, %v1782_v58, %v1293_v34  ;;  %v16672_v34 = vld [vmem:[#allocation70_spill] sm:$0xff] }
 0x260   :  { %v1912_v59 = vsel %vm1872_vm8, %v1847_v43, %v1387_v17  ;;  %v1589_v17 = vsel %vm1547_vm4, %v1524_v57, %v16671_v5  ;;  %v1330_v29 = vor.u32 %v1329_v33, %v1325_v13  ;;  %v16677_v33 = vld [vmem:[#allocation140_spill] sm:$0xff]  ;;  %v16678_v57 = vld [vmem:[#allocation82_spill] sm:$0xff] }
 0x261   :  { %v1977_v15 = vsel %vm1937_vm10, %v1912_v59, %v9576_v46  ;;  %v1654_v43 = vsel %vm1612_vm5, %v1589_v17, %v16673_v51  ;;  %v16674_v59 = vld [vmem:[#allocation55_spill] sm:$0xff]  ;;  %v16680_v17 = vld [vmem:[#allocation126_spill] sm:$0xff]  ;;  %v16682_v51 = vld [vmem:[#allocation136_spill] sm:$0xff] }
 0x262   :  { %7355 = vmatmul.msk.bf16.gmra.mxu0 %vm2022_vm11, %v1953_v37  ;;  %7367 = vmatmul.msk.bf16.gmra.mxu3 %vm2022_vm11, %v1977_v15  ;;  %v1412_v15 = vrot.slane %v7652_v4, 1  ;;  %v1719_v14 = vsel %vm1677_vm7, %v1654_v43, %v16675_v16  ;;  %v1335_v13 = vsel %vm396_vm0, %v1330_v29, %v1334_v19  ;;  %v16686_v19 = vld [vmem:[#allocation113_spill] sm:$0xff] }
 0x263   :  { %1232 = vrot.lane.b32.xlu1 %v16663_v45, %s7862_s15  ;;  %1306 = vrot.lane.b32.xlu2 %v9707_v18, %s7865_s18  ;;  %v2942_v45 = vld [vmem:[#allocation2 + $0x20] sm:$0x1] }
 0x264   :  { %1446 = vrot.lane.b32.xlu0 %v9161_v28, %s7863_s16  ;;  %v1630_v28 = vsel %vm1612_vm5, %v1565_v3, %v16666_v42  ;;  %v2943_v41 = vsel %vm9664_vm2, 0, %v2942_v45  ;;  %v1414_v23 = vsel %vm845_vm1, %v1412_v15, %v1413_v61  ;;  %v16679_v45 = vld [vmem:[#allocation37_spill] sm:$0xff]  ;;  %v16683_v15 = vld [vmem:[#allocation92_spill] sm:$0xff] }
 0x265   :  { %v9713_v46 = vpop.permute.xlu2 %1460  ;;  %v1365_v55 = vpop.permute.xlu1 %1364  ;;  %v1695_v38 = vsel %vm1677_vm7, %v1630_v28, %v16667_v0  ;;  %2944 = vst [vmem:[#allocation2 + $0x20] sm:$0x1] %v2943_v41 }
 0x266   :  { %v1271_v30 = vpop.permute.xlu0 %1270  ;;  %v1760_v7 = vsel %vm1742_vm6, %v1695_v38, %v16670_v24 }
 0x267   :  { %v1825_v58 = vsel %vm1807_vm9, %v1760_v7, %v1271_v30  ;;  %v1784_v30 = vsel %vm1742_vm6, %v1719_v14, %v9508_v44  ;;  %v2835_v44 = vld [vmem:[#allocation2 + $0x24] sm:$0x1]  ;;  %v16684_v14 = vld [vmem:[#allocation54_spill] sm:$0xff] }
 0x268   :  { %v1890_v3 = vsel %vm1872_vm8, %v1825_v58, %v1365_v55 }
 0x269   :  { %v1955_v0 = vsel %vm1937_vm10, %v1890_v3, %v9613_v9  ;;  %v2836_v9 = vsel %vm9638_vm14, 0, %v2835_v44 }
 0x26a   :  { %2837 = vst [vmem:[#allocation2 + $0x24] sm:$0x1] %v2836_v9 }
 0x26b   :  { %1470 = vrot.lane.b32.xlu1 %v16672_v34, %s7863_s16  ;;  %1284 = vrot.lane.b32.xlu2 %v7652_v4, %s7865_s18 }
 0x26c   :  { %1400 = vrot.lane.b32.xlu0 %v16674_v59, %s7864_s14  ;;  %v2945_v59 = vld [vmem:[#allocation2 + $0x2c] sm:$0x1] }
 0x26d   :  { %v9743_v37 = vpop.permute.xlu2 %1438  ;;  %v1389_v48 = vpop.permute.xlu1 %1388  ;;  %v2946_v29 = vsel %vm9664_vm2, 0, %v2945_v59  ;;  %v2948_v59 = vld [vmem:[#allocation2 + $0x38] sm:$0x1] }
 0x26e   :  { %v1295_v54 = vpop.permute.xlu0 %1294  ;;  %2947 = vst [vmem:[#allocation2 + $0x2c] sm:$0x1] %v2946_v29  ;;  %v16698_v29 = vld [vmem:[#allocation10_spill] sm:$0xff] }
 0x26f   :  { %v1849_v42 = vsel %vm1807_vm9, %v1784_v30, %v1295_v54  ;;  %v9751_v28 = vpop.f32.mrf.mxu0  ;;  %v9800_v30 = vld [vmem:[%s15928_s0 + $0x174] sm:$0xff] }
 0x270   :  { %v1914_v4 = vsel %vm1872_vm8, %v1849_v42, %v1389_v48  ;;  %v16685_v48 = vld [vmem:[#allocation51_spill] sm:$0xff]  ;;  %v16687_v54 = vld [vmem:[#allocation134_spill] sm:$0xff] }
 0x271   :  { %v1979_v38 = vsel %vm1937_vm10, %v1914_v4, %v9644_v47  ;;  %v16676_v47 = vld [vmem:[#allocation29_spill] sm:$0xff] }
 0x272   :  { %7356 = vmatmul.msk.bf16.gmra.mxu0 %vm2022_vm11, %v1955_v0  ;;  %7368 = vmatmul.msk.bf16.gmra.mxu3 %vm2022_vm11, %v1979_v38  ;;  %v1502_v22 = vsel %vm1482_vm3, %v16677_v33, %v16676_v47 }
 0x273   :  { %1448 = vrot.lane.b32.xlu1 %v1414_v23, %s7863_s16  ;;  %1234 = vrot.lane.b32.xlu2 %v16672_v34, %s7862_s15  ;;  %v1567_v24 = vsel %vm1547_vm4, %v1502_v22, %v16678_v57  ;;  %v16681_v34 = vld [vmem:[#allocation76_spill] sm:$0xff]  ;;  %v2838_v22 = vld [vmem:[#allocation2 + $0x30] sm:$0x1] }
 0x274   :  { %1378 = vrot.lane.b32.xlu0 %v1335_v13, %s7864_s14  ;;  %v1632_v5 = vsel %vm1612_vm5, %v1567_v24, %v16679_v45  ;;  %v1526_v41 = vsel %vm1482_vm3, %v9332_v12, %v16681_v34  ;;  %v16692_v45 = vld [vmem:[#allocation94_spill] sm:$0xff] }
 0x275   :  { %v1367_v55 = vpop.permute.xlu1 %1366  ;;  %v9771_v50 = vpop.permute.xlu2 %1392  ;;  %v1697_v58 = vsel %vm1677_vm7, %v1632_v5, %v16680_v17  ;;  %v1591_v61 = vsel %vm1547_vm4, %v1526_v41, %v16683_v15  ;;  %v16695_v41 = vld [vmem:[#allocation125_spill] sm:$0xff]  ;;  %v9848_v15 = vld [vmem:[%s15928_s0 + $0x180] sm:$0xff] }
 0x276   :  { %v1273_v56 = vpop.permute.xlu0 %1272  ;;  %v1762_v43 = vsel %vm1742_vm6, %v1697_v58, %v16682_v51  ;;  %v1656_v12 = vsel %vm1612_vm5, %v1591_v61, %v16686_v19  ;;  %v16694_v58 = vld [vmem:[#allocation15_spill] sm:$0xff]  ;;  %v16696_v61 = vld [vmem:[#allocation58_spill] sm:$0xff] }
 0x277   :  { %v9775_v7 = vpop.f32.mrf.mxu0  ;;  %v1827_v16 = vsel %vm1807_vm9, %v1762_v43, %v1273_v56  ;;  %v1721_v3 = vsel %vm1677_vm7, %v1656_v12, %v16687_v54  ;;  %v16699_v54 = vld [vmem:[#allocation45_spill] sm:$0xff] }
 0x278   :  { %v1786_v4 = vsel %vm1742_vm6, %v1721_v3, %v9442_v39  ;;  %v1892_v0 = vsel %vm1872_vm8, %v1827_v16, %v1367_v55  ;;  %v16689_v39 = vld [vmem:[#allocation40_spill] sm:$0xff]  ;;  %v16690_v55 = vld [vmem:[#allocation21_spill] sm:$0xff]  ;;  %v2949_v16 = vsel %vm9664_vm2, 0, %v2948_v59 }
 0x279   :  { %v1957_v47 = vsel %vm1937_vm10, %v1892_v0, %v9681_v2  ;;  %v2839_v2 = vsel %vm9638_vm14, 0, %v2838_v22  ;;  %2950 = vst [vmem:[#allocation2 + $0x38] sm:$0x1] %v2949_v16 }
 0x27a   :  { %2840 = vst [vmem:[#allocation2 + $0x30] sm:$0x1] %v2839_v2 }
 0x27b   :  { %1402 = vrot.lane.b32.xlu1 %v16684_v14, %s7864_s14  ;;  %1472 = vrot.lane.b32.xlu2 %v16685_v48, %s7863_s16 }
 0x27c   :  { %1308 = vrot.lane.b32.xlu0 %v9800_v30, %s7865_s18 }
 0x27d   :  { %v1391_v42 = vpop.permute.xlu1 %1390  ;;  %v9812_v44 = vpop.permute.xlu2 %1370 }
 0x27e   :  { %v1297_v23 = vpop.permute.xlu0 %1296 }
 0x27f   :  { %v1851_v38 = vsel %vm1807_vm9, %v1786_v4, %v1297_v23  ;;  %v9810_v13 = vpop.f32.mrf.mxu0  ;;  %v16700_v23 = vld [vmem:[#allocation133_spill] sm:$0xff] }
 0x280   :  { %16688 = vst [vmem:[#allocation63_spill] sm:$0xff] %v9810_v13  ;;  %v1916_v9 = vsel %vm1872_vm8, %v1851_v38, %v1391_v42 }
 0x281   :  { %v1981_v33 = vsel %vm1937_vm10, %v1916_v9, %v9713_v46  ;;  %v16691_v46 = vld [vmem:[#allocation44_spill] sm:$0xff] }
 0x282   :  { %7357 = vmatmul.msk.bf16.gmra.mxu0 %vm2022_vm11, %v1957_v47  ;;  %7369 = vmatmul.msk.bf16.gmra.mxu3 %vm2022_vm11, %v1981_v33  ;;  %v1504_v57 = vsel %vm1482_vm3, %v9351_v31, %v16691_v46  ;;  %v16701_v47 = vld [vmem:[#allocation48_spill] sm:$0xff] }
 0x283   :  { %1380 = vrot.lane.b32.xlu1 %v16689_v39, %s7864_s14  ;;  %1450 = vrot.lane.b32.xlu2 %v16690_v55, %s7863_s16  ;;  %v1569_v5 = vsel %vm1547_vm4, %v1504_v57, %v16692_v45  ;;  %v9880_v33 = vld [vmem:[%s15928_s0 + $0x18c] sm:$0xff]  ;;  %v2841_v39 = vld [vmem:[#allocation2 + $0x3c] sm:$0x1] }
 0x284   :  { %1286 = vrot.lane.b32.xlu0 %v9590_v49, %s7865_s18  ;;  %v1634_v34 = vsel %vm1612_vm5, %v1569_v5, %v16694_v58  ;;  %v139_v5 = vld [vmem:[%s15928_s0 + $0x1ac] sm:$0x1]  ;;  %v16703_v58 = vld [vmem:[#allocation93_spill] sm:$0xff] }
 0x285   :  { %v1369_v56 = vpop.permute.xlu1 %1368  ;;  %v1699_v49 = vsel %vm1677_vm7, %v1634_v34, %v16695_v41  ;;  %v9842_v43 = vpop.permute.xlu2 %1300  ;;  %v16704_v41 = vld [vmem:[#allocation105_spill] sm:$0xff] }
 0x286   :  { %v1275_v24 = vpop.permute.xlu0 %1274  ;;  %v1764_v51 = vsel %vm1742_vm6, %v1699_v49, %v9359_v11  ;;  %v16697_v11 = vld [vmem:[#allocation75_spill] sm:$0xff] }
 0x287   :  { %v9834_v17 = vpop.f32.mrf.mxu0  ;;  %v1829_v31 = vsel %vm1807_vm9, %v1764_v51, %v1275_v24  ;;  %v1528_v14 = vsel %vm1482_vm3, %v9379_v63, %v16697_v11  ;;  %v16702_v24 = vld [vmem:[#allocation62_spill] sm:$0xff]  ;;  %v2951_v49 = vld [vmem:[#allocation2 + $0x44] sm:$0x1]  ;;  %v16707_v11 = vld [vmem:[#allocation57_spill] sm:$0xff] }
 0x288   :  { %16693 = vst [vmem:[#allocation31_spill] sm:$0xff] %v9834_v17  ;;  %v1593_v19 = vsel %vm1547_vm4, %v1528_v14, %v16698_v29  ;;  %v1894_v4 = vsel %vm1872_vm8, %v1829_v31, %v1369_v56  ;;  %v1506_v45 = vsel %vm1482_vm3, %v9395_v60, %v16702_v24  ;;  %v16705_v51 = vld [vmem:[#allocation122_spill] sm:$0xff]  ;;  %v1321_v60 = vunpack.c.l.b16 %v139_v5 }
 0x289   :  { %v1658_v3 = vsel %vm1612_vm5, %v1593_v19, %v16699_v54  ;;  %v1571_v34 = vsel %vm1547_vm4, %v1506_v45, %v16703_v58  ;;  %v16706_v31 = vld [vmem:[#allocation74_spill] sm:$0xff]  ;;  %v9922_v19 = vld [vmem:[%s15928_s0 + $0x1a4] sm:$0xff] }
 0x28a   :  { %v1723_v0 = vsel %vm1677_vm7, %v1658_v3, %v16700_v23  ;;  %v16709_v23 = vld [vmem:[#allocation107_spill] sm:$0xff] }
 0x28b   :  { %1310 = vrot.lane.b32.xlu1 %v9848_v15, %s7865_s18  ;;  %1404 = vrot.lane.b32.xlu2 %v16696_v61, %s7864_s14  ;;  %v2952_v61 = vsel %vm9664_vm2, 0, %v2951_v49  ;;  %v16712_v45 = vld [vmem:[#allocation127_spill] sm:$0xff] }
 0x28c   :  { %1236 = vrot.lane.b32.xlu0 %v16685_v48, %s7862_s15  ;;  %v1959_v48 = vsel %vm1937_vm10, %v1894_v4, %v9743_v37  ;;  %v2842_v37 = vsel %vm9638_vm14, 0, %v2841_v39  ;;  %2953 = vst [vmem:[#allocation2 + $0x44] sm:$0x1] %v2952_v61  ;;  %v1339_v39 = vshll.u32 %v9922_v19, 16 }
 0x28d   :  { %v1299_v12 = vpop.permute.xlu1 %1298  ;;  %v9884_v55 = vpop.permute.xlu2 %1278  ;;  %2843 = vst [vmem:[#allocation2 + $0x3c] sm:$0x1] %v2842_v37  ;;  %v16711_v37 = vld [vmem:[#allocation116_spill] sm:$0xff] }
 0x28e   :  { %v1225_v42 = vpop.permute.xlu0 %1224 }
 0x28f   :  { %v9868_v38 = vpop.f32.mrf.mxu0  ;;  %v1788_v63 = vsel %vm1742_vm6, %v1723_v0, %v1225_v42  ;;  %v1178_v0 = vrot.slane %v16709_v23, 1  ;;  %v16716_v23 = vld [vmem:[#allocation47_spill] sm:$0xff] }
 0x290   :  { %v1853_v9 = vsel %vm1807_vm9, %v1788_v63, %v1299_v12  ;;  %v16708_v12 = vld [vmem:[#allocation52_spill] sm:$0xff] }
 0x291   :  { %v1918_v56 = vsel %vm1872_vm8, %v1853_v9, %v9771_v50  ;;  %v1636_v50 = vsel %vm1612_vm5, %v1571_v34, %v16704_v41  ;;  %v1530_v54 = vsel %vm1482_vm3, %v9421_v53, %v16708_v12  ;;  %v16710_v63 = vld [vmem:[#allocation12_spill] sm:$0xff]  ;;  %v16713_v41 = vld [vmem:[#allocation111_spill] sm:$0xff] }
 0x292   :  { %7358 = vmatmul.msk.bf16.gmra.mxu0 %vm2022_vm11, %v1959_v48  ;;  %v1701_v59 = vsel %vm1677_vm7, %v1636_v50, %v16705_v51  ;;  %v1595_v48 = vsel %vm1547_vm4, %v1530_v54, %v16710_v63  ;;  %v16714_v54 = vld [vmem:[#allocation42_spill] sm:$0xff]  ;;  %v2954_v63 = vld [vmem:[#allocation2 + $0x50] sm:$0x1] }
 0x293   :  { %1238 = vrot.lane.b32.xlu1 %v16701_v47, %s7862_s15  ;;  %1312 = vrot.lane.b32.xlu2 %v9880_v33, %s7865_s18  ;;  %v1766_v16 = vsel %vm1742_vm6, %v1701_v59, %v9357_v27  ;;  %v7772_v27 = vld [vmem:[%s15928_s0 + $0x198] sm:$0xff]  ;;  %v1660_v53 = vsel %vm1612_vm5, %v1595_v48, %v16711_v37  ;;  %v16717_v48 = vld [vmem:[#allocation129_spill] sm:$0xff] }
 0x294   :  { %1474 = vrot.lane.b32.xlu0 %v16701_v47, %s7863_s16  ;;  %v1177_v4 = vrot.slane %v7772_v27, 1  ;;  %v1323_v47 = vpack.c.b16 %v1321_v60, %v1321_v60  ;;  %v1725_v5 = vsel %vm1677_vm7, %v1660_v53, %v16712_v45  ;;  %v16718_v37 = vld [vmem:[#allocation141_spill] sm:$0xff] }
 0x295   :  { %v1277_v22 = vpop.permute.xlu1 %1276  ;;  %v9927_v3 = vpop.permute.xlu2 %1228 }
 0x296   :  { %v1463_v2 = vpop.permute.xlu0 %1462  ;;  %v1831_v14 = vsel %vm1807_vm9, %v1766_v16, %v1277_v22  ;;  %v1344_v24 = vshll.u32 %v1323_v47, 16  ;;  %v1179_v58 = vsel %vm845_vm1, %v1177_v4, %v1178_v0 }
 0x297   :  { %v9892_v46 = vpop.f32.mrf.mxu0  ;;  %v1983_v57 = vsel %vm1937_vm10, %v1918_v56, %v1463_v2  ;;  %v1896_v22 = vsel %vm1872_vm8, %v1831_v14, %v9812_v44  ;;  %v1337_v56 = vshrl.u32 %v9922_v19, 16  ;;  %v2844_v44 = vld [vmem:[#allocation2 + $0x48] sm:$0x1] }
 0x298   :  { %7370 = vmatmul.msk.bf16.gmra.mxu3 %vm2022_vm11, %v1983_v57  ;;  %v1341_v57 = vrot.slane %v1339_v39, 1  ;;  %v2845_v50 = vsel %vm9638_vm14, 0, %v2844_v44  ;;  %v1346_v51 = vrot.slane %v1344_v24, 1  ;;  %v2955_v39 = vsel %vm9664_vm2, 0, %v2954_v63 }
 0x299   :  { %2846 = vst [vmem:[#allocation2 + $0x48] sm:$0x1] %v2845_v50  ;;  %v16719_v50 = vld [vmem:[#allocation78_spill] sm:$0xff] }
 0x29a   :  { %v1342_v49 = vor.u32 %v1341_v57, %v1337_v56  ;;  %v1416_v56 = vrot.slane %v1323_v47, 1  ;;  %2956 = vst [vmem:[#allocation2 + $0x50] sm:$0x1] %v2955_v39  ;;  %v16725_v39 = vld [vmem:[#allocation17_spill] sm:$0xff] }
 0x29b   :  { %1240 = vrot.lane.b32.xlu2 %v16706_v31, %s7862_s15  ;;  %1476 = vrot.lane.b32.xlu1 %v16706_v31, %s7863_s16 }
 0x29c   :  { %1406 = vrot.lane.b32.xlu0 %v16707_v11, %s7864_s14  ;;  %v1347_v12 = vsel %vm396_vm0, %v1342_v49, %v1346_v51  ;;  %v2847_v51 = vld [vmem:[#allocation2 + $0x54] sm:$0x1] }
 0x29d   :  { %v1227_v29 = vpop.permute.xlu1 %1226  ;;  %v1467_v11 = vpop.permute.xlu2 %1466 }
 0x29e   :  { %v1441_v42 = vpop.permute.xlu0 %1440  ;;  %v1790_v34 = vsel %vm1742_vm6, %v1725_v5, %v1227_v29  ;;  %v2886_v29 = vld [vmem:[#allocation2 + $0xf0] sm:$0x1] }
 0x29f   :  { %v9935_v9 = vpop.f32.mrf.mxu0  ;;  %v1961_v2 = vsel %vm1937_vm10, %v1896_v22, %v1441_v42  ;;  %v1855_v31 = vsel %vm1807_vm9, %v1790_v34, %v9842_v43  ;;  %v1508_v42 = vsel %vm1482_vm3, %v9438_v25, %v16714_v54  ;;  %v2887_v43 = vsel %vm9638_vm14, 0, %v2886_v29  ;;  %v2996_v34 = vld [vmem:[#allocation2 + $0xf8] sm:$0x1] }
 0x2a0   :  { %2888 = vst [vmem:[#allocation2 + $0xf0] sm:$0x1] %v2887_v43  ;;  %v2997_v44 = vsel %vm9664_vm2, 0, %v2996_v34  ;;  %v2999_v34 = vld [vmem:[#allocation2 + $0x104] sm:$0x1] }
 0x2a1   :  { %2998 = vst [vmem:[#allocation2 + $0xf8] sm:$0x1] %v2997_v44  ;;  %v3000_v44 = vsel %vm9664_vm2, 0, %v2999_v34 }
 0x2a2   :  { %7359 = vmatmul.msk.bf16.gmra.mxu0 %vm2022_vm11, %v1961_v2  ;;  %v1415_v2 = vrot.slane %v9922_v19, 1  ;;  %3001 = vst [vmem:[#allocation2 + $0x104] sm:$0x1] %v3000_v44  ;;  %v2853_v44 = vld [vmem:[#allocation2 + $0x6c] sm:$0x1] }
 0x2a3   :  { %1408 = vrot.lane.b32.xlu1 %v16713_v41, %s7864_s14  ;;  %1478 = vrot.lane.b32.xlu2 %v1179_v58, %s7863_s16 }
 0x2a4   :  { %1314 = vrot.lane.b32.xlu0 %v7772_v27, %s7865_s18  ;;  %v16715_v27 = vld [vmem:[#allocation85_spill] sm:$0xff]  ;;  %v1417_v41 = vsel %vm845_vm1, %v1415_v2, %v1416_v56 }
 0x2a5   :  { %v1465_v59 = vpop.permute.xlu1 %1464  ;;  %v1573_v4 = vsel %vm1547_vm4, %v1508_v42, %v16715_v27  ;;  %v1445_v47 = vpop.permute.xlu2 %1444  ;;  %v2889_v27 = vld [vmem:[#allocation2 + $0xfc] sm:$0x1] }
 0x2a6   :  { %v1395_v60 = vpop.permute.xlu0 %1394  ;;  %v1638_v0 = vsel %vm1612_vm5, %v1573_v4, %v16716_v23  ;;  %v2890_v23 = vsel %vm9638_vm14, 0, %v2889_v27 }
 0x2a7   :  { %v1920_v61 = vsel %vm1872_vm8, %v1855_v31, %v1395_v60  ;;  %v9958_v16 = vpop.f32.mrf.mxu0  ;;  %v1703_v25 = vsel %vm1677_vm7, %v1638_v0, %v16717_v48  ;;  %v2848_v60 = vsel %vm9638_vm14, 0, %v2847_v51  ;;  %v16723_v0 = vld [vmem:[#allocation36_spill] sm:$0xff]  ;;  %2891 = vst [vmem:[#allocation2 + $0xfc] sm:$0x1] %v2890_v23 }
 0x2a8   :  { %v1985_v14 = vsel %vm1937_vm10, %v1920_v61, %v1465_v59  ;;  %v1768_v53 = vsel %vm1742_vm6, %v1703_v25, %v16718_v37  ;;  %v16721_v59 = vld [vmem:[#allocation115_spill] sm:$0xff]  ;;  %v16722_v61 = vld [vmem:[#allocation25_spill] sm:$0xff]  ;;  %2849 = vst [vmem:[#allocation2 + $0x54] sm:$0x1] %v2848_v60  ;;  %v1510_v63 = vsel %vm1482_vm3, %v9477_v62, %v16723_v0  ;;  %v2957_v25 = vld [vmem:[#allocation2 + $0x5c] sm:$0x1] }
 0x2a9   :  { %7371 = vmatmul.msk.bf16.gmra.mxu3 %vm2022_vm11, %v1985_v14  ;;  %v1833_v57 = vsel %vm1807_vm9, %v1768_v53, %v9884_v55  ;;  %v16720_v55 = vld [vmem:[#allocation95_spill] sm:$0xff] }
 0x2ab   :  { %1316 = vrot.lane.b32.xlu1 %v9922_v19, %s7865_s18  ;;  %1410 = vrot.lane.b32.xlu2 %v1347_v12, %s7864_s14  ;;  %v1532_v19 = vsel %vm1482_vm3, %v9460_v6, %v16719_v50  ;;  %v2850_v50 = vld [vmem:[#allocation2 + $0x60] sm:$0x1] }
 0x2ac   :  { %1242 = vrot.lane.b32.xlu0 %v1179_v58, %s7862_s15  ;;  %v1597_v49 = vsel %vm1547_vm4, %v1532_v19, %v16720_v55  ;;  %v16727_v19 = vld [vmem:[#allocation77_spill] sm:$0xff]  ;;  %v2851_v55 = vsel %vm9638_vm14, 0, %v2850_v50  ;;  %v2854_v50 = vsel %vm9638_vm14, 0, %v2853_v44 }
 0x2ad   :  { %v1443_v22 = vpop.permute.xlu1 %1442  ;;  %v1662_v31 = vsel %vm1612_vm5, %v1597_v49, %v16721_v59  ;;  %v1399_v53 = vpop.permute.xlu2 %1398  ;;  %v16728_v49 = vld [vmem:[#allocation11_spill] sm:$0xff]  ;;  %2852 = vst [vmem:[#allocation2 + $0x60] sm:$0x1] %v2851_v55 }
 0x2ae   :  { %v1373_v24 = vpop.permute.xlu0 %1372  ;;  %v1727_v14 = vsel %vm1677_vm7, %v1662_v31, %v16722_v61  ;;  %v16729_v31 = vld [vmem:[#allocation106_spill] sm:$0xff]  ;;  %2855 = vst [vmem:[#allocation2 + $0x6c] sm:$0x1] %v2854_v50 }
 0x2af   :  { %v1898_v45 = vsel %vm1872_vm8, %v1833_v57, %v1373_v24  ;;  %v9986_v5 = vpop.f32.mrf.mxu0  ;;  %v1792_v29 = vsel %vm1742_vm6, %v1727_v14, %v9927_v3  ;;  %v16724_v3 = vld [vmem:[#allocation97_spill] sm:$0xff] }
 0x2b0   :  { %v1963_v58 = vsel %vm1937_vm10, %v1898_v45, %v1443_v22  ;;  %v1575_v48 = vsel %vm1547_vm4, %v1510_v63, %v16724_v3  ;;  %v16726_v22 = vld [vmem:[#allocation128_spill] sm:$0xff]  ;;  %v16731_v3 = vld [vmem:[#allocation65_spill] sm:$0xff] }
 0x2b1   :  { %v1640_v37 = vsel %vm1612_vm5, %v1575_v48, %v16725_v39  ;;  %v1512_v48 = vsel %vm1482_vm3, %v9518_v20, %v16731_v3 }
 0x2b2   :  { %7360 = vmatmul.msk.bf16.gmra.mxu0 %vm2022_vm11, %v1963_v58  ;;  %v1705_v2 = vsel %vm1677_vm7, %v1640_v37, %v16726_v22  ;;  %v16732_v37 = vld [vmem:[#allocation96_spill] sm:$0xff] }
 0x2b3   :  { %v1770_v62 = vsel %vm1742_vm6, %v1705_v2, %v9403_v1  ;;  %v1534_v1 = vsel %vm1482_vm3, %v9497_v36, %v16727_v19 }
 0x2b4   :  { %1480 = vrot.lane.b32.xlu0 %v1417_v41, %s7863_s16  ;;  %v1599_v51 = vsel %vm1547_vm4, %v1534_v1, %v16728_v49 }
 0x2b5   :  { %v1397_v6 = vpop.permute.xlu1 %1396  ;;  %v1664_v60 = vsel %vm1612_vm5, %v1599_v51, %v16729_v31  ;;  %v1377_v61 = vpop.permute.xlu2 %1376  ;;  %v16735_v51 = vld [vmem:[#allocation69_spill] sm:$0xff] }
 0x2b6   :  { %v1303_v12 = vpop.permute.xlu0 %1302 }
 0x2b7   :  { %v1857_v54 = vsel %vm1807_vm9, %v1792_v29, %v1303_v12  ;;  %v10008_v42 = vpop.f32.mrf.mxu0 }
 0x2b8   :  { %v1922_v43 = vsel %vm1872_vm8, %v1857_v54, %v1397_v6  ;;  %v16730_v6 = vld [vmem:[#allocation34_spill] sm:$0xff]  ;;  %v2892_v54 = vld [vmem:[#allocation2 + $0x108] sm:$0x1] }
 0x2b9   :  { %v1987_v4 = vsel %vm1937_vm10, %v1922_v43, %v1467_v11  ;;  %v2958_v11 = vsel %vm9664_vm2, 0, %v2957_v25  ;;  %v1729_v29 = vsel %vm1677_vm7, %v1664_v60, %v16730_v6  ;;  %v2893_v43 = vsel %vm9638_vm14, 0, %v2892_v54  ;;  %v16736_v60 = vld [vmem:[#allocation16_spill] sm:$0xff]  ;;  %v2895_v6 = vld [vmem:[#allocation2 + $0x114] sm:$0x1]  ;;  %v16738_v54 = vld [vmem:[#allocation130_spill] sm:$0xff] }
 0x2ba   :  { %7372 = vmatmul.msk.bf16.gmra.mxu3 %vm2022_vm11, %v1987_v4  ;;  %2959 = vst [vmem:[#allocation2 + $0x5c] sm:$0x1] %v2958_v11  ;;  %v2960_v4 = vld [vmem:[#allocation2 + $0x68] sm:$0x1]  ;;  %v1577_v11 = vsel %vm1547_vm4, %v1512_v48, %v16732_v37 }
 0x2bb   :  { %2894 = vst [vmem:[#allocation2 + $0x108] sm:$0x1] %v2893_v43  ;;  %v2961_v23 = vsel %vm9664_vm2, 0, %v2960_v4  ;;  %v2963_v4 = vld [vmem:[#allocation2 + $0x74] sm:$0x1] }
 0x2bc   :  { %2962 = vst [vmem:[#allocation2 + $0x68] sm:$0x1] %v2961_v23  ;;  %v2964_v23 = vsel %vm9664_vm2, 0, %v2963_v4 }
 0x2bd   :  { %v1375_v56 = vpop.permute.xlu1 %1374  ;;  %2965 = vst [vmem:[#allocation2 + $0x74] sm:$0x1] %v2964_v23  ;;  %v16748_v23 = vld [vmem:[#allocation135_spill] sm:$0xff] }
 0x2be   :  { %v1281_v57 = vpop.permute.xlu0 %1280 }
 0x2bf   :  { %v1835_v24 = vsel %vm1807_vm9, %v1770_v62, %v1281_v57  ;;  %v10029_v45 = vpop.f32.mrf.mxu0  ;;  %v1307_v57 = vpop.permute.xlu2 %1306 }
 0x2c0   :  { %v1900_v58 = vsel %vm1872_vm8, %v1835_v24, %v1375_v56  ;;  %v16733_v56 = vld [vmem:[#allocation109_spill] sm:$0xff] }
 0x2c1   :  { %v1965_v41 = vsel %vm1937_vm10, %v1900_v58, %v1445_v47  ;;  %v1642_v62 = vsel %vm1612_vm5, %v1577_v11, %v16733_v56  ;;  %v3002_v24 = vld [vmem:[#allocation2 + $0x110] sm:$0x1]  ;;  %v16734_v58 = vld [vmem:[#allocation123_spill] sm:$0xff]  ;;  %v16740_v56 = vld [vmem:[#allocation50_spill] sm:$0xff] }
 0x2c2   :  { %7361 = vmatmul.msk.bf16.gmra.mxu0 %vm2022_vm11, %v1965_v41  ;;  %v1707_v20 = vsel %vm1677_vm7, %v1642_v62, %v16734_v58  ;;  %v1514_v62 = vsel %vm1482_vm3, %v9609_v32, %v16740_v56  ;;  %v16741_v58 = vld [vmem:[#allocation86_spill] sm:$0xff] }
 0x2c3   :  { %v1772_v34 = vsel %vm1742_vm6, %v1707_v20, %v9401_v26  ;;  %v16742_v20 = vld [vmem:[#allocation108_spill] sm:$0xff] }
 0x2c5   :  { %v10043_v59 = vpop.f32.mrf.mxu3  ;;  %v1305_v47 = vpop.permute.xlu1 %1304 }
 0x2c6   :  { %v1231_v14 = vpop.permute.xlu0 %1230 }
 0x2c7   :  { %v10049_v12 = vpop.f32.mrf.mxu0  ;;  %v1794_v36 = vsel %vm1742_vm6, %v1729_v29, %v1231_v14  ;;  %v16737_v29 = vld [vmem:[#allocation118_spill] sm:$0xff] }
 0x2c8   :  { %v1859_v27 = vsel %vm1807_vm9, %v1794_v36, %v1305_v47  ;;  %v1536_v47 = vsel %vm1482_vm3, %v9572_v10, %v16735_v51  ;;  %v1285_v10 = vpop.permute.xlu2 %1284 }
 0x2c9   :  { %v1924_v39 = vsel %vm1872_vm8, %v1859_v27, %v1399_v53  ;;  %v3003_v53 = vsel %vm9664_vm2, 0, %v3002_v24  ;;  %v1601_v14 = vsel %vm1547_vm4, %v1536_v47, %v16736_v60 }
 0x2ca   :  { %3004 = vst [vmem:[#allocation2 + $0x110] sm:$0x1] %v3003_v53  ;;  %v1666_v36 = vsel %vm1612_vm5, %v1601_v14, %v16737_v29 }
 0x2cb   :  { %v1731_v43 = vsel %vm1677_vm7, %v1666_v36, %v16738_v54 }
 0x2cd   :  { %v10057_v0 = vpop.f32.mrf.mxu3  ;;  %v1283_v63 = vpop.permute.xlu1 %1282 }
 0x2ce   :  { %v1469_v25 = vpop.permute.xlu0 %1468  ;;  %v1837_v41 = vsel %vm1807_vm9, %v1772_v34, %v1283_v63  ;;  %v2856_v34 = vld [vmem:[#allocation2 + $0x78] sm:$0x1] }
 0x2cf   :  { %v10065_v22 = vpop.f32.mrf.mxu0  ;;  %v1989_v2 = vsel %vm1937_vm10, %v1924_v39, %v1469_v25  ;;  %v1902_v55 = vsel %vm1872_vm8, %v1837_v41, %v1377_v61  ;;  %v2896_v61 = vsel %vm9638_vm14, 0, %v2895_v6  ;;  %v16743_v41 = vld [vmem:[#allocation132_spill] sm:$0xff]  ;;  %v2857_v32 = vsel %vm9638_vm14, 0, %v2856_v34  ;;  %v2898_v6 = vld [vmem:[#allocation2 + $0x120] sm:$0x1] }
 0x2d0   :  { %7373 = vmatmul.msk.bf16.gmra.mxu3 %vm2022_vm11, %v1989_v2  ;;  %2897 = vst [vmem:[#allocation2 + $0x114] sm:$0x1] %v2896_v61  ;;  %v3005_v2 = vld [vmem:[#allocation2 + $0x11c] sm:$0x1]  ;;  %v1235_v50 = vpop.permute.xlu2 %1234  ;;  %v2899_v29 = vsel %vm9638_vm14, 0, %v2898_v6 }
 0x2d1   :  { %v3006_v24 = vsel %vm9664_vm2, 0, %v3005_v2  ;;  %2858 = vst [vmem:[#allocation2 + $0x78] sm:$0x1] %v2857_v32  ;;  %v16746_v61 = vld [vmem:[#allocation98_spill] sm:$0xff]  ;;  %v16751_v32 = vld [vmem:[#allocation24_spill] sm:$0xff] }
 0x2d2   :  { %3007 = vst [vmem:[#allocation2 + $0x11c] sm:$0x1] %v3006_v24  ;;  %v3008_v24 = vld [vmem:[#allocation2 + $0x128] sm:$0x1] }
 0x2d3   :  { %2900 = vst [vmem:[#allocation2 + $0x120] sm:$0x1] %v2899_v29 }
 0x2d5   :  { %v10080_v19 = vpop.f32.mrf.mxu3  ;;  %v1233_v1 = vpop.permute.xlu1 %1232 }
 0x2d6   :  { %v1447_v49 = vpop.permute.xlu0 %1446  ;;  %v1796_v27 = vsel %vm1742_vm6, %v1731_v43, %v1233_v1  ;;  %v2966_v43 = vld [vmem:[#allocation2 + $0x80] sm:$0x1] }
 0x2d7   :  { %v1967_v26 = vsel %vm1937_vm10, %v1902_v55, %v1447_v49  ;;  %v10087_v31 = vpop.f32.mrf.mxu0  ;;  %v1861_v48 = vsel %vm1807_vm9, %v1796_v27, %v1307_v57  ;;  %v1579_v57 = vsel %vm1547_vm4, %v1514_v62, %v16741_v58  ;;  %v2967_v4 = vsel %vm9664_vm2, 0, %v2966_v43 }
 0x2d8   :  { %7362 = vmatmul.msk.bf16.gmra.mxu0 %vm2022_vm11, %v1967_v26  ;;  %v1644_v53 = vsel %vm1612_vm5, %v1579_v57, %v16742_v20  ;;  %2968 = vst [vmem:[#allocation2 + $0x80] sm:$0x1] %v2967_v4  ;;  %v3009_v57 = vsel %vm9664_vm2, 0, %v3008_v24  ;;  %v7773_v20 = vld [vmem:[%s15928_s0 + $0xd8] sm:$0xff] }
 0x2d9   :  { %v1709_v44 = vsel %vm1677_vm7, %v1644_v53, %v16743_v41  ;;  %v16749_v53 = vld [vmem:[#allocation46_spill] sm:$0xff]  ;;  %3010 = vst [vmem:[#allocation2 + $0x128] sm:$0x1] %v3009_v57  ;;  %v16750_v41 = vld [vmem:[#allocation100_spill] sm:$0xff] }
 0x2da   :  { %v1774_v1 = vsel %vm1742_vm6, %v1709_v44, %v9355_v8  ;;  %v16745_v8 = vld [vmem:[#allocation81_spill] sm:$0xff]  ;;  %v1516_v34 = vsel %vm1482_vm3, %v7773_v20, %v16749_v53 }
 0x2db   :  { %v1839_v51 = vsel %vm1807_vm9, %v1774_v1, %v1285_v10  ;;  %v1538_v36 = vsel %vm1482_vm3, %v9630_v21, %v16745_v8  ;;  %v16747_v10 = vld [vmem:[#allocation117_spill] sm:$0xff]  ;;  %v1581_v44 = vsel %vm1547_vm4, %v1516_v34, %v16750_v41 }
 0x2dc   :  { %v1603_v54 = vsel %vm1547_vm4, %v1538_v36, %v16746_v61  ;;  %v1646_v1 = vsel %vm1612_vm5, %v1581_v44, %v16751_v32  ;;  %v2862_v34 = vld [vmem:[#allocation2 + $0x90] sm:$0x1] }
 0x2dd   :  { %v10101_v63 = vpop.f32.mrf.mxu3  ;;  %v1471_v3 = vpop.permute.xlu1 %1470  ;;  %v1668_v27 = vsel %vm1612_vm5, %v1603_v54, %v16747_v10  ;;  %v2969_v10 = vld [vmem:[#allocation2 + $0x8c] sm:$0x1]  ;;  %v2863_v41 = vsel %vm9638_vm14, 0, %v2862_v34 }
 0x2de   :  { %v1401_v25 = vpop.permute.xlu0 %1400  ;;  %2864 = vst [vmem:[#allocation2 + $0x90] sm:$0x1] %v2863_v41 }
 0x2df   :  { %v1926_v39 = vsel %vm1872_vm8, %v1861_v48, %v1401_v25  ;;  %v10105_v37 = vpop.f32.mrf.mxu0 }
 0x2e0   :  { %16739 = vst [vmem:[#allocation66_spill] sm:$0xff] %v10105_v37  ;;  %v1991_v11 = vsel %vm1937_vm10, %v1926_v39, %v1471_v3  ;;  %v1733_v3 = vsel %vm1677_vm7, %v1668_v27, %v16748_v23  ;;  %v1473_v39 = vpop.permute.xlu2 %1472  ;;  %v16753_v27 = vld [vmem:[#allocation80_spill] sm:$0xff]  ;;  %v16754_v23 = vld [vmem:[#allocation14_spill] sm:$0xff] }
 0x2e1   :  { %7374 = vmatmul.msk.bf16.gmra.mxu3 %vm2022_vm11, %v1991_v11  ;;  %v1798_v21 = vsel %vm1742_vm6, %v1733_v3, %v1235_v50  ;;  %v2859_v50 = vld [vmem:[#allocation2 + $0x84] sm:$0x1]  ;;  %v1540_v4 = vsel %vm1482_vm3, %v9707_v18, %v16753_v27  ;;  %v16760_v27 = vld [vmem:[#allocation121_spill] sm:$0xff] }
 0x2e2   :  { %v1605_v3 = vsel %vm1547_vm4, %v1540_v4, %v16754_v23 }
 0x2e5   :  { %v10124_v55 = vpop.f32.mrf.mxu3  ;;  %v1449_v49 = vpop.permute.xlu1 %1448 }
 0x2e6   :  { %v1379_v47 = vpop.permute.xlu0 %1378 }
 0x2e7   :  { %v1904_v26 = vsel %vm1872_vm8, %v1839_v51, %v1379_v47  ;;  %v10128_v60 = vpop.f32.mrf.mxu0  ;;  %v16752_v51 = vld [vmem:[#allocation131_spill] sm:$0xff] }
 0x2e8   :  { %16744 = vst [vmem:[#allocation33_spill] sm:$0xff] %v10128_v60  ;;  %v1969_v14 = vsel %vm1937_vm10, %v1904_v26, %v1449_v49  ;;  %v2860_v49 = vsel %vm9638_vm14, 0, %v2859_v50  ;;  %v1711_v47 = vsel %vm1677_vm7, %v1646_v1, %v16752_v51  ;;  %v1451_v61 = vpop.permute.xlu2 %1450  ;;  %v3011_v1 = vld [vmem:[#allocation2 + $0x134] sm:$0x1] }
 0x2e9   :  { %7363 = vmatmul.msk.bf16.gmra.mxu0 %vm2022_vm11, %v1969_v14  ;;  %2861 = vst [vmem:[#allocation2 + $0x84] sm:$0x1] %v2860_v49  ;;  %v1776_v6 = vsel %vm1742_vm6, %v1711_v47, %v9444_v40  ;;  %v2970_v40 = vsel %vm9664_vm2, 0, %v2969_v10  ;;  %v3012_v47 = vsel %vm9664_vm2, 0, %v3011_v1  ;;  %v2975_v1 = vld [vmem:[#allocation2 + $0xa4] sm:$0x1] }
 0x2ea   :  { %2971 = vst [vmem:[#allocation2 + $0x8c] sm:$0x1] %v2970_v40  ;;  %v16761_v40 = vld [vmem:[#allocation67_spill] sm:$0xff] }
 0x2eb   :  { %3013 = vst [vmem:[#allocation2 + $0x134] sm:$0x1] %v3012_v47 }
 0x2ed   :  { %v10145_v48 = vpop.f32.mrf.mxu3  ;;  %v1403_v25 = vpop.permute.xlu1 %1402 }
 0x2ee   :  { %v1309_v11 = vpop.permute.xlu0 %1308 }
 0x2ef   :  { %v1863_v2 = vsel %vm1807_vm9, %v1798_v21, %v1309_v11  ;;  %v10149_v56 = vpop.f32.mrf.mxu0  ;;  %v2901_v11 = vld [vmem:[#allocation2 + $0x12c] sm:$0x1] }
 0x2f0   :  { %v1928_v62 = vsel %vm1872_vm8, %v1863_v2, %v1403_v25  ;;  %v16755_v25 = vld [vmem:[#allocation110_spill] sm:$0xff]  ;;  %v16756_v2 = vld [vmem:[#allocation28_spill] sm:$0xff]  ;;  %v2902_v18 = vsel %vm9638_vm14, 0, %v2901_v11  ;;  %v1405_v44 = vpop.permute.xlu2 %1404 }
 0x2f1   :  { %v1993_v58 = vsel %vm1937_vm10, %v1928_v62, %v1473_v39  ;;  %v1670_v21 = vsel %vm1612_vm5, %v1605_v3, %v16755_v25  ;;  %2903 = vst [vmem:[#allocation2 + $0x12c] sm:$0x1] %v2902_v18  ;;  %v2904_v25 = vld [vmem:[#allocation2 + $0x138] sm:$0x1]  ;;  %v2865_v18 = vld [vmem:[#allocation2 + $0x9c] sm:$0x1] }
 0x2f2   :  { %7375 = vmatmul.msk.bf16.gmra.mxu3 %vm2022_vm11, %v1993_v58  ;;  %v1735_v62 = vsel %vm1677_vm7, %v1670_v21, %v16756_v2 }
 0x2f5   :  { %v10169_v26 = vpop.f32.mrf.mxu3  ;;  %v1381_v14 = vpop.permute.xlu1 %1380 }
 0x2f6   :  { %v1287_v29 = vpop.permute.xlu0 %1286 }
 0x2f7   :  { %v1841_v8 = vsel %vm1807_vm9, %v1776_v6, %v1287_v29  ;;  %v10174_v36 = vpop.f32.mrf.mxu0  ;;  %v2972_v29 = vld [vmem:[#allocation2 + $0x98] sm:$0x1] }
 0x2f8   :  { %v1906_v54 = vsel %vm1872_vm8, %v1841_v8, %v1381_v14  ;;  %v16758_v8 = vld [vmem:[#allocation71_spill] sm:$0xff]  ;;  %v1313_v11 = vpop.permute.xlu2 %1312 }
 0x2f9   :  { %v1971_v43 = vsel %vm1937_vm10, %v1906_v54, %v1451_v61  ;;  %v1542_v61 = vsel %vm1482_vm3, %v9800_v30, %v16758_v8  ;;  %v2973_v54 = vsel %vm9664_vm2, 0, %v2972_v29  ;;  %v2905_v30 = vsel %vm9638_vm14, 0, %v2904_v25  ;;  %v16765_v8 = vld [vmem:[#allocation101_spill] sm:$0xff] }
 0x2fa   :  { %7364 = vmatmul.msk.bf16.gmra.mxu0 %vm2022_vm11, %v1971_v43  ;;  %v16759_v43 = vld [vmem:[#allocation19_spill] sm:$0xff]  ;;  %2974 = vst [vmem:[#allocation2 + $0x98] sm:$0x1] %v2973_v54  ;;  %v2976_v29 = vsel %vm9664_vm2, 0, %v2975_v1  ;;  %v16766_v54 = vld [vmem:[#allocation120_spill] sm:$0xff] }
 0x2fb   :  { %v1607_v10 = vsel %vm1547_vm4, %v1542_v61, %v16759_v43  ;;  %2906 = vst [vmem:[#allocation2 + $0x138] sm:$0x1] %v2905_v30  ;;  %v2978_v1 = vld [vmem:[#allocation2 + $0xb0] sm:$0x1] }
 0x2fc   :  { %v1672_v4 = vsel %vm1612_vm5, %v1607_v10, %v16760_v27  ;;  %2977 = vst [vmem:[#allocation2 + $0xa4] sm:$0x1] %v2976_v29  ;;  %v16767_v27 = vld [vmem:[#allocation138_spill] sm:$0xff] }
 0x2fd   :  { %v10190_v24 = vpop.f32.mrf.mxu3  ;;  %v1311_v57 = vpop.permute.xlu1 %1310  ;;  %v1737_v23 = vsel %vm1677_vm7, %v1672_v4, %v16761_v40  ;;  %v16769_v29 = vld [vmem:[#allocation26_spill] sm:$0xff] }
 0x2fe   :  { %v1237_v39 = vpop.permute.xlu0 %1236 }
 0x2ff   :  { %v10192_v58 = vpop.f32.mrf.mxu0  ;;  %v1800_v20 = vsel %vm1742_vm6, %v1735_v62, %v1237_v39 }
 0x300   :  { %v1865_v53 = vsel %vm1807_vm9, %v1800_v20, %v1311_v57 }
 0x301   :  { %v1930_v32 = vsel %vm1872_vm8, %v1865_v53, %v1405_v44  ;;  %v2866_v53 = vsel %vm9638_vm14, 0, %v2865_v18  ;;  %v3014_v44 = vld [vmem:[#allocation2 + $0x140] sm:$0x1] }
 0x302   :  { %2867 = vst [vmem:[#allocation2 + $0x9c] sm:$0x1] %v2866_v53 }
 0x305   :  { %v10207_v14 = vpop.f32.mrf.mxu3  ;;  %v1239_v6 = vpop.permute.xlu1 %1238 }
 0x306   :  { %v1475_v50 = vpop.permute.xlu0 %1474  ;;  %v1802_v21 = vsel %vm1742_vm6, %v1737_v23, %v1239_v6  ;;  %v1241_v6 = vpop.permute.xlu2 %1240 }
 0x307   :  { %v10201_v49 = vpop.f32.mrf.mxu0  ;;  %v1995_v51 = vsel %vm1937_vm10, %v1930_v32, %v1475_v50  ;;  %v1867_v62 = vsel %vm1807_vm9, %v1802_v21, %v1313_v11  ;;  %v3015_v50 = vsel %vm9664_vm2, 0, %v3014_v44  ;;  %v2868_v11 = vld [vmem:[#allocation2 + $0xa8] sm:$0x1] }
 0x308   :  { %16757 = vst [vmem:[#allocation59_spill] sm:$0xff] %v10201_v49  ;;  %7376 = vmatmul.msk.bf16.gmra.mxu3 %vm2022_vm11, %v1995_v51  ;;  %v16764_v51 = vld [vmem:[#allocation84_spill] sm:$0xff] }
 0x309   :  { %3016 = vst [vmem:[#allocation2 + $0x140] sm:$0x1] %v3015_v50  ;;  %v1544_v47 = vsel %vm1482_vm3, %v9848_v15, %v16764_v51  ;;  %v2907_v15 = vld [vmem:[#allocation2 + $0x144] sm:$0x1] }
 0x30a   :  { %v1609_v61 = vsel %vm1547_vm4, %v1544_v47, %v16765_v8  ;;  %v16768_v51 = vld [vmem:[#allocation83_spill] sm:$0xff] }
 0x30b   :  { %v1674_v43 = vsel %vm1612_vm5, %v1609_v61, %v16766_v54  ;;  %v1546_v47 = vsel %vm1482_vm3, %v9880_v33, %v16768_v51  ;;  %v16770_v54 = vld [vmem:[#allocation112_spill] sm:$0xff]  ;;  %v2261_v51 = vsel %vm1547_vm4, %v9775_v7, 0.0  ;;  %vm2808_vm3 = vcmask 60416  }
 0x30c   :  { %v1739_v4 = vsel %vm1677_vm7, %v1674_v43, %v16767_v27  ;;  %v1611_v8 = vsel %vm1547_vm4, %v1546_v47, %v16769_v29  ;;  %v2395_v47 = vmul.f32 %v9810_v13, %v9810_v13 }
 0x30d   :  { %v10225_v2 = vpop.f32.mrf.mxu3  ;;  %v1477_v20 = vpop.permute.xlu1 %1476  ;;  %v1804_v23 = vsel %vm1742_vm6, %v1739_v4, %v1241_v6  ;;  %v2979_v6 = vsel %vm9664_vm2, 0, %v2978_v1  ;;  %v1676_v43 = vsel %vm1612_vm5, %v1611_v8, %v16770_v54  ;;  %v2393_v1 = vmul.f32 %v9751_v28, %v9751_v28 }
 0x30e   :  { %v1407_v39 = vpop.permute.xlu0 %1406  ;;  %16762 = vst [vmem:[#allocation88_spill] sm:$0xff] %v10225_v2  ;;  %v1479_v18 = vpop.permute.xlu2 %1478  ;;  %v2260_v8 = vsel %vm1547_vm4, %v9751_v28, 0.0 }
 0x30f   :  { %v10220_v3 = vpop.f32.mrf.mxu0  ;;  %v1932_v57 = vsel %vm1872_vm8, %v1867_v62, %v1407_v39  ;;  %v2908_v39 = vsel %vm9638_vm14, 0, %v2907_v15  ;;  %2980 = vst [vmem:[#allocation2 + $0xb0] sm:$0x1] %v2979_v6  ;;  %v3020_v6 = vld [vmem:[#allocation2 + $0x158] sm:$0x1] }
 0x310   :  { %v1997_v34 = vsel %vm1937_vm10, %v1932_v57, %v1477_v20  ;;  %2909 = vst [vmem:[#allocation2 + $0x144] sm:$0x1] %v2908_v39  ;;  %v2869_v57 = vsel %vm9638_vm14, 0, %v2868_v11  ;;  %v2910_v11 = vld [vmem:[#allocation2 + $0x150] sm:$0x1]  ;;  %v3021_v29 = vsel %vm9664_vm2, 0, %v3020_v6 }
 0x311   :  { %2870 = vst [vmem:[#allocation2 + $0xa8] sm:$0x1] %v2869_v57  ;;  %v2911_v57 = vsel %vm9638_vm14, 0, %v2910_v11 }
 0x312   :  { %2912 = vst [vmem:[#allocation2 + $0x150] sm:$0x1] %v2911_v57 }
 0x313   :  { %3022 = vst [vmem:[#allocation2 + $0x158] sm:$0x1] %v3021_v29  ;;  %v2269_v29 = vsel %vm1547_vm4, %v9892_v46, 0.0 }
 0x315   :  { %v1409_v21 = vpop.permute.xlu1 %1408 }
 0x316   :  { %v1315_v10 = vpop.permute.xlu0 %1314 }
 0x317   :  { %v10232_v41 = vpop.f32.mrf.mxu0  ;;  %v1869_v25 = vsel %vm1807_vm9, %v1804_v23, %v1315_v10  ;;  %v16771_v10 = vld [vmem:[#allocation137_spill] sm:$0xff] }
 0x318   :  { %16763 = vst [vmem:[#allocation13_spill] sm:$0xff] %v10232_v41  ;;  %7377 = vmatmul.msk.bf16.gmra.mxu3 %vm2022_vm11, %v1997_v34  ;;  %v1934_v62 = vsel %vm1872_vm8, %v1869_v25, %v1409_v21  ;;  %v3017_v34 = vld [vmem:[#allocation2 + $0x14c] sm:$0x1]  ;;  %v1741_v27 = vsel %vm1677_vm7, %v1676_v43, %v16771_v10  ;;  %v1411_v25 = vpop.permute.xlu2 %1410  ;;  %v2263_v43 = vsel %vm1547_vm4, %v9810_v13, 0.0  ;;  %v2396_v10 = vmul.f32 %v9834_v17, %v9834_v17 }
 0x319   :  { %v1999_v20 = vsel %vm1937_vm10, %v1934_v62, %v1479_v18  ;;  %v3018_v44 = vsel %vm9664_vm2, 0, %v3017_v34  ;;  %v2871_v34 = vld [vmem:[#allocation2 + $0xb4] sm:$0x1] }
 0x31a   :  { %3019 = vst [vmem:[#allocation2 + $0x14c] sm:$0x1] %v3018_v44  ;;  %v2872_v44 = vsel %vm9638_vm14, 0, %v2871_v34 }
 0x31b   :  { %v10237_v32 = vpop.f32.mrf.mxu3  ;;  %2873 = vst [vmem:[#allocation2 + $0xb4] sm:$0x1] %v2872_v44  ;;  %v2462_v44 = vsel %vm1547_vm4, %v2396_v10, 0.0 }
 0x31d   :  { %v1317_v33 = vpop.permute.xlu1 %1316 }
 0x31e   :  { %v1243_v50 = vpop.permute.xlu0 %1242 }
 0x31f   :  { %v10250_v40 = vpop.f32.mrf.mxu0  ;;  %v1806_v23 = vsel %vm1742_vm6, %v1741_v27, %v1243_v50  ;;  %v2394_v50 = vmul.f32 %v9775_v7, %v9775_v7  ;;  %v2457_v27 = vsel %vm1547_vm4, %v2393_v1, 0.0  ;;  %v2398_v1 = vmul.f32 %v9892_v46, %v9892_v46 }
 0x320   :  { %v1871_v15 = vsel %vm1807_vm9, %v1806_v23, %v1317_v33  ;;  %v2262_v23 = vadd.f32 %v2261_v51, %v2260_v8  ;;  %v2399_v8 = vmul.f32 %v9935_v9, %v9935_v9 }
 0x321   :  { %v1936_v39 = vsel %vm1872_vm8, %v1871_v15, %v1411_v25  ;;  %v2458_v54 = vsel %vm1547_vm4, %v2394_v50, 0.0  ;;  %v2981_v15 = vld [vmem:[#allocation2 + $0xbc] sm:$0x1]  ;;  %v2460_v25 = vsel %vm1547_vm4, %v2395_v47, 0.0  ;;  %v2267_v50 = vsel %vm1547_vm4, %v9868_v38, 0.0 }
 0x322   :  { %v2982_v11 = vsel %vm9664_vm2, 0, %v2981_v15  ;;  %v2459_v57 = vadd.f32 %v2458_v54, %v2457_v27  ;;  %v2913_v27 = vld [vmem:[#allocation2 + $0x15c] sm:$0x1]  ;;  %v2466_v10 = vsel %vm1547_vm4, %v2398_v1, 0.0  ;;  %v2400_v15 = vmul.f32 %v9958_v16, %v9958_v16 }
 0x323   :  { %v10256_v30 = vpop.f32.mrf.mxu3  ;;  %2983 = vst [vmem:[#allocation2 + $0xbc] sm:$0x1] %v2982_v11  ;;  %v2468_v11 = vsel %vm1547_vm4, %v2399_v8, 0.0  ;;  %v2402_v8 = vmul.f32 %v10008_v42, %v10008_v42 }
 0x324   :  { %v2461_v51 = vadd.f32 %v2460_v25, %v2459_v57  ;;  %v2914_v25 = vsel %vm9638_vm14, 0, %v2913_v27  ;;  %v2401_v57 = vmul.f32 %v9986_v5, %v9986_v5 }
 0x325   :  { %2915 = vst [vmem:[#allocation2 + $0x15c] sm:$0x1] %v2914_v25  ;;  %v2403_v25 = vmul.f32 %v10029_v45, %v10029_v45 }
 0x326   :  { %v1481_v21 = vpop.permute.xlu0 %1480 }
 0x327   :  { %v10262_v53 = vpop.f32.mrf.mxu0  ;;  %v2001_v62 = vsel %vm1937_vm10, %v1936_v39, %v1481_v21  ;;  %v2265_v21 = vsel %vm1547_vm4, %v9834_v17, 0.0  ;;  %v2397_v39 = vmul.f32 %v9868_v38, %v9868_v38 }
 0x328   :  { %7378 = vmatmul.msk.bf16.gmra.mxu3 %vm2022_vm11, %v1999_v20 }
 0x329   :  { %v2464_v6 = vsel %vm1547_vm4, %v2397_v39, 0.0 }
 0x32c   :  { %v10274_v61 = vpop.f32.mrf.mxu3 }
 0x32f   :  { %v10280_v4 = vpop.f32.mrf.mxu0 }
 0x334   :  { %v10286_v18 = vpop.f32.mrf.mxu3 }
 0x335   :  { %16772 = vst [vmem:[#allocation68_spill] sm:$0xff] %v10286_v18 }
 0x337   :  { %v10291_v20 = vpop.f32.mrf.mxu0 }
 0x338   :  { %7379 = vmatmul.msk.bf16.gmra.mxu3 %vm2022_vm11, %v2001_v62  ;;  %16773 = vst [vmem:[#allocation60_spill] sm:$0xff] %v10291_v20  ;;  %v2264_v62 = vadd.f32 %v2263_v43, %v2262_v23  ;;  %v2463_v43 = vadd.f32 %v2462_v44, %v2461_v51  ;;  %v2271_v23 = vsel %vm1547_vm4, %v9935_v9, 0.0  ;;  %v2874_v44 = vld [vmem:[#allocation2 + $0xc0] sm:$0x1]  ;;  %vm3108_vm11 = vsmask.f32 4368 }
 0x33a   :  { %v2266_v47 = vadd.f32 %v2265_v21, %v2264_v62  ;;  %v2465_v21 = vadd.f32 %v2464_v6, %v2463_v43  ;;  %v2273_v62 = vsel %vm1547_vm4, %v9958_v16, 0.0  ;;  %v2470_v6 = vsel %vm1547_vm4, %v2400_v15, 0.0 }
 0x33c   :  { %v2268_v54 = vadd.f32 %v2267_v50, %v2266_v47  ;;  %v2467_v1 = vadd.f32 %v2466_v10, %v2465_v21  ;;  %v2875_v47 = vsel %vm9638_vm14, 0, %v2874_v44  ;;  %v2472_v10 = vsel %vm1547_vm4, %v2401_v57, 0.0 }
 0x33d   :  { %v10313_v33 = vpop.f32.mrf.mxu3  ;;  %2876 = vst [vmem:[#allocation2 + $0xc0] sm:$0x1] %v2875_v47  ;;  %v2474_v44 = vsel %vm1547_vm4, %v2402_v8, 0.0  ;;  %v2279_v47 = vsel %vm1547_vm4, %v10029_v45, 0.0  ;;  %v2984_v8 = vld [vmem:[#allocation2 + $0xc8] sm:$0x1] }
 0x33e   :  { %v2270_v39 = vadd.f32 %v2269_v29, %v2268_v54  ;;  %v2275_v29 = vsel %vm1547_vm4, %v9986_v5, 0.0  ;;  %v2469_v54 = vadd.f32 %v2468_v11, %v2467_v1  ;;  %v2404_v11 = vmul.f32 %v10049_v12, %v10049_v12 }
 0x33f   :  { %v10322_v34 = vpop.f32.mrf.mxu0  ;;  %v2476_v1 = vsel %vm1547_vm4, %v2403_v25, 0.0  ;;  %v2985_v13 = vsel %vm9664_vm2, 0, %v2984_v8  ;;  %v2406_v25 = vmul.f32 %v10087_v31, %v10087_v31  ;;  %v2287_v8 = vsel %vm1547_vm4, %v10105_v37, 0.0 }
 0x340   :  { %16774 = vst [vmem:[#allocation87_spill] sm:$0xff] %v10322_v34  ;;  %v2272_v50 = vadd.f32 %v2271_v23, %v2270_v39  ;;  %v2277_v23 = vsel %vm1547_vm4, %v10008_v42, 0.0  ;;  %v2471_v21 = vadd.f32 %v2470_v6, %v2469_v54  ;;  %v3023_v39 = vld [vmem:[#allocation2 + $0x164] sm:$0x1]  ;;  %v2281_v6 = vsel %vm1547_vm4, %v10049_v12, 0.0 }
 0x341   :  { %2986 = vst [vmem:[#allocation2 + $0xc8] sm:$0x1] %v2985_v13  ;;  %v2408_v13 = vmul.f32 %v10128_v60, %v10128_v60 }
 0x342   :  { %v2274_v43 = vadd.f32 %v2273_v62, %v2272_v50  ;;  %v3024_v62 = vsel %vm9664_vm2, 0, %v3023_v39  ;;  %v2473_v57 = vadd.f32 %v2472_v10, %v2471_v21  ;;  %v2478_v10 = vsel %vm1547_vm4, %v2404_v11, 0.0 }
 0x343   :  { %3025 = vst [vmem:[#allocation2 + $0x164] sm:$0x1] %v3024_v62  ;;  %v2407_v62 = vmul.f32 %v10105_v37, %v10105_v37  ;;  %v2883_v37 = vld [vmem:[#allocation2 + $0xe4] sm:$0x1] }
 0x344   :  { %v2276_v15 = vadd.f32 %v2275_v29, %v2274_v43  ;;  %v2405_v29 = vmul.f32 %v10065_v22, %v10065_v22  ;;  %v2475_v43 = vadd.f32 %v2474_v44, %v2473_v57 }
 0x345   :  { %v10346_v51 = vpop.f32.mrf.mxu3 }
 0x346   :  { %v2278_v50 = vadd.f32 %v2277_v23, %v2276_v15  ;;  %v2283_v23 = vsel %vm1547_vm4, %v10065_v22, 0.0  ;;  %v2477_v15 = vadd.f32 %v2476_v1, %v2475_v43  ;;  %v2480_v44 = vsel %vm1547_vm4, %v2405_v29, 0.0  ;;  %v2916_v1 = vld [vmem:[#allocation2 + $0x168] sm:$0x1] }
 0x347   :  { %v10355_v27 = vpop.f32.mrf.mxu0  ;;  %v2917_v29 = vsel %vm9638_vm14, 0, %v2916_v1  ;;  %v2484_v43 = vsel %vm1547_vm4, %v2407_v62, 0.0  ;;  %v2410_v62 = vmul.f32 %v10174_v36, %v10174_v36 }
 0x348   :  { %16775 = vst [vmem:[#allocation104_spill] sm:$0xff] %v10355_v27  ;;  %v2280_v54 = vadd.f32 %v2279_v47, %v2278_v50  ;;  %v2285_v47 = vsel %vm1547_vm4, %v10087_v31, 0.0  ;;  %v2479_v11 = vadd.f32 %v2478_v10, %v2477_v15  ;;  %v2482_v50 = vsel %vm1547_vm4, %v2406_v25, 0.0 }
 0x349   :  { %v2289_v10 = vsel %vm1547_vm4, %v10128_v60, 0.0  ;;  %2918 = vst [vmem:[#allocation2 + $0x168] sm:$0x1] %v2917_v29  ;;  %v2490_v29 = vsel %vm1547_vm4, %v2410_v62, 0.0 }
 0x34a   :  { %v2282_v21 = vadd.f32 %v2281_v6, %v2280_v54  ;;  %v2481_v6 = vadd.f32 %v2480_v44, %v2479_v11  ;;  %v2486_v44 = vsel %vm1547_vm4, %v2408_v13, 0.0  ;;  %v2884_v11 = vsel %vm9638_vm14, 0, %v2883_v37 }
 0x34b   :  { %2885 = vst [vmem:[#allocation2 + $0xe4] sm:$0x1] %v2884_v11  ;;  %v2411_v13 = vmul.f32 %v10192_v58, %v10192_v58  ;;  %v2295_v37 = vsel %vm1547_vm4, %v10192_v58, 0.0 }
 0x34c   :  { %v2284_v57 = vadd.f32 %v2283_v23, %v2282_v21  ;;  %v2409_v23 = vmul.f32 %v10149_v56, %v10149_v56  ;;  %v2483_v25 = vadd.f32 %v2482_v50, %v2481_v6 }
 0x34d   :  { %v2492_v11 = vsel %vm1547_vm4, %v2411_v13, 0.0 }
 0x34e   :  { %v2286_v54 = vadd.f32 %v2285_v47, %v2284_v57  ;;  %v2291_v47 = vsel %vm1547_vm4, %v10149_v56, 0.0  ;;  %v2485_v57 = vadd.f32 %v2484_v43, %v2483_v25  ;;  %v2488_v50 = vsel %vm1547_vm4, %v2409_v23, 0.0 }
 0x34f   :  { %v2412_v43 = vmul.f32 %v10201_v49, %v10201_v49 }
 0x350   :  { %v2288_v15 = vadd.f32 %v2287_v8, %v2286_v54  ;;  %v2293_v8 = vsel %vm1547_vm4, %v10174_v36, 0.0  ;;  %v2487_v6 = vadd.f32 %v2486_v44, %v2485_v57  ;;  %v2297_v44 = vsel %vm1547_vm4, %v10201_v49, 0.0 }
 0x351   :  { %v2301_v49 = vsel %vm1547_vm4, %v10232_v41, 0.0 }
 0x352   :  { %v2290_v1 = vadd.f32 %v2289_v10, %v2288_v15  ;;  %v3026_v10 = vld [vmem:[#allocation2 + $0x170] sm:$0x1]  ;;  %v2489_v25 = vadd.f32 %v2488_v50, %v2487_v6  ;;  %v2299_v50 = vsel %vm1547_vm4, %v10220_v3, 0.0 }
 0x353   :  { %v10374_v17 = vpop.f32.mrf.mxu3  ;;  %v3027_v23 = vsel %vm9664_vm2, 0, %v3026_v10 }
 0x354   :  { %v2292_v54 = vadd.f32 %v2291_v47, %v2290_v1  ;;  %v2413_v47 = vmul.f32 %v10220_v3, %v10220_v3  ;;  %3028 = vst [vmem:[#allocation2 + $0x170] sm:$0x1] %v3027_v23  ;;  %v2491_v62 = vadd.f32 %v2490_v29, %v2489_v25  ;;  %v2494_v1 = vsel %vm1547_vm4, %v2412_v43, 0.0 }
 0x355   :  { %v10383_v39 = vpop.f32.mrf.mxu0  ;;  %v2415_v29 = vmul.f32 %v10250_v40, %v10250_v40  ;;  %v2303_v23 = vsel %vm1547_vm4, %v10250_v40, 0.0 }
 0x356   :  { %16776 = vst [vmem:[#allocation35_spill] sm:$0xff] %v10383_v39  ;;  %v2294_v15 = vadd.f32 %v2293_v8, %v2292_v54  ;;  %v2414_v8 = vmul.f32 %v10232_v41, %v10232_v41  ;;  %v2493_v6 = vadd.f32 %v2492_v11, %v2491_v62  ;;  %v2496_v10 = vsel %vm1547_vm4, %v2413_v47, 0.0 }
 0x357   :  { %v2416_v11 = vmul.f32 %v10262_v53, %v10262_v53  ;;  %v2500_v62 = vsel %vm1547_vm4, %v2415_v29, 0.0  ;;  %v2417_v41 = vmul.f32 %v10280_v4, %v10280_v4 }
 0x358   :  { %v2296_v57 = vadd.f32 %v2295_v37, %v2294_v15  ;;  %v2495_v43 = vadd.f32 %v2494_v1, %v2493_v6  ;;  %v2498_v15 = vsel %vm1547_vm4, %v2414_v8, 0.0  ;;  %v2307_v6 = vsel %vm1547_vm4, %v10280_v4, 0.0 }
 0x359   :  { %v2502_v8 = vsel %vm1547_vm4, %v2416_v11, 0.0  ;;  %v2504_v29 = vsel %vm1547_vm4, %v2417_v41, 0.0  ;;  %v2420_v41 = vmul.f32 %v10355_v27, %v10355_v27 }
 0x35a   :  { %v2298_v54 = vadd.f32 %v2297_v44, %v2296_v57  ;;  %v2497_v44 = vadd.f32 %v2496_v10, %v2495_v43  ;;  %v2305_v57 = vsel %vm1547_vm4, %v10262_v53, 0.0  ;;  %v2309_v43 = vsel %vm1547_vm4, %v10291_v20, 0.0 }
 0x35b   :  { %v10402_v21 = vpop.f32.mrf.mxu3 }
 0x35c   :  { %16777 = vst [vmem:[#allocation99_spill] sm:$0xff] %v10402_v21  ;;  %v2300_v25 = vadd.f32 %v2299_v50, %v2298_v54  ;;  %v2499_v1 = vadd.f32 %v2498_v15, %v2497_v44  ;;  %v2418_v54 = vmul.f32 %v10291_v20, %v10291_v20  ;;  %v2313_v20 = vsel %vm1547_vm4, %v10355_v27, 0.0 }
 0x35d   :  { %v10411_v60 = vpop.f32.mrf.mxu0  ;;  %v2427_v27 = vmul.f32 %v10043_v59, %v10043_v59 }
 0x35e   :  { %16778 = vst [vmem:[#allocation23_spill] sm:$0xff] %v10411_v60  ;;  %v2302_v47 = vadd.f32 %v2301_v49, %v2300_v25  ;;  %v2501_v10 = vadd.f32 %v2500_v62, %v2499_v1  ;;  %v2419_v25 = vmul.f32 %v10322_v34, %v10322_v34  ;;  %v2311_v62 = vsel %vm1547_vm4, %v10322_v34, 0.0 }
 0x35f   :  { %v2422_v34 = vmul.f32 %v10411_v60, %v10411_v60 }
 0x360   :  { %v2304_v50 = vadd.f32 %v2303_v23, %v2302_v47  ;;  %v2503_v23 = vadd.f32 %v2502_v8, %v2501_v10  ;;  %v2506_v47 = vsel %vm1547_vm4, %v2418_v54, 0.0  ;;  %v2421_v8 = vmul.f32 %v10383_v39, %v10383_v39 }
 0x361   :  { %v2510_v54 = vsel %vm1547_vm4, %v2420_v41, 0.0  ;;  %v2514_v41 = vsel %vm1547_vm4, %v2422_v34, 0.0 }
 0x362   :  { %v2306_v49 = vadd.f32 %v2305_v57, %v2304_v50  ;;  %v2505_v57 = vadd.f32 %v2504_v29, %v2503_v23  ;;  %v2508_v50 = vsel %vm1547_vm4, %v2419_v25, 0.0  ;;  %v2512_v25 = vsel %vm1547_vm4, %v2421_v8, 0.0 }
 0x363   :  { %v2317_v23 = vsel %vm1547_vm4, %v10411_v60, 0.0 }
 0x364   :  { %v10435_v13 = vpop.f32.mrf.mxu3  ;;  %v2308_v11 = vadd.f32 %v2307_v6, %v2306_v49  ;;  %v2507_v6 = vadd.f32 %v2506_v47, %v2505_v57  ;;  %v2315_v49 = vsel %vm1547_vm4, %v10383_v39, 0.0 }
 0x365   :  { %16779 = vst [vmem:[#allocation53_spill] sm:$0xff] %v10435_v13 }
 0x366   :  { %v10442_v37 = vpop.f32.mrf.mxu0  ;;  %v2310_v1 = vadd.f32 %v2309_v43, %v2308_v11  ;;  %v2509_v29 = vadd.f32 %v2508_v50, %v2507_v6 }
 0x367   :  { %16780 = vst [vmem:[#allocation43_spill] sm:$0xff] %v10442_v37  ;;  %v2423_v11 = vmul.f32 %v10442_v37, %v10442_v37 }
 0x368   :  { %v2312_v10 = vadd.f32 %v2311_v62, %v2310_v1  ;;  %v2511_v47 = vadd.f32 %v2510_v54, %v2509_v29  ;;  %v2319_v1 = vsel %vm1547_vm4, %v10442_v37, 0.0 }
 0x369   :  { %v2516_v60 = vsel %vm1547_vm4, %v2423_v11, 0.0 }
 0x36a   :  { %v2314_v43 = vadd.f32 %v2313_v20, %v2312_v10  ;;  %v2513_v50 = vadd.f32 %v2512_v25, %v2511_v47  ;;  %v2993_v10 = vld [vmem:[#allocation2 + $0xec] sm:$0x1] }
 0x36b   :  { %v2994_v34 = vsel %vm9664_vm2, 0, %v2993_v10 }
 0x36c   :  { %v10466_v44 = vpop.f32.mrf.mxu3  ;;  %v2316_v62 = vadd.f32 %v2315_v49, %v2314_v43  ;;  %v2515_v29 = vadd.f32 %v2514_v41, %v2513_v50  ;;  %2995 = vst [vmem:[#allocation2 + $0xec] sm:$0x1] %v2994_v34 }
 0x36d   :  { %16782 = vst [vmem:[#allocation79_spill] sm:$0xff] %v10466_v44 }
 0x36e   :  { %v10464_v15 = vpop.f32.mrf.mxu0  ;;  %v2318_v8 = vadd.f32 %v2317_v23, %v2316_v62  ;;  %v2517_v47 = vadd.f32 %v2516_v60, %v2515_v29  ;;  %v2327_v60 = vsel %vm1547_vm4, %v10043_v59, 0.0  ;;  %v2524_v29 = vsel %vm1547_vm4, %v2427_v27, 0.0 }
 0x36f   :  { %16781 = vst [vmem:[#allocation27_spill] sm:$0xff] %v10464_v15  ;;  %v2424_v20 = vmul.f32 %v10464_v15, %v10464_v15  ;;  %v2321_v54 = vsel %vm1547_vm4, %v10464_v15, 0.0 }
 0x370   :  { %v2320_v43 = vadd.f32 %v2319_v1, %v2318_v8  ;;  %v2428_v8 = vmul.f32 %v10057_v0, %v10057_v0 }
 0x371   :  { %v2518_v25 = vsel %vm1547_vm4, %v2424_v20, 0.0 }
 0x372   :  { %v2322_v62 = vadd.f32 %v2321_v54, %v2320_v43  ;;  %v2519_v37 = vadd.f32 %v2518_v25, %v2517_v47  ;;  %v2329_v43 = vsel %vm1547_vm4, %v10057_v0, 0.0  ;;  %v2331_v47 = vsel %vm1547_vm4, %v10080_v19, 0.0 }
 0x375   :  { %v10495_v6 = vpop.f32.mrf.mxu3 }
 0x376   :  { %16783 = vst [vmem:[#allocation30_spill] sm:$0xff] %v10495_v6 }
 0x377   :  { %v10488_v57 = vpop.f32.mrf.mxu0 }
 0x378   :  { %v2425_v49 = vmul.f32 %v10488_v57, %v10488_v57  ;;  %v2323_v23 = vsel %vm1547_vm4, %v10488_v57, 0.0 }
 0x379   :  { %v2324_v15 = vadd.f32 %v2323_v23, %v2322_v62  ;;  %v2526_v23 = vsel %vm1547_vm4, %v2428_v8, 0.0  ;;  %v2430_v62 = vmul.f32 %v10101_v63, %v10101_v63 }
 0x37a   :  { %v2520_v11 = vsel %vm1547_vm4, %v2425_v49, 0.0 }
 0x37b   :  { %v2521_v20 = vadd.f32 %v2520_v11, %v2519_v37  ;;  %v2429_v37 = vmul.f32 %v10080_v19, %v10080_v19  ;;  %v2530_v8 = vsel %vm1547_vm4, %v2430_v62, 0.0 }
 0x37d   :  { %v10521_v54 = vpop.f32.mrf.mxu3  ;;  %v2528_v27 = vsel %vm1547_vm4, %v2429_v37, 0.0 }
 0x37e   :  { %16784 = vst [vmem:[#allocation73_spill] sm:$0xff] %v10521_v54 }
 0x37f   :  { %v10508_v39 = vpop.f32.mrf.mxu0 }
 0x380   :  { %v2325_v41 = vsel %vm1547_vm4, %v10508_v39, 0.0  ;;  %v2426_v1 = vmul.f32 %v10508_v39, %v10508_v39 }
 0x381   :  { %v2326_v50 = vadd.f32 %v2325_v41, %v2324_v15 }
 0x382   :  { %v2522_v10 = vsel %vm1547_vm4, %v2426_v1, 0.0  ;;  %v2333_v1 = vsel %vm1547_vm4, %v10101_v63, 0.0 }
 0x383   :  { %v2328_v49 = vadd.f32 %v2327_v60, %v2326_v50  ;;  %v2523_v34 = vadd.f32 %v2522_v10, %v2521_v20  ;;  %v2431_v20 = vmul.f32 %v10124_v55, %v10124_v55  ;;  %v2335_v10 = vsel %vm1547_vm4, %v10124_v55, 0.0 }
 0x385   :  { %v2330_v15 = vadd.f32 %v2329_v43, %v2328_v49  ;;  %v2525_v25 = vadd.f32 %v2524_v29, %v2523_v34  ;;  %v2432_v49 = vmul.f32 %v10145_v48, %v10145_v48  ;;  %v2532_v37 = vsel %vm1547_vm4, %v2431_v20, 0.0  ;;  %v16818_v35 = vld [vmem:[#allocation73_spill] sm:$0xff] }
 0x387   :  { %v2332_v11 = vadd.f32 %v2331_v47, %v2330_v15  ;;  %v2527_v41 = vadd.f32 %v2526_v23, %v2525_v25  ;;  %v2337_v15 = vsel %vm1547_vm4, %v10145_v48, 0.0  ;;  %v2433_v25 = vmul.f32 %v10169_v26, %v10169_v26 }
 0x388   :  { %v2534_v62 = vsel %vm1547_vm4, %v2432_v49, 0.0 }
 0x389   :  { %v2334_v50 = vadd.f32 %v2333_v1, %v2332_v11  ;;  %v2529_v60 = vadd.f32 %v2528_v27, %v2527_v41  ;;  %v2339_v11 = vsel %vm1547_vm4, %v10169_v26, 0.0  ;;  %v2434_v41 = vmul.f32 %v10190_v24, %v10190_v24 }
 0x38a   :  { %v2536_v20 = vsel %vm1547_vm4, %v2433_v25, 0.0 }
 0x38b   :  { %v2336_v34 = vadd.f32 %v2335_v10, %v2334_v50  ;;  %v2531_v29 = vadd.f32 %v2530_v8, %v2529_v60  ;;  %v10543_v43 = vpop.f32.mrf.mxu3  ;;  %v2341_v50 = vsel %vm1547_vm4, %v10190_v24, 0.0  ;;  %v2435_v60 = vmul.f32 %v10207_v14, %v10207_v14 }
 0x38c   :  { %16785 = vst [vmem:[#allocation89_spill] sm:$0xff] %v10543_v43  ;;  %v2538_v49 = vsel %vm1547_vm4, %v2434_v41, 0.0  ;;  %v2345_v41 = vsel %vm1547_vm4, %v10225_v2, 0.0 }
 0x38d   :  { %v2338_v23 = vadd.f32 %v2337_v15, %v2336_v34  ;;  %v2533_v47 = vadd.f32 %v2532_v37, %v2531_v29  ;;  %v2919_v34 = vld [vmem:[#allocation2 + $0x174] sm:$0x1]  ;;  %v2343_v29 = vsel %vm1547_vm4, %v10207_v14, 0.0  ;;  %v2436_v37 = vmul.f32 %v10225_v2, %v10225_v2  ;;  %v3032_v2 = vld [vmem:[#allocation2 + $0x188] sm:$0x1] }
 0x38e   :  { %v2920_v15 = vsel %vm9638_vm14, 0, %v2919_v34  ;;  %v2347_v34 = vsel %vm1547_vm4, %v10237_v32, 0.0 }
 0x38f   :  { %v2340_v27 = vadd.f32 %v2339_v11, %v2338_v23  ;;  %v2535_v1 = vadd.f32 %v2534_v62, %v2533_v47  ;;  %2921 = vst [vmem:[#allocation2 + $0x174] sm:$0x1] %v2920_v15  ;;  %v3029_v62 = vld [vmem:[#allocation2 + $0x17c] sm:$0x1]  ;;  %v2540_v11 = vsel %vm1547_vm4, %v2435_v60, 0.0  ;;  %v2438_v60 = vmul.f32 %v10256_v30, %v10256_v30 }
 0x391   :  { %v2342_v8 = vadd.f32 %v2341_v50, %v2340_v27  ;;  %v2537_v10 = vadd.f32 %v2536_v20, %v2535_v1  ;;  %v2437_v27 = vmul.f32 %v10237_v32, %v10237_v32  ;;  %v3030_v1 = vsel %vm9664_vm2, 0, %v3029_v62 }
 0x392   :  { %3031 = vst [vmem:[#allocation2 + $0x17c] sm:$0x1] %v3030_v1  ;;  %v3033_v62 = vsel %vm9664_vm2, 0, %v3032_v2  ;;  %v2925_v1 = vld [vmem:[#allocation2 + $0x18c] sm:$0x1] }
 0x393   :  { %v2344_v25 = vadd.f32 %v2343_v29, %v2342_v8  ;;  %v2539_v23 = vadd.f32 %v2538_v49, %v2537_v10  ;;  %v10567_v47 = vpop.f32.mrf.mxu3  ;;  %v2922_v8 = vld [vmem:[#allocation2 + $0x180] sm:$0x1]  ;;  %v2542_v10 = vsel %vm1547_vm4, %v2436_v37, 0.0  ;;  %v2439_v37 = vmul.f32 %v10274_v61, %v10274_v61  ;;  %3034 = vst [vmem:[#allocation2 + $0x188] sm:$0x1] %v3033_v62 }
 0x394   :  { %16786 = vst [vmem:[#allocation32_spill] sm:$0xff] %v10567_v47  ;;  %v2923_v49 = vsel %vm9638_vm14, 0, %v2922_v8  ;;  %v2926_v8 = vsel %vm9638_vm14, 0, %v2925_v1  ;;  %v3035_v2 = vld [vmem:[#allocation2 + $0x194] sm:$0x1] }
 0x395   :  { %v2346_v20 = vadd.f32 %v2345_v41, %v2344_v25  ;;  %v2541_v50 = vadd.f32 %v2540_v11, %v2539_v23  ;;  %2924 = vst [vmem:[#allocation2 + $0x180] sm:$0x1] %v2923_v49  ;;  %v2544_v25 = vsel %vm1547_vm4, %v2437_v27, 0.0  ;;  %v2349_v23 = vsel %vm1547_vm4, %v10256_v30, 0.0 }
 0x396   :  { %v2440_v27 = vmul.f32 %v10286_v18, %v10286_v18  ;;  %2927 = vst [vmem:[#allocation2 + $0x18c] sm:$0x1] %v2926_v8 }
 0x397   :  { %v2348_v29 = vadd.f32 %v2347_v34, %v2346_v20  ;;  %v2543_v15 = vadd.f32 %v2542_v10, %v2541_v50  ;;  %v2546_v20 = vsel %vm1547_vm4, %v2438_v60, 0.0  ;;  %v2351_v50 = vsel %vm1547_vm4, %v10274_v61, 0.0 }
 0x398   :  { %v2353_v60 = vsel %vm1547_vm4, %v10286_v18, 0.0  ;;  %v2357_v18 = vsel %vm1547_vm4, %v10346_v51, 0.0 }
 0x399   :  { %v2545_v11 = vadd.f32 %v2544_v25, %v2543_v15  ;;  %v2350_v41 = vadd.f32 %v2349_v23, %v2348_v29  ;;  %v2548_v29 = vsel %vm1547_vm4, %v2439_v37, 0.0  ;;  %v2441_v15 = vmul.f32 %v10313_v33, %v10313_v33 }
 0x39a   :  { %v3036_v25 = vsel %vm9664_vm2, 0, %v3035_v2  ;;  %v2442_v37 = vmul.f32 %v10346_v51, %v10346_v51 }
 0x39b   :  { %v2352_v10 = vadd.f32 %v2351_v50, %v2350_v41  ;;  %v2547_v34 = vadd.f32 %v2546_v20, %v2545_v11  ;;  %v10597_v49 = vpop.f32.mrf.mxu3  ;;  %3037 = vst [vmem:[#allocation2 + $0x194] sm:$0x1] %v3036_v25  ;;  %v2550_v11 = vsel %vm1547_vm4, %v2440_v27, 0.0  ;;  %v2355_v41 = vsel %vm1547_vm4, %v10313_v33, 0.0  ;;  %v2928_v50 = vld [vmem:[#allocation2 + $0x198] sm:$0x1] }
 0x39c   :  { %16787 = vst [vmem:[#allocation56_spill] sm:$0xff] %v10597_v49  ;;  %v2552_v8 = vsel %vm1547_vm4, %v2441_v15, 0.0  ;;  %v2929_v27 = vsel %vm9638_vm14, 0, %v2928_v50  ;;  %v2444_v15 = vmul.f32 %v10402_v21, %v10402_v21  ;;  %v2363_v50 = vsel %vm1547_vm4, %v10435_v13, 0.0 }
 0x39d   :  { %v2354_v23 = vadd.f32 %v2353_v60, %v2352_v10  ;;  %v2549_v62 = vadd.f32 %v2548_v29, %v2547_v34  ;;  %v2443_v10 = vmul.f32 %v10374_v17, %v10374_v17  ;;  %2930 = vst [vmem:[#allocation2 + $0x198] sm:$0x1] %v2929_v27  ;;  %v2554_v29 = vsel %vm1547_vm4, %v2442_v37, 0.0 }
 0x39e   :  { %v2359_v60 = vsel %vm1547_vm4, %v10374_v17, 0.0 }
 0x39f   :  { %v2356_v1 = vadd.f32 %v2355_v41, %v2354_v23  ;;  %v2551_v20 = vadd.f32 %v2550_v11, %v2549_v62  ;;  %v2556_v11 = vsel %vm1547_vm4, %v2443_v10, 0.0  ;;  %v2361_v41 = vsel %vm1547_vm4, %v10402_v21, 0.0 }
 0x3a1   :  { %v2358_v34 = vadd.f32 %v2357_v18, %v2356_v1  ;;  %v2553_v2 = vadd.f32 %v2552_v8, %v2551_v20  ;;  %v2445_v18 = vmul.f32 %v10435_v13, %v10435_v13  ;;  %v2558_v20 = vsel %vm1547_vm4, %v2444_v15, 0.0 }
 0x3a2   :  { %v2446_v8 = vmul.f32 %v10466_v44, %v10466_v44 }
 0x3a3   :  { %v2360_v25 = vadd.f32 %v2359_v60, %v2358_v34  ;;  %v2555_v23 = vadd.f32 %v2554_v29, %v2553_v2  ;;  %v10623_v62 = vpop.f32.mrf.mxu3  ;;  %v2560_v10 = vsel %vm1547_vm4, %v2445_v18, 0.0  ;;  %v2365_v2 = vsel %vm1547_vm4, %v10466_v44, 0.0 }
 0x3a4   :  { %16788 = vst [vmem:[#allocation22_spill] sm:$0xff] %v10623_v62  ;;  %v2447_v29 = vmul.f32 %v10495_v6, %v10495_v6  ;;  %v2562_v15 = vsel %vm1547_vm4, %v2446_v8, 0.0 }
 0x3a5   :  { %v2362_v1 = vadd.f32 %v2361_v41, %v2360_v25  ;;  %v2557_v37 = vadd.f32 %v2556_v11, %v2555_v23  ;;  %v2367_v23 = vsel %vm1547_vm4, %v10495_v6, 0.0  ;;  %v2448_v11 = vmul.f32 %v10521_v54, %v10521_v54 }
 0x3a6   :  { %v2564_v18 = vsel %vm1547_vm4, %v2447_v29, 0.0 }
 0x3a7   :  { %v2364_v27 = vadd.f32 %v2363_v50, %v2362_v1  ;;  %v2559_v34 = vadd.f32 %v2558_v20, %v2557_v37  ;;  %v2369_v20 = vsel %vm1547_vm4, %v10521_v54, 0.0  ;;  %v2449_v50 = vmul.f32 %v10543_v43, %v10543_v43 }
 0x3a9   :  { %v2366_v60 = vadd.f32 %v2365_v2, %v2364_v27  ;;  %v2561_v25 = vadd.f32 %v2560_v10, %v2559_v34  ;;  %v2566_v34 = vsel %vm1547_vm4, %v2448_v11, 0.0  ;;  %v2371_v10 = vsel %vm1547_vm4, %v10543_v43, 0.0 }
 0x3aa   :  { %v2450_v2 = vmul.f32 %v10567_v47, %v10567_v47  ;;  %v2568_v29 = vsel %vm1547_vm4, %v2449_v50, 0.0  ;;  %v2451_v11 = vmul.f32 %v10597_v49, %v10597_v49  ;;  %v2452_v50 = vmul.f32 %v10623_v62, %v10623_v62 }
 0x3ab   :  { %v2368_v41 = vadd.f32 %v2367_v23, %v2366_v60  ;;  %v2563_v1 = vadd.f32 %v2562_v15, %v2561_v25  ;;  %v10645_v37 = vpop.f32.mrf.mxu3  ;;  %v2373_v15 = vsel %vm1547_vm4, %v10567_v47, 0.0 }
 0x3ac   :  { %16789 = vst [vmem:[#allocation91_spill] sm:$0xff] %v10645_v37 }
 0x3ad   :  { %v2370_v27 = vadd.f32 %v2369_v20, %v2368_v41  ;;  %v2565_v8 = vadd.f32 %v2564_v18, %v2563_v1  ;;  %v2570_v41 = vsel %vm1547_vm4, %v2450_v2, 0.0  ;;  %v2375_v20 = vsel %vm1547_vm4, %v10597_v49, 0.0 }
 0x3af   :  { %v2372_v60 = vadd.f32 %v2371_v10, %v2370_v27  ;;  %v2567_v25 = vadd.f32 %v2566_v34, %v2565_v8  ;;  %v2572_v8 = vsel %vm1547_vm4, %v2451_v11, 0.0  ;;  %v2377_v10 = vsel %vm1547_vm4, %v10623_v62, 0.0 }
 0x3b1   :  { %v2569_v23 = vadd.f32 %v2568_v29, %v2567_v25  ;;  %v2374_v54 = vadd.f32 %v2373_v15, %v2372_v60  ;;  %v2574_v60 = vsel %vm1547_vm4, %v2452_v50, 0.0  ;;  %v2453_v25 = vmul.f32 %v10645_v37, %v10645_v37 }
 0x3b3   :  { %v2571_v1 = vadd.f32 %v2570_v41, %v2569_v23  ;;  %v10663_v18 = vpop.f32.mrf.mxu3  ;;  %v2376_v27 = vadd.f32 %v2375_v20, %v2374_v54  ;;  %v2379_v54 = vsel %vm1547_vm4, %v10645_v37, 0.0  ;;  %v2576_v41 = vsel %vm1547_vm4, %v2453_v25, 0.0 }
 0x3b4   :  { %16790 = vst [vmem:[#allocation9_spill] sm:$0xff] %v10663_v18  ;;  %v2454_v11 = vmul.f32 %v10663_v18, %v10663_v18 }
 0x3b5   :  { %v2573_v34 = vadd.f32 %v2572_v8, %v2571_v1  ;;  %v2378_v2 = vadd.f32 %v2377_v10, %v2376_v27  ;;  %v2381_v27 = vsel %vm1547_vm4, %v10663_v18, 0.0 }
 0x3b7   :  { %v2575_v29 = vadd.f32 %v2574_v60, %v2573_v34  ;;  %v2380_v23 = vadd.f32 %v2379_v54, %v2378_v2  ;;  %v2578_v34 = vsel %vm1547_vm4, %v2454_v11, 0.0 }
 0x3b9   :  { %v2577_v20 = vadd.f32 %v2576_v41, %v2575_v29  ;;  %v2382_v50 = vadd.f32 %v2381_v27, %v2380_v23 }
 0x3bb   :  { %v10675_v15 = vpop.f32.mrf.mxu3  ;;  %v2579_v2 = vadd.f32 %v2578_v34, %v2577_v20 }
 0x3bc   :  { %v2455_v1 = vmul.f32 %v10675_v15, %v10675_v15  ;;  %v2383_v8 = vsel %vm1547_vm4, %v10675_v15, 0.0 }
 0x3bd   :  { %v2384_v60 = vadd.f32 %v2383_v8, %v2382_v50 }
 0x3be   :  { %v2580_v10 = vsel %vm1547_vm4, %v2455_v1, 0.0 }
 0x3bf   :  { %v2581_v41 = vadd.f32 %v2580_v10, %v2579_v2  ;;  %v3038_v2 = vld [vmem:[#allocation2 + $0x1a0] sm:$0x1] }
 0x3c3   :  { %v10690_v25 = vpop.f32.mrf.mxu3 }
 0x3c4   :  { %v2385_v54 = vsel %vm1547_vm4, %v10690_v25, 0.0  ;;  %v2456_v29 = vmul.f32 %v10690_v25, %v10690_v25 }
 0x3c5   :  { %v2386_v18 = vadd.f32 %v2385_v54, %v2384_v60  ;;  %v3039_v60 = vsel %vm9664_vm2, 0, %v3038_v2  ;;  %v16077_v54 = vmov 0  }
 0x3c6   :  { %v2582_v37 = vsel %vm1547_vm4, %v2456_v29, 0.0  ;;  %3040 = vst [vmem:[#allocation2 + $0x1a0] sm:$0x1] %v3039_v60 }
 0x3c7   :  { %v2387_v62 = vrot.slane %v2386_v18, 4  ;;  %v2583_v23 = vadd.f32 %v2582_v37, %v2581_v41  ;;  %2809 = vst.msk [vmem:[#allocation2] sm:$0xf] %vm2808_vm3, %v16077_v54 }
 0x3c8   :  { %2810 = vst.msk [vmem:[#allocation2 + $0x4] sm:$0xf] %vm2808_vm3, %v16077_v54 }
 0x3c9   :  { %v2388_v27 = vadd.f32 %v2387_v62, %v2386_v18  ;;  %v2584_v11 = vrot.slane %v2583_v23, 4  ;;  %2812 = vst.msk [vmem:[#allocation2 + $0x8] sm:$0x1] %vm2811_vm12, %v16077_v54 }
 0x3ca   :  { %2813 = vst.msk [vmem:[#allocation2 + $0xd8] sm:$0xf] %vm2808_vm3, %v16077_v54 }
 0x3cb   :  { %v2389_v49 = vrot.slane %v2388_v27, 2  ;;  %v2585_v1 = vadd.f32 %v2584_v11, %v2583_v23  ;;  %2814 = vst.msk [vmem:[#allocation2 + $0xdc] sm:$0xf] %vm2808_vm3, %v16077_v54 }
 0x3cc   :  { %2815 = vst.msk [vmem:[#allocation2 + $0xe0] sm:$0x1] %vm2811_vm12, %v16077_v54 }
 0x3cd   :  { %v2390_v20 = vadd.f32 %v2389_v49, %v2388_v27  ;;  %v2586_v8 = vrot.slane %v2585_v1, 2  ;;  %2817 = vst.msk [vmem:[#allocation2 + $0xcc] sm:$0xf] %vm2808_vm3, %v16077_v54  ;;  %v2607_v27 = vld [vmem:[%s15931_s3] sm:$0x1]  ;;  %s7867_s3 = smov 56  }
 0x3ce   :  { %v2826_v29 = vld [vmem:[#allocation2] sm:$0x1]  ;;  %2818 = vst.msk [vmem:[#allocation2 + $0xd0] sm:$0xf] %vm2808_vm3, %v16077_v54 }
 0x3cf   :  { %v2391_v50 = vrot.slane %v2390_v20, 1  ;;  %v2587_v34 = vadd.f32 %v2586_v8, %v2585_v1  ;;  %v2827_v23 = vsel %vm9638_vm14, 0, %v2826_v29  ;;  %2819 = vst.msk [vmem:[#allocation2 + $0xd4] sm:$0x1] %vm2811_vm12, %v16077_v54 }
 0x3d0   :  { %2828 = vst [vmem:[#allocation2] sm:$0x1] %v2827_v23  ;;  %v2936_v11 = vld [vmem:[#allocation2 + $0x8] sm:$0x1]  ;;  %v16795_v23 = vld [vmem:[#allocation13_spill] sm:$0xff] }
 0x3d1   :  { %v2392_v47 = vadd.f32 %v2391_v50, %v2390_v20  ;;  %v2588_v43 = vrot.slane %v2587_v34, 1  ;;  %v2937_v8 = vsel %vm9664_vm2, 0, %v2936_v11  ;;  %2820 = vst.msk [vmem:[#allocation2 + $0x1a4] sm:$0xf] %vm2808_vm3, %v16077_v54 }
 0x3d2   :  { %2938 = vst [vmem:[#allocation2 + $0x8] sm:$0x1] %v2937_v8  ;;  %v16797_v8 = vld [vmem:[#allocation87_spill] sm:$0xff] }
 0x3d3   :  { %v2589_v6 = vadd.f32 %v2588_v43, %v2587_v34  ;;  %v2590_v44 = vmul.f32 0.001953125, %v2392_v47  ;;  %2821 = vst.msk [vmem:[#allocation2 + $0x1a8] sm:$0xf] %vm2808_vm3, %v16077_v54 }
 0x3d4   :  { %2822 = vst.msk [vmem:[#allocation2 + $0x1ac] sm:$0x1] %vm2811_vm12, %v16077_v54  ;;  %vm10878_vm12 = vmor %vm2824_vm13, %vm3108_vm11  ;;  %vm5977_vm11 = vcmask 588800  }
 0x3d5   :  { %v2591_v13 = vmul.f32 0.001953125, %v2589_v6  ;;  %v2592_v21 = vmul.f32 %v2590_v44, %v2590_v44  ;;  %vm11249_vm13 = vmand %vm2808_vm3, %vm2934_vm15  ;;  %vm6042_vm15 = vcmask 1043456  }
 0x3d7   :  { %v2593_v10 = vsub.f32 %v2591_v13, %v2592_v21  ;;  %v2594_v13 = vld [vmem:[%s15930_s2] sm:$0x1] }
 0x3d9   :  { %v2595_v37 = vadd.f32 1e-05, %v2593_v10 }
 0x3db   :  { %7737 = vrsqrt.f32 %v2595_v37  ;;  %vm2602_vm6 = vweird.f32 %v2595_v37 }
 0x3e1   :  { %v7738_v62 = vpop.eup %7737 }
 0x3e2   :  { %v2597_v49 = vmul.f32 %v7738_v62, %v2595_v37  ;;  %vm2603_vm5 = vweird.f32 %v7738_v62 }
 0x3e3   :  { %vm2604_vm8 = vmor %vm2602_vm6, %vm2603_vm5  ;;  %vm5746_vm5 = vcmask 392192   ;;  %vm5811_vm6 = vcmask 457728  }
 0x3e4   :  { %v2598_v18 = vmul.f32 %v7738_v62, %v2597_v49 }
 0x3e6   :  { %v2599_v43 = vmul.f32 0.5, %v2598_v18  ;;  %v16791_v18 = vld [vmem:[#allocation66_spill] sm:$0xff] }
 0x3e8   :  { %v2600_v21 = vsub.f32 1.5, %v2599_v43 }
 0x3ea   :  { %v2601_v6 = vmul.f32 %v7738_v62, %v2600_v21 }
 0x3ec   :  { %v2605_v47 = vsel %vm2604_vm8, %v7738_v62, %v2601_v6  ;;  %v16793_v6 = vld [vmem:[#allocation59_spill] sm:$0xff]  ;;  %vm5876_vm8 = vcmask 523264  }
 0x3ed   :  { %v2606_v41 = vmul.f32 %v2605_v47, %v2594_v13 }
 0x3ef   :  { %v2608_v1 = vmul.f32 %v2606_v41, %v2590_v44  ;;  %v10725_v20 = vperm.slane %v2606_v41, 0 }
 0x3f1   :  { %v2609_v50 = vsub.f32 %v2607_v27, %v2608_v1  ;;  %v2675_v34 = vmul.f32 %v10725_v20, %v10675_v15  ;;  %v2676_v10 = vmul.f32 %v10725_v20, %v10690_v25  ;;  %v10743_v2 = vmul.f32 %v10725_v20, %v9751_v28 }
 0x3f2   :  { %v10747_v60 = vmul.f32 %v10725_v20, %v9775_v7  ;;  %v10751_v15 = vmul.f32 %v10725_v20, %v9868_v38  ;;  %v10755_v25 = vmul.f32 %v10725_v20, %v9892_v46  ;;  %v10759_v37 = vmul.f32 %v10725_v20, %v9935_v9 }
 0x3f3   :  { %v10739_v44 = vperm.slane %v2609_v50, 0  ;;  %v10763_v28 = vmul.f32 %v10725_v20, %v9958_v16  ;;  %v10767_v7 = vmul.f32 %v10725_v20, %v9986_v5  ;;  %v10773_v46 = vmul.f32 %v10725_v20, %v10008_v42 }
 0x3f4   :  { %v10777_v9 = vmul.f32 %v10725_v20, %v10029_v45  ;;  %v10781_v16 = vmul.f32 %v10725_v20, %v10049_v12  ;;  %v10785_v5 = vmul.f32 %v10725_v20, %v10065_v22  ;;  %v10789_v49 = vmul.f32 %v10725_v20, %v10087_v31  ;;  %v16792_v45 = vld [vmem:[#allocation33_spill] sm:$0xff] }
 0x3f5   :  { %v2742_v62 = vadd.f32 %v10739_v44, %v2675_v34  ;;  %v2743_v38 = vadd.f32 %v10739_v44, %v2676_v10  ;;  %v10793_v42 = vmul.f32 %v10725_v20, %v16791_v18  ;;  %v10797_v13 = vmul.f32 %v10725_v20, %v16792_v45  ;;  %v16798_v10 = vld [vmem:[#allocation104_spill] sm:$0xff]  ;;  %v16800_v18 = vld [vmem:[#allocation23_spill] sm:$0xff] }
 0x3f6   :  { %v10801_v12 = vmul.f32 %v10725_v20, %v10149_v56  ;;  %v10805_v22 = vmul.f32 %v10725_v20, %v10174_v36  ;;  %v10809_v31 = vmul.f32 %v10725_v20, %v10192_v58  ;;  %v10813_v47 = vmul.f32 %v10725_v20, %v16793_v6  ;;  %v16802_v6 = vld [vmem:[#allocation27_spill] sm:$0xff] }
 0x3f7   :  { %v2806_v43 = vmax.f32 %v2742_v62, 0.0  ;;  %v2807_v21 = vmax.f32 %v2743_v38, 0.0  ;;  %v10817_v29 = vmul.f32 %v10725_v20, %v10220_v3  ;;  %v10823_v27 = vmul.f32 %v10725_v20, %v16795_v23  ;;  %v16796_v3 = vld [vmem:[#allocation60_spill] sm:$0xff] }
 0x3f8   :  { %v10827_v36 = vmul.f32 %v10725_v20, %v10250_v40  ;;  %v10831_v58 = vmul.f32 %v10725_v20, %v10262_v53  ;;  %v10835_v11 = vmul.f32 %v10725_v20, %v10280_v4  ;;  %v10839_v1 = vmul.f32 %v10725_v20, %v16796_v3  ;;  %v16799_v53 = vld [vmem:[#allocation35_spill] sm:$0xff] }
 0x3f9   :  { %v10819_v41 = vpack.c.bf16 %v2806_v43, %v2806_v43  ;;  %v3107_v56 = vpack.c.bf16 %v2807_v21, %v2807_v21  ;;  %v10843_v50 = vmul.f32 %v10725_v20, %v16797_v8  ;;  %v10848_v62 = vmul.f32 %v10725_v20, %v16798_v10  ;;  %v16801_v21 = vld [vmem:[#allocation43_spill] sm:$0xff] }
 0x3fa   :  { %v10852_v38 = vmul.f32 %v10725_v20, %v16799_v53  ;;  %v10856_v43 = vmul.f32 %v10725_v20, %v16800_v18  ;;  %v10860_v45 = vmul.f32 %v10725_v20, %v16801_v21  ;;  %v10864_v23 = vmul.f32 %v10725_v20, %v16802_v6  ;;  %v3974_v18 = vld [vmem:[#allocation2 + $0x1a0] sm:$0x1] }
 0x3fb   :  { %16794 = vst [vmem:[#allocation72_spill] sm:$0xff] %v10819_v41  ;;  %v3638_v34 = vshrl.u32 %v10819_v41, 16  ;;  %v3646_v40 = vshrl.u32 %v3107_v56, 16  ;;  %v3649_v4 = vshll.u32 %v3107_v56, 16  ;;  %v10870_v10 = vmul.f32 %v10725_v20, %v10488_v57 }
 0x3fc   :  { %v10874_v56 = vmul.f32 %v10725_v20, %v10508_v39  ;;  %v16804_v53 = vmov 0  ;;  %v10892_v57 = vmul.f32 %v10725_v20, %v10080_v19  ;;  %v10896_v39 = vmul.f32 %v10725_v20, %v10101_v63 }
 0x3fd   :  { %v10866_v3 = vrot.slane %v3638_v34, 7  ;;  %v3648_v8 = vrot.slane %v3646_v40, 7  ;;  %v16805_v53 = vsel %vm10878_vm12, 4294967295, %v16804_v53  ;;  %v10884_v34 = vmul.f32 %v10725_v20, %v10043_v59 }
 0x3fe   :  { %16806 = vst [vmem:[#allocation18_spill] sm:$0xff] %v16805_v53  ;;  %v10888_v40 = vmul.f32 %v10725_v20, %v10057_v0  ;;  %v10901_v59 = vmul.f32 %v10725_v20, %v10124_v55  ;;  %v10905_v0 = vmul.f32 %v10725_v20, %v10145_v48  ;;  %v10909_v19 = vmul.f32 %v10725_v20, %v10169_v26  ;;  %v16807_v48 = vld [vmem:[#allocation88_spill] sm:$0xff]  ;;  %v16820_v53 = vld [vmem:[#allocation89_spill] sm:$0xff] }
 0x3ff   :  { %16803 = vst [vmem:[#allocation103_spill] sm:$0xff] %v10866_v3  ;;  %v3644_v21 = vrot.slane %v10866_v3, 4  ;;  %v3651_v6 = vor.u32 %v3649_v4, %v3648_v8  ;;  %v3653_v54 = vrot.slane %v3648_v8, 4  ;;  %v10913_v63 = vmul.f32 %v10725_v20, %v10190_v24 }
 0x400   :  { %v10917_v4 = vmul.f32 %v10725_v20, %v10207_v14  ;;  %v10925_v52 = vmul.f32 %v10725_v20, %v16807_v48  ;;  %v10929_v26 = vmul.f32 %v10725_v20, %v10237_v32  ;;  %v10934_v24 = vmul.f32 %v10725_v20, %v10256_v30  ;;  %v7673_v32 = vld [vmem:[#allocation2] sm:$0xff] }
 0x401   :  { %v3652_v55 = vsel %vm10878_vm12, %v3644_v21, %v3651_v6  ;;  %v3975_v8 = vsel %vm9638_vm14, %v3653_v54, %v3974_v18  ;;  %v10938_v14 = vmul.f32 %v10725_v20, %v10274_v61  ;;  %v16808_v21 = vld [vmem:[#allocation68_spill] sm:$0xff]  ;;  %v10946_v18 = vmul.f32 %v10725_v20, %v10313_v33  ;;  %v16810_v61 = vld [vmem:[#allocation99_spill] sm:$0xff] }
 0x402   :  { %3973 = vst.msk [vmem:[#allocation2 + $0x19c] sm:$0xf] %vm2808_vm3, %v3652_v55  ;;  %v10942_v54 = vmul.f32 %v10725_v20, %v16808_v21  ;;  %v3979_v6 = vld [vmem:[#allocation2 + $0x8] sm:$0x1]  ;;  %v10950_v55 = vmul.f32 %v10725_v20, %v10346_v51  ;;  %v10954_v30 = vmul.f32 %v10725_v20, %v10374_v17  ;;  %v10958_v48 = vmul.f32 %v10725_v20, %v16810_v61  ;;  %v16812_v21 = vld [vmem:[#allocation53_spill] sm:$0xff]  ;;  %v16814_v33 = vld [vmem:[#allocation79_spill] sm:$0xff] }
 0x403   :  { %3976 = vst [vmem:[#allocation2 + $0x1a0] sm:$0x1] %v3975_v8  ;;  %v10962_v3 = vmul.f32 %v10725_v20, %v16812_v21  ;;  %v10966_v41 = vmul.f32 %v10725_v20, %v16814_v33  ;;  %v16816_v8 = vld [vmem:[#allocation30_spill] sm:$0xff]  ;;  %v10974_v17 = vmul.f32 %v10725_v20, %v16818_v35  ;;  %v10978_v61 = vmul.f32 %v10725_v20, %v16820_v53 }
 0x404   :  { %16809 = vst [vmem:[#allocation49_spill] sm:$0xff] %v10954_v30  ;;  %v10970_v51 = vmul.f32 %v10725_v20, %v16816_v8  ;;  %v4342_v30 = vshrl.u32 %v7673_v32, 16  ;;  %v4344_v35 = vshll.u32 %v7673_v32, 16  ;;  %v10998_v53 = vadd.f32 %v10739_v44, %v10747_v60 }
 0x405   :  { %16811 = vst [vmem:[#allocation39_spill] sm:$0xff] %v10958_v48  ;;  %v16821_v48 = vld [vmem:[#allocation32_spill] sm:$0xff]  ;;  %v11012_v32 = vadd.f32 %v10739_v44, %v10751_v15  ;;  %v11020_v60 = vadd.f32 %v10739_v44, %v10759_v37  ;;  %v11033_v15 = vadd.f32 %v10739_v44, %v10773_v46  ;;  %v11053_v46 = vadd.f32 %v10739_v44, %v10793_v42 }
 0x406   :  { %16813 = vst [vmem:[#allocation61_spill] sm:$0xff] %v10962_v3  ;;  %v10982_v21 = vmul.f32 %v10725_v20, %v16821_v48  ;;  %v16823_v3 = vld [vmem:[#allocation56_spill] sm:$0xff]  ;;  %v16826_v48 = vld [vmem:[#allocation91_spill] sm:$0xff]  ;;  %v11073_v42 = vadd.f32 %v10739_v44, %v10813_v47  ;;  %v11095_v47 = vadd.f32 %v10739_v44, %v10835_v11  ;;  %v11115_v11 = vadd.f32 %v10739_v44, %v10856_v43 }
 0x407   :  { %16815 = vst [vmem:[#allocation90_spill] sm:$0xff] %v10966_v41  ;;  %v10986_v33 = vmul.f32 %v10725_v20, %v16823_v3  ;;  %v16825_v41 = vld [vmem:[#allocation22_spill] sm:$0xff]  ;;  %v16827_v3 = vld [vmem:[#allocation9_spill] sm:$0xff]  ;;  %v11135_v43 = vadd.f32 %v10739_v44, %v10884_v34  ;;  %v11155_v34 = vadd.f32 %v10739_v44, %v10905_v0  ;;  %v11175_v0 = vadd.f32 %v10739_v44, %v10929_v26 }
 0x408   :  { %16817 = vst [vmem:[#allocation38_spill] sm:$0xff] %v10970_v51  ;;  %v10990_v8 = vmul.f32 %v10725_v20, %v16825_v41  ;;  %v4277_v51 = vunpack.c.l.b16 %v3979_v6  ;;  %v11016_v6 = vadd.f32 %v10739_v44, %v10755_v25  ;;  %v11037_v25 = vadd.f32 %v10739_v44, %v10777_v9 }
 0x409   :  { %16819 = vst [vmem:[#allocation119_spill] sm:$0xff] %v10974_v17  ;;  %v10994_v17 = vadd.f32 %v10739_v44, %v10743_v2  ;;  %v4346_v2 = vrot.slane %v4344_v35, 1  ;;  %v11041_v35 = vadd.f32 %v10739_v44, %v10781_v16  ;;  %v11057_v9 = vadd.f32 %v10739_v44, %v10797_v13 }
 0x40a   :  { %16822 = vst [vmem:[#allocation41_spill] sm:$0xff] %v10982_v21  ;;  %v11002_v21 = vmul.f32 %v10725_v20, %v16826_v48  ;;  %v11008_v41 = vpack.c.b16 %v4277_v51, %v4277_v51  ;;  %v11024_v48 = vadd.f32 %v10739_v44, %v10763_v28  ;;  %v11045_v28 = vadd.f32 %v10739_v44, %v10785_v5 }
 0x40b   :  { %16824 = vst [vmem:[#allocation139_spill] sm:$0xff] %v10986_v33  ;;  %v11006_v33 = vmul.f32 %v10725_v20, %v16827_v3  ;;  %v11029_v3 = vadd.f32 %v10739_v44, %v10767_v7  ;;  %v4347_v37 = vor.u32 %v4346_v2, %v4342_v30  ;;  %v11049_v7 = vadd.f32 %v10739_v44, %v10789_v49 }
 0x40c   :  { %16828 = vst [vmem:[#allocation142_spill] sm:$0xff] %v11008_v41  ;;  %v4349_v51 = vshll.u32 %v11008_v41, 16  ;;  %v11061_v16 = vadd.f32 %v10739_v44, %v10801_v12  ;;  %v11065_v5 = vadd.f32 %v10739_v44, %v10805_v22  ;;  %v11069_v49 = vadd.f32 %v10739_v44, %v10809_v31  ;;  %v16842_v2 = vld [vmem:[#allocation39_spill] sm:$0xff] }
 0x40d   :  { %v11077_v13 = vadd.f32 %v10739_v44, %v10817_v29  ;;  %v11082_v12 = vadd.f32 %v10739_v44, %v10823_v27  ;;  %v11086_v22 = vadd.f32 %v10739_v44, %v10827_v36  ;;  %v11090_v31 = vadd.f32 %v10739_v44, %v10831_v58  ;;  %16829 = vst [vmem:[#allocation102_spill] sm:$0xff] %v11155_v34 }
 0x40e   :  { %v4351_v41 = vrot.slane %v4349_v51, 1  ;;  %v11099_v29 = vadd.f32 %v10739_v44, %v10839_v1  ;;  %v11103_v27 = vadd.f32 %v10739_v44, %v10843_v50  ;;  %v11107_v36 = vadd.f32 %v10739_v44, %v10848_v62  ;;  %16834 = vst [vmem:[#allocation29_spill] sm:$0xff] %v11175_v0  ;;  %v16844_v51 = vld [vmem:[#allocation61_spill] sm:$0xff] }
 0x40f   :  { %v11111_v58 = vadd.f32 %v10739_v44, %v10852_v38  ;;  %v11119_v1 = vadd.f32 %v10739_v44, %v10860_v45  ;;  %v11123_v50 = vadd.f32 %v10739_v44, %v10864_v23  ;;  %v11127_v62 = vadd.f32 %v10739_v44, %v10870_v10 }
 0x410   :  { %v4352_v30 = vsel %vm396_vm0, %v4347_v37, %v4351_v41  ;;  %v11131_v38 = vadd.f32 %v10739_v44, %v10874_v56  ;;  %v11139_v45 = vadd.f32 %v10739_v44, %v10888_v40  ;;  %v11143_v23 = vadd.f32 %v10739_v44, %v10892_v57  ;;  %v16840_v41 = vld [vmem:[#allocation49_spill] sm:$0xff]  ;;  %v16846_v37 = vld [vmem:[#allocation90_spill] sm:$0xff] }
 0x411   :  { %4725 = vrot.lane.b32.xlu1 %v4352_v30, %s7859_s17  ;;  %v11147_v10 = vadd.f32 %v10739_v44, %v10896_v39  ;;  %v11151_v56 = vadd.f32 %v10739_v44, %v10901_v59  ;;  %v11159_v40 = vadd.f32 %v10739_v44, %v10909_v19  ;;  %v11163_v57 = vadd.f32 %v10739_v44, %v10913_v63  ;;  %v16848_v30 = vld [vmem:[#allocation38_spill] sm:$0xff] }
 0x412   :  { %v11167_v39 = vadd.f32 %v10739_v44, %v10917_v4  ;;  %v11171_v59 = vadd.f32 %v10739_v44, %v10925_v52  ;;  %v11179_v19 = vadd.f32 %v10739_v44, %v10934_v24  ;;  %v11183_v63 = vadd.f32 %v10739_v44, %v10938_v14 }
 0x413   :  { %16830 = vst [vmem:[#allocation70_spill] sm:$0xff] %v11159_v40  ;;  %v11187_v4 = vadd.f32 %v10739_v44, %v10942_v54  ;;  %v11191_v52 = vadd.f32 %v10739_v44, %v10946_v18  ;;  %v11195_v26 = vadd.f32 %v10739_v44, %v10950_v55  ;;  %v11199_v24 = vadd.f32 %v10739_v44, %v16840_v41 }
 0x414   :  { %16831 = vst [vmem:[#allocation114_spill] sm:$0xff] %v11163_v57  ;;  %v11203_v14 = vadd.f32 %v10739_v44, %v16842_v2  ;;  %v11207_v54 = vadd.f32 %v10739_v44, %v16844_v51  ;;  %v11211_v18 = vadd.f32 %v10739_v44, %v16846_v37  ;;  %v11215_v55 = vadd.f32 %v10739_v44, %v16848_v30 }
 0x415   :  { %16832 = vst [vmem:[#allocation55_spill] sm:$0xff] %v11167_v39  ;;  %v11223_v2 = vadd.f32 %v10739_v44, %v10978_v61  ;;  %v11235_v30 = vadd.f32 %v10739_v44, %v10990_v8  ;;  %v11243_v61 = vadd.f32 %v10739_v44, %v11006_v33  ;;  %v16860_v8 = vmov 0 }
 0x416   :  { %16833 = vst [vmem:[#allocation124_spill] sm:$0xff] %v11171_v59  ;;  %v16861_v8 = vsel %vm11249_vm13, 4294967295, %v16860_v8  ;;  %v3764_v59 = vld [vmem:[#allocation2 + $0x20] sm:$0x1] }
 0x417   :  { %16835 = vst [vmem:[#allocation140_spill] sm:$0xff] %v11179_v19 }
 0x418   :  { %16836 = vst [vmem:[#allocation82_spill] sm:$0xff] %v11183_v63 }
 0x419   :  { %16837 = vst [vmem:[#allocation37_spill] sm:$0xff] %v11187_v4 }
 0x41a   :  { %16838 = vst [vmem:[#allocation126_spill] sm:$0xff] %v11191_v52  ;;  %v16864_v52 = vld [vmem:[#allocation31_spill] sm:$0xff] }
 0x41b   :  { %16839 = vst [vmem:[#allocation76_spill] sm:$0xff] %v11195_v26  ;;  %v16850_v26 = vld [vmem:[#allocation119_spill] sm:$0xff] }
 0x41c   :  { %16841 = vst [vmem:[#allocation136_spill] sm:$0xff] %v11199_v24  ;;  %v11219_v41 = vadd.f32 %v10739_v44, %v16850_v26  ;;  %v11239_v26 = vadd.f32 %v10739_v44, %v11002_v21  ;;  %v3767_v21 = vld [vmem:[#allocation2 + $0x24] sm:$0xf] }
 0x41d   :  { %16843 = vst [vmem:[#allocation92_spill] sm:$0xff] %v11203_v14  ;;  %v16853_v14 = vld [vmem:[#allocation41_spill] sm:$0xff] }
 0x41e   :  { %16845 = vst [vmem:[#allocation54_spill] sm:$0xff] %v11207_v54  ;;  %v11227_v51 = vadd.f32 %v10739_v44, %v16853_v14  ;;  %v16855_v54 = vld [vmem:[#allocation139_spill] sm:$0xff]  ;;  %v2749_v14 = vmax.f32 %v11016_v6, 0.0 }
 0x41f   :  { %16847 = vst [vmem:[#allocation51_spill] sm:$0xff] %v11211_v18  ;;  %v11231_v37 = vadd.f32 %v10739_v44, %v16855_v54 }
 0x420   :  { %16849 = vst [vmem:[#allocation113_spill] sm:$0xff] %v11215_v55 }
 0x421   :  { %16851 = vst [vmem:[#allocation134_spill] sm:$0xff] %v11219_v41  ;;  %v3049_v41 = vpack.c.bf16 %v2749_v14, %v2749_v14 }
 0x422   :  { %16852 = vst [vmem:[#allocation40_spill] sm:$0xff] %v11223_v2  ;;  %v2748_v2 = vmax.f32 %v11012_v32, 0.0 }
 0x423   :  { %16854 = vst [vmem:[#allocation21_spill] sm:$0xff] %v11227_v51  ;;  %v3156_v33 = vshll.u32 %v3049_v41, 16 }
 0x424   :  { %16856 = vst [vmem:[#allocation44_spill] sm:$0xff] %v11231_v37  ;;  %v3048_v51 = vpack.c.bf16 %v2748_v2, %v2748_v2  ;;  %v3153_v37 = vshrl.u32 %v3049_v41, 16  ;;  %v16863_v2 = vld [vmem:[#allocation63_spill] sm:$0xff] }
 0x425   :  { %16857 = vst [vmem:[#allocation94_spill] sm:$0xff] %v11235_v30  ;;  %v2615_v14 = vmul.f32 %v10725_v20, %v16863_v2 }
 0x426   :  { %16858 = vst [vmem:[#allocation15_spill] sm:$0xff] %v11239_v26  ;;  %v3145_v54 = vshrl.u32 %v3048_v51, 16  ;;  %v3148_v18 = vshll.u32 %v3048_v51, 16  ;;  %v3155_v26 = vrot.slane %v3153_v37, 7  ;;  %v2616_v51 = vmul.f32 %v10725_v20, %v16864_v52  ;;  %v16868_v20 = vld [vmem:[#allocation103_spill] sm:$0xff] }
 0x427   :  { %16859 = vst [vmem:[#allocation125_spill] sm:$0xff] %v11243_v61  ;;  %v3771_v61 = vld [vmem:[#allocation2 + $0x2c] sm:$0x1] }
 0x428   :  { %v3147_v55 = vrot.slane %v3145_v54, 7  ;;  %16862 = vst [vmem:[#allocation58_spill] sm:$0xff] %v16861_v8  ;;  %v3158_v24 = vor.u32 %v3156_v33, %v3155_v26  ;;  %v3160_v6 = vrot.slane %v3155_v26, 4  ;;  %v16867_v26 = vld [vmem:[#allocation72_spill] sm:$0xff] }
 0x429   :  { %v3641_v33 = vshll.u32 %v16867_v26, 16 }
 0x42a   :  { %v3150_v30 = vor.u32 %v3148_v18, %v3147_v55  ;;  %v3151_v32 = vrot.slane %v3147_v55, 4  ;;  %v3772_v41 = vsel %vm9638_vm14, %v3160_v6, %v3771_v61  ;;  %v2682_v18 = vadd.f32 %v10739_v44, %v2615_v14 }
 0x42b   :  { %v2683_v55 = vadd.f32 %v10739_v44, %v2616_v51  ;;  %3773 = vst [vmem:[#allocation2 + $0x2c] sm:$0x1] %v3772_v41  ;;  %v3643_v52 = vor.u32 %v3641_v33, %v16868_v20  ;;  %v3760_v33 = vld [vmem:[#allocation2 + $0x18] sm:$0xf] }
 0x42c   :  { %v3768_v54 = vsel %vm11249_vm13, %v3150_v30, %v3767_v21  ;;  %v3159_v63 = vsel %vm10878_vm12, %v3151_v32, %v3158_v24  ;;  %v2746_v2 = vmax.f32 %v2682_v18, 0.0  ;;  %v3970_v21 = vld [vmem:[#allocation2 + $0x198] sm:$0xf] }
 0x42d   :  { %3769 = vst [vmem:[#allocation2 + $0x24] sm:$0xf] %v3768_v54  ;;  %v2747_v30 = vmax.f32 %v2683_v55, 0.0  ;;  %v3971_v32 = vsel %vm11249_vm13, %v3643_v52, %v3970_v21  ;;  %v16890_v40 = vld [vmem:[#allocation94_spill] sm:$0xff] }
 0x42e   :  { %3770 = vst.msk [vmem:[#allocation2 + $0x28] sm:$0xf] %vm2808_vm3, %v3159_v63  ;;  %v3046_v61 = vpack.c.bf16 %v2746_v2, %v2746_v2  ;;  %v2744_v2 = vmax.f32 %v10994_v17, 0.0 }
 0x42f   :  { %v3047_v6 = vpack.c.bf16 %v2747_v30, %v2747_v30  ;;  %3972 = vst [vmem:[#allocation2 + $0x198] sm:$0xf] %v3971_v32  ;;  %v2745_v30 = vmax.f32 %v10998_v53, 0.0 }
 0x430   :  { %v3128_v44 = vshrl.u32 %v3046_v61, 16  ;;  %v3131_v55 = vshll.u32 %v3046_v61, 16 }
 0x431   :  { %v3136_v63 = vshrl.u32 %v3047_v6, 16  ;;  %v3139_v0 = vshll.u32 %v3047_v6, 16  ;;  %v3753_v6 = vld [vmem:[#allocation2 + $0xc] sm:$0xf] }
 0x432   :  { %v3988_v24 = vld [vmem:[#allocation2 + $0x2c] sm:$0x1]  ;;  %v3130_v18 = vrot.slane %v3128_v44, 7 }
 0x433   :  { %v4280_v14 = vunpack.c.l.b16 %v3988_v24  ;;  %v3138_v20 = vrot.slane %v3136_v63, 7 }
 0x434   :  { %v3133_v21 = vor.u32 %v3131_v55, %v3130_v18  ;;  %v3134_v24 = vrot.slane %v3130_v18, 4  ;;  %v3757_v18 = vld [vmem:[#allocation2 + $0x14] sm:$0x1] }
 0x435   :  { %v7676_v19 = vld [vmem:[#allocation2 + $0x24] sm:$0xff]  ;;  %v11270_v51 = vpack.c.b16 %v4280_v14, %v4280_v14  ;;  %v3141_v32 = vor.u32 %v3139_v0, %v3138_v20  ;;  %v3143_v14 = vrot.slane %v3138_v20, 4 }
 0x436   :  { %v4380_v54 = vshll.u32 %v7676_v19, 16  ;;  %v4378_v41 = vshrl.u32 %v7676_v19, 16  ;;  %v3761_v17 = vsel %vm11249_vm13, %v3133_v21, %v3760_v33 }
 0x437   :  { %16869 = vst [vmem:[#allocation75_spill] sm:$0xff] %v11270_v51  ;;  %v4385_v52 = vshll.u32 %v11270_v51, 16  ;;  %v3142_v44 = vsel %vm10878_vm12, %v3134_v24, %v3141_v32  ;;  %v3765_v53 = vsel %vm9638_vm14, %v3143_v14, %v3764_v59 }
 0x438   :  { %v4382_v26 = vrot.slane %v4380_v54, 1  ;;  %3762 = vst [vmem:[#allocation2 + $0x18] sm:$0xf] %v3761_v17  ;;  %v16886_v54 = vld [vmem:[#allocation134_spill] sm:$0xff] }
 0x439   :  { %v4387_v57 = vrot.slane %v4385_v52, 1  ;;  %3763 = vst.msk [vmem:[#allocation2 + $0x1c] sm:$0xf] %vm2808_vm3, %v3142_v44  ;;  %v3044_v52 = vpack.c.bf16 %v2744_v2, %v2744_v2 }
 0x43a   :  { %v4383_v39 = vor.u32 %v4382_v26, %v4378_v41  ;;  %3766 = vst [vmem:[#allocation2 + $0x20] sm:$0x1] %v3765_v53  ;;  %v3045_v41 = vpack.c.bf16 %v2745_v30, %v2745_v30 }
 0x43b   :  { %v3114_v20 = vshll.u32 %v3044_v52, 16 }
 0x43c   :  { %v11286_v0 = vsel %vm396_vm0, %v4383_v39, %v4387_v57  ;;  %v3111_v57 = vshrl.u32 %v3044_v52, 16 }
 0x43d   :  { %16870 = vst [vmem:[#allocation10_spill] sm:$0xff] %v11286_v0  ;;  %4731 = vrot.lane.b32.xlu1 %v11286_v0, %s7859_s17  ;;  %v16888_v0 = vld [vmem:[#allocation21_spill] sm:$0xff] }
 0x43e   :  { %v3113_v63 = vrot.slane %v3111_v57, 7  ;;  %v16889_v57 = vld [vmem:[#allocation44_spill] sm:$0xff] }
 0x440   :  { %v7675_v33 = vld [vmem:[#allocation2 + $0x18] sm:$0xff]  ;;  %v3116_v55 = vor.u32 %v3114_v20, %v3113_v63  ;;  %v3117_v51 = vrot.slane %v3113_v63, 4  ;;  %v16892_v63 = vld [vmem:[#allocation125_spill] sm:$0xff] }
 0x441   :  { %v3985_v44 = vld [vmem:[#allocation2 + $0x20] sm:$0x1]  ;;  %v4368_v53 = vshll.u32 %v7675_v33, 16  ;;  %v4366_v30 = vshrl.u32 %v7675_v33, 16  ;;  %v16887_v33 = vld [vmem:[#allocation40_spill] sm:$0xff] }
 0x442   :  { %v4279_v61 = vunpack.c.l.b16 %v3985_v44  ;;  %v3119_v44 = vshrl.u32 %v3045_v41, 16 }
 0x443   :  { %v4370_v17 = vrot.slane %v4368_v53, 1  ;;  %v16894_v53 = vmax.f32 %v11020_v60, 0.0 }
 0x444   :  { %v11334_v26 = vpack.c.b16 %v4279_v61, %v4279_v61  ;;  %v3121_v14 = vrot.slane %v3119_v44, 7  ;;  %v3122_v61 = vshll.u32 %v3045_v41, 16 }
 0x445   :  { %v4371_v19 = vor.u32 %v4370_v17, %v4366_v30  ;;  %v3754_v17 = vsel %vm11249_vm13, %v3116_v55, %v3753_v6  ;;  %v16891_v30 = vld [vmem:[#allocation15_spill] sm:$0xff]  ;;  %v11354_v39 = vpack.c.bf16 %v16894_v53, %v16894_v53  ;;  %v16898_v55 = vmax.f32 %v11029_v3, 0.0 }
 0x446   :  { %16883 = vst [vmem:[#allocation45_spill] sm:$0xff] %v11334_v26  ;;  %v4373_v32 = vshll.u32 %v11334_v26, 16  ;;  %v3124_v2 = vor.u32 %v3122_v61, %v3121_v14  ;;  %v3126_v21 = vrot.slane %v3121_v14, 4  ;;  %v16901_v3 = vmax.f32 %v11041_v35, 0.0 }
 0x447   :  { %16895 = vst [vmem:[#allocation48_spill] sm:$0xff] %v11354_v39  ;;  %v11366_v14 = vpack.c.bf16 %v16898_v55, %v16898_v55  ;;  %v16908_v35 = vmax.f32 %v11057_v9, 0.0  ;;  %v16916_v9 = vmax.f32 %v11073_v42, 0.0  ;;  %v16922_v42 = vmax.f32 %v11090_v31, 0.0 }
 0x448   :  { %v4375_v59 = vrot.slane %v4373_v32, 1  ;;  %3755 = vst [vmem:[#allocation2 + $0xc] sm:$0xf] %v3754_v17  ;;  %v16896_v32 = vmax.f32 %v11024_v48, 0.0  ;;  %v3125_v60 = vsel %vm10878_vm12, %v3117_v51, %v3124_v2  ;;  %v16900_v48 = vmax.f32 %v11037_v25, 0.0 }
 0x449   :  { %v11385_v17 = vpack.c.bf16 %v16901_v3, %v16901_v3  ;;  %v16902_v51 = vmax.f32 %v11045_v28, 0.0  ;;  %3756 = vst.msk [vmem:[#allocation2 + $0x10] sm:$0xf] %vm2808_vm3, %v3125_v60  ;;  %v16906_v25 = vmax.f32 %v11053_v46, 0.0  ;;  %v16910_v28 = vmax.f32 %v11061_v16, 0.0 }
 0x44a   :  { %v11349_v41 = vsel %vm396_vm0, %v4371_v19, %v4375_v59  ;;  %v11361_v6 = vpack.c.bf16 %v16896_v32, %v16896_v32  ;;  %v3758_v19 = vsel %vm9638_vm14, %v3126_v21, %v3757_v18  ;;  %v16899_v59 = vmax.f32 %v11033_v15, 0.0 }
 0x44b   :  { %16893 = vst [vmem:[#allocation133_spill] sm:$0xff] %v11349_v41  ;;  %4729 = vrot.lane.b32.xlu0 %v11349_v41, %s7859_s17  ;;  %v11380_v53 = vpack.c.bf16 %v16900_v48, %v16900_v48  ;;  %v11390_v2 = vpack.c.bf16 %v16902_v51, %v16902_v51  ;;  %v16904_v15 = vmax.f32 %v11049_v7, 0.0  ;;  %v11401_v21 = vpack.c.bf16 %v16906_v25, %v16906_v25 }
 0x44c   :  { %16897 = vst [vmem:[#allocation62_spill] sm:$0xff] %v11361_v6  ;;  %v11375_v61 = vpack.c.bf16 %v16899_v59, %v16899_v59  ;;  %v11406_v32 = vpack.c.bf16 %v16908_v35, %v16908_v35  ;;  %v11411_v55 = vpack.c.bf16 %v16910_v28, %v16910_v28  ;;  %v16912_v7 = vmax.f32 %v11065_v5, 0.0 }
 0x44d   :  { %16903 = vst [vmem:[#allocation93_spill] sm:$0xff] %v11390_v2  ;;  %v11396_v18 = vpack.c.bf16 %v16904_v15, %v16904_v15  ;;  %v16914_v46 = vmax.f32 %v11069_v49, 0.0  ;;  %v11426_v48 = vpack.c.bf16 %v16916_v9, %v16916_v9  ;;  %v16917_v16 = vmax.f32 %v11077_v13, 0.0 }
 0x44e   :  { %16907 = vst [vmem:[#allocation122_spill] sm:$0xff] %v11401_v21  ;;  %v11416_v60 = vpack.c.bf16 %v16912_v7, %v16912_v7  ;;  %v16919_v5 = vmax.f32 %v11082_v12, 0.0  ;;  %v16920_v49 = vmax.f32 %v11086_v22, 0.0  ;;  %v11446_v15 = vpack.c.bf16 %v16922_v42, %v16922_v42 }
 0x44f   :  { %16905 = vst [vmem:[#allocation105_spill] sm:$0xff] %v11396_v18  ;;  %v11421_v59 = vpack.c.bf16 %v16914_v46, %v16914_v46  ;;  %v11431_v3 = vpack.c.bf16 %v16917_v16, %v16917_v16  ;;  %v16923_v13 = vmax.f32 %v11095_v47, 0.0  ;;  %v16925_v12 = vmax.f32 %v11099_v29, 0.0 }
 0x450   :  { %16909 = vst [vmem:[#allocation74_spill] sm:$0xff] %v11406_v32  ;;  %v11441_v51 = vpack.c.bf16 %v16920_v49, %v16920_v49  ;;  %v16926_v22 = vmax.f32 %v11103_v27, 0.0  ;;  %v16928_v31 = vmax.f32 %v11107_v36, 0.0  ;;  %v16929_v47 = vmax.f32 %v11111_v58, 0.0 }
 0x451   :  { %16911 = vst [vmem:[#allocation57_spill] sm:$0xff] %v11411_v55  ;;  %v11451_v25 = vpack.c.bf16 %v16923_v13, %v16923_v13  ;;  %v11456_v35 = vpack.c.bf16 %v16925_v12, %v16925_v12  ;;  %v16931_v29 = vmax.f32 %v11115_v11, 0.0  ;;  %v16933_v27 = vmax.f32 %v11119_v1, 0.0 }
 0x452   :  { %3759 = vst [vmem:[#allocation2 + $0x14] sm:$0x1] %v3758_v19  ;;  %v11436_v19 = vpack.c.bf16 %v16919_v5, %v16919_v5  ;;  %v11461_v28 = vpack.c.bf16 %v16926_v22, %v16926_v22  ;;  %v11466_v7 = vpack.c.bf16 %v16928_v31, %v16928_v31  ;;  %v11471_v46 = vpack.c.bf16 %v16929_v47, %v16929_v47 }
 0x453   :  { %16913 = vst [vmem:[#allocation52_spill] sm:$0xff] %v11416_v60  ;;  %v11476_v9 = vpack.c.bf16 %v16931_v29, %v16931_v29  ;;  %v11481_v16 = vpack.c.bf16 %v16933_v27, %v16933_v27  ;;  %v16935_v36 = vmax.f32 %v11123_v50, 0.0  ;;  %v16936_v58 = vmax.f32 %v11127_v62, 0.0 }
 0x454   :  { %16915 = vst [vmem:[#allocation107_spill] sm:$0xff] %v11421_v59  ;;  %v16938_v11 = vmax.f32 %v11131_v38, 0.0  ;;  %v16939_v1 = vmax.f32 %v11135_v43, 0.0  ;;  %v16941_v50 = vmax.f32 %v11139_v45, 0.0  ;;  %v16942_v62 = vmax.f32 %v11143_v23, 0.0 }
 0x455   :  { %16918 = vst [vmem:[#allocation12_spill] sm:$0xff] %v11431_v3  ;;  %v11486_v5 = vpack.c.bf16 %v16935_v36, %v16935_v36  ;;  %v11491_v49 = vpack.c.bf16 %v16936_v58, %v16936_v58  ;;  %v16944_v38 = vmax.f32 %v11147_v10, 0.0  ;;  %v16945_v43 = vmax.f32 %v11151_v56, 0.0  ;;  %v16949_v36 = vld [vmem:[#allocation70_spill] sm:$0xff]  ;;  %v16955_v56 = vld [vmem:[#allocation55_spill] sm:$0xff] }
 0x456   :  { %16921 = vst [vmem:[#allocation116_spill] sm:$0xff] %v11441_v51  ;;  %v11496_v42 = vpack.c.bf16 %v16938_v11, %v16938_v11  ;;  %v11501_v13 = vpack.c.bf16 %v16939_v1, %v16939_v1  ;;  %v11506_v12 = vpack.c.bf16 %v16941_v50, %v16941_v50  ;;  %v11511_v22 = vpack.c.bf16 %v16942_v62, %v16942_v62  ;;  %v7674_v11 = vld [vmem:[#allocation2 + $0xc] sm:$0xff]  ;;  %v16952_v10 = vld [vmem:[#allocation114_spill] sm:$0xff] }
 0x457   :  { %16924 = vst [vmem:[#allocation127_spill] sm:$0xff] %v11451_v25  ;;  %v11516_v31 = vpack.c.bf16 %v16944_v38, %v16944_v38  ;;  %v11521_v47 = vpack.c.bf16 %v16945_v43, %v16945_v43  ;;  %v16947_v29 = vmov %v11155_v34  ;;  %v16950_v23 = vmax.f32 %v16949_v36, 0.0  ;;  %v16958_v43 = vld [vmem:[#allocation124_spill] sm:$0xff]  ;;  %v16961_v36 = vld [vmem:[#allocation29_spill] sm:$0xff] }
 0x458   :  { %16927 = vst [vmem:[#allocation111_spill] sm:$0xff] %v11461_v28  ;;  %v16948_v45 = vmax.f32 %v16947_v29, 0.0  ;;  %v16953_v1 = vmax.f32 %v16952_v10, 0.0  ;;  %v16956_v62 = vmax.f32 %v16955_v56, 0.0  ;;  %v16959_v29 = vmax.f32 %v16958_v43, 0.0  ;;  %v16964_v10 = vld [vmem:[#allocation140_spill] sm:$0xff] }
 0x459   :  { %16930 = vst [vmem:[#allocation42_spill] sm:$0xff] %v11471_v46  ;;  %v11531_v58 = vpack.c.bf16 %v16950_v23, %v16950_v23  ;;  %v16962_v44 = vmax.f32 %v16961_v36, 0.0  ;;  %v3982_v20 = vld [vmem:[#allocation2 + $0x14] sm:$0x1]  ;;  %v16965_v34 = vmax.f32 %v16964_v10, 0.0  ;;  %v16967_v56 = vld [vmem:[#allocation82_spill] sm:$0xff] }
 0x45a   :  { %16932 = vst [vmem:[#allocation85_spill] sm:$0xff] %v11476_v9  ;;  %v11526_v27 = vpack.c.bf16 %v16948_v45, %v16948_v45  ;;  %v11536_v50 = vpack.c.bf16 %v16953_v1, %v16953_v1  ;;  %v11541_v38 = vpack.c.bf16 %v16956_v62, %v16956_v62  ;;  %v11546_v45 = vpack.c.bf16 %v16959_v29, %v16959_v29  ;;  %v16970_v29 = vld [vmem:[#allocation37_spill] sm:$0xff]  ;;  %v16976_v10 = vld [vmem:[#allocation76_spill] sm:$0xff] }
 0x45b   :  { %16934 = vst [vmem:[#allocation47_spill] sm:$0xff] %v11481_v16  ;;  %v11551_v23 = vpack.c.bf16 %v16962_v44, %v16962_v44  ;;  %v11556_v1 = vpack.c.bf16 %v16965_v34, %v16965_v34  ;;  %v16968_v52 = vmax.f32 %v16967_v56, 0.0  ;;  %v4278_v43 = vunpack.c.l.b16 %v3982_v20  ;;  %v16973_v44 = vld [vmem:[#allocation126_spill] sm:$0xff]  ;;  %v16979_v56 = vld [vmem:[#allocation136_spill] sm:$0xff] }
 0x45c   :  { %16937 = vst [vmem:[#allocation129_spill] sm:$0xff] %v11491_v49  ;;  %v4356_v24 = vshll.u32 %v7674_v11, 16  ;;  %v16971_v41 = vmax.f32 %v16970_v29, 0.0  ;;  %v16974_v26 = vmax.f32 %v16973_v44, 0.0  ;;  %v16977_v34 = vmax.f32 %v16976_v10, 0.0 }
 0x45d   :  { %16940 = vst [vmem:[#allocation141_spill] sm:$0xff] %v11501_v13  ;;  %v11561_v62 = vpack.c.bf16 %v16968_v52, %v16968_v52  ;;  %v16980_v52 = vmax.f32 %v16979_v56, 0.0  ;;  %v4354_v44 = vshrl.u32 %v7674_v11, 16  ;;  %v17088_v37 = vshrl.u32 %v11531_v58, 16 }
 0x45e   :  { %16943 = vst [vmem:[#allocation78_spill] sm:$0xff] %v11511_v22  ;;  %v11566_v36 = vpack.c.bf16 %v16971_v41, %v16971_v41  ;;  %v17092_v8 = vshrl.u32 %v11541_v38, 16 }
 0x45f   :  { %16946 = vst [vmem:[#allocation95_spill] sm:$0xff] %v11521_v47  ;;  %v11581_v20 = vpack.c.bf16 %v16980_v52, %v16980_v52  ;;  %v16992_v52 = vld [vmem:[#allocation113_spill] sm:$0xff] }
 0x460   :  { %16951 = vst [vmem:[#allocation115_spill] sm:$0xff] %v11531_v58 }
 0x461   :  { %16954 = vst [vmem:[#allocation25_spill] sm:$0xff] %v11536_v50 }
 0x462   :  { %16957 = vst [vmem:[#allocation36_spill] sm:$0xff] %v11541_v38 }
 0x463   :  { %16960 = vst [vmem:[#allocation97_spill] sm:$0xff] %v11546_v45 }
 0x464   :  { %16963 = vst [vmem:[#allocation17_spill] sm:$0xff] %v11551_v23  ;;  %v11571_v23 = vpack.c.bf16 %v16974_v26, %v16974_v26  ;;  %v4358_v26 = vrot.slane %v4356_v24, 1  ;;  %v16997_v24 = vmax.f32 %v16887_v33, 0.0 }
 0x465   :  { %16966 = vst [vmem:[#allocation128_spill] sm:$0xff] %v11556_v1  ;;  %v11576_v1 = vpack.c.bf16 %v16977_v34, %v16977_v34  ;;  %v16989_v34 = vld [vmem:[#allocation51_spill] sm:$0xff] }
 0x466   :  { %16969 = vst [vmem:[#allocation77_spill] sm:$0xff] %v11561_v62  ;;  %v16982_v62 = vld [vmem:[#allocation92_spill] sm:$0xff] }
 0x467   :  { %16972 = vst [vmem:[#allocation11_spill] sm:$0xff] %v11566_v36  ;;  %v16983_v29 = vmax.f32 %v16982_v62, 0.0  ;;  %v11588_v36 = vpack.c.b16 %v4278_v43, %v4278_v43  ;;  %v16995_v43 = vmax.f32 %v16886_v54, 0.0 }
 0x468   :  { %16975 = vst [vmem:[#allocation106_spill] sm:$0xff] %v11571_v23  ;;  %v16986_v23 = vld [vmem:[#allocation54_spill] sm:$0xff] }
 0x469   :  { %16978 = vst [vmem:[#allocation34_spill] sm:$0xff] %v11576_v1  ;;  %v11586_v41 = vpack.c.bf16 %v16983_v29, %v16983_v29  ;;  %v16987_v45 = vmax.f32 %v16986_v23, 0.0  ;;  %v16990_v1 = vmax.f32 %v16989_v34, 0.0  ;;  %v11608_v11 = vpack.c.bf16 %v16995_v43, %v16995_v43 }
 0x46a   :  { %16981 = vst [vmem:[#allocation65_spill] sm:$0xff] %v11581_v20  ;;  %v16993_v20 = vmax.f32 %v16992_v52, 0.0  ;;  %v16999_v23 = vmax.f32 %v16888_v0, 0.0  ;;  %v4359_v29 = vor.u32 %v4358_v26, %v4354_v44  ;;  %v4361_v34 = vshll.u32 %v11588_v36, 16 }
 0x46b   :  { %16984 = vst [vmem:[#allocation96_spill] sm:$0xff] %v11586_v41  ;;  %v11593_v10 = vpack.c.bf16 %v16987_v45, %v16987_v45  ;;  %v11598_v56 = vpack.c.bf16 %v16990_v1, %v16990_v1  ;;  %v11613_v45 = vpack.c.bf16 %v16997_v24, %v16997_v24  ;;  %v17003_v52 = vmax.f32 %v16890_v40, 0.0 }
 0x46c   :  { %16985 = vst [vmem:[#allocation109_spill] sm:$0xff] %v11588_v36  ;;  %v11603_v62 = vpack.c.bf16 %v16993_v20, %v16993_v20  ;;  %v11618_v1 = vpack.c.bf16 %v16999_v23, %v16999_v23  ;;  %v17001_v20 = vmax.f32 %v16889_v57, 0.0  ;;  %v17005_v43 = vmax.f32 %v16891_v30, 0.0  ;;  %v3788_v36 = vld [vmem:[#allocation2 + $0x48] sm:$0xf] }
 0x46d   :  { %16988 = vst [vmem:[#allocation123_spill] sm:$0xff] %v11593_v10  ;;  %v11629_v33 = vpack.c.bf16 %v17003_v52, %v17003_v52  ;;  %v17007_v24 = vmax.f32 %v16892_v63, 0.0  ;;  %v4363_v26 = vrot.slane %v4361_v34, 1  ;;  %v3196_v34 = vshrl.u32 %v11380_v53, 16  ;;  %v3792_v52 = vld [vmem:[#allocation2 + $0x50] sm:$0x1] }
 0x46e   :  { %16991 = vst [vmem:[#allocation69_spill] sm:$0xff] %v11598_v56  ;;  %v11624_v54 = vpack.c.bf16 %v17001_v20, %v17001_v20  ;;  %v11634_v0 = vpack.c.bf16 %v17005_v43, %v17005_v43  ;;  %v3199_v57 = vshll.u32 %v11380_v53, 16  ;;  %v3204_v20 = vshrl.u32 %v11385_v17, 16 }
 0x46f   :  { %16994 = vst [vmem:[#allocation16_spill] sm:$0xff] %v11603_v62  ;;  %v11639_v44 = vpack.c.bf16 %v17007_v24, %v17007_v24  ;;  %v11649_v63 = vsel %vm396_vm0, %v4359_v29, %v4363_v26  ;;  %v3207_v23 = vshll.u32 %v11385_v17, 16  ;;  %v3198_v53 = vrot.slane %v3196_v34, 7 }
 0x470   :  { %16996 = vst [vmem:[#allocation118_spill] sm:$0xff] %v11608_v11  ;;  %4727 = vrot.lane.b32.xlu2 %v11649_v63, %s7859_s17  ;;  %v3206_v28 = vrot.slane %v3204_v20, 7  ;;  %v17018_v30 = vshrl.u32 %v11366_v14, 16  ;;  %v17019_v40 = vshrl.u32 %v11354_v39, 16  ;;  %v17024_v20 = vshrl.u32 %v11390_v2, 16 }
 0x471   :  { %16998 = vst [vmem:[#allocation130_spill] sm:$0xff] %v11613_v45  ;;  %v3201_v9 = vor.u32 %v3199_v57, %v3198_v53  ;;  %v3202_v29 = vrot.slane %v3198_v53, 4  ;;  %v17013_v53 = vld [vmem:[#allocation77_spill] sm:$0xff] }
 0x472   :  { %17000 = vst [vmem:[#allocation50_spill] sm:$0xff] %v11618_v1  ;;  %v3209_v16 = vor.u32 %v3207_v23, %v3206_v28  ;;  %v3211_v26 = vrot.slane %v3206_v28, 4  ;;  %v17021_v28 = vshrl.u32 %v11361_v6, 16  ;;  %v3781_v6 = vld [vmem:[#allocation2 + $0x3c] sm:$0xf] }
 0x473   :  { %17002 = vst [vmem:[#allocation86_spill] sm:$0xff] %v11624_v54  ;;  %v3789_v43 = vsel %vm11249_vm13, %v3201_v9, %v3788_v36  ;;  %v17011_v36 = vld [vmem:[#allocation17_spill] sm:$0xff]  ;;  %v3181_v9 = vrot.slane %v17018_v30, 7  ;;  %v17026_v30 = vshrl.u32 %v11396_v18, 16 }
 0x474   :  { %17004 = vst [vmem:[#allocation108_spill] sm:$0xff] %v11629_v33  ;;  %v3210_v17 = vsel %vm10878_vm12, %v3202_v29, %v3209_v16  ;;  %v3793_v57 = vsel %vm9638_vm14, %v3211_v26, %v3792_v52  ;;  %v17010_v16 = vld [vmem:[#allocation97_spill] sm:$0xff]  ;;  %v17012_v26 = vld [vmem:[#allocation128_spill] sm:$0xff]  ;;  %v17016_v29 = vld [vmem:[#allocation34_spill] sm:$0xff]  ;;  %v11749_v52 = vrot.slane %v17019_v40, 7  ;;  %v11753_v23 = vrot.slane %v17021_v28, 7 }
 0x475   :  { %17006 = vst [vmem:[#allocation132_spill] sm:$0xff] %v11634_v0  ;;  %v11759_v0 = vrot.slane %v17024_v20, 7  ;;  %v11763_v33 = vrot.slane %v17026_v30, 7  ;;  %v17028_v40 = vshrl.u32 %v11401_v21, 16  ;;  %v3785_v30 = vld [vmem:[#allocation2 + $0x44] sm:$0x1] }
 0x476   :  { %17008 = vst [vmem:[#allocation81_spill] sm:$0xff] %v11639_v44  ;;  %v17096_v4 = vshrl.u32 %v17011_v36, 16  ;;  %v17098_v58 = vshrl.u32 %v17012_v26, 16  ;;  %v17106_v36 = vshrl.u32 %v17016_v29, 16 }
 0x477   :  { %17009 = vst [vmem:[#allocation98_spill] sm:$0xff] %v11649_v63  ;;  %v17015_v63 = vld [vmem:[#allocation106_spill] sm:$0xff]  ;;  %v11767_v39 = vrot.slane %v17028_v40, 7  ;;  %v17037_v40 = vshll.u32 %v11366_v14, 16 }
 0x478   :  { %3790 = vst [vmem:[#allocation2 + $0x48] sm:$0xf] %v3789_v43  ;;  %v17014_v43 = vld [vmem:[#allocation11_spill] sm:$0xff] }
 0x479   :  { %3791 = vst.msk [vmem:[#allocation2 + $0x4c] sm:$0xf] %vm2808_vm3, %v3210_v17  ;;  %v17017_v17 = vld [vmem:[#allocation65_spill] sm:$0xff]  ;;  %v17102_v38 = vshrl.u32 %v17014_v43, 16  ;;  %v17112_v43 = vshrl.u32 %v11593_v10, 16 }
 0x47a   :  { %3794 = vst [vmem:[#allocation2 + $0x50] sm:$0x1] %v3793_v57  ;;  %v17023_v57 = vshrl.u32 %v11375_v61, 16  ;;  %v17108_v26 = vshrl.u32 %v17017_v17, 16 }
 0x47b   :  { %17020 = vst [vmem:[#allocation117_spill] sm:$0xff] %v11749_v52 }
 0x47c   :  { %17022 = vst [vmem:[#allocation135_spill] sm:$0xff] %v11753_v23  ;;  %v3189_v46 = vrot.slane %v17023_v57, 7  ;;  %v17030_v23 = vshrl.u32 %v11406_v32, 16  ;;  %v17032_v57 = vshrl.u32 %v11411_v55, 16  ;;  %v17038_v32 = vshrl.u32 %v11421_v59, 16 }
 0x47d   :  { %17025 = vst [vmem:[#allocation46_spill] sm:$0xff] %v11759_v0  ;;  %v17040_v55 = vshrl.u32 %v11426_v48, 16 }
 0x47e   :  { %17027 = vst [vmem:[#allocation100_spill] sm:$0xff] %v11763_v33  ;;  %v11771_v52 = vrot.slane %v17030_v23, 7  ;;  %v11775_v20 = vrot.slane %v17032_v57, 7  ;;  %v11787_v23 = vrot.slane %v17038_v32, 7  ;;  %v17045_v32 = vshrl.u32 %v11436_v19, 16 }
 0x47f   :  { %17029 = vst [vmem:[#allocation24_spill] sm:$0xff] %v11767_v39  ;;  %v3184_v39 = vor.u32 %v17037_v40, %v3181_v9  ;;  %v11791_v57 = vrot.slane %v17040_v55, 7  ;;  %v17047_v55 = vshrl.u32 %v11441_v51, 16  ;;  %v17070_v51 = vshrl.u32 %v11486_v5, 16 }
 0x480   :  { %v7679_v34 = vld [vmem:[#allocation2 + $0x48] sm:$0xff]  ;;  %17031 = vst [vmem:[#allocation131_spill] sm:$0xff] %v11771_v52  ;;  %v11804_v40 = vrot.slane %v17045_v32, 7 }
 0x481   :  { %v3997_v45 = vld [vmem:[#allocation2 + $0x50] sm:$0x1]  ;;  %v4416_v44 = vshll.u32 %v7679_v34, 16  ;;  %v4414_v28 = vshrl.u32 %v7679_v34, 16  ;;  %17033 = vst [vmem:[#allocation80_spill] sm:$0xff] %v11775_v20  ;;  %v3185_v34 = vrot.slane %v3181_v9, 4  ;;  %v3782_v9 = vsel %vm11249_vm13, %v3184_v39, %v3781_v6 }
 0x482   :  { %v4283_v24 = vunpack.c.l.b16 %v3997_v45  ;;  %v17034_v45 = vshrl.u32 %v11416_v60, 16  ;;  %17039 = vst [vmem:[#allocation28_spill] sm:$0xff] %v11787_v23  ;;  %v17042_v60 = vshll.u32 %v11375_v61, 16  ;;  %v11808_v59 = vrot.slane %v17047_v55, 7 }
 0x483   :  { %v4418_v21 = vrot.slane %v4416_v44, 1  ;;  %17041 = vst [vmem:[#allocation71_spill] sm:$0xff] %v11791_v57  ;;  %v17043_v44 = vshrl.u32 %v11431_v3, 16  ;;  %v17051_v39 = vshrl.u32 %v11451_v25, 16 }
 0x484   :  { %v11779_v2 = vrot.slane %v17034_v45, 7  ;;  %v11781_v18 = vpack.c.b16 %v4283_v24, %v4283_v24  ;;  %v3192_v45 = vor.u32 %v17042_v60, %v3189_v46  ;;  %17046 = vst [vmem:[#allocation121_spill] sm:$0xff] %v11804_v40 }
 0x485   :  { %v4419_v20 = vor.u32 %v4418_v21, %v4414_v28  ;;  %v11798_v14 = vrot.slane %v17043_v44, 7  ;;  %17048 = vst [vmem:[#allocation67_spill] sm:$0xff] %v11808_v59  ;;  %v11820_v6 = vrot.slane %v17051_v39, 7  ;;  %v17053_v44 = vshrl.u32 %v11456_v35, 16  ;;  %v17063_v39 = vld [vmem:[#allocation85_spill] sm:$0xff] }
 0x486   :  { %17035 = vst [vmem:[#allocation14_spill] sm:$0xff] %v11779_v2  ;;  %v3194_v2 = vrot.slane %v3189_v46, 4  ;;  %v4421_v24 = vshll.u32 %v11781_v18, 16  ;;  %v3193_v61 = vsel %vm10878_vm12, %v3185_v34, %v3192_v45  ;;  %v17049_v46 = vshrl.u32 %v11446_v15, 16  ;;  %v17055_v34 = vld [vmem:[#allocation111_spill] sm:$0xff] }
 0x487   :  { %17036 = vst [vmem:[#allocation110_spill] sm:$0xff] %v11781_v18  ;;  %v11824_v32 = vrot.slane %v17053_v44, 7  ;;  %v17056_v45 = vshrl.u32 %v17055_v34, 16  ;;  %v17064_v18 = vshrl.u32 %v17063_v39, 16 }
 0x488   :  { %17044 = vst [vmem:[#allocation19_spill] sm:$0xff] %v11798_v14  ;;  %v3786_v21 = vsel %vm9638_vm14, %v3194_v2, %v3785_v30  ;;  %v4423_v60 = vrot.slane %v4421_v24, 1  ;;  %v11816_v28 = vrot.slane %v17049_v46, 7  ;;  %v17058_v2 = vshrl.u32 %v11466_v7, 16  ;;  %v17060_v24 = vld [vmem:[#allocation42_spill] sm:$0xff] }
 0x489   :  { %3783 = vst [vmem:[#allocation2 + $0x3c] sm:$0xf] %v3782_v9  ;;  %v11829_v9 = vrot.slane %v17056_v45, 7  ;;  %v17061_v55 = vshrl.u32 %v17060_v24, 16  ;;  %v11841_v25 = vrot.slane %v17064_v18, 7  ;;  %v17072_v24 = vshrl.u32 %v11491_v49, 16 }
 0x48a   :  { %17050 = vst [vmem:[#allocation84_spill] sm:$0xff] %v11816_v28  ;;  %v11833_v30 = vrot.slane %v17058_v2, 7  ;;  %v11844_v44 = vsel %vm396_vm0, %v4419_v20, %v4423_v60  ;;  %v11852_v2 = vrot.slane %v17070_v51, 7  ;;  %v17074_v18 = vshrl.u32 %v11496_v42, 16 }
 0x48b   :  { %17052 = vst [vmem:[#allocation101_spill] sm:$0xff] %v11820_v6  ;;  %v11837_v46 = vrot.slane %v17061_v55, 7  ;;  %v11856_v55 = vrot.slane %v17072_v24, 7  ;;  %4737 = vrot.lane.b32.xlu1 %v11844_v44, %s7859_s17  ;;  %v17076_v20 = vshrl.u32 %v11501_v13, 16  ;;  %v17080_v51 = vshrl.u32 %v11511_v22, 16 }
 0x48c   :  { %17054 = vst [vmem:[#allocation120_spill] sm:$0xff] %v11824_v32  ;;  %v17082_v24 = vshrl.u32 %v11516_v31, 16  ;;  %v17086_v13 = vshrl.u32 %v11526_v27, 16  ;;  %v17090_v22 = vshrl.u32 %v11536_v50, 16  ;;  %v17100_v50 = vshrl.u32 %v17013_v53, 16 }
 0x48d   :  { %3784 = vst.msk [vmem:[#allocation2 + $0x40] sm:$0xf] %vm2808_vm3, %v3193_v61  ;;  %v17067_v61 = vld [vmem:[#allocation47_spill] sm:$0xff]  ;;  %v11866_v60 = vrot.slane %v17076_v20, 7  ;;  %v11874_v49 = vrot.slane %v17080_v51, 7  ;;  %v17110_v53 = vshrl.u32 %v11586_v41, 16 }
 0x48e   :  { %17057 = vst [vmem:[#allocation138_spill] sm:$0xff] %v11829_v9  ;;  %v17068_v34 = vshrl.u32 %v17067_v61, 16  ;;  %v11878_v3 = vrot.slane %v17082_v24, 7  ;;  %v11886_v20 = vrot.slane %v17086_v13, 7  ;;  %v11894_v51 = vrot.slane %v17090_v22, 7  ;;  %v17120_v41 = vld [vmem:[#allocation130_spill] sm:$0xff] }
 0x48f   :  { %17059 = vst [vmem:[#allocation83_spill] sm:$0xff] %v11833_v30  ;;  %v11898_v24 = vrot.slane %v17092_v8, 7  ;;  %v11906_v13 = vrot.slane %v17096_v4, 7  ;;  %v11914_v22 = vrot.slane %v17100_v50, 7  ;;  %v11918_v8 = vrot.slane %v17102_v38, 7 }
 0x490   :  { %17062 = vst [vmem:[#allocation26_spill] sm:$0xff] %v11837_v46  ;;  %v11848_v45 = vrot.slane %v17068_v34, 7  ;;  %v17078_v34 = vshrl.u32 %v11506_v12, 16  ;;  %v11926_v4 = vrot.slane %v17106_v36, 7  ;;  %v11934_v50 = vrot.slane %v17110_v53, 7 }
 0x491   :  { %17065 = vst [vmem:[#allocation112_spill] sm:$0xff] %v11841_v25  ;;  %v11938_v38 = vrot.slane %v17112_v43, 7  ;;  %v17116_v36 = vshrl.u32 %v11603_v62, 16  ;;  %v17121_v53 = vshrl.u32 %v17120_v41, 16  ;;  %v17123_v43 = vshrl.u32 %v11618_v1, 16  ;;  %v17137_v1 = vld [vmem:[#allocation48_spill] sm:$0xff] }
 0x492   :  { %3787 = vst [vmem:[#allocation2 + $0x44] sm:$0x1] %v3786_v21  ;;  %v11862_v21 = vrot.slane %v17074_v18, 7  ;;  %v11870_v61 = vrot.slane %v17078_v34, 7  ;;  %v11890_v34 = vrot.slane %v17088_v37, 7  ;;  %v11910_v37 = vrot.slane %v17098_v58, 7 }
 0x493   :  { %17066 = vst [vmem:[#allocation137_spill] sm:$0xff] %v11844_v44  ;;  %v17084_v44 = vshrl.u32 %v11521_v47, 16  ;;  %v17094_v47 = vshrl.u32 %v17010_v16, 16  ;;  %v17104_v16 = vshrl.u32 %v17015_v63, 16  ;;  %v11930_v58 = vrot.slane %v17108_v26, 7 }
 0x494   :  { %17069 = vst [vmem:[#allocation66_spill] sm:$0xff] %v11848_v45  ;;  %v11946_v29 = vrot.slane %v17116_v36, 7  ;;  %v17118_v26 = vshrl.u32 %v11608_v11, 16 }
 0x495   :  { %17071 = vst [vmem:[#allocation33_spill] sm:$0xff] %v11852_v2  ;;  %v11882_v18 = vrot.slane %v17084_v44, 7  ;;  %v11902_v44 = vrot.slane %v17094_v47, 7  ;;  %v11922_v47 = vrot.slane %v17104_v16, 7  ;;  %v17114_v16 = vshrl.u32 %v11598_v56, 16 }
 0x496   :  { %17073 = vst [vmem:[#allocation59_spill] sm:$0xff] %v11856_v55  ;;  %v11950_v17 = vrot.slane %v17118_v26, 7  ;;  %v17130_v26 = vld [vmem:[#allocation132_spill] sm:$0xff] }
 0x497   :  { %17075 = vst [vmem:[#allocation13_spill] sm:$0xff] %v11862_v21  ;;  %v11942_v63 = vrot.slane %v17114_v16, 7  ;;  %v17125_v16 = vshrl.u32 %v11624_v54, 16 }
 0x498   :  { %17077 = vst [vmem:[#allocation60_spill] sm:$0xff] %v11866_v60 }
 0x499   :  { %17079 = vst [vmem:[#allocation87_spill] sm:$0xff] %v11870_v61  ;;  %v3994_v10 = vld [vmem:[#allocation2 + $0x44] sm:$0x1]  ;;  %v11962_v56 = vrot.slane %v17125_v16, 7 }
 0x49a   :  { %17081 = vst [vmem:[#allocation104_spill] sm:$0xff] %v11874_v49  ;;  %v4282_v62 = vunpack.c.l.b16 %v3994_v10 }
 0x49b   :  { %17083 = vst [vmem:[#allocation35_spill] sm:$0xff] %v11878_v3 }
 0x49c   :  { %17085 = vst [vmem:[#allocation23_spill] sm:$0xff] %v11882_v18  ;;  %v11981_v16 = vpack.c.b16 %v4282_v62, %v4282_v62 }
 0x49d   :  { %17087 = vst [vmem:[#allocation43_spill] sm:$0xff] %v11886_v20 }
 0x49e   :  { %17089 = vst [vmem:[#allocation27_spill] sm:$0xff] %v11890_v34 }
 0x49f   :  { %17091 = vst [vmem:[#allocation88_spill] sm:$0xff] %v11894_v51 }
 0x4a0   :  { %17093 = vst [vmem:[#allocation68_spill] sm:$0xff] %v11898_v24 }
 0x4a1   :  { %17095 = vst [vmem:[#allocation99_spill] sm:$0xff] %v11902_v44 }
 0x4a2   :  { %17097 = vst [vmem:[#allocation53_spill] sm:$0xff] %v11906_v13 }
 0x4a3   :  { %17099 = vst [vmem:[#allocation79_spill] sm:$0xff] %v11910_v37 }
 0x4a4   :  { %17101 = vst [vmem:[#allocation30_spill] sm:$0xff] %v11914_v22 }
 0x4a5   :  { %17103 = vst [vmem:[#allocation73_spill] sm:$0xff] %v11918_v8  ;;  %v7678_v8 = vld [vmem:[#allocation2 + $0x3c] sm:$0xff] }
 0x4a6   :  { %17105 = vst [vmem:[#allocation89_spill] sm:$0xff] %v11922_v47  ;;  %v4404_v36 = vshll.u32 %v7678_v8, 16  ;;  %v4402_v10 = vshrl.u32 %v7678_v8, 16  ;;  %v4409_v8 = vshll.u32 %v11981_v16, 16 }
 0x4a7   :  { %17107 = vst [vmem:[#allocation32_spill] sm:$0xff] %v11926_v4 }
 0x4a8   :  { %17109 = vst [vmem:[#allocation56_spill] sm:$0xff] %v11930_v58 }
 0x4a9   :  { %17111 = vst [vmem:[#allocation22_spill] sm:$0xff] %v11934_v50  ;;  %v11954_v50 = vrot.slane %v17121_v53, 7  ;;  %v17133_v53 = vld [vmem:[#allocation81_spill] sm:$0xff] }
 0x4aa   :  { %17113 = vst [vmem:[#allocation91_spill] sm:$0xff] %v11938_v38  ;;  %v11958_v38 = vrot.slane %v17123_v43, 7  ;;  %v17136_v43 = vld [vmem:[#allocation117_spill] sm:$0xff] }
 0x4ab   :  { %17115 = vst [vmem:[#allocation9_spill] sm:$0xff] %v11942_v63 }
 0x4ac   :  { %17117 = vst [vmem:[#allocation49_spill] sm:$0xff] %v11946_v29  ;;  %v17127_v29 = vld [vmem:[#allocation108_spill] sm:$0xff] }
 0x4ad   :  { %17119 = vst [vmem:[#allocation39_spill] sm:$0xff] %v11950_v17  ;;  %v17128_v63 = vshrl.u32 %v17127_v29, 16  ;;  %v17131_v17 = vshrl.u32 %v17130_v26, 16  ;;  %v17141_v29 = vld [vmem:[#allocation135_spill] sm:$0xff] }
 0x4ae   :  { %17122 = vst [vmem:[#allocation61_spill] sm:$0xff] %v11954_v50  ;;  %v17134_v50 = vshrl.u32 %v17133_v53, 16 }
 0x4af   :  { %17124 = vst [vmem:[#allocation90_spill] sm:$0xff] %v11958_v38  ;;  %v11966_v11 = vrot.slane %v17128_v63, 7  ;;  %v11970_v41 = vrot.slane %v17131_v17, 7  ;;  %v17138_v38 = vshll.u32 %v17137_v1, 16 }
 0x4b0   :  { %17126 = vst [vmem:[#allocation38_spill] sm:$0xff] %v11962_v56  ;;  %v11974_v58 = vrot.slane %v17134_v50, 7  ;;  %v4406_v56 = vrot.slane %v4404_v36, 1  ;;  %v17145_v50 = vld [vmem:[#allocation93_spill] sm:$0xff] }
 0x4b1   :  { %17129 = vst [vmem:[#allocation119_spill] sm:$0xff] %v11966_v11  ;;  %v11979_v54 = vor.u32 %v17138_v38, %v17136_v43  ;;  %v17142_v11 = vld [vmem:[#allocation62_spill] sm:$0xff]  ;;  %v17148_v38 = vld [vmem:[#allocation105_spill] sm:$0xff] }
 0x4b2   :  { %17132 = vst [vmem:[#allocation41_spill] sm:$0xff] %v11970_v41  ;;  %v17143_v26 = vshll.u32 %v17142_v11, 16  ;;  %v4407_v62 = vor.u32 %v4406_v56, %v4402_v10  ;;  %v17149_v36 = vshll.u32 %v17148_v38, 16  ;;  %v17158_v38 = vld [vmem:[#allocation57_spill] sm:$0xff] }
 0x4b3   :  { %17135 = vst [vmem:[#allocation139_spill] sm:$0xff] %v11974_v58  ;;  %v17146_v58 = vshll.u32 %v17145_v50, 16  ;;  %v17155_v50 = vld [vmem:[#allocation74_spill] sm:$0xff] }
 0x4b4   :  { %17139 = vst [vmem:[#allocation63_spill] sm:$0xff] %v11979_v54  ;;  %v11987_v17 = vor.u32 %v17143_v26, %v17141_v29  ;;  %v12000_v63 = vor.u32 %v17149_v36, %v11763_v33  ;;  %v17151_v26 = vld [vmem:[#allocation24_spill] sm:$0xff]  ;;  %v17152_v54 = vld [vmem:[#allocation122_spill] sm:$0xff]  ;;  %v17156_v1 = vshll.u32 %v17155_v50, 16  ;;  %v17159_v36 = vshll.u32 %v17158_v38, 16 }
 0x4b5   :  { %17140 = vst [vmem:[#allocation31_spill] sm:$0xff] %v11981_v16  ;;  %v11993_v41 = vor.u32 %v17146_v58, %v11759_v0  ;;  %v17153_v53 = vshll.u32 %v17152_v54, 16  ;;  %v3236_v58 = vrot.slane %v17151_v26, 4  ;;  %v4411_v16 = vrot.slane %v4409_v8, 1  ;;  %v17161_v33 = vld [vmem:[#allocation14_spill] sm:$0xff]  ;;  %v17162_v54 = vld [vmem:[#allocation52_spill] sm:$0xff] }
 0x4b6   :  { %17144 = vst [vmem:[#allocation72_spill] sm:$0xff] %v11987_v17  ;;  %v3243_v56 = vor.u32 %v17156_v1, %v11771_v52  ;;  %v17164_v1 = vshll.u32 %v11426_v48, 16  ;;  %v3287_v8 = vrot.slane %v11798_v14, 4  ;;  %v3321_v48 = vrot.slane %v11820_v6, 4  ;;  %v17197_v52 = vld [vmem:[#allocation118_spill] sm:$0xff] }
 0x4b7   :  { %17147 = vst [vmem:[#allocation103_spill] sm:$0xff] %v11993_v41  ;;  %v12006_v29 = vor.u32 %v17153_v53, %v17151_v26  ;;  %v17157_v41 = vld [vmem:[#allocation80_spill] sm:$0xff]  ;;  %v17163_v53 = vshll.u32 %v17162_v54, 16  ;;  %v12029_v38 = vsel %vm396_vm0, %v4407_v62, %v4411_v16  ;;  %v3304_v54 = vrot.slane %v11808_v59, 4  ;;  %v17193_v59 = vld [vmem:[#allocation69_spill] sm:$0xff] }
 0x4b8   :  { %17150 = vst [vmem:[#allocation134_spill] sm:$0xff] %v12000_v63  ;;  %v12016_v0 = vor.u32 %v17159_v36, %v17157_v41  ;;  %v3253_v11 = vrot.slane %v17157_v41, 4  ;;  %v3270_v63 = vrot.slane %v11787_v23, 4  ;;  %v3277_v50 = vor.u32 %v17164_v1, %v11791_v57  ;;  %4735 = vrot.lane.b32.xlu0 %v12029_v38, %s7859_s17  ;;  %v17204_v57 = vld [vmem:[#allocation119_spill] sm:$0xff] }
 0x4b9   :  { %17154 = vst [vmem:[#allocation40_spill] sm:$0xff] %v12006_v29  ;;  %v3260_v29 = vor.u32 %v17163_v53, %v17161_v33  ;;  %v17166_v41 = vshll.u32 %v11436_v19, 16  ;;  %v17167_v53 = vshll.u32 %v11446_v15, 16  ;;  %v17168_v1 = vshll.u32 %v11456_v35, 16  ;;  %v17201_v33 = vld [vmem:[#allocation50_spill] sm:$0xff] }
 0x4ba   :  { %17160 = vst [vmem:[#allocation21_spill] sm:$0xff] %v12016_v0  ;;  %v3338_v62 = vrot.slane %v11829_v9, 4  ;;  %v17169_v19 = vshll.u32 %v11466_v7, 16  ;;  %v3355_v26 = vrot.slane %v11837_v46, 4  ;;  %v17170_v15 = vshll.u32 %v17063_v39, 16 }
 0x4bb   :  { %17165 = vst [vmem:[#allocation44_spill] sm:$0xff] %v12029_v38  ;;  %v3294_v36 = vor.u32 %v17166_v41, %v11804_v40  ;;  %v3311_v10 = vor.u32 %v17167_v53, %v11816_v28  ;;  %v3328_v16 = vor.u32 %v17168_v1, %v11824_v32  ;;  %v3372_v38 = vrot.slane %v11848_v45, 4  ;;  %v17192_v32 = vld [vmem:[#allocation9_spill] sm:$0xff] }
 0x4bc   :  { %v3345_v41 = vor.u32 %v17169_v19, %v11833_v30  ;;  %v3362_v53 = vor.u32 %v17170_v15, %v11841_v25  ;;  %v17171_v6 = vshll.u32 %v11486_v5, 16  ;;  %v3389_v35 = vrot.slane %v11856_v55, 4  ;;  %v17189_v25 = vld [vmem:[#allocation96_spill] sm:$0xff] }
 0x4bd   :  { %v17172_v1 = vshll.u32 %v11496_v42, 16  ;;  %v3406_v7 = vrot.slane %v11866_v60, 4  ;;  %v17173_v19 = vshll.u32 %v11506_v12, 16  ;;  %v3423_v39 = vrot.slane %v11874_v49, 4 }
 0x4be   :  { %v3379_v28 = vor.u32 %v17171_v6, %v11852_v2  ;;  %v17174_v15 = vshll.u32 %v11516_v31, 16  ;;  %v3440_v5 = vrot.slane %v11882_v18, 4  ;;  %v17175_v6 = vshll.u32 %v11526_v27, 16 }
 0x4bf   :  { %v3396_v9 = vor.u32 %v17172_v1, %v11862_v21  ;;  %v3413_v46 = vor.u32 %v17173_v19, %v11870_v61  ;;  %v3457_v42 = vrot.slane %v11890_v34, 4  ;;  %v17176_v1 = vld [vmem:[#allocation25_spill] sm:$0xff]  ;;  %v3474_v12 = vrot.slane %v11898_v24, 4  ;;  %v17183_v34 = vld [vmem:[#allocation11_spill] sm:$0xff]  ;;  %v17185_v24 = vld [vmem:[#allocation34_spill] sm:$0xff] }
 0x4c0   :  { %v3430_v45 = vor.u32 %v17174_v15, %v11878_v3  ;;  %v3447_v55 = vor.u32 %v17175_v6, %v11886_v20  ;;  %v17177_v60 = vshll.u32 %v17176_v1, 16  ;;  %v17178_v19 = vld [vmem:[#allocation97_spill] sm:$0xff]  ;;  %v3491_v31 = vrot.slane %v11906_v13, 4  ;;  %v17180_v15 = vld [vmem:[#allocation128_spill] sm:$0xff]  ;;  %v17188_v13 = vld [vmem:[#allocation22_spill] sm:$0xff] }
 0x4c1   :  { %v17179_v49 = vshll.u32 %v17178_v19, 16  ;;  %v17181_v18 = vshll.u32 %v17180_v15, 16  ;;  %v3508_v27 = vrot.slane %v11914_v22, 4  ;;  %v17182_v6 = vld [vmem:[#allocation73_spill] sm:$0xff]  ;;  %v17184_v20 = vshll.u32 %v17183_v34, 16 }
 0x4c2   :  { %v3464_v21 = vor.u32 %v17177_v60, %v11894_v51  ;;  %v3774_v1 = vld [vmem:[#allocation2 + $0x30] sm:$0xf]  ;;  %v3525_v60 = vrot.slane %v11922_v47, 4  ;;  %v17186_v51 = vshll.u32 %v17185_v24, 16  ;;  %v17190_v30 = vshll.u32 %v17189_v25, 16  ;;  %v17196_v47 = vld [vmem:[#allocation39_spill] sm:$0xff] }
 0x4c3   :  { %v3481_v61 = vor.u32 %v17179_v49, %v11902_v44  ;;  %v3498_v3 = vor.u32 %v17181_v18, %v11910_v37  ;;  %v3515_v2 = vor.u32 %v17184_v20, %v17182_v6  ;;  %v17187_v49 = vld [vmem:[#allocation56_spill] sm:$0xff]  ;;  %v3778_v18 = vld [vmem:[#allocation2 + $0x38] sm:$0x1]  ;;  %v17191_v37 = vld [vmem:[#allocation91_spill] sm:$0xff]  ;;  %v17194_v34 = vshll.u32 %v17193_v59, 16 }
 0x4c4   :  { %v3532_v19 = vor.u32 %v17186_v51, %v11926_v4  ;;  %v3542_v44 = vrot.slane %v17187_v49, 4  ;;  %v3549_v15 = vor.u32 %v17190_v30, %v17188_v13  ;;  %v3559_v22 = vrot.slane %v17191_v37, 4  ;;  %v17195_v6 = vld [vmem:[#allocation49_spill] sm:$0xff]  ;;  %v17200_v49 = vld [vmem:[#allocation90_spill] sm:$0xff]  ;;  %v17205_v37 = vld [vmem:[#allocation108_spill] sm:$0xff] }
 0x4c5   :  { %v3566_v20 = vor.u32 %v17194_v34, %v17192_v32  ;;  %v3576_v40 = vrot.slane %v17195_v6, 4  ;;  %v17198_v14 = vshll.u32 %v17197_v52, 16  ;;  %v17199_v51 = vld [vmem:[#allocation61_spill] sm:$0xff]  ;;  %v17202_v0 = vshll.u32 %v17201_v33, 16  ;;  %v17203_v30 = vld [vmem:[#allocation38_spill] sm:$0xff]  ;;  %v17208_v32 = vld [vmem:[#allocation139_spill] sm:$0xff] }
 0x4c6   :  { %v3593_v4 = vrot.slane %v17199_v51, 4  ;;  %v3610_v13 = vrot.slane %v17203_v30, 4  ;;  %v17206_v23 = vshll.u32 %v17205_v37, 16  ;;  %v17207_v59 = vld [vmem:[#allocation41_spill] sm:$0xff]  ;;  %v3261_v30 = vsel %vm10878_vm12, %v3253_v11, %v3260_v29 }
 0x4c7   :  { %v3583_v24 = vor.u32 %v17198_v14, %v17196_v47  ;;  %v3600_v25 = vor.u32 %v17202_v0, %v17200_v49  ;;  %v3627_v34 = vrot.slane %v17207_v59, 4  ;;  %v17209_v6 = vld [vmem:[#allocation81_spill] sm:$0xff]  ;;  %v17211_v14 = vld [vmem:[#allocation72_spill] sm:$0xff]  ;;  %v17215_v49 = vld [vmem:[#allocation63_spill] sm:$0xff]  ;;  %v12154_v29 = vsel %vm10878_vm12, %v3338_v62, %v3345_v41  ;;  %3812 = vst.msk [vmem:[#allocation2 + $0x70] sm:$0xf] %vm2808_vm3, %v3261_v30 }
 0x4c8   :  { %v3617_v43 = vor.u32 %v17206_v23, %v17204_v57  ;;  %v17210_v17 = vshll.u32 %v17209_v6, 16  ;;  %v17212_v47 = vld [vmem:[#allocation117_spill] sm:$0xff]  ;;  %v3775_v37 = vsel %vm11249_vm13, %v17215_v49, %v3774_v1  ;;  %v17217_v23 = vld [vmem:[#allocation135_spill] sm:$0xff]  ;;  %v3278_v1 = vsel %vm10878_vm12, %v3270_v63, %v3277_v50  ;;  %v17223_v62 = vld [vmem:[#allocation28_spill] sm:$0xff]  ;;  %3847 = vst.msk [vmem:[#allocation2 + $0xac] sm:$0xf] %vm2808_vm3, %v12154_v29 }
 0x4c9   :  { %v17213_v51 = vrot.slane %v17212_v47, 4  ;;  %3776 = vst [vmem:[#allocation2 + $0x30] sm:$0xf] %v3775_v37  ;;  %v17218_v57 = vrot.slane %v17217_v23, 4  ;;  %v12150_v49 = vsel %vm10878_vm12, %v3321_v48, %v3328_v16  ;;  %v12158_v63 = vsel %vm10878_vm12, %v3355_v26, %v3362_v53  ;;  %v3806_v48 = vld [vmem:[#allocation2 + $0x68] sm:$0x1] }
 0x4ca   :  { %v3634_v52 = vor.u32 %v17210_v17, %v17208_v32  ;;  %v17220_v17 = vld [vmem:[#allocation134_spill] sm:$0xff]  ;;  %v12162_v11 = vsel %vm10878_vm12, %v3372_v38, %v3379_v28  ;;  %v12170_v50 = vsel %vm10878_vm12, %v3406_v7, %v3413_v46  ;;  %v12178_v26 = vsel %vm10878_vm12, %v3440_v5, %v3447_v55  ;;  %v3813_v38 = vld [vmem:[#allocation2 + $0x74] sm:$0x1]  ;;  %v17224_v41 = vld [vmem:[#allocation107_spill] sm:$0xff]  ;;  %3819 = vst.msk [vmem:[#allocation2 + $0x7c] sm:$0xf] %vm2808_vm3, %v3278_v1 }
 0x4cb   :  { %v3176_v0 = vsel %vm10878_vm12, %v17213_v51, %v17211_v14  ;;  %v3779_v6 = vsel %vm9638_vm14, %v17218_v57, %v3778_v18  ;;  %v17221_v32 = vld [vmem:[#allocation46_spill] sm:$0xff]  ;;  %v3244_v51 = vsel %vm10878_vm12, %v3236_v58, %v3243_v56  ;;  %v12142_v57 = vsel %vm10878_vm12, %v3287_v8, %v3294_v36  ;;  %v3795_v56 = vld [vmem:[#allocation2 + $0x54] sm:$0xf]  ;;  %v3802_v36 = vld [vmem:[#allocation2 + $0x60] sm:$0xf] }
 0x4cc   :  { %v17222_v47 = vrot.slane %v17221_v32, 4  ;;  %3777 = vst.msk [vmem:[#allocation2 + $0x34] sm:$0xf] %vm2808_vm3, %v3176_v0  ;;  %v12146_v32 = vsel %vm10878_vm12, %v3304_v54, %v3311_v10  ;;  %v12166_v58 = vsel %vm10878_vm12, %v3389_v35, %v3396_v9  ;;  %v3799_v10 = vld [vmem:[#allocation2 + $0x5c] sm:$0x1]  ;;  %v12174_v8 = vsel %vm10878_vm12, %v3423_v39, %v3430_v45  ;;  %v17226_v35 = vld [vmem:[#allocation103_spill] sm:$0xff] }
 0x4cd   :  { %3780 = vst [vmem:[#allocation2 + $0x38] sm:$0x1] %v3779_v6  ;;  %v12182_v28 = vsel %vm10878_vm12, %v3457_v42, %v3464_v21  ;;  %v3809_v9 = vld [vmem:[#allocation2 + $0x6c] sm:$0xf]  ;;  %v12187_v46 = vsel %vm10878_vm12, %v3474_v12, %v3481_v61  ;;  %v12191_v45 = vsel %vm10878_vm12, %v3491_v31, %v3498_v3  ;;  %v12195_v55 = vsel %vm10878_vm12, %v3508_v27, %v3515_v2  ;;  %v3816_v16 = vld [vmem:[#allocation2 + $0x78] sm:$0xf] }
 0x4ce   :  { %v3227_v14 = vsel %vm10878_vm12, %v17222_v47, %v17220_v17  ;;  %v12199_v21 = vsel %vm10878_vm12, %v3525_v60, %v3532_v19  ;;  %v12204_v54 = vsel %vm10878_vm12, %v3542_v44, %v3549_v15  ;;  %v12208_v61 = vsel %vm10878_vm12, %v3559_v22, %v3566_v20  ;;  %3805 = vst.msk [vmem:[#allocation2 + $0x64] sm:$0xf] %vm2808_vm3, %v3244_v51  ;;  %v3820_v39 = vld [vmem:[#allocation2 + $0x80] sm:$0x1]  ;;  %v17229_v12 = vld [vmem:[#allocation100_spill] sm:$0xff]  ;;  %v17232_v60 = vld [vmem:[#allocation14_spill] sm:$0xff] }
 0x4cf   :  { %3798 = vst.msk [vmem:[#allocation2 + $0x58] sm:$0xf] %vm2808_vm3, %v3227_v14  ;;  %v12212_v3 = vsel %vm10878_vm12, %v3576_v40, %v3583_v24  ;;  %v12216_v2 = vsel %vm10878_vm12, %v3593_v4, %v3600_v25  ;;  %v17225_v44 = vshll.u32 %v17224_v41, 16  ;;  %v12224_v22 = vsel %vm10878_vm12, %v3610_v13, %v3617_v43  ;;  %v17228_v5 = vld [vmem:[#allocation71_spill] sm:$0xff]  ;;  %v17231_v13 = vld [vmem:[#allocation21_spill] sm:$0xff]  ;;  %v17235_v24 = vld [vmem:[#allocation12_spill] sm:$0xff] }
 0x4d0   :  { %v12228_v40 = vsel %vm10878_vm12, %v3627_v34, %v3634_v52  ;;  %v3796_v4 = vsel %vm11249_vm13, %v17226_v35, %v3795_v56  ;;  %v3279_v42 = vrot.slane %v17228_v5, 4  ;;  %v17230_v31 = vrot.slane %v17229_v12, 4  ;;  %v3823_v18 = vld [vmem:[#allocation2 + $0x84] sm:$0xf]  ;;  %v17237_v52 = vld [vmem:[#allocation40_spill] sm:$0xff]  ;;  %v17241_v14 = vld [vmem:[#allocation121_spill] sm:$0xff] }
 0x4d1   :  { %v3269_v53 = vor.u32 %v17225_v44, %v17223_v62  ;;  %v3810_v43 = vsel %vm11249_vm13, %v17231_v13, %v3809_v9  ;;  %v17233_v19 = vrot.slane %v17232_v60, 4  ;;  %3797 = vst [vmem:[#allocation2 + $0x54] sm:$0xf] %v3796_v4  ;;  %v17234_v20 = vld [vmem:[#allocation19_spill] sm:$0xff]  ;;  %v17236_v25 = vshll.u32 %v17235_v24, 16  ;;  %v17238_v0 = vld [vmem:[#allocation116_spill] sm:$0xff] }
 0x4d2   :  { %v3800_v27 = vsel %vm9638_vm14, %v17230_v31, %v3799_v10  ;;  %v3803_v33 = vsel %vm11249_vm13, %v17237_v52, %v3802_v36  ;;  %3811 = vst [vmem:[#allocation2 + $0x6c] sm:$0xf] %v3810_v43  ;;  %v3301_v37 = vshll.u32 %v17238_v0, 16  ;;  %v17239_v6 = vld [vmem:[#allocation131_spill] sm:$0xff]  ;;  %v3296_v51 = vrot.slane %v17241_v14, 4  ;;  %v17245_v13 = vld [vmem:[#allocation101_spill] sm:$0xff] }
 0x4d3   :  { %v3814_v15 = vsel %vm9638_vm14, %v17233_v19, %v3813_v38  ;;  %v3286_v30 = vor.u32 %v17236_v25, %v17234_v20  ;;  %v7677_v34 = vld [vmem:[#allocation2 + $0x30] sm:$0xff]  ;;  %v17240_v17 = vrot.slane %v17239_v6, 4  ;;  %v3817_v10 = vsel %vm11249_vm13, %v3269_v53, %v3816_v16  ;;  %3801 = vst [vmem:[#allocation2 + $0x5c] sm:$0x1] %v3800_v27  ;;  %v3827_v9 = vld [vmem:[#allocation2 + $0x8c] sm:$0x1] }
 0x4d4   :  { %v3991_v23 = vld [vmem:[#allocation2 + $0x38] sm:$0x1]  ;;  %3815 = vst [vmem:[#allocation2 + $0x74] sm:$0x1] %v3814_v15  ;;  %v4392_v56 = vshll.u32 %v7677_v34, 16  ;;  %v17242_v38 = vld [vmem:[#allocation67_spill] sm:$0xff]  ;;  %v3821_v62 = vsel %vm9638_vm14, %v3279_v42, %v3820_v39  ;;  %v3828_v39 = vsel %vm9638_vm14, %v3296_v51, %v3827_v9 }
 0x4d5   :  { %v3807_v47 = vsel %vm9638_vm14, %v17240_v17, %v3806_v48  ;;  %v4281_v1 = vunpack.c.l.b16 %v3991_v23  ;;  %v3303_v36 = vor.u32 %v3301_v37, %v17242_v38  ;;  %3804 = vst [vmem:[#allocation2 + $0x60] sm:$0xf] %v3803_v33  ;;  %v3830_v41 = vld [vmem:[#allocation2 + $0x90] sm:$0xf]  ;;  %v4390_v48 = vshrl.u32 %v7677_v34, 16  ;;  %v17243_v5 = vld [vmem:[#allocation127_spill] sm:$0xff] }
 0x4d6   :  { %v4394_v35 = vrot.slane %v4392_v56, 1  ;;  %v3824_v4 = vsel %vm11249_vm13, %v3286_v30, %v3823_v18  ;;  %3808 = vst [vmem:[#allocation2 + $0x68] sm:$0x1] %v3807_v47  ;;  %v3318_v12 = vshll.u32 %v17243_v5, 16  ;;  %v17244_v16 = vld [vmem:[#allocation84_spill] sm:$0xff]  ;;  %v17246_v15 = vld [vmem:[#allocation111_spill] sm:$0xff] }
 0x4d7   :  { %v12263_v44 = vpack.c.b16 %v4281_v1, %v4281_v1  ;;  %3818 = vst [vmem:[#allocation2 + $0x78] sm:$0xf] %v3817_v10  ;;  %v3313_v53 = vrot.slane %v17244_v16, 4  ;;  %v3834_v42 = vld [vmem:[#allocation2 + $0x98] sm:$0x1]  ;;  %v3831_v60 = vsel %vm11249_vm13, %v3303_v36, %v3830_v41  ;;  %v3335_v18 = vshll.u32 %v17246_v15, 16 }
 0x4d8   :  { %v4395_v31 = vor.u32 %v4394_v35, %v4390_v48  ;;  %3822 = vst [vmem:[#allocation2 + $0x80] sm:$0x1] %v3821_v62  ;;  %v3320_v43 = vor.u32 %v3318_v12, %v17245_v13  ;;  %v3837_v19 = vld [vmem:[#allocation2 + $0x9c] sm:$0xf]  ;;  %v17247_v24 = vld [vmem:[#allocation120_spill] sm:$0xff]  ;;  %v17251_v14 = vld [vmem:[#allocation83_spill] sm:$0xff] }
 0x4d9   :  { %v4397_v27 = vshll.u32 %v12263_v44, 16  ;;  %3825 = vst [vmem:[#allocation2 + $0x84] sm:$0xf] %v3824_v4  ;;  %v3330_v25 = vrot.slane %v17247_v24, 4  ;;  %v7682_v30 = vld [vmem:[#allocation2 + $0x6c] sm:$0xff]  ;;  %v17248_v52 = vld [vmem:[#allocation138_spill] sm:$0xff]  ;;  %v3835_v37 = vsel %vm9638_vm14, %v3313_v53, %v3834_v42 }
 0x4da   :  { %3826 = vst.msk [vmem:[#allocation2 + $0x88] sm:$0xf] %vm2808_vm3, %v12142_v57  ;;  %v3841_v34 = vld [vmem:[#allocation2 + $0xa4] sm:$0x1]  ;;  %v3337_v33 = vor.u32 %v3335_v18, %v17248_v52  ;;  %v3844_v6 = vld [vmem:[#allocation2 + $0xa8] sm:$0xf]  ;;  %v3838_v57 = vsel %vm11249_vm13, %v3320_v43, %v3837_v19 }
 0x4db   :  { %v4399_v20 = vrot.slane %v4397_v27, 1  ;;  %3829 = vst [vmem:[#allocation2 + $0x8c] sm:$0x1] %v3828_v39  ;;  %v4006_v23 = vld [vmem:[#allocation2 + $0x74] sm:$0x1]  ;;  %v17250_v17 = vld [vmem:[#allocation42_spill] sm:$0xff]  ;;  %v3842_v9 = vsel %vm9638_vm14, %v3330_v25, %v3841_v34 }
 0x4dc   :  { %3832 = vst [vmem:[#allocation2 + $0x90] sm:$0xf] %v3831_v60  ;;  %v3352_v47 = vshll.u32 %v17250_v17, 16  ;;  %v3347_v51 = vrot.slane %v17251_v14, 4  ;;  %v3848_v1 = vld [vmem:[#allocation2 + $0xb0] sm:$0x1]  ;;  %v4286_v38 = vunpack.c.l.b16 %v4006_v23  ;;  %v3845_v35 = vsel %vm11249_vm13, %v3337_v33, %v3844_v6 }
 0x4dd   :  { %v12281_v0 = vsel %vm396_vm0, %v4395_v31, %v4399_v20  ;;  %3833 = vst.msk [vmem:[#allocation2 + $0x94] sm:$0xf] %vm2808_vm3, %v12146_v32  ;;  %v17252_v56 = vld [vmem:[#allocation26_spill] sm:$0xff]  ;;  %v4452_v36 = vshll.u32 %v7682_v30, 16  ;;  %v3851_v62 = vld [vmem:[#allocation2 + $0xb4] sm:$0xf] }
 0x4de   :  { %17249 = vst [vmem:[#allocation94_spill] sm:$0xff] %v12281_v0  ;;  %4733 = vrot.lane.b32.xlu2 %v12281_v0, %s7859_s17  ;;  %v3354_v10 = vor.u32 %v3352_v47, %v17252_v56  ;;  %v17253_v41 = vld [vmem:[#allocation47_spill] sm:$0xff]  ;;  %v17254_v4 = vld [vmem:[#allocation112_spill] sm:$0xff]  ;;  %v12300_v12 = vpack.c.b16 %v4286_v38, %v4286_v38  ;;  %v4450_v32 = vshrl.u32 %v7682_v30, 16  ;;  %v3855_v53 = vld [vmem:[#allocation2 + $0xbc] sm:$0x1]  ;;  %v3849_v39 = vsel %vm9638_vm14, %v3347_v51, %v3848_v1 }
 0x4df   :  { %3836 = vst [vmem:[#allocation2 + $0x98] sm:$0x1] %v3835_v37  ;;  %v3369_v48 = vshll.u32 %v17253_v41, 16  ;;  %v3364_v5 = vrot.slane %v17254_v4, 4  ;;  %v4454_v16 = vrot.slane %v4452_v36, 1  ;;  %v17255_v31 = vld [vmem:[#allocation66_spill] sm:$0xff] }
 0x4e0   :  { %3839 = vst [vmem:[#allocation2 + $0x9c] sm:$0xf] %v3838_v57  ;;  %v3858_v42 = vld [vmem:[#allocation2 + $0xc0] sm:$0xf]  ;;  %v17256_v13 = vld [vmem:[#allocation129_spill] sm:$0xff]  ;;  %v3852_v60 = vsel %vm11249_vm13, %v3354_v10, %v3851_v62  ;;  %v4457_v15 = vshll.u32 %v12300_v12, 16 }
 0x4e1   :  { %3840 = vst.msk [vmem:[#allocation2 + $0xa0] sm:$0xf] %vm2808_vm3, %v12150_v49  ;;  %v3371_v27 = vor.u32 %v3369_v48, %v17255_v31  ;;  %v3386_v43 = vshll.u32 %v17256_v13, 16  ;;  %v4455_v19 = vor.u32 %v4454_v16, %v4450_v32  ;;  %v17257_v18 = vld [vmem:[#allocation33_spill] sm:$0xff]  ;;  %v3862_v49 = vld [vmem:[#allocation2 + $0xc8] sm:$0x1]  ;;  %v3856_v30 = vsel %vm9638_vm14, %v3364_v5, %v3855_v53 }
 0x4e2   :  { %3843 = vst [vmem:[#allocation2 + $0xa4] sm:$0x1] %v3842_v9  ;;  %v3381_v20 = vrot.slane %v17257_v18, 4  ;;  %v17258_v24 = vld [vmem:[#allocation59_spill] sm:$0xff]  ;;  %v4459_v34 = vrot.slane %v4457_v15, 1  ;;  %v17259_v33 = vld [vmem:[#allocation141_spill] sm:$0xff] }
 0x4e3   :  { %3846 = vst [vmem:[#allocation2 + $0xa8] sm:$0xf] %v3845_v35  ;;  %v3388_v25 = vor.u32 %v3386_v43, %v17258_v24  ;;  %v3865_v52 = vld [vmem:[#allocation2 + $0xe4] sm:$0xf]  ;;  %v3403_v37 = vshll.u32 %v17259_v33, 16  ;;  %v3859_v23 = vsel %vm11249_vm13, %v3371_v27, %v3858_v42  ;;  %v17260_v6 = vld [vmem:[#allocation13_spill] sm:$0xff] }
 0x4e4   :  { %3850 = vst [vmem:[#allocation2 + $0xb0] sm:$0x1] %v3849_v39  ;;  %v3398_v17 = vrot.slane %v17260_v6, 4  ;;  %v12322_v47 = vsel %vm396_vm0, %v4455_v19, %v4459_v34  ;;  %v3869_v29 = vld [vmem:[#allocation2 + $0xec] sm:$0x1]  ;;  %v3863_v51 = vsel %vm9638_vm14, %v3381_v20, %v3862_v49  ;;  %v17263_v56 = vld [vmem:[#allocation78_spill] sm:$0xff] }
 0x4e5   :  { %3853 = vst [vmem:[#allocation2 + $0xb4] sm:$0xf] %v3852_v60  ;;  %v17262_v57 = vld [vmem:[#allocation60_spill] sm:$0xff]  ;;  %4743 = vrot.lane.b32.xlu1 %v12322_v47, %s7859_s17  ;;  %v3872_v1 = vld [vmem:[#allocation2 + $0xf0] sm:$0xf]  ;;  %v3420_v10 = vshll.u32 %v17263_v56, 16  ;;  %v3866_v9 = vsel %vm11249_vm13, %v3388_v25, %v3865_v52 }
 0x4e6   :  { %17261 = vst [vmem:[#allocation15_spill] sm:$0xff] %v12322_v47  ;;  %v3405_v14 = vor.u32 %v3403_v37, %v17262_v57  ;;  %v17264_v38 = vld [vmem:[#allocation87_spill] sm:$0xff]  ;;  %v3879_v62 = vld [vmem:[#allocation2 + $0xfc] sm:$0xf]  ;;  %v17265_v41 = vld [vmem:[#allocation104_spill] sm:$0xff]  ;;  %v3870_v35 = vsel %vm9638_vm14, %v3398_v17, %v3869_v29 }
 0x4e7   :  { %3854 = vst.msk [vmem:[#allocation2 + $0xb8] sm:$0xf] %vm2808_vm3, %v12158_v63  ;;  %v3415_v36 = vrot.slane %v17264_v38, 4  ;;  %v3876_v63 = vld [vmem:[#allocation2 + $0xf8] sm:$0x1]  ;;  %v3422_v48 = vor.u32 %v3420_v10, %v17265_v41  ;;  %v17266_v5 = vld [vmem:[#allocation95_spill] sm:$0xff] }
 0x4e8   :  { %3857 = vst [vmem:[#allocation2 + $0xbc] sm:$0x1] %v3856_v30  ;;  %v3883_v4 = vld [vmem:[#allocation2 + $0x104] sm:$0x1]  ;;  %v3437_v32 = vshll.u32 %v17266_v5, 16  ;;  %v3873_v16 = vsel %vm11249_vm13, %v3405_v14, %v3872_v1  ;;  %v17268_v27 = vld [vmem:[#allocation36_spill] sm:$0xff] }
 0x4e9   :  { %3860 = vst [vmem:[#allocation2 + $0xc0] sm:$0xf] %v3859_v23  ;;  %v17267_v53 = vld [vmem:[#allocation115_spill] sm:$0xff]  ;;  %v3471_v39 = vshll.u32 %v17268_v27, 16  ;;  %v3886_v60 = vld [vmem:[#allocation2 + $0x108] sm:$0xf]  ;;  %v3877_v25 = vsel %vm9638_vm14, %v3415_v36, %v3876_v63 }
 0x4ea   :  { %3861 = vst.msk [vmem:[#allocation2 + $0xc4] sm:$0xf] %vm2808_vm3, %v12162_v11  ;;  %v3454_v31 = vshll.u32 %v17267_v53, 16  ;;  %v17269_v11 = vld [vmem:[#allocation17_spill] sm:$0xff]  ;;  %v17270_v13 = vld [vmem:[#allocation35_spill] sm:$0xff]  ;;  %v17272_v18 = vld [vmem:[#allocation106_spill] sm:$0xff] }
 0x4eb   :  { %3864 = vst [vmem:[#allocation2 + $0xc8] sm:$0x1] %v3863_v51  ;;  %v3488_v42 = vshll.u32 %v17269_v11, 16  ;;  %v3432_v43 = vrot.slane %v17270_v13, 4  ;;  %v17271_v19 = vld [vmem:[#allocation77_spill] sm:$0xff]  ;;  %v3522_v20 = vshll.u32 %v17272_v18, 16 }
 0x4ec   :  { %3867 = vst [vmem:[#allocation2 + $0xe4] sm:$0xf] %v3866_v9  ;;  %v3505_v15 = vshll.u32 %v17271_v19, 16  ;;  %v17273_v49 = vld [vmem:[#allocation23_spill] sm:$0xff]  ;;  %v3890_v30 = vld [vmem:[#allocation2 + $0x110] sm:$0x1] }
 0x4ed   :  { %3868 = vst.msk [vmem:[#allocation2 + $0xe8] sm:$0xf] %vm2808_vm3, %v12166_v58  ;;  %v3439_v24 = vor.u32 %v3437_v32, %v17273_v49  ;;  %v17274_v34 = vld [vmem:[#allocation65_spill] sm:$0xff]  ;;  %v17275_v33 = vld [vmem:[#allocation123_spill] sm:$0xff]  ;;  %v17276_v23 = vld [vmem:[#allocation16_spill] sm:$0xff]  ;;  %v3880_v58 = vsel %vm11249_vm13, %v3422_v48, %v3879_v62  ;;  %v3884_v62 = vsel %vm9638_vm14, %v3432_v43, %v3883_v4 }
 0x4ee   :  { %3871 = vst [vmem:[#allocation2 + $0xec] sm:$0x1] %v3870_v35  ;;  %v3539_v52 = vshll.u32 %v17274_v34, 16  ;;  %v3556_v37 = vshll.u32 %v17275_v33, 16  ;;  %v3573_v6 = vshll.u32 %v17276_v23, 16  ;;  %v17277_v17 = vld [vmem:[#allocation130_spill] sm:$0xff] }
 0x4ef   :  { %3874 = vst [vmem:[#allocation2 + $0xf0] sm:$0xf] %v3873_v16  ;;  %v3590_v29 = vshll.u32 %v17277_v17, 16  ;;  %v17278_v57 = vld [vmem:[#allocation86_spill] sm:$0xff]  ;;  %v17279_v51 = vld [vmem:[#allocation132_spill] sm:$0xff]  ;;  %v17280_v56 = vld [vmem:[#allocation43_spill] sm:$0xff] }
 0x4f0   :  { %v3607_v14 = vshll.u32 %v17278_v57, 16  ;;  %v3449_v10 = vrot.slane %v17280_v56, 4  ;;  %3875 = vst.msk [vmem:[#allocation2 + $0xf4] sm:$0xf] %vm2808_vm3, %v12170_v50  ;;  %v3893_v9 = vld [vmem:[#allocation2 + $0x114] sm:$0xf] }
 0x4f1   :  { %v17281_v38 = vld [vmem:[#allocation27_spill] sm:$0xff]  ;;  %v17282_v63 = vld [vmem:[#allocation88_spill] sm:$0xff]  ;;  %3878 = vst [vmem:[#allocation2 + $0xf8] sm:$0x1] %v3877_v25  ;;  %v3897_v48 = vld [vmem:[#allocation2 + $0x11c] sm:$0x1] }
 0x4f2   :  { %v3456_v36 = vor.u32 %v3454_v31, %v17281_v38  ;;  %v3466_v41 = vrot.slane %v17282_v63, 4  ;;  %v17283_v35 = vld [vmem:[#allocation68_spill] sm:$0xff]  ;;  %v12372_v32 = vld [vmem:[#allocation2 + $0x120] sm:$0xf]  ;;  %v17285_v11 = vld [vmem:[#allocation53_spill] sm:$0xff] }
 0x4f3   :  { %v12368_v5 = vor.u32 %v3471_v39, %v17283_v35  ;;  %v3904_v16 = vld [vmem:[#allocation2 + $0x128] sm:$0x1]  ;;  %v12374_v53 = vld [vmem:[#allocation2 + $0x12c] sm:$0xf]  ;;  %v17284_v27 = vld [vmem:[#allocation99_spill] sm:$0xff]  ;;  %v12378_v13 = vor.u32 %v3488_v42, %v17285_v11  ;;  %v3887_v39 = vsel %vm11249_vm13, %v3439_v24, %v3886_v60 }
 0x4f4   :  { %v3483_v50 = vrot.slane %v17284_v27, 4  ;;  %v17286_v31 = vld [vmem:[#allocation79_spill] sm:$0xff]  ;;  %3881 = vst [vmem:[#allocation2 + $0xfc] sm:$0xf] %v3880_v58  ;;  %v3911_v18 = vld [vmem:[#allocation2 + $0x134] sm:$0x1] }
 0x4f5   :  { %v3500_v19 = vrot.slane %v17286_v31, 4  ;;  %v12383_v4 = vld [vmem:[#allocation2 + $0x138] sm:$0xf]  ;;  %v3918_v43 = vld [vmem:[#allocation2 + $0x140] sm:$0x1]  ;;  %v17288_v33 = vld [vmem:[#allocation73_spill] sm:$0xff] }
 0x4f6   :  { %v12385_v49 = vld [vmem:[#allocation2 + $0x144] sm:$0xf]  ;;  %v17287_v25 = vld [vmem:[#allocation30_spill] sm:$0xff]  ;;  %v3517_v23 = vrot.slane %v17288_v33, 4  ;;  %v17289_v17 = vld [vmem:[#allocation89_spill] sm:$0xff] }
 0x4f7   :  { %v12388_v34 = vor.u32 %v3505_v15, %v17287_v25  ;;  %v12392_v42 = vor.u32 %v3522_v20, %v17289_v17  ;;  %v17290_v57 = vld [vmem:[#allocation32_spill] sm:$0xff]  ;;  %3882 = vst.msk [vmem:[#allocation2 + $0x100] sm:$0xf] %vm2808_vm3, %v12174_v8  ;;  %v17292_v38 = vld [vmem:[#allocation22_spill] sm:$0xff]  ;;  %v17293_v35 = vld [vmem:[#allocation91_spill] sm:$0xff]  ;;  %v3891_v15 = vsel %vm9638_vm14, %v3449_v10, %v3890_v30 }
 0x4f8   :  { %v3534_v56 = vrot.slane %v17290_v57, 4  ;;  %v3925_v60 = vld [vmem:[#allocation2 + $0x14c] sm:$0x1]  ;;  %v3551_v63 = vrot.slane %v17292_v38, 4  ;;  %v12402_v27 = vor.u32 %v3556_v37, %v17293_v35  ;;  %3885 = vst [vmem:[#allocation2 + $0x104] sm:$0x1] %v3884_v62 }
 0x4f9   :  { %v17291_v24 = vld [vmem:[#allocation56_spill] sm:$0xff]  ;;  %v12406_v20 = vld [vmem:[#allocation2 + $0x150] sm:$0xf]  ;;  %v17296_v8 = vld [vmem:[#allocation39_spill] sm:$0xff]  ;;  %3888 = vst [vmem:[#allocation2 + $0x108] sm:$0xf] %v3887_v39 }
 0x4fa   :  { %v12398_v58 = vor.u32 %v3539_v52, %v17291_v24  ;;  %v17294_v11 = vld [vmem:[#allocation9_spill] sm:$0xff]  ;;  %v3894_v52 = vsel %vm11249_vm13, %v3456_v36, %v3893_v9  ;;  %v3932_v57 = vld [vmem:[#allocation2 + $0x158] sm:$0x1]  ;;  %v17300_v35 = vld [vmem:[#allocation119_spill] sm:$0xff]  ;;  %3889 = vst.msk [vmem:[#allocation2 + $0x10c] sm:$0xf] %vm2808_vm3, %v12178_v26  ;;  %v3898_v9 = vsel %vm9638_vm14, %v3466_v41, %v3897_v48  ;;  %v3908_v36 = vsel %vm11249_vm13, %v12378_v13, %v12374_v53 }
 0x4fb   :  { %v3568_v31 = vrot.slane %v17294_v11, 4  ;;  %v17295_v25 = vld [vmem:[#allocation49_spill] sm:$0xff]  ;;  %v17298_v38 = vld [vmem:[#allocation90_spill] sm:$0xff]  ;;  %3892 = vst [vmem:[#allocation2 + $0x110] sm:$0x1] %v3891_v15  ;;  %v3912_v26 = vsel %vm9638_vm14, %v3500_v19, %v3911_v18  ;;  %v3915_v41 = vsel %vm11249_vm13, %v12388_v34, %v12383_v4  ;;  %v3922_v48 = vsel %vm11249_vm13, %v12392_v42, %v12385_v49 }
 0x4fc   :  { %v12410_v33 = vor.u32 %v3573_v6, %v17295_v25  ;;  %v17297_v37 = vld [vmem:[#allocation61_spill] sm:$0xff]  ;;  %v17299_v10 = vld [vmem:[#allocation38_spill] sm:$0xff]  ;;  %v3939_v25 = vld [vmem:[#allocation2 + $0x164] sm:$0x1]  ;;  %3895 = vst [vmem:[#allocation2 + $0x114] sm:$0xf] %v3894_v52  ;;  %v3929_v13 = vsel %vm11249_vm13, %v12398_v58, %v12406_v20  ;;  %v12467_v19 = vsel %vm9638_vm14, %v3551_v63, %v3932_v57 }
 0x4fd   :  { %v12416_v24 = vor.u32 %v3590_v29, %v17297_v37  ;;  %v12420_v62 = vor.u32 %v3607_v14, %v17299_v10  ;;  %v12425_v6 = vld [vmem:[#allocation2 + $0x15c] sm:$0xf]  ;;  %v3901_v29 = vsel %vm11249_vm13, %v12368_v5, %v12372_v32  ;;  %v3905_v14 = vsel %vm9638_vm14, %v3483_v50, %v3904_v16  ;;  %v12453_v32 = vld [vmem:[#allocation2 + $0x60] sm:$0xff]  ;;  %v4003_v16 = vld [vmem:[#allocation2 + $0x68] sm:$0x1] }
 0x4fe   :  { %v12447_v5 = vsel %vm9638_vm14, %v3517_v23, %v3918_v43  ;;  %v12455_v53 = vld [vmem:[#allocation2 + $0x54] sm:$0xff]  ;;  %v12459_v50 = vsel %vm9638_vm14, %v3534_v56, %v3925_v60  ;;  %3896 = vst.msk [vmem:[#allocation2 + $0x118] sm:$0xf] %vm2808_vm3, %v12182_v28  ;;  %v4285_v39 = vunpack.c.l.b16 %v4003_v16  ;;  %v4000_v18 = vld [vmem:[#allocation2 + $0x5c] sm:$0x1]  ;;  %v4438_v34 = vshrl.u32 %v12453_v32, 16 }
 0x4ff   :  { %v12471_v4 = vld [vmem:[#allocation2 + $0x90] sm:$0xff]  ;;  %3899 = vst [vmem:[#allocation2 + $0x11c] sm:$0x1] %v3898_v9  ;;  %v4440_v23 = vshll.u32 %v12453_v32, 16  ;;  %v4284_v56 = vunpack.c.l.b16 %v4000_v18  ;;  %v12479_v60 = vld [vmem:[#allocation2 + $0x84] sm:$0xff]  ;;  %v12483_v28 = vsel %vm9638_vm14, %v3568_v31, %v3939_v25  ;;  %v4426_v15 = vshrl.u32 %v12455_v53, 16 }
 0x500   :  { %3902 = vst [vmem:[#allocation2 + $0x120] sm:$0xf] %v3901_v29  ;;  %v12485_v63 = vpack.c.b16 %v4285_v39, %v4285_v39  ;;  %v4428_v52 = vshll.u32 %v12455_v53, 16  ;;  %v4015_v57 = vld [vmem:[#allocation2 + $0x98] sm:$0x1]  ;;  %v4488_v16 = vshll.u32 %v12471_v4, 16 }
 0x501   :  { %3903 = vst.msk [vmem:[#allocation2 + $0x124] sm:$0xf] %vm2808_vm3, %v12187_v46  ;;  %v4442_v37 = vrot.slane %v4440_v23, 1  ;;  %v12491_v10 = vpack.c.b16 %v4284_v56, %v4284_v56  ;;  %v4289_v9 = vunpack.c.l.b16 %v4015_v57  ;;  %v4012_v18 = vld [vmem:[#allocation2 + $0x8c] sm:$0x1]  ;;  %v4486_v29 = vshrl.u32 %v12471_v4, 16 }
 0x502   :  { %3906 = vst [vmem:[#allocation2 + $0x128] sm:$0x1] %v3905_v14  ;;  %v4445_v31 = vshll.u32 %v12485_v63, 16  ;;  %v4430_v25 = vrot.slane %v4428_v52, 1  ;;  %v4288_v39 = vunpack.c.l.b16 %v4012_v18  ;;  %v12496_v11 = vld [vmem:[#allocation2 + $0x78] sm:$0xff]  ;;  %v4490_v56 = vrot.slane %v4488_v16, 1 }
 0x503   :  { %3909 = vst [vmem:[#allocation2 + $0x12c] sm:$0xf] %v3908_v36  ;;  %v4443_v30 = vor.u32 %v4442_v37, %v4438_v34  ;;  %v4433_v46 = vshll.u32 %v12491_v10, 16  ;;  %v12499_v23 = vpack.c.b16 %v4289_v9, %v4289_v9  ;;  %v4009_v57 = vld [vmem:[#allocation2 + $0x80] sm:$0x1]  ;;  %v4476_v52 = vshll.u32 %v12479_v60, 16 }
 0x504   :  { %3910 = vst.msk [vmem:[#allocation2 + $0x130] sm:$0xf] %vm2808_vm3, %v12191_v45  ;;  %v4447_v14 = vrot.slane %v4445_v31, 1  ;;  %v4431_v1 = vor.u32 %v4430_v25, %v4426_v15  ;;  %v12503_v43 = vpack.c.b16 %v4288_v39, %v4288_v39  ;;  %v12506_v18 = vld [vmem:[#allocation2 + $0xb4] sm:$0xff]  ;;  %v12508_v17 = vld [vmem:[#allocation2 + $0x168] sm:$0xf]  ;;  %v4491_v34 = vor.u32 %v4490_v56, %v4486_v29 }
 0x505   :  { %3913 = vst [vmem:[#allocation2 + $0x134] sm:$0x1] %v3912_v26  ;;  %v4435_v36 = vrot.slane %v4433_v46, 1  ;;  %v4493_v37 = vshll.u32 %v12499_v23, 16  ;;  %v4287_v9 = vunpack.c.l.b16 %v4009_v57  ;;  %v4024_v16 = vld [vmem:[#allocation2 + $0xbc] sm:$0x1] }
 0x506   :  { %3916 = vst [vmem:[#allocation2 + $0x138] sm:$0xf] %v3915_v41  ;;  %v12512_v45 = vsel %vm396_vm0, %v4443_v30, %v4447_v14  ;;  %v4474_v15 = vshrl.u32 %v12479_v60, 16  ;;  %v4478_v31 = vrot.slane %v4476_v52, 1  ;;  %v4481_v25 = vshll.u32 %v12503_v43, 16  ;;  %v12516_v39 = vld [vmem:[#allocation2 + $0xa8] sm:$0xff] }
 0x507   :  { %17301 = vst [vmem:[#allocation125_spill] sm:$0xff] %v12512_v45  ;;  %4741 = vrot.lane.b32.xlu0 %v12512_v45, %s7859_s17  ;;  %v12523_v26 = vsel %vm396_vm0, %v4431_v1, %v4435_v36  ;;  %v4495_v41 = vrot.slane %v4493_v37, 1  ;;  %v12525_v29 = vpack.c.b16 %v4287_v9, %v4287_v9  ;;  %v4464_v30 = vshll.u32 %v12496_v11, 16  ;;  %v4021_v46 = vld [vmem:[#allocation2 + $0xb0] sm:$0x1]  ;;  %v12542_v9 = vld [vmem:[#allocation2 + $0x9c] sm:$0xff] }
 0x508   :  { %3917 = vst.msk [vmem:[#allocation2 + $0x13c] sm:$0xf] %vm2808_vm3, %v12195_v55  ;;  %4739 = vrot.lane.b32.xlu2 %v12523_v26, %s7859_s17  ;;  %v4479_v56 = vor.u32 %v4478_v31, %v4474_v15  ;;  %v4483_v57 = vrot.slane %v4481_v25, 1  ;;  %v4462_v55 = vshrl.u32 %v12496_v11, 16  ;;  %v4292_v14 = vunpack.c.l.b16 %v4024_v16  ;;  %v4018_v52 = vld [vmem:[#allocation2 + $0xa4] sm:$0x1] }
 0x509   :  { %17302 = vst [vmem:[#allocation102_spill] sm:$0xff] %v12523_v26  ;;  %v12538_v1 = vsel %vm396_vm0, %v4491_v34, %v4495_v41  ;;  %v4466_v36 = vrot.slane %v4464_v30, 1  ;;  %v4524_v37 = vshll.u32 %v12506_v18, 16  ;;  %v3943_v16 = vsel %vm11249_vm13, %v12410_v33, %v12508_v17  ;;  %v4039_v34 = vld [vmem:[#allocation2 + $0xf8] sm:$0x1]  ;;  %v12557_v33 = vld [vmem:[#allocation2 + $0xf0] sm:$0xff] }
 0x50a   :  { %3920 = vst [vmem:[#allocation2 + $0x140] sm:$0x1] %v12447_v5  ;;  %v4469_v5 = vshll.u32 %v12525_v29, 16  ;;  %4749 = vrot.lane.b32.xlu1 %v12538_v1, %s7859_s17  ;;  %v12552_v49 = vpack.c.b16 %v4292_v14, %v4292_v14  ;;  %v4522_v42 = vshrl.u32 %v12506_v18, 16  ;;  %v4512_v41 = vshll.u32 %v12516_v39, 16  ;;  %v12574_v58 = vld [vmem:[#allocation2 + $0xe4] sm:$0xff] }
 0x50b   :  { %3923 = vst [vmem:[#allocation2 + $0x144] sm:$0xf] %v3922_v48  ;;  %v4291_v48 = vunpack.c.l.b16 %v4021_v46  ;;  %v4467_v15 = vor.u32 %v4466_v36, %v4462_v55  ;;  %v4526_v25 = vrot.slane %v4524_v37, 1  ;;  %v3946_v17 = vld [vmem:[#allocation2 + $0x170] sm:$0x1]  ;;  %v4290_v46 = vunpack.c.l.b16 %v4018_v52 }
 0x50c   :  { %17303 = vst [vmem:[#allocation70_spill] sm:$0xff] %v12538_v1  ;;  %v4471_v31 = vrot.slane %v4469_v5, 1  ;;  %v4529_v30 = vshll.u32 %v12552_v49, 16  ;;  %v3949_v55 = vld [vmem:[#allocation2 + $0x174] sm:$0xf]  ;;  %v4510_v36 = vshrl.u32 %v12516_v39, 16 }
 0x50d   :  { %3924 = vst.msk [vmem:[#allocation2 + $0x148] sm:$0xf] %vm2808_vm3, %v12199_v21  ;;  %v12565_v21 = vsel %vm396_vm0, %v4479_v56, %v4483_v57  ;;  %v4527_v14 = vor.u32 %v4526_v25, %v4522_v42  ;;  %v4514_v5 = vrot.slane %v4512_v41, 1  ;;  %v4500_v37 = vshll.u32 %v12542_v9, 16  ;;  %v4036_v52 = vld [vmem:[#allocation2 + $0xec] sm:$0x1] }
 0x50e   :  { %3927 = vst [vmem:[#allocation2 + $0x14c] sm:$0x1] %v12459_v50  ;;  %v12568_v50 = vpack.c.b16 %v4291_v48, %v4291_v48  ;;  %v4531_v20 = vrot.slane %v4529_v30, 1  ;;  %v12578_v56 = vpack.c.b16 %v4290_v46, %v4290_v46  ;;  %v4295_v57 = vunpack.c.l.b16 %v4039_v34  ;;  %v3953_v48 = vld [vmem:[#allocation2 + $0x17c] sm:$0x1]  ;;  %v12603_v30 = vld [vmem:[#allocation2 + $0x114] sm:$0xff] }
 0x50f   :  { %3930 = vst [vmem:[#allocation2 + $0x150] sm:$0xf] %v3929_v13  ;;  %v3956_v1 = vld [vmem:[#allocation2 + $0x180] sm:$0xf]  ;;  %v17306_v25 = vsel %vm11249_vm13, %v12402_v27, %v12425_v6  ;;  %4747 = vrot.lane.b32.xlu0 %v12565_v21, %s7859_s17  ;;  %v4502_v34 = vrot.slane %v4500_v37, 1  ;;  %v4560_v41 = vshll.u32 %v12557_v33, 16 }
 0x510   :  { %17304 = vst [vmem:[#allocation114_spill] sm:$0xff] %v12565_v21  ;;  %v4517_v13 = vshll.u32 %v12568_v50, 16  ;;  %v4505_v27 = vshll.u32 %v12578_v56, 16  ;;  %v12601_v6 = vpack.c.b16 %v4295_v57, %v4295_v57  ;;  %v4048_v37 = vld [vmem:[#allocation2 + $0x11c] sm:$0x1]  ;;  %v3950_v57 = vsel %vm11249_vm13, %v12416_v24, %v3949_v55 }
 0x511   :  { %3931 = vst.msk [vmem:[#allocation2 + $0x154] sm:$0xf] %vm2808_vm3, %v12204_v54  ;;  %v17305_v54 = vrot.slane %v17296_v8, 4  ;;  %v4515_v8 = vor.u32 %v4514_v5, %v4510_v36  ;;  %v4562_v46 = vrot.slane %v4560_v41, 1  ;;  %v17310_v36 = vshll.u32 %v17279_v51, 16 }
 0x512   :  { %3934 = vst [vmem:[#allocation2 + $0x158] sm:$0x1] %v12467_v19  ;;  %v12592_v19 = vsel %vm396_vm0, %v4467_v15, %v4471_v31  ;;  %v12607_v15 = vsel %vm396_vm0, %v4527_v14, %v4531_v20  ;;  %v4519_v31 = vrot.slane %v4517_v13, 1  ;;  %v4548_v14 = vshll.u32 %v12574_v58, 16  ;;  %v3963_v20 = vld [vmem:[#allocation2 + $0x18c] sm:$0xf] }
 0x513   :  { %v3947_v42 = vsel %vm9638_vm14, %v17305_v54, %v3946_v17  ;;  %3937 = vst [vmem:[#allocation2 + $0x15c] sm:$0xf] %v17306_v25  ;;  %4745 = vrot.lane.b32.xlu2 %v12592_v19, %s7859_s17  ;;  %v4498_v17 = vshrl.u32 %v12542_v9, 16  ;;  %v3960_v54 = vld [vmem:[#allocation2 + $0x188] sm:$0x1]  ;;  %v17309_v25 = vld [vmem:[#allocation41_spill] sm:$0xff]  ;;  %4755 = vrot.lane.b32.xlu1 %v12607_v15, %s7859_s17  ;;  %v3957_v21 = vsel %vm11249_vm13, %v12420_v62, %v3956_v1 }
 0x514   :  { %17307 = vst [vmem:[#allocation55_spill] sm:$0xff] %v12592_v19  ;;  %v3626_v5 = vor.u32 %v17310_v36, %v17309_v25  ;;  %v4558_v51 = vshrl.u32 %v12557_v33, 16  ;;  %v4045_v25 = vld [vmem:[#allocation2 + $0x110] sm:$0x1]  ;;  %v3967_v24 = vld [vmem:[#allocation2 + $0x194] sm:$0x1] }
 0x515   :  { %3938 = vst.msk [vmem:[#allocation2 + $0x160] sm:$0xf] %vm2808_vm3, %v12208_v61  ;;  %v4294_v61 = vunpack.c.l.b16 %v4036_v52  ;;  %v4503_v13 = vor.u32 %v4502_v34, %v4498_v17  ;;  %v4507_v52 = vrot.slane %v4505_v27, 1  ;;  %v17312_v36 = vrot.slane %v17298_v38, 4  ;;  %v4051_v26 = vld [vmem:[#allocation2 + $0x128] sm:$0x1] }
 0x516   :  { %3941 = vst [vmem:[#allocation2 + $0x164] sm:$0x1] %v12483_v28  ;;  %v4565_v28 = vshll.u32 %v12601_v6, 16  ;;  %v12633_v34 = vsel %vm396_vm0, %v4515_v8, %v4519_v31  ;;  %v4563_v17 = vor.u32 %v4562_v46, %v4558_v51  ;;  %v4550_v38 = vrot.slane %v4548_v14, 1  ;;  %v2880_v31 = vld [vmem:[#allocation2 + $0xd8] sm:$0x1] }
 0x517   :  { %17308 = vst [vmem:[#allocation124_spill] sm:$0xff] %v12607_v15  ;;  %v12622_v41 = vpack.c.b16 %v4294_v61, %v4294_v61  ;;  %v3954_v15 = vsel %vm9638_vm14, %v17312_v36, %v3953_v48  ;;  %v4596_v61 = vshll.u32 %v12603_v30, 16  ;;  %v4297_v62 = vunpack.c.l.b16 %v4045_v25  ;;  %4753 = vrot.lane.b32.xlu0 %v12633_v34, %s7859_s17  ;;  %v4054_v51 = vld [vmem:[#allocation2 + $0x134] sm:$0x1] }
 0x518   :  { %3944 = vst [vmem:[#allocation2 + $0x168] sm:$0xf] %v3943_v16  ;;  %v17311_v16 = vld [vmem:[#allocation139_spill] sm:$0xff]  ;;  %v4567_v27 = vrot.slane %v4565_v28, 1  ;;  %v17314_v1 = vrot.slane %v17300_v35, 4  ;;  %v12650_v8 = vsel %vm396_vm0, %v4503_v13, %v4507_v52  ;;  %v3964_v46 = vsel %vm11249_vm13, %v3626_v5, %v3963_v20 }
 0x519   :  { %3945 = vst.msk [vmem:[#allocation2 + $0x16c] sm:$0xf] %vm2808_vm3, %v12212_v3  ;;  %v3636_v55 = vrot.slane %v17311_v16, 4  ;;  %v4298_v3 = vunpack.c.l.b16 %v4048_v37  ;;  %v12636_v16 = vld [vmem:[#allocation2 + $0x108] sm:$0xff]  ;;  %v4553_v48 = vshll.u32 %v12622_v41, 16  ;;  %v4546_v35 = vshrl.u32 %v12574_v58, 16 }
 0x51a   :  { %3948 = vst [vmem:[#allocation2 + $0x170] sm:$0x1] %v3947_v42  ;;  %v3961_v42 = vsel %vm9638_vm14, %v17314_v1, %v3960_v54  ;;  %v12659_v54 = vld [vmem:[#allocation2 + $0x138] sm:$0xff]  ;;  %v4598_v7 = vrot.slane %v4596_v61, 1  ;;  %v4584_v28 = vshll.u32 %v12636_v16, 16  ;;  %v12670_v20 = vpack.c.b16 %v4297_v62, %v4297_v62  ;;  %v12686_v62 = vld [vmem:[#allocation2 + $0x12c] sm:$0xff] }
 0x51b   :  { %3951 = vst [vmem:[#allocation2 + $0x174] sm:$0xf] %v3950_v57  ;;  %v12641_v36 = vpack.c.b16 %v4298_v3, %v4298_v3  ;;  %v3968_v37 = vsel %vm9638_vm14, %v3636_v55, %v3967_v24  ;;  %4751 = vrot.lane.b32.xlu2 %v12650_v8, %s7859_s17  ;;  %v12664_v57 = vsel %vm396_vm0, %v4563_v17, %v4567_v27  ;;  %v4555_v14 = vrot.slane %v4553_v48, 1 }
 0x51c   :  { %17313 = vst [vmem:[#allocation29_spill] sm:$0xff] %v12633_v34  ;;  %4761 = vrot.lane.b32.xlu1 %v12664_v57, %s7859_s17  ;;  %v4594_v52 = vshrl.u32 %v12603_v30, 16  ;;  %v4632_v3 = vshll.u32 %v12659_v54, 16  ;;  %v4586_v61 = vrot.slane %v4584_v28, 1  ;;  %v4589_v48 = vshll.u32 %v12670_v20, 16 }
 0x51d   :  { %3952 = vst.msk [vmem:[#allocation2 + $0x178] sm:$0xf] %vm2808_vm3, %v12216_v2  ;;  %v4057_v2 = vld [vmem:[#allocation2 + $0x140] sm:$0x1]  ;;  %v4601_v5 = vshll.u32 %v12641_v36, 16  ;;  %v4630_v28 = vshrl.u32 %v12659_v54, 16 }
 0x51e   :  { %3955 = vst [vmem:[#allocation2 + $0x17c] sm:$0x1] %v3954_v15  ;;  %v2990_v15 = vld [vmem:[#allocation2 + $0xe0] sm:$0x1]  ;;  %v4301_v13 = vunpack.c.l.b16 %v4057_v2  ;;  %v4599_v17 = vor.u32 %v4598_v7, %v4594_v52  ;;  %v4066_v1 = vld [vmem:[#allocation2 + $0x164] sm:$0x1] }
 0x51f   :  { %17315 = vst [vmem:[#allocation140_spill] sm:$0xff] %v12650_v8  ;;  %v2991_v24 = vsel %vm9664_vm2, 0, %v2990_v15  ;;  %v4603_v27 = vrot.slane %v4601_v5, 1  ;;  %v4304_v15 = vunpack.c.l.b16 %v4066_v1  ;;  %v4591_v7 = vrot.slane %v4589_v48, 1  ;;  %v4042_v5 = vld [vmem:[#allocation2 + $0x104] sm:$0x1] }
 0x520   :  { %3958 = vst [vmem:[#allocation2 + $0x180] sm:$0xf] %v3957_v21  ;;  %v4551_v21 = vor.u32 %v4550_v38, %v4546_v35  ;;  %v12679_v55 = vpack.c.b16 %v4301_v13, %v4301_v13  ;;  %v12703_v13 = vld [vmem:[#allocation2 + $0xfc] sm:$0xff] }
 0x521   :  { %3959 = vst.msk [vmem:[#allocation2 + $0x184] sm:$0xf] %vm2808_vm3, %v12224_v22  ;;  %v2881_v22 = vsel %vm9638_vm14, 0, %v2880_v31  ;;  %v4634_v31 = vrot.slane %v4632_v3, 1 }
 0x522   :  { %17316 = vst [vmem:[#allocation82_spill] sm:$0xff] %v12664_v57  ;;  %v12683_v38 = vsel %vm396_vm0, %v4551_v21, %v4555_v14  ;;  %v4637_v2 = vshll.u32 %v12679_v55, 16  ;;  %v4620_v14 = vshll.u32 %v12686_v62, 16 }
 0x523   :  { %3962 = vst [vmem:[#allocation2 + $0x188] sm:$0x1] %v3961_v42  ;;  %4759 = vrot.lane.b32.xlu0 %v12683_v38, %s7859_s17  ;;  %v4582_v42 = vshrl.u32 %v12636_v16, 16  ;;  %v4635_v52 = vor.u32 %v4634_v31, %v4630_v28 }
 0x524   :  { %3965 = vst [vmem:[#allocation2 + $0x18c] sm:$0xf] %v3964_v46  ;;  %v12692_v46 = vld [vmem:[#allocation2 + $0x15c] sm:$0xff]  ;;  %v4622_v1 = vrot.slane %v4620_v14, 1 }
 0x525   :  { %3966 = vst.msk [vmem:[#allocation2 + $0x190] sm:$0xf] %vm2808_vm3, %v12228_v40  ;;  %v4300_v40 = vunpack.c.l.b16 %v4054_v51  ;;  %v4587_v35 = vor.u32 %v4586_v61, %v4582_v42  ;;  %v4639_v51 = vrot.slane %v4637_v2, 1  ;;  %v12710_v61 = vld [vmem:[#allocation2 + $0x150] sm:$0xff]  ;;  %vm5681_vm3 = vcmask 326656  }
 0x526   :  { %3969 = vst [vmem:[#allocation2 + $0x194] sm:$0x1] %v3968_v37  ;;  %v12695_v37 = vsel %vm396_vm0, %v4599_v17, %v4603_v27  ;;  %v4296_v17 = vunpack.c.l.b16 %v4042_v5  ;;  %v12708_v27 = vpack.c.b16 %v4304_v15, %v4304_v15  ;;  %v4572_v15 = vshll.u32 %v12703_v13, 16 }
 0x527   :  { %17318 = vst [vmem:[#allocation37_spill] sm:$0xff] %v12683_v38  ;;  %4767 = vrot.lane.b32.xlu1 %v12695_v37, %s7859_s17  ;;  %v12700_v21 = vpack.c.b16 %v4300_v40, %v4300_v40  ;;  %v12713_v40 = vsel %vm396_vm0, %v4587_v35, %v4591_v7  ;;  %v12722_v5 = vsel %vm396_vm0, %v4635_v52, %v4639_v51  ;;  %v4618_v35 = vshrl.u32 %v12686_v62, 16 }
 0x528   :  { %2882 = vst [vmem:[#allocation2 + $0xd8] sm:$0x1] %v2881_v22  ;;  %v4063_v22 = vld [vmem:[#allocation2 + $0x158] sm:$0x1]  ;;  %v4666_v7 = vshrl.u32 %v12692_v46, 16  ;;  %v4673_v34 = vshll.u32 %v12708_v27, 16 }
 0x529   :  { %2992 = vst [vmem:[#allocation2 + $0xe0] sm:$0x1] %v2991_v24  ;;  %v4668_v24 = vshll.u32 %v12692_v46, 16  ;;  %v4625_v42 = vshll.u32 %v12700_v21, 16  ;;  %v4303_v25 = vunpack.c.l.b16 %v4063_v22  ;;  %v12729_v8 = vld [vmem:[#allocation2 + $0x180] sm:$0xff]  ;;  %v4656_v51 = vshll.u32 %v12710_v61, 16 }
 0x52a   :  { %17319 = vst [vmem:[#allocation126_spill] sm:$0xff] %v12695_v37  ;;  %v4075_v59 = vld [vmem:[#allocation2 + $0x188] sm:$0x1]  ;;  %v4623_v37 = vor.u32 %v4622_v1, %v4618_v35  ;;  %v4704_v1 = vshll.u32 %v12729_v8, 16  ;;  %v12746_v35 = vld [vmem:[#allocation2 + $0x174] sm:$0xff] }
 0x52b   :  { %17320 = vst [vmem:[#allocation76_spill] sm:$0xff] %v12713_v40  ;;  %4765 = vrot.lane.b32.xlu0 %v12713_v40, %s7859_s17  ;;  %v4670_v14 = vrot.slane %v4668_v24, 1  ;;  %v4307_v19 = vunpack.c.l.b16 %v4075_v59  ;;  %v4627_v47 = vrot.slane %v4625_v42, 1  ;;  %v12733_v52 = vpack.c.b16 %v4303_v25, %v4303_v25 }
 0x52c   :  { %17321 = vst [vmem:[#allocation136_spill] sm:$0xff] %v12722_v5  ;;  %v4574_v40 = vrot.slane %v4572_v15, 1  ;;  %v4675_v59 = vrot.slane %v4673_v34, 1  ;;  %v4658_v42 = vrot.slane %v4656_v51, 1  ;;  %v4570_v15 = vshrl.u32 %v12703_v13, 16 }
 0x52d   :  { %v4671_v57 = vor.u32 %v4670_v14, %v4666_v7  ;;  %v12739_v0 = vpack.c.b16 %v4307_v19, %v4307_v19  ;;  %v12743_v25 = vsel %vm396_vm0, %v4623_v37, %v4627_v47  ;;  %17323 = vst [vmem:[#allocation54_spill] sm:$0xff] %v12746_v35  ;;  %v12753_v19 = vld [vmem:[#allocation2 + $0x120] sm:$0xff]  ;;  %v4299_v34 = vunpack.c.l.b16 %v4051_v26 }
 0x52e   :  { %17322 = vst [vmem:[#allocation92_spill] sm:$0xff] %v12743_v25  ;;  %v4654_v47 = vshrl.u32 %v12710_v61, 16  ;;  %v4575_v37 = vor.u32 %v4574_v40, %v4570_v15  ;;  %v4706_v51 = vrot.slane %v4704_v1, 1  ;;  %v4692_v26 = vshll.u32 %v12746_v35, 16  ;;  %v4060_v15 = vld [vmem:[#allocation2 + $0x14c] sm:$0x1] }
 0x52f   :  { %v12706_v3 = vld [vmem:[#allocation2 + $0xd8] sm:$0xff]  ;;  %4773 = vrot.lane.b32.xlu1 %v12722_v5, %s7859_s17  ;;  %v12758_v14 = vsel %vm396_vm0, %v4671_v57, %v4675_v59  ;;  %v4608_v40 = vshll.u32 %v12753_v19, 16  ;;  %v4702_v57 = vshrl.u32 %v12729_v8, 16 }
 0x530   :  { %v4033_v48 = vld [vmem:[#allocation2 + $0xe0] sm:$0x1]  ;;  %v4534_v2 = vshrl.u32 %v12706_v3, 16  ;;  %v4536_v28 = vshll.u32 %v12706_v3, 16  ;;  %17324 = vst [vmem:[#allocation51_spill] sm:$0xff] %v12758_v14 }
 0x531   :  { %v4293_v31 = vunpack.c.l.b16 %v4033_v48  ;;  %v4707_v59 = vor.u32 %v4706_v51, %v4702_v57  ;;  %v4690_v51 = vshrl.u32 %v12746_v35, 16  ;;  %v4069_v57 = vld [vmem:[#allocation2 + $0x170] sm:$0x1] }
 0x532   :  { %v4538_v48 = vrot.slane %v4536_v28, 1  ;;  %v4072_v28 = vld [vmem:[#allocation2 + $0x17c] sm:$0x1] }
 0x533   :  { %v12726_v22 = vpack.c.b16 %v4293_v31, %v4293_v31  ;;  %v12737_v31 = vpack.c.b16 %v4296_v17, %v4296_v17  ;;  %v4306_v17 = vunpack.c.l.b16 %v4072_v28  ;;  %4771 = vrot.lane.b32.xlu0 %v12743_v25, %s7859_s17 }
 0x534   :  { %v4539_v45 = vor.u32 %v4538_v48, %v4534_v2  ;;  %v4661_v2 = vshll.u32 %v12733_v52, 16 }
 0x535   :  { %v4541_v24 = vshll.u32 %v12726_v22, 16  ;;  %v4577_v7 = vshll.u32 %v12737_v31, 16  ;;  %v12763_v28 = vpack.c.b16 %v4306_v17, %v4306_v17 }
 0x537   :  { %v4543_v38 = vrot.slane %v4541_v24, 1  ;;  %4779 = vrot.lane.b32.xlu1 %v12758_v14, %s7859_s17  ;;  %v4663_v24 = vrot.slane %v4661_v2, 1  ;;  %17325 = vst [vmem:[#allocation113_spill] sm:$0xff] %v12763_v28  ;;  %v4579_v5 = vrot.slane %v4577_v7, 1  ;;  %v12773_v14 = vld [vmem:[#allocation2 + $0x144] sm:$0xff]  ;;  %v4694_v2 = vrot.slane %v4692_v26, 1 }
 0x538   :  { %v4697_v17 = vshll.u32 %v12763_v28, 16 }
 0x539   :  { %v4544_v48 = vsel %vm396_vm0, %v4539_v45, %v4543_v38  ;;  %v4709_v45 = vshll.u32 %v12739_v0, 16  ;;  %v4659_v38 = vor.u32 %v4658_v42, %v4654_v47  ;;  %v4302_v42 = vunpack.c.l.b16 %v4060_v15 }
 0x53a   :  { %4757 = vrot.lane.b32.xlu2 %v4544_v48, %s7859_s17  ;;  %v12766_v48 = vpack.c.b16 %v4299_v34, %v4299_v34  ;;  %v12777_v7 = vsel %vm396_vm0, %v4575_v37, %v4579_v5  ;;  %v4610_v34 = vrot.slane %v4608_v40, 1  ;;  %v4644_v5 = vshll.u32 %v12773_v14, 16 }
 0x53b   :  { %v4711_v1 = vrot.slane %v4709_v45, 1  ;;  %v12771_v25 = vsel %vm396_vm0, %v4659_v38, %v4663_v24  ;;  %17327 = vst [vmem:[#allocation48_spill] sm:$0xff] %v12777_v7  ;;  %v4606_v45 = vshrl.u32 %v12753_v19, 16  ;;  %v12789_v24 = vpack.c.b16 %v4302_v42, %v4302_v42  ;;  %v12804_v42 = vld [vmem:[#allocation2 + $0x168] sm:$0xff] }
 0x53c   :  { %17326 = vst [vmem:[#allocation85_spill] sm:$0xff] %v12771_v25  ;;  %v4613_v47 = vshll.u32 %v12766_v48, 16  ;;  %4777 = vrot.lane.b32.xlu0 %v12771_v25, %s7859_s17  ;;  %v4695_v37 = vor.u32 %v4694_v2, %v4690_v51  ;;  %v4699_v26 = vrot.slane %v4697_v17, 1  ;;  %v17329_v25 = vld [vmem:[#allocation109_spill] sm:$0xff]  ;;  %v4646_v35 = vrot.slane %v4644_v5, 1 }
 0x53d   :  { %v12787_v38 = vsel %vm396_vm0, %v4707_v59, %v4711_v1  ;;  %v4611_v40 = vor.u32 %v4610_v34, %v4606_v45  ;;  %v4649_v28 = vshll.u32 %v12789_v24, 16  ;;  %v4305_v2 = vunpack.c.l.b16 %v4069_v57  ;;  %v12806_v17 = vld [vmem:[#allocation2 + $0xc] sm:$0xff]  ;;  %v17333_v45 = vld [vmem:[#allocation142_spill] sm:$0xff] }
 0x53e   :  { %17328 = vst [vmem:[#allocation62_spill] sm:$0xff] %v12787_v38  ;;  %v4615_v15 = vrot.slane %v4613_v47, 1  ;;  %v12797_v59 = vsel %vm396_vm0, %v4695_v37, %v4699_v26  ;;  %v4792_v34 = vrot.slane %v12806_v17, 1  ;;  %v12812_v47 = vld [vmem:[#allocation2] sm:$0xff]  ;;  %v4790_v5 = vrot.slane %v17333_v45, 1 }
 0x53f   :  { %4785 = vrot.lane.b32.xlu1 %v12787_v38, %s7859_s17  ;;  %17330 = vst [vmem:[#allocation93_spill] sm:$0xff] %v12797_v59  ;;  %v4789_v51 = vrot.slane %v12812_v47, 1  ;;  %v4680_v57 = vshll.u32 %v12804_v42, 16 }
 0x540   :  { %v12800_v1 = vsel %vm396_vm0, %v4611_v40, %v4615_v15  ;;  %17332 = vst [vmem:[#allocation24_spill] sm:$0xff] %v12812_v47  ;;  %v4651_v40 = vrot.slane %v4649_v28, 1  ;;  %v12821_v15 = vpack.c.b16 %v4305_v2, %v4305_v2  ;;  %v12833_v2 = vld [vmem:[#allocation2 + $0x30] sm:$0xff] }
 0x541   :  { %17331 = vst [vmem:[#allocation105_spill] sm:$0xff] %v12800_v1  ;;  %v4791_v38 = vsel %vm845_vm1, %v4789_v51, %v4790_v5  ;;  %v4682_v45 = vrot.slane %v4680_v57, 1  ;;  %v17337_v51 = vld [vmem:[#allocation75_spill] sm:$0xff] }
 0x542   :  { %4763 = vrot.lane.b32.xlu2 %v12777_v7, %s7859_s17  ;;  %v4793_v7 = vrot.slane %v17329_v25, 1  ;;  %v4642_v25 = vshrl.u32 %v12773_v14, 16  ;;  %v4799_v5 = vrot.slane %v17337_v51, 1  ;;  %v12848_v57 = vld [vmem:[#allocation2 + $0x24] sm:$0xff] }
 0x544   :  { %4783 = vrot.lane.b32.xlu0 %v12797_v59, %s7859_s17  ;;  %v12817_v37 = vsel %vm845_vm1, %v4792_v34, %v4793_v7  ;;  %v4647_v26 = vor.u32 %v4646_v35, %v4642_v25  ;;  %v4078_v59 = vld [vmem:[#allocation2 + $0x194] sm:$0x1]  ;;  %v4685_v7 = vshll.u32 %v12821_v15, 16  ;;  %v12831_v35 = vld [vmem:[#allocation2 + $0x18c] sm:$0xff]  ;;  %v4801_v34 = vrot.slane %v12833_v2, 1 }
 0x545   :  { %17334 = vst [vmem:[#allocation122_spill] sm:$0xff] %v12817_v37  ;;  %v4308_v28 = vunpack.c.l.b16 %v4078_v59 }
 0x546   :  { %v12827_v47 = vsel %vm396_vm0, %v4647_v26, %v4651_v40  ;;  %v4687_v26 = vrot.slane %v4685_v7, 1  ;;  %v4716_v40 = vshll.u32 %v12831_v35, 16  ;;  %v4810_v7 = vrot.slane %v12455_v53, 1  ;;  %v12874_v53 = vpop.permute.xlu1 %4725 }
 0x547   :  { %4887 = vrot.lane.b32.xlu1 %v12817_v37, %s7861_s30  ;;  %17335 = vst [vmem:[#allocation74_spill] sm:$0xff] %v12827_v47  ;;  %v12845_v59 = vpack.c.b16 %v4308_v28, %v4308_v28  ;;  %v4811_v37 = vrot.slane %v12491_v10, 1  ;;  %v4714_v28 = vshrl.u32 %v12831_v35, 16 }
 0x548   :  { %v4718_v51 = vrot.slane %v4716_v40, 1 }
 0x549   :  { %v12866_v10 = vsel %vm845_vm1, %v4810_v7, %v4811_v37 }
 0x54a   :  { %4769 = vrot.lane.b32.xlu2 %v12800_v1, %s7859_s17  ;;  %v4802_v1 = vrot.slane %v12263_v44, 1  ;;  %v4678_v44 = vshrl.u32 %v12804_v42, 16 }
 0x54c   :  { %4885 = vrot.lane.b32.xlu0 %v4791_v38, %s7861_s30  ;;  %v12840_v25 = vsel %vm845_vm1, %v4801_v34, %v4802_v1  ;;  %v4683_v38 = vor.u32 %v4682_v45, %v4678_v44  ;;  %v4721_v45 = vshll.u32 %v12845_v59, 16 }
 0x54d   :  { %17336 = vst [vmem:[#allocation80_spill] sm:$0xff] %v12840_v25 }
 0x54e   :  { %v12856_v34 = vsel %vm396_vm0, %v4683_v38, %v4687_v26  ;;  %v4723_v38 = vrot.slane %v4721_v45, 1  ;;  %v12871_v26 = vld [vmem:[#allocation2 + $0x48] sm:$0xff]  ;;  %v12888_v45 = vpop.permute.xlu2 %4727 }
 0x54f   :  { %4893 = vrot.lane.b32.xlu1 %v12840_v25, %s7861_s30  ;;  %17338 = vst [vmem:[#allocation57_spill] sm:$0xff] %v12856_v34  ;;  %v4807_v40 = vrot.slane %v12871_v26, 1 }
 0x552   :  { %4775 = vrot.lane.b32.xlu2 %v12827_v47, %s7859_s17  ;;  %v4798_v47 = vrot.slane %v12848_v57, 1 }
 0x554   :  { %v12853_v1 = vsel %vm845_vm1, %v4798_v47, %v4799_v5  ;;  %v17339_v47 = vld [vmem:[#allocation110_spill] sm:$0xff]  ;;  %v4719_v5 = vor.u32 %v4718_v51, %v4714_v28  ;;  %v4819_v51 = vrot.slane %v12496_v11, 1  ;;  %v17342_v28 = vld [vmem:[#allocation45_spill] sm:$0xff] }
 0x555   :  { %4891 = vrot.lane.b32.xlu0 %v12853_v1, %s7861_s30  ;;  %v4808_v44 = vrot.slane %v17339_v47, 1  ;;  %v4796_v47 = vrot.slane %v17342_v28, 1  ;;  %v12900_v11 = vld [vmem:[#allocation2 + $0x18] sm:$0xff]  ;;  %v4828_v28 = vrot.slane %v12542_v9, 1  ;;  %v4825_v9 = vrot.slane %v12471_v4, 1 }
 0x556   :  { %v12881_v37 = vsel %vm396_vm0, %v4719_v5, %v4723_v38  ;;  %v4795_v38 = vrot.slane %v12900_v11, 1 }
 0x557   :  { %4899 = vrot.lane.b32.xlu1 %v12866_v10, %s7861_s30  ;;  %v12878_v25 = vsel %vm845_vm1, %v4807_v40, %v4808_v44  ;;  %17340 = vst [vmem:[#allocation52_spill] sm:$0xff] %v12881_v37  ;;  %v12897_v44 = vld [vmem:[#allocation2 + $0x6c] sm:$0xff]  ;;  %v4829_v40 = vrot.slane %v12578_v56, 1  ;;  %v12920_v56 = vpop.permute.xlu2 %4733 }
 0x558   :  { %v4816_v5 = vrot.slane %v12897_v44, 1  ;;  %17345 = vst [vmem:[#allocation11_spill] sm:$0xff] %v12920_v56 }
 0x55a   :  { %4781 = vrot.lane.b32.xlu2 %v12856_v34, %s7859_s17  ;;  %v4820_v34 = vrot.slane %v12525_v29, 1  ;;  %v4817_v29 = vrot.slane %v12300_v12, 1  ;;  %v12910_v12 = vsel %vm845_vm1, %v4795_v38, %v4796_v47  ;;  %v17346_v47 = vld [vmem:[#allocation31_spill] sm:$0xff]  ;;  %v4837_v38 = vrot.slane %v12706_v3, 1 }
 0x55c   :  { %v12891_v7 = vsel %vm845_vm1, %v4819_v51, %v4820_v34  ;;  %v12905_v34 = vsel %vm845_vm1, %v4816_v5, %v4817_v29  ;;  %v12907_v51 = vpop.permute.xlu1 %4731  ;;  %v4826_v29 = vrot.slane %v12499_v23, 1  ;;  %v4805_v5 = vrot.slane %v17346_v47, 1 }
 0x55d   :  { %4897 = vrot.lane.b32.xlu0 %v12878_v25, %s7861_s30  ;;  %17341 = vst [vmem:[#allocation25_spill] sm:$0xff] %v12891_v7 }
 0x55e   :  { %17343 = vst [vmem:[#allocation97_spill] sm:$0xff] %v12905_v34  ;;  %v12935_v56 = vsel %vm845_vm1, %v4825_v9, %v4826_v29  ;;  %v4814_v29 = vrot.slane %v12485_v63, 1  ;;  %v4846_v63 = vrot.slane %v12703_v13, 1 }
 0x55f   :  { %4905 = vrot.lane.b32.xlu1 %v12891_v7, %s7861_s30  ;;  %v4838_v7 = vrot.slane %v12726_v22, 1  ;;  %v4835_v22 = vrot.slane %v12552_v49, 1 }
 0x561   :  { %v4839_v47 = vsel %vm845_vm1, %v4837_v38, %v4838_v7 }
 0x562   :  { %4787 = vrot.lane.b32.xlu2 %v12881_v37, %s7859_s17  ;;  %v12918_v37 = vsel %vm845_vm1, %v4828_v28, %v4829_v40  ;;  %v12932_v28 = vpop.permute.xlu0 %4729  ;;  %v12950_v9 = vpop.permute.xlu2 %4739 }
 0x563   :  { %17344 = vst [vmem:[#allocation128_spill] sm:$0xff] %v12918_v37 }
 0x564   :  { %v12945_v4 = vpop.permute.xlu1 %4737  ;;  %17347 = vst [vmem:[#allocation34_spill] sm:$0xff] %v12950_v9 }
 0x565   :  { %4903 = vrot.lane.b32.xlu0 %v12905_v34, %s7861_s30  ;;  %v12929_v34 = vld [vmem:[#allocation2 + $0x3c] sm:$0xff] }
 0x566   :  { %v4804_v40 = vrot.slane %v12929_v34, 1 }
 0x567   :  { %4911 = vrot.lane.b32.xlu1 %v12918_v37, %s7861_s30  ;;  %v4847_v37 = vrot.slane %v12737_v31, 1 }
 0x568   :  { %v12938_v23 = vsel %vm845_vm1, %v4804_v40, %v4805_v5  ;;  %v4834_v5 = vrot.slane %v12506_v18, 1  ;;  %v4813_v40 = vrot.slane %v12453_v32, 1  ;;  %v4844_v18 = vrot.slane %v12601_v6, 1 }
 0x569   :  { %v12969_v32 = vsel %vm845_vm1, %v4846_v63, %v4847_v37  ;;  %v4855_v63 = vrot.slane %v12753_v19, 1 }
 0x56a   :  { %4889 = vrot.lane.b32.xlu2 %v12910_v12, %s7861_s30  ;;  %v12956_v7 = vsel %vm845_vm1, %v4834_v5, %v4835_v22  ;;  %v12959_v38 = vsel %vm845_vm1, %v4813_v40, %v4814_v29  ;;  %v12963_v49 = vpop.permute.xlu0 %4735  ;;  %v4843_v22 = vrot.slane %v12557_v33, 1  ;;  %v4822_v29 = vrot.slane %v12479_v60, 1 }
 0x56b   :  { %17348 = vst [vmem:[#allocation96_spill] sm:$0xff] %v12956_v7  ;;  %v4856_v5 = vrot.slane %v12766_v48, 1  ;;  %v4853_v48 = vrot.slane %v12641_v36, 1  ;;  %v4864_v36 = vrot.slane %v12773_v14, 1 }
 0x56c   :  { %v12974_v31 = vpop.permute.xlu1 %4743  ;;  %v12983_v37 = vsel %vm845_vm1, %v4843_v22, %v4844_v18  ;;  %v4832_v18 = vrot.slane %v12568_v50, 1 }
 0x56d   :  { %4909 = vrot.lane.b32.xlu0 %v12935_v56, %s7861_s30  ;;  %17349 = vst [vmem:[#allocation69_spill] sm:$0xff] %v12974_v31  ;;  %v12980_v40 = vpop.permute.xlu2 %4745  ;;  %v12996_v60 = vsel %vm845_vm1, %v4855_v63, %v4856_v5  ;;  %v4841_v63 = vrot.slane %v12622_v41, 1  ;;  %v17389_v31 = vld [vmem:[#allocation94_spill] sm:$0xff] }
 0x56e   :  { %17350 = vst [vmem:[#allocation118_spill] sm:$0xff] %v12980_v40  ;;  %v4865_v40 = vrot.slane %v12789_v24, 1  ;;  %v4862_v24 = vrot.slane %v12679_v55, 1  ;;  %v4873_v55 = vrot.slane %v12804_v42, 1 }
 0x56f   :  { %4917 = vrot.lane.b32.xlu1 %v4839_v47, %s7861_s30  ;;  %v4823_v47 = vrot.slane %v12503_v43, 1 }
 0x571   :  { %v12986_v6 = vsel %vm845_vm1, %v4822_v29, %v4823_v47  ;;  %v4852_v47 = vrot.slane %v12603_v30, 1  ;;  %v4831_v29 = vrot.slane %v12516_v39, 1  ;;  %v13023_v39 = vsel %vm845_vm1, %v4864_v36, %v4865_v40 }
 0x572   :  { %4895 = vrot.lane.b32.xlu2 %v12938_v23, %s7861_s30  ;;  %v4871_v36 = vrot.slane %v12708_v27, 1  ;;  %v4882_v27 = vrot.slane %v12831_v35, 1 }
 0x573   :  { %v13011_v5 = vsel %vm845_vm1, %v4831_v29, %v4832_v18  ;;  %v4840_v18 = vrot.slane %v12574_v58, 1 }
 0x574   :  { %17353 = vst [vmem:[#allocation81_spill] sm:$0xff] %v13011_v5 }
 0x575   :  { %4915 = vrot.lane.b32.xlu0 %v12956_v7, %s7861_s30  ;;  %v13008_v7 = vsel %vm845_vm1, %v4852_v47, %v4853_v48  ;;  %v13018_v50 = vpop.permute.xlu2 %4751  ;;  %v4861_v48 = vrot.slane %v12659_v54, 1  ;;  %v4874_v47 = vrot.slane %v12821_v15, 1  ;;  %v13038_v40 = vsel %vm845_vm1, %v4840_v18, %v4841_v63 }
 0x576   :  { %17354 = vst [vmem:[#allocation72_spill] sm:$0xff] %v13018_v50  ;;  %v4870_v63 = vrot.slane %v12692_v46, 1  ;;  %v4883_v18 = vrot.slane %v12845_v59, 1 }
 0x577   :  { %4923 = vrot.lane.b32.xlu1 %v12969_v32, %s7861_s30  ;;  %v13035_v29 = vsel %vm845_vm1, %v4861_v48, %v4862_v24  ;;  %v13048_v54 = vsel %vm845_vm1, %v4873_v55, %v4874_v47  ;;  %v4850_v24 = vrot.slane %v12670_v20, 1  ;;  %v4849_v48 = vrot.slane %v12636_v16, 1 }
 0x578   :  { %17358 = vst [vmem:[#allocation135_spill] sm:$0xff] %v13048_v54  ;;  %v13062_v47 = vsel %vm845_vm1, %v4870_v63, %v4871_v36  ;;  %v13075_v46 = vsel %vm845_vm1, %v4882_v27, %v4883_v18  ;;  %v4880_v36 = vrot.slane %v12739_v0, 1  ;;  %v4879_v63 = vrot.slane %v12729_v8, 1 }
 0x579   :  { %v12993_v43 = vpop.permute.xlu0 %4741  ;;  %17359 = vst [vmem:[#allocation134_spill] sm:$0xff] %v13062_v47  ;;  %v13065_v55 = vsel %vm845_vm1, %v4849_v48, %v4850_v24  ;;  %v4859_v24 = vrot.slane %v12700_v21, 1  ;;  %v4858_v48 = vrot.slane %v12686_v62, 1  ;;  %v4868_v8 = vrot.slane %v12733_v52, 1  ;;  %v17369_v52 = vld [vmem:[#allocation113_spill] sm:$0xff] }
 0x57a   :  { %4901 = vrot.lane.b32.xlu2 %v12959_v38, %s7861_s30  ;;  %17351 = vst [vmem:[#allocation50_spill] sm:$0xff] %v12993_v43  ;;  %v4867_v27 = vrot.slane %v12710_v61, 1  ;;  %v17371_v61 = vld [vmem:[#allocation54_spill] sm:$0xff] }
 0x57b   :  { %17360 = vst [vmem:[#allocation46_spill] sm:$0xff] %v13075_v46  ;;  %v13091_v18 = vsel %vm845_vm1, %v4858_v48, %v4859_v24  ;;  %v4877_v48 = vrot.slane %v17369_v52, 1 }
 0x57c   :  { %v13003_v22 = vpop.permute.xlu1 %4749 }
 0x57d   :  { %4921 = vrot.lane.b32.xlu0 %v12983_v37, %s7861_s30  ;;  %17352 = vst [vmem:[#allocation108_spill] sm:$0xff] %v13003_v22  ;;  %v17380_v22 = vld [vmem:[#allocation10_spill] sm:$0xff] }
 0x57f   :  { %4929 = vrot.lane.b32.xlu1 %v12996_v60, %s7861_s30 }
 0x581   :  { %v13020_v30 = vpop.permute.xlu0 %4747 }
 0x582   :  { %4907 = vrot.lane.b32.xlu2 %v12986_v6, %s7861_s30  ;;  %17355 = vst [vmem:[#allocation117_spill] sm:$0xff] %v13020_v30 }
 0x585   :  { %4927 = vrot.lane.b32.xlu0 %v13008_v7, %s7861_s30  ;;  %v13030_v14 = vpop.permute.xlu1 %4755 }
 0x586   :  { %17356 = vst [vmem:[#allocation18_spill] sm:$0xff] %v13030_v14  ;;  %v13088_v14 = vsel %vm845_vm1, %v4879_v63, %v4880_v36  ;;  %v13108_v36 = vsel %vm845_vm1, %v4867_v27, %v4868_v8  ;;  %v4876_v8 = vrot.slane %v17371_v61, 1 }
 0x587   :  { %4935 = vrot.lane.b32.xlu1 %v13023_v39, %s7861_s30  ;;  %17362 = vst [vmem:[#allocation107_spill] sm:$0xff] %v13088_v14 }
 0x588   :  { %17366 = vst [vmem:[#allocation100_spill] sm:$0xff] %v13108_v36  ;;  %v13125_v27 = vsel %vm845_vm1, %v4876_v8, %v4877_v48  ;;  %v17379_v8 = vld [vmem:[#allocation133_spill] sm:$0xff] }
 0x589   :  { %v13045_v41 = vpop.permute.xlu0 %4753  ;;  %17372 = vst [vmem:[#allocation12_spill] sm:$0xff] %v13125_v27 }
 0x58a   :  { %4913 = vrot.lane.b32.xlu2 %v13011_v5, %s7861_s30  ;;  %17357 = vst [vmem:[#allocation63_spill] sm:$0xff] %v13045_v41 }
 0x58d   :  { %4933 = vrot.lane.b32.xlu0 %v13035_v29, %s7861_s30 }
 0x58e   :  { %v13057_v42 = vpop.permute.xlu1 %4761 }
 0x58f   :  { %4941 = vrot.lane.b32.xlu1 %v13048_v54, %s7861_s30 }
 0x592   :  { %4919 = vrot.lane.b32.xlu2 %v13038_v40, %s7861_s30 }
 0x594   :  { %v13050_v15 = vpop.permute.xlu2 %4757 }
 0x595   :  { %4939 = vrot.lane.b32.xlu0 %v13062_v47, %s7861_s30  ;;  %v13072_v20 = vpop.permute.xlu0 %4759 }
 0x597   :  { %4947 = vrot.lane.b32.xlu1 %v13075_v46, %s7861_s30 }
 0x599   :  { %v13084_v35 = vpop.permute.xlu1 %4767 }
 0x59a   :  { %4925 = vrot.lane.b32.xlu2 %v13065_v55, %s7861_s30  ;;  %17361 = vst [vmem:[#allocation28_spill] sm:$0xff] %v13084_v35 }
 0x59c   :  { %v13077_v59 = vpop.permute.xlu2 %4763 }
 0x59d   :  { %4945 = vrot.lane.b32.xlu0 %v13088_v14, %s7861_s30  ;;  %v13097_v0 = vpop.permute.xlu0 %4765 }
 0x59e   :  { %17363 = vst [vmem:[#allocation103_spill] sm:$0xff] %v13097_v0 }
 0x59f   :  { %4963 = vrot.lane.b32.xlu1 %v12848_v57, %s7865_s18 }
 0x5a1   :  { %v13104_v62 = vpop.permute.xlu1 %4773 }
 0x5a2   :  { %4931 = vrot.lane.b32.xlu2 %v13091_v18, %s7861_s30  ;;  %17365 = vst [vmem:[#allocation71_spill] sm:$0xff] %v13104_v62 }
 0x5a4   :  { %v13099_v21 = vpop.permute.xlu2 %4769 }
 0x5a5   :  { %17364 = vst [vmem:[#allocation58_spill] sm:$0xff] %v13099_v21  ;;  %4961 = vrot.lane.b32.xlu0 %v12900_v11, %s7865_s18  ;;  %v13114_v24 = vpop.permute.xlu0 %4771 }
 0x5a6   :  { %17367 = vst [vmem:[#allocation21_spill] sm:$0xff] %v13114_v24 }
 0x5a7   :  { %4969 = vrot.lane.b32.xlu1 %v12871_v26, %s7865_s18 }
 0x5a9   :  { %v13121_v41 = vpop.permute.xlu1 %4779 }
 0x5aa   :  { %4937 = vrot.lane.b32.xlu2 %v13108_v36, %s7861_s30  ;;  %17370 = vst [vmem:[#allocation19_spill] sm:$0xff] %v13121_v41  ;;  %v13139_v41 = vld [vmem:[#allocation2 + $0x60] sm:$0xff] }
 0x5ac   :  { %v13116_v63 = vpop.permute.xlu2 %4775 }
 0x5ad   :  { %17368 = vst [vmem:[#allocation14_spill] sm:$0xff] %v13116_v63  ;;  %4967 = vrot.lane.b32.xlu0 %v12929_v34, %s7865_s18  ;;  %v17375_v63 = vld [vmem:[#allocation98_spill] sm:$0xff] }
 0x5ae   :  { %v13131_v50 = vpop.permute.xlu0 %4777 }
 0x5af   :  { %17373 = vst [vmem:[#allocation40_spill] sm:$0xff] %v13131_v50  ;;  %5053 = vrot.lane.b32.xlu1 %v17375_v63, %s7863_s16 }
 0x5b1   :  { %v13137_v52 = vpop.permute.xlu1 %4785 }
 0x5b2   :  { %4943 = vrot.lane.b32.xlu2 %v13125_v27, %s7861_s30  ;;  %17376 = vst [vmem:[#allocation131_spill] sm:$0xff] %v13137_v52  ;;  %s7868_s30 = smov 48  }
 0x5b4   :  { %v13133_v46 = vpop.permute.xlu2 %4781 }
 0x5b5   :  { %17374 = vst [vmem:[#allocation116_spill] sm:$0xff] %v13133_v46  ;;  %4973 = vrot.lane.b32.xlu0 %v13139_v41, %s7865_s18 }
 0x5b6   :  { %v13145_v48 = vpop.permute.xlu0 %4783 }
 0x5b7   :  { %17377 = vst [vmem:[#allocation121_spill] sm:$0xff] %v13145_v48  ;;  %5291 = vrot.lane.b32.xlu1 %v17379_v8, %s7867_s3  ;;  %v13167_v48 = vld [vmem:[#allocation2 + $0x54] sm:$0xff] }
 0x5b9   :  { %v13151_v46 = vpop.permute.xlu1 %4887 }
 0x5ba   :  { %4959 = vrot.lane.b32.xlu2 %v12806_v17, %s7865_s18 }
 0x5bc   :  { %v13147_v61 = vpop.permute.xlu2 %4787 }
 0x5bd   :  { %17378 = vst [vmem:[#allocation67_spill] sm:$0xff] %v13147_v61  ;;  %5197 = vrot.lane.b32.xlu0 %v12900_v11, %s7868_s30 }
 0x5be   :  { %v13157_v63 = vpop.permute.xlu0 %4885 }
 0x5bf   :  { %5055 = vrot.lane.b32.xlu1 %v17379_v8, %s7863_s16  ;;  %v17382_v8 = vld [vmem:[#allocation122_spill] sm:$0xff] }
 0x5c1   :  { %v13163_v61 = vpop.permute.xlu1 %4893 }
 0x5c2   :  { %4965 = vrot.lane.b32.xlu2 %v12833_v2, %s7865_s18 }
 0x5c4   :  { %v13159_v52 = vpop.permute.xlu2 %4889 }
 0x5c5   :  { %4975 = vrot.lane.b32.xlu0 %v12897_v44, %s7865_s18 }
 0x5c7   :  { %v13171_v50 = vpop.permute.xlu0 %4891  ;;  %5293 = vrot.lane.b32.xlu1 %v17380_v22, %s7867_s3 }
 0x5c9   :  { %v13177_v62 = vpop.permute.xlu1 %4899 }
 0x5ca   :  { %4971 = vrot.lane.b32.xlu2 %v13167_v48, %s7865_s18  ;;  %17381 = vst [vmem:[#allocation127_spill] sm:$0xff] %v13177_v62 }
 0x5cc   :  { %v13173_v14 = vpop.permute.xlu2 %4895 }
 0x5cd   :  { %5199 = vrot.lane.b32.xlu0 %v12848_v57, %s7868_s30 }
 0x5cf   :  { %v13183_v27 = vpop.permute.xlu0 %4897  ;;  %5127 = vrot.lane.b32.xlu1 %v12853_v1, %s7869_s27 }
 0x5d1   :  { %v13189_v24 = vpop.permute.xlu1 %4905 }
 0x5d2   :  { %5123 = vrot.lane.b32.xlu2 %v17382_v8, %s7869_s27  ;;  %17384 = vst [vmem:[#allocation101_spill] sm:$0xff] %v13189_v24  ;;  %v17387_v8 = vld [vmem:[#allocation80_spill] sm:$0xff] }
 0x5d4   :  { %v13185_v30 = vpop.permute.xlu2 %4901 }
 0x5d5   :  { %17383 = vst [vmem:[#allocation84_spill] sm:$0xff] %v13185_v30  ;;  %5057 = vrot.lane.b32.xlu0 %v17380_v22, %s7863_s16 }
 0x5d7   :  { %v13195_v54 = vpop.permute.xlu0 %4903  ;;  %5365 = vrot.lane.b32.xlu1 %v17387_v8, %s7870_s28 }
 0x5d8   :  { %17385 = vst [vmem:[#allocation111_spill] sm:$0xff] %v13195_v54 }
 0x5d9   :  { %v13201_v47 = vpop.permute.xlu1 %4911 }
 0x5da   :  { %5361 = vrot.lane.b32.xlu2 %v12910_v12, %s7870_s28  ;;  %17388 = vst [vmem:[#allocation138_spill] sm:$0xff] %v13201_v47 }
 0x5dc   :  { %v13197_v21 = vpop.permute.xlu2 %4907 }
 0x5dd   :  { %17386 = vst [vmem:[#allocation120_spill] sm:$0xff] %v13197_v21  ;;  %5295 = vrot.lane.b32.xlu0 %v17389_v31, %s7867_s3 }
 0x5df   :  { %v13207_v22 = vpop.permute.xlu0 %4909  ;;  %5203 = vrot.lane.b32.xlu1 %v12929_v34, %s7868_s30 }
 0x5e0   :  { %17390 = vst [vmem:[#allocation42_spill] sm:$0xff] %v13207_v22  ;;  %v17397_v22 = vld [vmem:[#allocation44_spill] sm:$0xff] }
 0x5e1   :  { %v13213_v54 = vpop.permute.xlu1 %4917 }
 0x5e2   :  { %5125 = vrot.lane.b32.xlu2 %v12910_v12, %s7869_s27 }
 0x5e4   :  { %v13209_v24 = vpop.permute.xlu2 %4913 }
 0x5e5   :  { %17391 = vst [vmem:[#allocation83_spill] sm:$0xff] %v13209_v24  ;;  %5129 = vrot.lane.b32.xlu0 %v17387_v8, %s7869_s27 }
 0x5e7   :  { %v13219_v47 = vpop.permute.xlu0 %4915  ;;  %4991 = vrot.lane.b32.xlu1 %v12574_v58, %s7865_s18 }
 0x5e8   :  { %17392 = vst [vmem:[#allocation26_spill] sm:$0xff] %v13219_v47 }
 0x5e9   :  { %v13225_v12 = vpop.permute.xlu1 %4923 }
 0x5ea   :  { %5363 = vrot.lane.b32.xlu2 %v12853_v1, %s7870_s28 }
 0x5ec   :  { %v13221_v21 = vpop.permute.xlu2 %4919 }
 0x5ed   :  { %5367 = vrot.lane.b32.xlu0 %v12938_v23, %s7870_s28 }
 0x5ef   :  { %v13231_v24 = vpop.permute.xlu0 %4921  ;;  %5229 = vrot.lane.b32.xlu1 %v12557_v33, %s7868_s30 }
 0x5f1   :  { %v13237_v1 = vpop.permute.xlu1 %4929 }
 0x5f2   :  { %5201 = vrot.lane.b32.xlu2 %v12833_v2, %s7868_s30  ;;  %17394 = vst [vmem:[#allocation112_spill] sm:$0xff] %v13237_v1 }
 0x5f4   :  { %v13233_v8 = vpop.permute.xlu2 %4925 }
 0x5f5   :  { %17393 = vst [vmem:[#allocation47_spill] sm:$0xff] %v13233_v8  ;;  %5155 = vrot.lane.b32.xlu0 %v13038_v40, %s7869_s27  ;;  %v17411_v8 = vld [vmem:[#allocation24_spill] sm:$0xff] }
 0x5f6   :  { %v5426_v0 = vsel %vm1547_vm4, %v17411_v8, %v12874_v53 }
 0x5f7   :  { %v13243_v58 = vpop.permute.xlu0 %4927  ;;  %5061 = vrot.lane.b32.xlu1 %v17397_v22, %s7863_s16 }
 0x5f8   :  { %17395 = vst [vmem:[#allocation66_spill] sm:$0xff] %v13243_v58 }
 0x5f9   :  { %v13249_v5 = vpop.permute.xlu1 %4935 }
 0x5fa   :  { %5059 = vrot.lane.b32.xlu2 %v17389_v31, %s7863_s16  ;;  %17398 = vst [vmem:[#allocation33_spill] sm:$0xff] %v13249_v5  ;;  %v17401_v31 = vld [vmem:[#allocation137_spill] sm:$0xff] }
 0x5fb   :  { %v17403_v5 = vld [vmem:[#allocation37_spill] sm:$0xff] }
 0x5fc   :  { %v13245_v47 = vpop.permute.xlu2 %4931 }
 0x5fd   :  { %17396 = vst [vmem:[#allocation129_spill] sm:$0xff] %v13245_v47  ;;  %5393 = vrot.lane.b32.xlu0 %v12983_v37, %s7870_s28 }
 0x5ff   :  { %v13255_v1 = vpop.permute.xlu0 %4933  ;;  %5299 = vrot.lane.b32.xlu1 %v17401_v31, %s7867_s3 }
 0x600   :  { %17399 = vst [vmem:[#allocation59_spill] sm:$0xff] %v13255_v1 }
 0x601   :  { %v13261_v58 = vpop.permute.xlu1 %4941 }
 0x602   :  { %5297 = vrot.lane.b32.xlu2 %v17397_v22, %s7867_s3  ;;  %17402 = vst [vmem:[#allocation13_spill] sm:$0xff] %v13261_v58  ;;  %v17406_v22 = vld [vmem:[#allocation82_spill] sm:$0xff] }
 0x604   :  { %v13257_v40 = vpop.permute.xlu2 %4937 }
 0x605   :  { %17400 = vst [vmem:[#allocation141_spill] sm:$0xff] %v13257_v40  ;;  %5205 = vrot.lane.b32.xlu0 %v12871_v26, %s7868_s30 }
 0x607   :  { %v13267_v47 = vpop.permute.xlu0 %4939  ;;  %5087 = vrot.lane.b32.xlu1 %v17406_v22, %s7863_s16 }
 0x608   :  { %17404 = vst [vmem:[#allocation60_spill] sm:$0xff] %v13267_v47 }
 0x609   :  { %v13273_v1 = vpop.permute.xlu1 %4947 }
 0x60a   :  { %5085 = vrot.lane.b32.xlu2 %v17403_v5, %s7863_s16  ;;  %17407 = vst [vmem:[#allocation87_spill] sm:$0xff] %v13273_v1  ;;  %v17409_v5 = vld [vmem:[#allocation48_spill] sm:$0xff] }
 0x60c   :  { %v13269_v35 = vpop.permute.xlu2 %4943 }
 0x60d   :  { %17405 = vst [vmem:[#allocation78_spill] sm:$0xff] %v13269_v35  ;;  %4993 = vrot.lane.b32.xlu0 %v12557_v33, %s7865_s18  ;;  %v5949_v35 = vld [vmem:[%s15932_s4 + $0x20] sm:$0xf] }
 0x60e   :  { %v5967_v47 = vunpack.c.l.b16 %v5949_v35  ;;  %v7711_v35 = vld [vmem:[%s15932_s4 + $0x10] sm:$0xff] }
 0x60f   :  { %v13279_v58 = vpop.permute.xlu0 %4945  ;;  %5325 = vrot.lane.b32.xlu1 %v17409_v5, %s7867_s3 }
 0x610   :  { %17408 = vst [vmem:[#allocation104_spill] sm:$0xff] %v13279_v58  ;;  %v5972_v1 = vpack.c.b16 %v5967_v47, %v5967_v47 }
 0x611   :  { %v13286_v36 = vpop.permute.xlu1 %4963 }
 0x612   :  { %5323 = vrot.lane.b32.xlu2 %v17406_v22, %s7867_s3  ;;  %v6044_v33 = vsel %vm6042_vm15, %v5972_v1, 0  ;;  %v7712_v22 = vld [vmem:[%s15932_s4 + $0x18] sm:$0xff] }
 0x613   :  { %6049 = vmatpush.bf16.msra.mxu1 %v6044_v33  ;;  %7716 = vmatpush.bf16.msra.mxu2 %v6044_v33 }
 0x614   :  { %v4960_v40 = vpop.permute.xlu2 %4959 }
 0x615   :  { %5231 = vrot.lane.b32.xlu0 %v12703_v13, %s7868_s30 }
 0x617   :  { %v4962_v58 = vpop.permute.xlu0 %4961  ;;  %5133 = vrot.lane.b32.xlu1 %v12878_v25, %s7869_s27  ;;  %6050 = vmatpush.bf16.msra.mxu1 %v7712_v22 }
 0x618   :  { %7717 = vmatpush.bf16.msra.mxu2 %v7712_v22 }
 0x619   :  { %v13299_v47 = vpop.permute.xlu1 %4969 }
 0x61a   :  { %5131 = vrot.lane.b32.xlu2 %v12938_v23, %s7869_s27  ;;  %v7710_v23 = vld [vmem:[%s15932_s4 + $0x8] sm:$0xff] }
 0x61b   :  { %6051 = vmatpush.bf16.msra.mxu1 %v7711_v35 }
 0x61c   :  { %v13295_v30 = vpop.permute.xlu2 %4965  ;;  %7718 = vmatpush.bf16.msra.mxu2 %v7711_v35 }
 0x61d   :  { %5063 = vrot.lane.b32.xlu0 %v17401_v31, %s7863_s16  ;;  %v7709_v31 = vld [vmem:[%s15932_s4] sm:$0xff] }
 0x61f   :  { %v13311_v1 = vpop.permute.xlu0 %4967  ;;  %5371 = vrot.lane.b32.xlu1 %v12866_v10, %s7870_s28  ;;  %6052 = vmatpush.bf16.msra.mxu1 %v7710_v23 }
 0x620   :  { %7719 = vmatpush.bf16.msra.mxu2 %v7710_v23  ;;  %v5490_v23 = vsel %vm1677_vm7, %v5426_v0, %v13157_v63 }
 0x621   :  { %v5054_v22 = vpop.permute.xlu1 %5053  ;;  %v5554_v9 = vsel %vm1807_vm9, %v5490_v23, %v4960_v40 }
 0x622   :  { %5369 = vrot.lane.b32.xlu2 %v12878_v25, %s7870_s28  ;;  %v17410_v25 = vld [vmem:[#allocation102_spill] sm:$0xff] }
 0x623   :  { %6053 = vmatpush.bf16.msra.mxu1 %v7709_v31 }
 0x624   :  { %v13313_v33 = vpop.permute.xlu2 %4971  ;;  %7720 = vmatpush.bf16.msra.mxu2 %v7709_v31 }
 0x625   :  { %5301 = vrot.lane.b32.xlu0 %v17410_v25, %s7867_s3 }
 0x627   :  { %v13324_v35 = vpop.permute.xlu0 %4973  ;;  %5159 = vrot.lane.b32.xlu1 %v12969_v32, %s7869_s27 }
 0x629   :  { %v5292_v62 = vpop.permute.xlu1 %5291 }
 0x62a   :  { %5157 = vrot.lane.b32.xlu2 %v12983_v37, %s7869_s27  ;;  %v5618_v37 = vsel %vm1937_vm10, %v5554_v9, %v5054_v22 }
 0x62c   :  { %v5124_v43 = vpop.permute.xlu2 %5123 }
 0x62d   :  { %5089 = vrot.lane.b32.xlu0 %v17409_v5, %s7863_s16  ;;  %v5683_v53 = vsel %vm5681_vm3, %v5618_v37, %v5124_v43 }
 0x62f   :  { %v5198_v31 = vpop.permute.xlu0 %5197  ;;  %5397 = vrot.lane.b32.xlu1 %v13065_v55, %s7870_s28 }
 0x630   :  { %v5748_v0 = vsel %vm5746_vm5, %v5683_v53, %v5198_v31 }
 0x631   :  { %v5813_v9 = vsel %vm5811_vm6, %v5748_v0, %v5292_v62  ;;  %v5056_v40 = vpop.permute.xlu1 %5055  ;;  %v5428_v62 = vsel %vm1547_vm4, %v12806_v17, %v12888_v45 }
 0x632   :  { %5395 = vrot.lane.b32.xlu2 %v12969_v32, %s7870_s28  ;;  %v17412_v32 = vld [vmem:[#allocation76_spill] sm:$0xff]  ;;  %v5492_v22 = vsel %vm1677_vm7, %v5428_v62, %v13151_v46 }
 0x633   :  { %v5556_v37 = vsel %vm1807_vm9, %v5492_v22, %v4962_v58 }
 0x634   :  { %v5362_v8 = vpop.permute.xlu2 %5361  ;;  %v5620_v31 = vsel %vm1937_vm10, %v5556_v37, %v5056_v40 }
 0x635   :  { %v5878_v63 = vsel %vm5876_vm8, %v5813_v9, %v5362_v8  ;;  %5327 = vrot.lane.b32.xlu0 %v17412_v32, %s7867_s3 }
 0x636   :  { %7540 = vmatmul.msk.bf16.vlgmr.msra.gmra.mxu1 %vm5977_vm11, %v5878_v63 }
 0x637   :  { %v13350_v43 = vpop.permute.xlu0 %4975  ;;  %5209 = vrot.lane.b32.xlu1 %v13139_v41, %s7868_s30 }
 0x639   :  { %v5294_v23 = vpop.permute.xlu1 %5293 }
 0x63a   :  { %5207 = vrot.lane.b32.xlu2 %v13167_v48, %s7868_s30 }
 0x63c   :  { %v5126_v5 = vpop.permute.xlu2 %5125 }
 0x63d   :  { %5135 = vrot.lane.b32.xlu0 %v12866_v10, %s7869_s27  ;;  %v5685_v8 = vsel %vm5681_vm3, %v5620_v31, %v5126_v5  ;;  %v13383_v5 = vld [vmem:[#allocation2 + $0x114] sm:$0xff] }
 0x63f   :  { %v5200_v53 = vpop.permute.xlu0 %5199  ;;  %4997 = vrot.lane.b32.xlu1 %v12636_v16, %s7865_s18 }
 0x640   :  { %v5750_v17 = vsel %vm5746_vm5, %v5685_v8, %v5200_v53 }
 0x641   :  { %v5815_v45 = vsel %vm5811_vm6, %v5750_v17, %v5294_v23  ;;  %v5128_v58 = vpop.permute.xlu1 %5127  ;;  %v17413_v23 = vld [vmem:[#allocation125_spill] sm:$0xff] }
 0x642   :  { %4995 = vrot.lane.b32.xlu2 %v12703_v13, %s7865_s18  ;;  %v5430_v13 = vsel %vm1547_vm4, %v12900_v11, %v12932_v28 }
 0x643   :  { %v5494_v10 = vsel %vm1677_vm7, %v5430_v13, %v13159_v52  ;;  %v17415_v13 = vld [vmem:[#allocation126_spill] sm:$0xff] }
 0x644   :  { %v5364_v0 = vpop.permute.xlu2 %5363  ;;  %v5558_v63 = vsel %vm1807_vm9, %v5494_v10, %v13286_v36 }
 0x645   :  { %v5880_v46 = vsel %vm5876_vm8, %v5815_v45, %v5364_v0  ;;  %5373 = vrot.lane.b32.xlu0 %v12959_v38, %s7870_s28  ;;  %v17414_v0 = vld [vmem:[#allocation15_spill] sm:$0xff] }
 0x646   :  { %7541 = vmatmul.msk.bf16.gmra.mxu1 %vm5977_vm11, %v5880_v46 }
 0x647   :  { %v5058_v9 = vpop.permute.xlu0 %5057  ;;  %5235 = vrot.lane.b32.xlu1 %v13383_v5, %s7868_s30 }
 0x648   :  { %v5622_v62 = vsel %vm1937_vm10, %v5558_v63, %v5058_v9  ;;  %v5458_v63 = vsel %vm1547_vm4, %v12706_v3, %v13050_v15 }
 0x649   :  { %v5366_v22 = vpop.permute.xlu1 %5365  ;;  %v5687_v11 = vsel %vm5681_vm3, %v5622_v62, %v5128_v58 }
 0x64a   :  { %5233 = vrot.lane.b32.xlu2 %v12636_v16, %s7868_s30 }
 0x64c   :  { %v5202_v40 = vpop.permute.xlu2 %5201 }
 0x64d   :  { %5161 = vrot.lane.b32.xlu0 %v13065_v55, %s7869_s27  ;;  %v5752_v28 = vsel %vm5746_vm5, %v5687_v11, %v5202_v40  ;;  %v5432_v55 = vsel %vm1547_vm4, %v12848_v57, %v12907_v51  ;;  %v17416_v11 = vld [vmem:[#allocation105_spill] sm:$0xff] }
 0x64e   :  { %v5496_v53 = vsel %vm1677_vm7, %v5432_v55, %v13171_v50 }
 0x64f   :  { %v5296_v16 = vpop.permute.xlu0 %5295  ;;  %5067 = vrot.lane.b32.xlu1 %v17413_v23, %s7863_s16  ;;  %v5560_v17 = vsel %vm1807_vm9, %v5496_v53, %v13295_v30 }
 0x650   :  { %v5817_v52 = vsel %vm5811_vm6, %v5752_v28, %v5296_v16 }
 0x651   :  { %v5882_v37 = vsel %vm5876_vm8, %v5817_v52, %v5366_v22  ;;  %v5204_v31 = vpop.permute.xlu1 %5203 }
 0x652   :  { %5065 = vrot.lane.b32.xlu2 %v17410_v25, %s7863_s16 }
 0x654   :  { %v5060_v36 = vpop.permute.xlu2 %5059 }
 0x655   :  { %5399 = vrot.lane.b32.xlu0 %v13008_v7, %s7870_s28  ;;  %v5624_v45 = vsel %vm1937_vm10, %v5560_v17, %v5060_v36 }
 0x656   :  { %7542 = vmatmul.msk.bf16.gmra.mxu1 %vm5977_vm11, %v5882_v37  ;;  %v17418_v37 = vld [vmem:[#allocation11_spill] sm:$0xff] }
 0x657   :  { %v5130_v25 = vpop.permute.xlu0 %5129  ;;  %5305 = vrot.lane.b32.xlu1 %v17414_v0, %s7867_s3 }
 0x658   :  { %v5689_v58 = vsel %vm5681_vm3, %v5624_v45, %v5130_v25 }
 0x659   :  { %v4992_v46 = vpop.permute.xlu1 %4991  ;;  %v5754_v57 = vsel %vm5746_vm5, %v5689_v58, %v5204_v31  ;;  %v5434_v31 = vsel %vm1547_vm4, %v12833_v2, %v17418_v37 }
 0x65a   :  { %5303 = vrot.lane.b32.xlu2 %v17413_v23, %s7867_s3  ;;  %v17417_v23 = vld [vmem:[#allocation97_spill] sm:$0xff]  ;;  %v5498_v55 = vsel %vm1677_vm7, %v5434_v31, %v13163_v61  ;;  %v17422_v31 = vld [vmem:[#allocation114_spill] sm:$0xff] }
 0x65b   :  { %v17419_v61 = vld [vmem:[#allocation25_spill] sm:$0xff] }
 0x65c   :  { %v5298_v8 = vpop.permute.xlu2 %5297 }
 0x65d   :  { %5211 = vrot.lane.b32.xlu0 %v12897_v44, %s7868_s30  ;;  %v5819_v30 = vsel %vm5811_vm6, %v5754_v57, %v5298_v8  ;;  %v5522_v44 = vsel %vm1677_vm7, %v5458_v63, %v13213_v54  ;;  %v7785_v57 = vld [vmem:[#allocation2 + $0xe4] sm:$0xff] }
 0x65f   :  { %v5368_v51 = vpop.permute.xlu0 %5367  ;;  %5093 = vrot.lane.b32.xlu1 %v17415_v13, %s7863_s16 }
 0x660   :  { %v5884_v10 = vsel %vm5876_vm8, %v5819_v30, %v5368_v51  ;;  %v5460_v51 = vsel %vm1547_vm4, %v7785_v57, %v13072_v20  ;;  %v17423_v57 = vld [vmem:[#allocation136_spill] sm:$0xff] }
 0x661   :  { %v5230_v9 = vpop.permute.xlu1 %5229 }
 0x662   :  { %5091 = vrot.lane.b32.xlu2 %v17412_v32, %s7863_s16  ;;  %v5586_v32 = vsel %vm1807_vm9, %v5522_v44, %v4992_v46 }
 0x664   :  { %v5086_v50 = vpop.permute.xlu2 %5085 }
 0x665   :  { %4999 = vrot.lane.b32.xlu0 %v13383_v5, %s7865_s18  ;;  %v5650_v22 = vsel %vm1937_vm10, %v5586_v32, %v5086_v50 }
 0x666   :  { %7543 = vmatmul.msk.bf16.gmra.mxu1 %vm5977_vm11, %v5884_v10 }
 0x667   :  { %v5156_v40 = vpop.permute.xlu0 %5155  ;;  %5331 = vrot.lane.b32.xlu1 %v17416_v11, %s7867_s3 }
 0x668   :  { %v5715_v3 = vsel %vm5681_vm3, %v5650_v22, %v5156_v40  ;;  %v17421_v22 = vld [vmem:[#allocation92_spill] sm:$0xff] }
 0x669   :  { %v5062_v15 = vpop.permute.xlu1 %5061  ;;  %v5780_v54 = vsel %vm5746_vm5, %v5715_v3, %v5230_v9 }
 0x66a   :  { %5329 = vrot.lane.b32.xlu2 %v17415_v13, %s7867_s3  ;;  %v5524_v13 = vsel %vm1677_vm7, %v5460_v51, %v13221_v21 }
 0x66c   :  { %v5324_v62 = vpop.permute.xlu2 %5323 }
 0x66d   :  { %5237 = vrot.lane.b32.xlu0 %v12753_v19, %s7868_s30  ;;  %v5845_v28 = vsel %vm5811_vm6, %v5780_v54, %v5324_v62 }
 0x66f   :  { %v5394_v16 = vpop.permute.xlu0 %5393  ;;  %5139 = vrot.lane.b32.xlu1 %v17417_v23, %s7869_s27 }
 0x670   :  { %v5910_v52 = vsel %vm5876_vm8, %v5845_v28, %v5394_v16 }
 0x671   :  { %7556 = vmatmul.msk.bf16.vlgmr.msra.gmra.mxu2 %vm5977_vm11, %v5910_v52  ;;  %v5300_v25 = vpop.permute.xlu1 %5299 }
 0x672   :  { %5137 = vrot.lane.b32.xlu2 %v12959_v38, %s7869_s27  ;;  %v5562_v38 = vsel %vm1807_vm9, %v5498_v55, %v13311_v1  ;;  %v7787_v55 = vld [vmem:[#allocation2 + $0xf0] sm:$0xff] }
 0x673   :  { %v5626_v53 = vsel %vm1937_vm10, %v5562_v38, %v5062_v15 }
 0x674   :  { %v5132_v36 = vpop.permute.xlu2 %5131 }
 0x675   :  { %5069 = vrot.lane.b32.xlu0 %v17414_v0, %s7863_s16  ;;  %v5691_v2 = vsel %vm5681_vm3, %v5626_v53, %v5132_v36  ;;  %v17420_v0 = vld [vmem:[#allocation55_spill] sm:$0xff] }
 0x677   :  { %v5206_v8 = vpop.permute.xlu0 %5205  ;;  %5377 = vrot.lane.b32.xlu1 %v17419_v61, %s7870_s28 }
 0x678   :  { %v5756_v45 = vsel %vm5746_vm5, %v5691_v2, %v5206_v8 }
 0x679   :  { %v5821_v46 = vsel %vm5811_vm6, %v5756_v45, %v5300_v25  ;;  %v5088_v58 = vpop.permute.xlu1 %5087  ;;  %v13521_v25 = vld [vmem:[#allocation2 + $0x12c] sm:$0xff] }
 0x67a   :  { %5375 = vrot.lane.b32.xlu2 %v17417_v23, %s7870_s28 }
 0x67c   :  { %v5370_v17 = vpop.permute.xlu2 %5369 }
 0x67d   :  { %v5886_v1 = vsel %vm5876_vm8, %v5821_v46, %v5370_v17  ;;  %5307 = vrot.lane.b32.xlu0 %v17420_v0, %s7867_s3 }
 0x67e   :  { %7544 = vmatmul.msk.bf16.gmra.mxu1 %vm5977_vm11, %v5886_v1 }
 0x67f   :  { %v4994_v50 = vpop.permute.xlu0 %4993  ;;  %5165 = vrot.lane.b32.xlu1 %v12996_v60, %s7869_s27 }
 0x680   :  { %v5588_v10 = vsel %vm1807_vm9, %v5524_v13, %v4994_v50  ;;  %v13549_v50 = vld [vmem:[#allocation2 + $0x84] sm:$0xff] }
 0x681   :  { %v5326_v9 = vpop.permute.xlu1 %5325  ;;  %v5652_v63 = vsel %vm1937_vm10, %v5588_v10, %v5088_v58 }
 0x682   :  { %5163 = vrot.lane.b32.xlu2 %v13008_v7, %s7869_s27 }
 0x684   :  { %v5158_v30 = vpop.permute.xlu2 %5157 }
 0x685   :  { %5095 = vrot.lane.b32.xlu0 %v17416_v11, %s7863_s16  ;;  %v5717_v20 = vsel %vm5681_vm3, %v5652_v63, %v5158_v30  ;;  %v13495_v11 = vld [vmem:[#allocation2 + $0x78] sm:$0xff] }
 0x687   :  { %v5232_v7 = vpop.permute.xlu0 %5231  ;;  %5403 = vrot.lane.b32.xlu1 %v13091_v18, %s7870_s28 }
 0x688   :  { %v5782_v21 = vsel %vm5746_vm5, %v5717_v20, %v5232_v7 }
 0x689   :  { %v5847_v32 = vsel %vm5811_vm6, %v5782_v21, %v5326_v9  ;;  %v5134_v62 = vpop.permute.xlu1 %5133 }
 0x68a   :  { %5401 = vrot.lane.b32.xlu2 %v12996_v60, %s7870_s28  ;;  %v5436_v60 = vsel %vm1547_vm4, %v12929_v34, %v12963_v49 }
 0x68b   :  { %v5500_v3 = vsel %vm1677_vm7, %v5436_v60, %v13173_v14 }
 0x68c   :  { %v5396_v44 = vpop.permute.xlu2 %5395  ;;  %v5564_v54 = vsel %vm1807_vm9, %v5500_v3, %v13299_v47 }
 0x68d   :  { %v5912_v40 = vsel %vm5876_vm8, %v5847_v32, %v5396_v44  ;;  %5333 = vrot.lane.b32.xlu0 %v17421_v22, %s7867_s3  ;;  %v7790_v44 = vld [vmem:[#allocation2 + $0xfc] sm:$0xff] }
 0x68e   :  { %7557 = vmatmul.msk.bf16.gmra.mxu2 %vm5977_vm11, %v5912_v40  ;;  %v5464_v21 = vsel %vm1547_vm4, %v7790_v44, %v13077_v59 }
 0x68f   :  { %v5064_v15 = vpop.permute.xlu0 %5063  ;;  %5141 = vrot.lane.b32.xlu1 %v17419_v61, %s7869_s27  ;;  %v5528_v32 = vsel %vm1677_vm7, %v5464_v21, %v13225_v12  ;;  %v17434_v21 = vld [vmem:[#allocation100_spill] sm:$0xff] }
 0x690   :  { %v5628_v28 = vsel %vm1937_vm10, %v5564_v54, %v5064_v15 }
 0x691   :  { %v5372_v36 = vpop.permute.xlu1 %5371  ;;  %v5693_v34 = vsel %vm5681_vm3, %v5628_v28, %v5134_v62  ;;  %v17424_v62 = vld [vmem:[#allocation70_spill] sm:$0xff] }
 0x692   :  { %5213 = vrot.lane.b32.xlu2 %v13495_v11, %s7868_s30 }
 0x694   :  { %v5208_v16 = vpop.permute.xlu2 %5207 }
 0x695   :  { %5071 = vrot.lane.b32.xlu0 %v17420_v0, %s7863_s16  ;;  %v5758_v14 = vsel %vm5746_vm5, %v5693_v34, %v5208_v16  ;;  %v5438_v0 = vsel %vm1547_vm4, %v12871_v26, %v12945_v4 }
 0x696   :  { %v5502_v51 = vsel %vm1677_vm7, %v5438_v0, %v13183_v27 }
 0x697   :  { %v5302_v49 = vpop.permute.xlu0 %5301  ;;  %5379 = vrot.lane.b32.xlu1 %v12986_v6, %s7870_s28  ;;  %v5566_v13 = vsel %vm1807_vm9, %v5502_v51, %v13313_v33  ;;  %v13629_v51 = vld [vmem:[#allocation2 + $0x144] sm:$0xff] }
 0x698   :  { %v5823_v47 = vsel %vm5811_vm6, %v5758_v14, %v5302_v49  ;;  %v17426_v14 = vld [vmem:[#allocation127_spill] sm:$0xff] }
 0x699   :  { %v5888_v23 = vsel %vm5876_vm8, %v5823_v47, %v5372_v36  ;;  %v5160_v37 = vpop.permute.xlu1 %5159 }
 0x69a   :  { %5001 = vrot.lane.b32.xlu2 %v12753_v19, %s7865_s18  ;;  %7545 = vmatmul.msk.bf16.gmra.mxu1 %vm5977_vm11, %v5888_v23  ;;  %v5462_v19 = vsel %vm1547_vm4, %v7787_v55, %v13057_v42  ;;  %v13604_v55 = vld [vmem:[#allocation2 + $0x90] sm:$0xff] }
 0x69b   :  { %v5526_v38 = vsel %vm1677_vm7, %v5462_v19, %v13231_v24 }
 0x69c   :  { %v4996_v52 = vpop.permute.xlu2 %4995 }
 0x69d   :  { %5309 = vrot.lane.b32.xlu0 %v17422_v31, %s7867_s3  ;;  %v5590_v8 = vsel %vm1807_vm9, %v5526_v38, %v4996_v52 }
 0x69f   :  { %v5090_v53 = vpop.permute.xlu0 %5089  ;;  %5167 = vrot.lane.b32.xlu1 %v13091_v18, %s7869_s27 }
 0x6a0   :  { %v5654_v17 = vsel %vm1937_vm10, %v5590_v8, %v5090_v53 }
 0x6a1   :  { %v5398_v45 = vpop.permute.xlu1 %5397  ;;  %v5719_v42 = vsel %vm5681_vm3, %v5654_v17, %v5160_v37  ;;  %v7793_v17 = vld [vmem:[#allocation2 + $0x108] sm:$0xff] }
 0x6a2   :  { %5239 = vrot.lane.b32.xlu2 %v13521_v25, %s7868_s30 }
 0x6a4   :  { %v5234_v2 = vpop.permute.xlu2 %5233 }
 0x6a5   :  { %5097 = vrot.lane.b32.xlu0 %v17421_v22, %s7863_s16  ;;  %v5784_v24 = vsel %vm5746_vm5, %v5719_v42, %v5234_v2  ;;  %v13576_v22 = vld [vmem:[#allocation2 + $0x138] sm:$0xff] }
 0x6a7   :  { %v5328_v61 = vpop.permute.xlu0 %5327  ;;  %5405 = vrot.lane.b32.xlu1 %v13035_v29, %s7870_s28 }
 0x6a8   :  { %v5849_v1 = vsel %vm5811_vm6, %v5784_v24, %v5328_v61  ;;  %v17429_v24 = vld [vmem:[#allocation47_spill] sm:$0xff] }
 0x6a9   :  { %v5914_v18 = vsel %vm5876_vm8, %v5849_v1, %v5398_v45  ;;  %v5210_v58 = vpop.permute.xlu1 %5209  ;;  %v17428_v45 = vld [vmem:[#allocation103_spill] sm:$0xff]  ;;  %v17430_v1 = vld [vmem:[#allocation128_spill] sm:$0xff] }
 0x6aa   :  { %4977 = vrot.lane.b32.xlu2 %v13495_v11, %s7865_s18  ;;  %7558 = vmatmul.msk.bf16.gmra.mxu2 %vm5977_vm11, %v5914_v18  ;;  %v5466_v42 = vsel %vm1547_vm4, %v7793_v17, %v17428_v45  ;;  %v17440_v17 = vld [vmem:[#allocation69_spill] sm:$0xff] }
 0x6ac   :  { %v5066_v46 = vpop.permute.xlu2 %5065 }
 0x6ad   :  { %5335 = vrot.lane.b32.xlu0 %v17423_v57, %s7867_s3  ;;  %v5630_v10 = vsel %vm1937_vm10, %v5566_v13, %v5066_v46 }
 0x6af   :  { %v5136_v30 = vpop.permute.xlu0 %5135  ;;  %5143 = vrot.lane.b32.xlu1 %v12986_v6, %s7869_s27 }
 0x6b0   :  { %v5695_v26 = vsel %vm5681_vm3, %v5630_v10, %v5136_v30 }
 0x6b1   :  { %v4998_v4 = vpop.permute.xlu1 %4997  ;;  %v5760_v27 = vsel %vm5746_vm5, %v5695_v26, %v5210_v58 }
 0x6b2   :  { %5215 = vrot.lane.b32.xlu2 %v13549_v50, %s7868_s30  ;;  %v5592_v40 = vsel %vm1807_vm9, %v5528_v32, %v4998_v4 }
 0x6b4   :  { %v5304_v9 = vpop.permute.xlu2 %5303 }
 0x6b5   :  { %5073 = vrot.lane.b32.xlu0 %v17422_v31, %s7863_s16  ;;  %v5825_v33 = vsel %vm5811_vm6, %v5760_v27, %v5304_v9  ;;  %v17427_v31 = vld [vmem:[#allocation74_spill] sm:$0xff] }
 0x6b7   :  { %v5374_v63 = vpop.permute.xlu0 %5373  ;;  %5381 = vrot.lane.b32.xlu1 %v12935_v56, %s7870_s28 }
 0x6b8   :  { %v5890_v20 = vsel %vm5876_vm8, %v5825_v33, %v5374_v63  ;;  %v17432_v63 = vld [vmem:[#allocation50_spill] sm:$0xff] }
 0x6b9   :  { %7546 = vmatmul.msk.bf16.gmra.mxu1 %vm5977_vm11, %v5890_v20  ;;  %v5236_v6 = vpop.permute.xlu1 %5235  ;;  %v5442_v33 = vsel %vm1547_vm4, %v13139_v41, %v17432_v63  ;;  %v17435_v41 = vld [vmem:[#allocation85_spill] sm:$0xff]  ;;  %v7799_v63 = vld [vmem:[#allocation2 + $0x120] sm:$0xff] }
 0x6ba   :  { %5003 = vrot.lane.b32.xlu2 %v13521_v25, %s7865_s18 }
 0x6bc   :  { %v5092_v7 = vpop.permute.xlu2 %5091 }
 0x6bd   :  { %5311 = vrot.lane.b32.xlu0 %v17424_v62, %s7867_s3  ;;  %v5656_v15 = vsel %vm1937_vm10, %v5592_v40, %v5092_v7  ;;  %v17433_v7 = vld [vmem:[#allocation84_spill] sm:$0xff] }
 0x6bf   :  { %v5162_v60 = vpop.permute.xlu0 %5161  ;;  %5169 = vrot.lane.b32.xlu1 %v13035_v29, %s7869_s27  ;;  %v17425_v29 = vld [vmem:[#allocation34_spill] sm:$0xff] }
 0x6c0   :  { %v5721_v59 = vsel %vm5681_vm3, %v5656_v15, %v5162_v60  ;;  %v5440_v49 = vsel %vm1547_vm4, %v13167_v48, %v17425_v29  ;;  %v13657_v60 = vld [vmem:[#allocation2 + $0x9c] sm:$0xff] }
 0x6c1   :  { %v5068_v12 = vpop.permute.xlu1 %5067  ;;  %v5786_v54 = vsel %vm5746_vm5, %v5721_v59, %v5236_v6  ;;  %v5504_v52 = vsel %vm1677_vm7, %v5440_v49, %v17426_v14 }
 0x6c2   :  { %5241 = vrot.lane.b32.xlu2 %v13576_v22, %s7868_s30  ;;  %v5568_v23 = vsel %vm1807_vm9, %v5504_v52, %v13324_v35  ;;  %v17438_v52 = vld [vmem:[#allocation81_spill] sm:$0xff] }
 0x6c3   :  { %v5632_v37 = vsel %vm1937_vm10, %v5568_v23, %v5068_v12 }
 0x6c4   :  { %v5330_v3 = vpop.permute.xlu2 %5329 }
 0x6c5   :  { %5099 = vrot.lane.b32.xlu0 %v17423_v57, %s7863_s16  ;;  %v5851_v28 = vsel %vm5811_vm6, %v5786_v54, %v5330_v3  ;;  %v17431_v57 = vld [vmem:[#allocation140_spill] sm:$0xff] }
 0x6c7   :  { %v5400_v16 = vpop.permute.xlu0 %5399  ;;  %5407 = vrot.lane.b32.xlu1 %v13023_v39, %s7870_s28 }
 0x6c8   :  { %v5916_v34 = vsel %vm5876_vm8, %v5851_v28, %v5400_v16  ;;  %v17436_v16 = vld [vmem:[#allocation28_spill] sm:$0xff] }
 0x6c9   :  { %7559 = vmatmul.msk.bf16.gmra.mxu2 %vm5977_vm11, %v5916_v34  ;;  %v5306_v47 = vpop.permute.xlu1 %5305  ;;  %v5468_v28 = vsel %vm1547_vm4, %v13383_v5, %v17436_v16  ;;  %v17439_v5 = vld [vmem:[#allocation29_spill] sm:$0xff] }
 0x6ca   :  { %4979 = vrot.lane.b32.xlu2 %v13549_v50, %s7865_s18 }
 0x6cc   :  { %v5138_v36 = vpop.permute.xlu2 %5137 }
 0x6cd   :  { %5337 = vrot.lane.b32.xlu0 %v17427_v31, %s7867_s3  ;;  %v5697_v19 = vsel %vm5681_vm3, %v5632_v37, %v5138_v36  ;;  %v17437_v36 = vld [vmem:[#allocation66_spill] sm:$0xff] }
 0x6ce   :  { %v5532_v34 = vsel %vm1677_vm7, %v5468_v28, %v17437_v36  ;;  %v17448_v36 = vld [vmem:[#allocation118_spill] sm:$0xff] }
 0x6cf   :  { %v5212_v48 = vpop.permute.xlu0 %5211  ;;  %5145 = vrot.lane.b32.xlu1 %v12935_v56, %s7869_s27  ;;  %v5530_v56 = vsel %vm1677_vm7, %v5466_v42, %v17429_v24  ;;  %v17441_v42 = vld [vmem:[#allocation111_spill] sm:$0xff] }
 0x6d0   :  { %v5762_v53 = vsel %vm5746_vm5, %v5697_v19, %v5212_v48 }
 0x6d1   :  { %v5827_v35 = vsel %vm5811_vm6, %v5762_v53, %v5306_v47  ;;  %v5094_v2 = vpop.permute.xlu1 %5093 }
 0x6d2   :  { %5217 = vrot.lane.b32.xlu2 %v13604_v55, %s7868_s30 }
 0x6d4   :  { %v5376_v38 = vpop.permute.xlu2 %5375 }
 0x6d5   :  { %v5892_v8 = vsel %vm5876_vm8, %v5827_v35, %v5376_v38  ;;  %5075 = vrot.lane.b32.xlu0 %v17424_v62, %s7863_s16 }
 0x6d6   :  { %7547 = vmatmul.msk.bf16.gmra.mxu1 %vm5977_vm11, %v5892_v8 }
 0x6d7   :  { %v5000_v61 = vpop.permute.xlu0 %4999  ;;  %5383 = vrot.lane.b32.xlu1 %v17430_v1, %s7870_s28 }
 0x6d8   :  { %v5594_v18 = vsel %vm1807_vm9, %v5530_v56, %v5000_v61 }
 0x6d9   :  { %v5332_v58 = vpop.permute.xlu1 %5331  ;;  %v5658_v0 = vsel %vm1937_vm10, %v5594_v18, %v5094_v2  ;;  %v7797_v2 = vld [vmem:[#allocation2 + $0x6c] sm:$0xff] }
 0x6da   :  { %5005 = vrot.lane.b32.xlu2 %v13576_v22, %s7865_s18  ;;  %v5444_v45 = vsel %vm1547_vm4, %v7797_v2, %v17440_v17 }
 0x6db   :  { %v5508_v61 = vsel %vm1677_vm7, %v5444_v45, %v17441_v42 }
 0x6dc   :  { %v5164_v46 = vpop.permute.xlu2 %5163 }
 0x6dd   :  { %5313 = vrot.lane.b32.xlu0 %v17431_v57, %s7867_s3  ;;  %v5723_v30 = vsel %vm5681_vm3, %v5658_v0, %v5164_v46 }
 0x6df   :  { %v5238_v13 = vpop.permute.xlu0 %5237  ;;  %5171 = vrot.lane.b32.xlu1 %v13023_v39, %s7869_s27  ;;  %v5506_v39 = vsel %vm1677_vm7, %v5442_v33, %v17433_v7  ;;  %v17444_v33 = vld [vmem:[#allocation58_spill] sm:$0xff] }
 0x6e0   :  { %v5788_v9 = vsel %vm5746_vm5, %v5723_v30, %v5238_v13  ;;  %v5570_v6 = vsel %vm1807_vm9, %v5506_v39, %v13350_v43  ;;  %v13708_v13 = vld [vmem:[#allocation2 + $0xa8] sm:$0xff]  ;;  %v5470_v7 = vsel %vm1547_vm4, %v7799_v63, %v17444_v33 }
 0x6e1   :  { %v5853_v26 = vsel %vm5811_vm6, %v5788_v9, %v5332_v58  ;;  %v5140_v27 = vpop.permute.xlu1 %5139  ;;  %v17445_v39 = vld [vmem:[#allocation112_spill] sm:$0xff] }
 0x6e2   :  { %5243 = vrot.lane.b32.xlu2 %v13629_v51, %s7868_s30 }
 0x6e4   :  { %v5402_v10 = vpop.permute.xlu2 %5401 }
 0x6e5   :  { %v5918_v4 = vsel %vm5876_vm8, %v5853_v26, %v5402_v10  ;;  %5101 = vrot.lane.b32.xlu0 %v17427_v31, %s7863_s16  ;;  %v13683_v31 = vld [vmem:[#allocation2 + $0x150] sm:$0xff] }
 0x6e6   :  { %7560 = vmatmul.msk.bf16.gmra.mxu2 %vm5977_vm11, %v5918_v4 }
 0x6e7   :  { %v5070_v20 = vpop.permute.xlu0 %5069  ;;  %5409 = vrot.lane.b32.xlu1 %v17434_v21, %s7870_s28 }
 0x6e8   :  { %v5634_v32 = vsel %vm1937_vm10, %v5570_v6, %v5070_v20  ;;  %v5534_v20 = vsel %vm1677_vm7, %v5470_v7, %v17445_v39 }
 0x6e9   :  { %v5378_v40 = vpop.permute.xlu1 %5377  ;;  %v5699_v62 = vsel %vm5681_vm3, %v5634_v32, %v5140_v27  ;;  %v17446_v32 = vld [vmem:[#allocation96_spill] sm:$0xff] }
 0x6ea   :  { %4981 = vrot.lane.b32.xlu2 %v13604_v55, %s7865_s18 }
 0x6ec   :  { %v5214_v44 = vpop.permute.xlu2 %5213 }
 0x6ed   :  { %5339 = vrot.lane.b32.xlu0 %v17435_v41, %s7867_s3  ;;  %v5764_v43 = vsel %vm5746_vm5, %v5699_v62, %v5214_v44 }
 0x6ef   :  { %v5308_v3 = vpop.permute.xlu0 %5307  ;;  %5147 = vrot.lane.b32.xlu1 %v17430_v1, %s7869_s27  ;;  %v17442_v1 = vld [vmem:[#allocation134_spill] sm:$0xff] }
 0x6f0   :  { %v5829_v59 = vsel %vm5811_vm6, %v5764_v43, %v5308_v3  ;;  %v17447_v3 = vld [vmem:[#allocation124_spill] sm:$0xff]  ;;  %v13733_v43 = vld [vmem:[#allocation2 + $0x15c] sm:$0xff] }
 0x6f1   :  { %v5894_v12 = vsel %vm5876_vm8, %v5829_v59, %v5378_v40  ;;  %v5166_v54 = vpop.permute.xlu1 %5165 }
 0x6f2   :  { %5219 = vrot.lane.b32.xlu2 %v13657_v60, %s7868_s30  ;;  %7548 = vmatmul.msk.bf16.gmra.mxu1 %vm5977_vm11, %v5894_v12 }
 0x6f4   :  { %v5002_v15 = vpop.permute.xlu2 %5001 }
 0x6f5   :  { %5077 = vrot.lane.b32.xlu0 %v17431_v57, %s7863_s16  ;;  %v5596_v49 = vsel %vm1807_vm9, %v5532_v34, %v5002_v15  ;;  %v17443_v57 = vld [vmem:[#allocation51_spill] sm:$0xff]  ;;  %v5446_v34 = vsel %vm1547_vm4, %v13495_v11, %v17448_v36 }
 0x6f7   :  { %v5096_v29 = vpop.permute.xlu0 %5095  ;;  %5385 = vrot.lane.b32.xlu1 %v17438_v52, %s7870_s28 }
 0x6f8   :  { %v5660_v47 = vsel %vm1937_vm10, %v5596_v49, %v5096_v29  ;;  %v17449_v29 = vld [vmem:[#allocation101_spill] sm:$0xff] }
 0x6f9   :  { %v5404_v23 = vpop.permute.xlu1 %5403  ;;  %v5725_v37 = vsel %vm5681_vm3, %v5660_v47, %v5166_v54  ;;  %v5510_v49 = vsel %vm1677_vm7, %v5446_v34, %v17449_v29 }
 0x6fa   :  { %5007 = vrot.lane.b32.xlu2 %v13629_v51, %s7865_s18 }
 0x6fc   :  { %v5240_v14 = vpop.permute.xlu2 %5239 }
 0x6fd   :  { %5315 = vrot.lane.b32.xlu0 %v17439_v5, %s7867_s3  ;;  %v5790_v19 = vsel %vm5746_vm5, %v5725_v37, %v5240_v14  ;;  %v4027_v37 = vld [vmem:[#allocation2 + $0xc8] sm:$0x1] }
 0x6ff   :  { %v5334_v48 = vpop.permute.xlu0 %5333  ;;  %5173 = vrot.lane.b32.xlu1 %v17434_v21, %s7869_s27 }
 0x700   :  { %v5855_v53 = vsel %vm5811_vm6, %v5790_v19, %v5334_v48  ;;  %v5025_v19 = vunpack.c.l.b16 %v4027_v37 }
 0x701   :  { %v5920_v35 = vsel %vm5876_vm8, %v5855_v53, %v5404_v23  ;;  %v5142_v8 = vpop.permute.xlu1 %5141  ;;  %v17450_v23 = vld [vmem:[#allocation135_spill] sm:$0xff]  ;;  %v17451_v53 = vld [vmem:[#allocation57_spill] sm:$0xff] }
 0x702   :  { %5245 = vrot.lane.b32.xlu2 %v13683_v31, %s7868_s30  ;;  %7561 = vmatmul.msk.bf16.gmra.mxu2 %vm5977_vm11, %v5920_v35  ;;  %v13761_v35 = vld [vmem:[#allocation2 + $0xb4] sm:$0xff]  ;;  %v5027_v17 = vpack.c.b16 %v5025_v19, %v5025_v19 }
 0x704   :  { %v4978_v38 = vpop.permute.xlu2 %4977 }
 0x705   :  { %5103 = vrot.lane.b32.xlu0 %v17435_v41, %s7863_s16  ;;  %v5572_v56 = vsel %vm1807_vm9, %v5508_v61, %v4978_v38  ;;  %v13757_v38 = vld [vmem:[#allocation2 + $0xc0] sm:$0xff] }
 0x706   :  { %v5032_v61 = vshll.u32 %v13757_v38, 16 }
 0x707   :  { %v5072_v24 = vpop.permute.xlu0 %5071  ;;  %5411 = vrot.lane.b32.xlu1 %v17442_v1, %s7870_s28 }
 0x708   :  { %v5636_v18 = vsel %vm1937_vm10, %v5572_v56, %v5072_v24 }
 0x709   :  { %v5380_v58 = vpop.permute.xlu1 %5379  ;;  %v5701_v0 = vsel %vm5681_vm3, %v5636_v18, %v5142_v8  ;;  %v5037_v18 = vshll.u32 %v5027_v17, 16 }
 0x70a   :  { %4983 = vrot.lane.b32.xlu2 %v13657_v60, %s7865_s18 }
 0x70b   :  { %v5039_v7 = vrot.slane %v5037_v18, 1 }
 0x70c   :  { %v5216_v46 = vpop.permute.xlu2 %5215 }
 0x70d   :  { %5341 = vrot.lane.b32.xlu0 %v17443_v57, %s7867_s3  ;;  %v5766_v10 = vsel %vm5746_vm5, %v5701_v0, %v5216_v46  ;;  %v5118_v46 = vrot.slane %v5027_v17, 1  ;;  %v17452_v0 = vld [vmem:[#allocation21_spill] sm:$0xff] }
 0x70f   :  { %v5310_v30 = vpop.permute.xlu0 %5309  ;;  %5149 = vrot.lane.b32.xlu1 %v17438_v52, %s7869_s27 }
 0x710   :  { %v5831_v26 = vsel %vm5811_vm6, %v5766_v10, %v5310_v30  ;;  %v5030_v30 = vshrl.u32 %v13757_v38, 16  ;;  %v17453_v10 = vld [vmem:[#allocation129_spill] sm:$0xff] }
 0x711   :  { %v5896_v4 = vsel %vm5876_vm8, %v5831_v26, %v5380_v58  ;;  %v5168_v27 = vpop.permute.xlu1 %5167  ;;  %v5117_v58 = vrot.slane %v13757_v38, 1 }
 0x712   :  { %5221 = vrot.lane.b32.xlu2 %v13708_v13, %s7868_s30  ;;  %7549 = vmatmul.msk.bf16.gmra.mxu1 %vm5977_vm11, %v5896_v4 }
 0x713   :  { %v5119_v4 = vsel %vm845_vm1, %v5117_v58, %v5118_v46 }
 0x714   :  { %v5004_v9 = vpop.permute.xlu2 %5003 }
 0x715   :  { %5079 = vrot.lane.b32.xlu0 %v17439_v5, %s7863_s16  ;;  %v5598_v44 = vsel %vm1807_vm9, %v5534_v20, %v5004_v9  ;;  %v13787_v20 = vpop.f32.mrf.mxu1 }
 0x717   :  { %v5098_v6 = vpop.permute.xlu0 %5097  ;;  %5387 = vrot.lane.b32.xlu1 %v17446_v32, %s7870_s28 }
 0x718   :  { %v5662_v40 = vsel %vm1937_vm10, %v5598_v44, %v5098_v6 }
 0x719   :  { %v5406_v62 = vpop.permute.xlu1 %5405  ;;  %v5727_v41 = vsel %vm5681_vm3, %v5662_v40, %v5168_v27 }
 0x71a   :  { %5009 = vrot.lane.b32.xlu2 %v13683_v31, %s7865_s18 }
 0x71c   :  { %v5242_v21 = vpop.permute.xlu2 %5241 }
 0x71d   :  { %5317 = vrot.lane.b32.xlu0 %v17447_v3, %s7867_s3  ;;  %v5792_v59 = vsel %vm5746_vm5, %v5727_v41, %v5242_v21  ;;  %v13792_v21 = vld [vmem:[#allocation2 + $0x168] sm:$0xff] }
 0x71f   :  { %v5336_v15 = vpop.permute.xlu0 %5335  ;;  %5175 = vrot.lane.b32.xlu1 %v17442_v1, %s7869_s27  ;;  %v5034_v1 = vrot.slane %v5032_v61, 1 }
 0x720   :  { %v5857_v54 = vsel %vm5811_vm6, %v5792_v59, %v5336_v15  ;;  %v13802_v59 = vpop.f32.mrf.mxu1 }
 0x721   :  { %v5922_v16 = vsel %vm5876_vm8, %v5857_v54, %v5406_v62  ;;  %v5144_v28 = vpop.permute.xlu1 %5143  ;;  %v5035_v33 = vor.u32 %v5034_v1, %v5030_v30 }
 0x722   :  { %5247 = vrot.lane.b32.xlu2 %v13733_v43, %s7868_s30  ;;  %7562 = vmatmul.msk.bf16.gmra.mxu2 %vm5977_vm11, %v5922_v16  ;;  %v17455_v16 = vld [vmem:[#allocation120_spill] sm:$0xff] }
 0x723   :  { %v5040_v44 = vsel %vm396_vm0, %v5035_v33, %v5039_v7 }
 0x724   :  { %v4980_v12 = vpop.permute.xlu2 %4979 }
 0x725   :  { %5105 = vrot.lane.b32.xlu0 %v17443_v57, %s7863_s16  ;;  %v5574_v52 = vsel %vm1807_vm9, %v5510_v49, %v4980_v12  ;;  %v5472_v57 = vsel %vm1547_vm4, %v13521_v25, %v17452_v0  ;;  %v17454_v12 = vld [vmem:[#allocation117_spill] sm:$0xff]  ;;  %v17456_v49 = vld [vmem:[#allocation12_spill] sm:$0xff] }
 0x726   :  { %v5536_v9 = vsel %vm1677_vm7, %v5472_v57, %v17453_v10  ;;  %v5448_v54 = vsel %vm1547_vm4, %v13549_v50, %v17454_v12  ;;  %v17460_v57 = vld [vmem:[#allocation71_spill] sm:$0xff] }
 0x727   :  { %v5074_v14 = vpop.permute.xlu0 %5073  ;;  %5413 = vrot.lane.b32.xlu1 %v17450_v23, %s7870_s28  ;;  %v5474_v30 = vsel %vm1547_vm4, %v13576_v22, %v17460_v57 }
 0x728   :  { %v5638_v5 = vsel %vm1937_vm10, %v5574_v52, %v5074_v14  ;;  %v2877_v14 = vld [vmem:[#allocation2 + $0xcc] sm:$0x1]  ;;  %v2987_v52 = vld [vmem:[#allocation2 + $0xd4] sm:$0x1] }
 0x729   :  { %v5382_v48 = vpop.permute.xlu1 %5381  ;;  %v5703_v11 = vsel %vm5681_vm3, %v5638_v5, %v5144_v28  ;;  %v5512_v28 = vsel %vm1677_vm7, %v5448_v54, %v17455_v16  ;;  %v2878_v50 = vsel %vm9638_vm14, 0, %v2877_v14  ;;  %v2988_v5 = vsel %vm9664_vm2, 0, %v2987_v52  ;;  %v17463_v14 = vld [vmem:[#allocation42_spill] sm:$0xff] }
 0x72a   :  { %4985 = vrot.lane.b32.xlu2 %v13708_v13, %s7865_s18  ;;  %2879 = vst [vmem:[#allocation2 + $0xcc] sm:$0x1] %v2878_v50 }
 0x72b   :  { %2989 = vst [vmem:[#allocation2 + $0xd4] sm:$0x1] %v2988_v5 }
 0x72c   :  { %v5218_v47 = vpop.permute.xlu2 %5217 }
 0x72d   :  { %5343 = vrot.lane.b32.xlu0 %v17451_v53, %s7867_s3  ;;  %v5768_v2 = vsel %vm5746_vm5, %v5703_v11, %v5218_v47  ;;  %v17459_v11 = vld [vmem:[#allocation93_spill] sm:$0xff] }
 0x72f   :  { %v5312_v8 = vpop.permute.xlu0 %5311  ;;  %5151 = vrot.lane.b32.xlu1 %v17446_v32, %s7869_s27 }
 0x730   :  { %v5833_v42 = vsel %vm5811_vm6, %v5768_v2, %v5312_v8 }
 0x731   :  { %v5898_v24 = vsel %vm5876_vm8, %v5833_v42, %v5382_v48  ;;  %v5170_v56 = vpop.permute.xlu1 %5169  ;;  %v7690_v61 = vld [vmem:[#allocation2 + $0xcc] sm:$0xff] }
 0x732   :  { %5223 = vrot.lane.b32.xlu2 %v13761_v35, %s7868_s30  ;;  %7550 = vmatmul.msk.bf16.gmra.mxu1 %vm5977_vm11, %v5898_v24  ;;  %v5268_v1 = vshrl.u32 %v7690_v61, 16  ;;  %v5270_v18 = vshll.u32 %v7690_v61, 16  ;;  %v5355_v10 = vrot.slane %v7690_v61, 1 }
 0x734   :  { %v5006_v45 = vpop.permute.xlu2 %5005  ;;  %v5272_v0 = vrot.slane %v5270_v18, 1 }
 0x735   :  { %5081 = vrot.lane.b32.xlu0 %v17447_v3, %s7863_s16  ;;  %v5600_v27 = vsel %vm1807_vm9, %v5536_v9, %v5006_v45  ;;  %v17461_v9 = vld [vmem:[#allocation59_spill] sm:$0xff] }
 0x737   :  { %v5100_v26 = vpop.permute.xlu0 %5099  ;;  %5389 = vrot.lane.b32.xlu1 %v5119_v4, %s7870_s28 }
 0x738   :  { %v5664_v25 = vsel %vm1937_vm10, %v5600_v27, %v5100_v26  ;;  %v5538_v26 = vsel %vm1677_vm7, %v5474_v30, %v17461_v9  ;;  %v5273_v27 = vor.u32 %v5272_v0, %v5268_v1 }
 0x739   :  { %v5408_v39 = vpop.permute.xlu1 %5407  ;;  %v5729_v6 = vsel %vm5681_vm3, %v5664_v25, %v5170_v56  ;;  %v4030_v56 = vld [vmem:[#allocation2 + $0xd4] sm:$0x1] }
 0x73a   :  { %5011 = vrot.lane.b32.xlu2 %v13733_v43, %s7865_s18  ;;  %v5263_v46 = vunpack.c.l.b16 %v4030_v56  ;;  %v17466_v56 = vld [vmem:[#allocation14_spill] sm:$0xff] }
 0x73c   :  { %v5244_v63 = vpop.permute.xlu2 %5243  ;;  %v5265_v58 = vpack.c.b16 %v5263_v46, %v5263_v46  ;;  %v17467_v46 = vld [vmem:[#allocation33_spill] sm:$0xff] }
 0x73d   :  { %5319 = vrot.lane.b32.xlu0 %v5040_v44, %s7867_s3  ;;  %v5794_v40 = vsel %vm5746_vm5, %v5729_v6, %v5244_v63 }
 0x73e   :  { %v5275_v63 = vshll.u32 %v5265_v58, 16  ;;  %v5356_v33 = vrot.slane %v5265_v58, 1 }
 0x73f   :  { %v5338_v32 = vpop.permute.xlu0 %5337  ;;  %5177 = vrot.lane.b32.xlu1 %v17450_v23, %s7869_s27  ;;  %v13946_v23 = vld [vmem:[#allocation2 + $0x18c] sm:$0xff] }
 0x740   :  { %v5859_v41 = vsel %vm5811_vm6, %v5794_v40, %v5338_v32  ;;  %v5357_v22 = vsel %vm845_vm1, %v5355_v10, %v5356_v33  ;;  %v4081_v10 = vld [vmem:[#allocation2 + $0x1a0] sm:$0x1] }
 0x741   :  { %v5924_v3 = vsel %vm5876_vm8, %v5859_v41, %v5408_v39  ;;  %v5146_v15 = vpop.permute.xlu1 %5145  ;;  %v13850_v41 = vld [vmem:[#allocation2 + $0x174] sm:$0xff]  ;;  %v13907_v33 = vld [vmem:[#allocation2 + $0x180] sm:$0xff] }
 0x742   :  { %5249 = vrot.lane.b32.xlu2 %v13792_v21, %s7868_s30  ;;  %7563 = vmatmul.msk.bf16.gmra.mxu2 %vm5977_vm11, %v5924_v3 }
 0x744   :  { %v4982_v62 = vpop.permute.xlu2 %4981 }
 0x745   :  { %5107 = vrot.lane.b32.xlu0 %v17451_v53, %s7863_s16  ;;  %v5576_v34 = vsel %vm1807_vm9, %v5512_v28, %v4982_v62  ;;  %v13826_v53 = vpop.f32.mrf.mxu1 }
 0x747   :  { %v5076_v36 = vpop.permute.xlu0 %5075  ;;  %5415 = vrot.lane.b32.xlu1 %v17456_v49, %s7870_s28 }
 0x748   :  { %v5640_v47 = vsel %vm1937_vm10, %v5576_v34, %v5076_v36  ;;  %v17462_v34 = vld [vmem:[#allocation108_spill] sm:$0xff] }
 0x749   :  { %v5384_v48 = vpop.permute.xlu1 %5383  ;;  %v5705_v19 = vsel %vm5681_vm3, %v5640_v47, %v5146_v15 }
 0x74a   :  { %4987 = vrot.lane.b32.xlu2 %v13761_v35, %s7865_s18 }
 0x74c   :  { %v5220_v29 = vpop.permute.xlu2 %5219 }
 0x74d   :  { %5345 = vrot.lane.b32.xlu0 %v17459_v11, %s7867_s3  ;;  %v5770_v2 = vsel %vm5746_vm5, %v5705_v19, %v5220_v29  ;;  %v13842_v39 = vpop.f32.mrf.mxu1  ;;  %v5450_v29 = vsel %vm1547_vm4, %v13604_v55, %v17462_v34  ;;  %v17464_v19 = vld [vmem:[#allocation107_spill] sm:$0xff]  ;;  %v17465_v55 = vld [vmem:[#allocation62_spill] sm:$0xff] }
 0x74e   :  { %v5514_v52 = vsel %vm1677_vm7, %v5450_v29, %v17463_v14  ;;  %v17471_v29 = vld [vmem:[#allocation138_spill] sm:$0xff] }
 0x74f   :  { %v5314_v8 = vpop.permute.xlu0 %5313  ;;  %5153 = vrot.lane.b32.xlu1 %v5119_v4, %s7869_s27 }
 0x750   :  { %v5835_v45 = vsel %vm5811_vm6, %v5770_v2, %v5314_v8 }
 0x751   :  { %v5900_v42 = vsel %vm5876_vm8, %v5835_v45, %v5384_v48  ;;  %v5172_v24 = vpop.permute.xlu1 %5171 }
 0x752   :  { %5225 = vrot.lane.b32.xlu2 %v13757_v38, %s7868_s30  ;;  %7551 = vmatmul.msk.bf16.gmra.mxu1 %vm5977_vm11, %v5900_v42 }
 0x754   :  { %v5008_v17 = vpop.permute.xlu2 %5007 }
 0x755   :  { %5083 = vrot.lane.b32.xlu0 %v5040_v44, %s7863_s16  ;;  %v5602_v7 = vsel %vm1807_vm9, %v5538_v26, %v5008_v17  ;;  %v5277_v44 = vrot.slane %v5275_v63, 1  ;;  %v13858_v36 = vpop.f32.mrf.mxu1  ;;  %v17468_v26 = vld [vmem:[#allocation46_spill] sm:$0xff]  ;;  %v17469_v63 = vld [vmem:[#allocation52_spill] sm:$0xff] }
 0x757   :  { %v5102_v4 = vpop.permute.xlu0 %5101  ;;  %v5278_v40 = vsel %vm396_vm0, %v5273_v27, %v5277_v44  ;;  %5391 = vrot.lane.b32.xlu1 %v5357_v22, %s7870_s28  ;;  %v5026_v27 = vunpack.c.l.b16 %v4081_v10 }
 0x758   :  { %v5666_v6 = vsel %vm1937_vm10, %v5602_v7, %v5102_v4  ;;  %v13903_v4 = vld [vmem:[#allocation2 + $0x198] sm:$0xff] }
 0x759   :  { %v5410_v32 = vpop.permute.xlu1 %5409  ;;  %v5731_v62 = vsel %vm5681_vm3, %v5666_v6, %v5172_v24  ;;  %v5028_v22 = vpack.c.b16 %v5026_v27, %v5026_v27 }
 0x75a   :  { %5013 = vrot.lane.b32.xlu2 %v13792_v21, %s7865_s18 }
 0x75b   :  { %v5121_v34 = vrot.slane %v5028_v22, 1 }
 0x75c   :  { %v5246_v25 = vpop.permute.xlu2 %5245 }
 0x75d   :  { %5321 = vrot.lane.b32.xlu0 %v5278_v40, %s7867_s3  ;;  %v5796_v15 = vsel %vm5746_vm5, %v5731_v62, %v5246_v25  ;;  %v13876_v8 = vpop.f32.mrf.mxu1 }
 0x75f   :  { %v5340_v3 = vpop.permute.xlu0 %5339  ;;  %5179 = vrot.lane.b32.xlu1 %v17456_v49, %s7869_s27 }
 0x760   :  { %v5861_v54 = vsel %vm5811_vm6, %v5796_v15, %v5340_v3 }
 0x761   :  { %v5926_v16 = vsel %vm5876_vm8, %v5861_v54, %v5410_v32  ;;  %v5148_v28 = vpop.permute.xlu1 %5147  ;;  %v5044_v32 = vshll.u32 %v13903_v4, 16  ;;  %v17470_v54 = vld [vmem:[#allocation72_spill] sm:$0xff] }
 0x762   :  { %5251 = vrot.lane.b32.xlu2 %v13850_v41, %s7868_s30  ;;  %7564 = vmatmul.msk.bf16.gmra.mxu2 %vm5977_vm11, %v5926_v16  ;;  %v5452_v16 = vsel %vm1547_vm4, %v13657_v60, %v17470_v54 }
 0x763   :  { %v5046_v15 = vrot.slane %v5044_v32, 1  ;;  %v5516_v14 = vsel %vm1677_vm7, %v5452_v16, %v17471_v29 }
 0x764   :  { %v4984_v12 = vpop.permute.xlu2 %4983 }
 0x765   :  { %5109 = vrot.lane.b32.xlu0 %v17459_v11, %s7863_s16  ;;  %v5578_v50 = vsel %vm1807_vm9, %v5514_v52, %v4984_v12  ;;  %v13896_v18 = vpop.f32.mrf.mxu1  ;;  %v5049_v12 = vshll.u32 %v5028_v22, 16 }
 0x767   :  { %v5078_v47 = vpop.permute.xlu0 %5077  ;;  %5417 = vrot.lane.b32.xlu1 %v17464_v19, %s7870_s28 }
 0x768   :  { %v5642_v48 = vsel %vm1937_vm10, %v5578_v50, %v5078_v47 }
 0x769   :  { %v5386_v49 = vpop.permute.xlu1 %5385  ;;  %v5707_v11 = vsel %vm5681_vm3, %v5642_v48, %v5148_v28  ;;  %v5042_v28 = vshrl.u32 %v13903_v4, 16  ;;  %v5051_v48 = vrot.slane %v5049_v12, 1 }
 0x76a   :  { %4989 = vrot.lane.b32.xlu2 %v13757_v38, %s7865_s18 }
 0x76c   :  { %v5222_v5 = vpop.permute.xlu2 %5221 }
 0x76d   :  { %5347 = vrot.lane.b32.xlu0 %v17465_v55, %s7867_s3  ;;  %v5772_v2 = vsel %vm5746_vm5, %v5707_v11, %v5222_v5  ;;  %v13914_v40 = vpop.f32.mrf.mxu1  ;;  %v5047_v5 = vor.u32 %v5046_v15, %v5042_v28  ;;  %v3041_v11 = vld [vmem:[#allocation2 + $0x1ac] sm:$0x1] }
 0x76f   :  { %v5316_v38 = vpop.permute.xlu0 %5315  ;;  %5181 = vrot.lane.b32.xlu1 %v17464_v19, %s7869_s27  ;;  %v2931_v19 = vld [vmem:[#allocation2 + $0x1a4] sm:$0x1] }
 0x770   :  { %v5837_v45 = vsel %vm5811_vm6, %v5772_v2, %v5316_v38  ;;  %v2932_v38 = vsel %vm9638_vm14, 0, %v2931_v19  ;;  %v3042_v2 = vsel %vm9664_vm2, 0, %v3041_v11 }
 0x771   :  { %v5902_v42 = vsel %vm5876_vm8, %v5837_v45, %v5386_v49  ;;  %v5174_v24 = vpop.permute.xlu1 %5173  ;;  %v5120_v49 = vrot.slane %v13903_v4, 1  ;;  %2933 = vst [vmem:[#allocation2 + $0x1a4] sm:$0x1] %v2932_v38 }
 0x772   :  { %5227 = vrot.lane.b32.xlu2 %v7690_v61, %s7868_s30  ;;  %7552 = vmatmul.msk.bf16.gmra.mxu1 %vm5977_vm11, %v5902_v42  ;;  %v5476_v61 = vsel %vm1547_vm4, %v13629_v51, %v17466_v56  ;;  %3043 = vst [vmem:[#allocation2 + $0x1ac] sm:$0x1] %v3042_v2  ;;  %v13943_v56 = vpop.f32.mrf.mxu2  ;;  %v17478_v2 = vld [vmem:[#allocation63_spill] sm:$0xff] }
 0x773   :  { %v5540_v1 = vsel %vm1677_vm7, %v5476_v61, %v17467_v46  ;;  %17472 = vst [vmem:[#allocation95_spill] sm:$0xff] %v13943_v56 }
 0x774   :  { %v5010_v17 = vpop.permute.xlu2 %5009 }
 0x775   :  { %5111 = vrot.lane.b32.xlu0 %v17465_v55, %s7863_s16  ;;  %v5604_v0 = vsel %vm1807_vm9, %v5540_v1, %v5010_v17  ;;  %v13932_v60 = vpop.f32.mrf.mxu1  ;;  %v5122_v17 = vsel %vm845_vm1, %v5120_v49, %v5121_v34 }
 0x777   :  { %v5104_v58 = vpop.permute.xlu0 %5103  ;;  %5419 = vrot.lane.b32.xlu1 %v17468_v26, %s7870_s28 }
 0x778   :  { %v5668_v30 = vsel %vm1937_vm10, %v5604_v0, %v5104_v58  ;;  %v7708_v0 = vld [vmem:[#allocation2 + $0x1a4] sm:$0xff] }
 0x779   :  { %v5412_v9 = vpop.permute.xlu1 %5411  ;;  %v5733_v51 = vsel %vm5681_vm3, %v5668_v30, %v5174_v24  ;;  %v5052_v24 = vsel %vm396_vm0, %v5047_v5, %v5051_v48  ;;  %v4084_v30 = vld [vmem:[#allocation2 + $0x1ac] sm:$0x1] }
 0x77a   :  { %5015 = vrot.lane.b32.xlu2 %v13850_v41, %s7865_s18  ;;  %v13965_v32 = vpop.f32.mrf.mxu2 }
 0x77c   :  { %v5248_v57 = vpop.permute.xlu2 %5247 }
 0x77d   :  { %5349 = vrot.lane.b32.xlu0 %v17469_v63, %s7867_s3  ;;  %v5798_v25 = vsel %vm5746_vm5, %v5733_v51, %v5248_v57  ;;  %v13954_v10 = vpop.f32.mrf.mxu1  ;;  %v5282_v51 = vshll.u32 %v7708_v0, 16 }
 0x77e   :  { %17473 = vst [vmem:[#allocation115_spill] sm:$0xff] %v13954_v10 }
 0x77f   :  { %v5342_v7 = vpop.permute.xlu0 %5341  ;;  %5183 = vrot.lane.b32.xlu1 %v17468_v26, %s7869_s27  ;;  %v5280_v26 = vshrl.u32 %v7708_v0, 16 }
 0x780   :  { %v5863_v44 = vsel %vm5811_vm6, %v5798_v25, %v5342_v7  ;;  %v5358_v7 = vrot.slane %v7708_v0, 1  ;;  %v17474_v25 = vld [vmem:[#allocation40_spill] sm:$0xff] }
 0x781   :  { %v5928_v62 = vsel %vm5876_vm8, %v5863_v44, %v5412_v9  ;;  %v5150_v3 = vpop.permute.xlu1 %5149  ;;  %v5264_v9 = vunpack.c.l.b16 %v4084_v30  ;;  %v17475_v44 = vld [vmem:[#allocation141_spill] sm:$0xff] }
 0x782   :  { %5253 = vrot.lane.b32.xlu2 %v13907_v33, %s7868_s30  ;;  %7565 = vmatmul.msk.bf16.gmra.mxu2 %vm5977_vm11, %v5928_v62 }
 0x783   :  { %v5266_v27 = vpack.c.b16 %v5264_v9, %v5264_v9 }
 0x784   :  { %v4986_v6 = vpop.permute.xlu2 %4985 }
 0x785   :  { %5113 = vrot.lane.b32.xlu0 %v17469_v63, %s7863_s16  ;;  %v5580_v47 = vsel %vm1807_vm9, %v5516_v14, %v4986_v6  ;;  %v5284_v63 = vrot.slane %v5282_v51, 1  ;;  %v5478_v6 = vsel %vm1547_vm4, %v13683_v31, %v17474_v25  ;;  %v5287_v15 = vshll.u32 %v5266_v27, 16  ;;  %v13970_v14 = vpop.f32.mrf.mxu1 }
 0x786   :  { %v5542_v22 = vsel %vm1677_vm7, %v5478_v6, %v17475_v44  ;;  %v5359_v12 = vrot.slane %v5266_v27, 1  ;;  %17476 = vst [vmem:[#allocation36_spill] sm:$0xff] %v13970_v14  ;;  %v17482_v6 = vld [vmem:[#allocation60_spill] sm:$0xff] }
 0x787   :  { %v5080_v52 = vpop.permute.xlu0 %5079  ;;  %5421 = vrot.lane.b32.xlu1 %v5122_v17, %s7870_s28  ;;  %v5289_v34 = vrot.slane %v5287_v15, 1 }
 0x788   :  { %v5644_v55 = vsel %vm1937_vm10, %v5580_v47, %v5080_v52  ;;  %v5360_v31 = vsel %vm845_vm1, %v5358_v7, %v5359_v12  ;;  %v17481_v7 = vld [vmem:[#allocation19_spill] sm:$0xff] }
 0x789   :  { %v5388_v45 = vpop.permute.xlu1 %5387  ;;  %v5709_v42 = vsel %vm5681_vm3, %v5644_v55, %v5150_v3  ;;  %v5285_v3 = vor.u32 %v5284_v63, %v5280_v26  ;;  %v5480_v25 = vsel %vm1547_vm4, %v13733_v43, %v17481_v7  ;;  %v17490_v7 = vld [vmem:[#allocation13_spill] sm:$0xff] }
 0x78a   :  { %5017 = vrot.lane.b32.xlu2 %v13907_v33, %s7865_s18 }
 0x78b   :  { %v5290_v52 = vsel %vm396_vm0, %v5285_v3, %v5289_v34 }
 0x78c   :  { %v5224_v50 = vpop.permute.xlu2 %5223 }
 0x78d   :  { %5351 = vrot.lane.b32.xlu0 %v5052_v24, %s7867_s3  ;;  %v5774_v61 = vsel %vm5746_vm5, %v5709_v42, %v5224_v50  ;;  %v13978_v50 = vpop.f32.mrf.mxu2  ;;  %v13984_v38 = vpop.f32.mrf.mxu1 }
 0x78e   :  { %17477 = vst [vmem:[#allocation17_spill] sm:$0xff] %v13984_v38 }
 0x78f   :  { %v5318_v37 = vpop.permute.xlu0 %5317  ;;  %5185 = vrot.lane.b32.xlu1 %v5122_v17, %s7869_s27  ;;  %v5454_v17 = vsel %vm1547_vm4, %v13708_v13, %v17478_v2 }
 0x790   :  { %v5839_v1 = vsel %vm5811_vm6, %v5774_v61, %v5318_v37 }
 0x791   :  { %v5904_v58 = vsel %vm5876_vm8, %v5839_v1, %v5388_v45  ;;  %v5176_v57 = vpop.permute.xlu1 %5175  ;;  %v17479_v45 = vld [vmem:[#allocation83_spill] sm:$0xff] }
 0x792   :  { %5255 = vrot.lane.b32.xlu2 %v13946_v23, %s7868_s30  ;;  %7553 = vmatmul.msk.bf16.gmra.mxu1 %vm5977_vm11, %v5904_v58  ;;  %v5518_v42 = vsel %vm1677_vm7, %v5454_v17, %v17479_v45 }
 0x794   :  { %v5012_v46 = vpop.permute.xlu2 %5011 }
 0x795   :  { %5115 = vrot.lane.b32.xlu0 %v5052_v24, %s7863_s16  ;;  %v5606_v54 = vsel %vm1807_vm9, %v5542_v22, %v5012_v46  ;;  %v13994_v46 = vpop.f32.mrf.mxu2  ;;  %v13998_v30 = vpop.f32.mrf.mxu1 }
 0x796   :  { %17480 = vst [vmem:[#allocation35_spill] sm:$0xff] %v13998_v30 }
 0x797   :  { %v5106_v62 = vpop.permute.xlu0 %5105  ;;  %5423 = vrot.lane.b32.xlu1 %v5360_v31, %s7870_s28 }
 0x798   :  { %v5670_v28 = vsel %vm1937_vm10, %v5606_v54, %v5106_v62 }
 0x799   :  { %v5414_v29 = vpop.permute.xlu1 %5413  ;;  %v5735_v47 = vsel %vm5681_vm3, %v5670_v28, %v5176_v57 }
 0x79a   :  { %5019 = vrot.lane.b32.xlu2 %v13946_v23, %s7865_s18 }
 0x79c   :  { %v5250_v16 = vpop.permute.xlu2 %5249 }
 0x79d   :  { %5353 = vrot.lane.b32.xlu0 %v5290_v52, %s7867_s3  ;;  %v5800_v48 = vsel %vm5746_vm5, %v5735_v47, %v5250_v16  ;;  %v14003_v51 = vpop.f32.mrf.mxu2  ;;  %v14012_v44 = vpop.f32.mrf.mxu1 }
 0x79e   :  { %17483 = vst [vmem:[#allocation77_spill] sm:$0xff] %v14012_v44 }
 0x79f   :  { %v5344_v5 = vpop.permute.xlu0 %5343 }
 0x7a0   :  { %v5865_v19 = vsel %vm5811_vm6, %v5800_v48, %v5344_v5  ;;  %v17485_v48 = vld [vmem:[#allocation18_spill] sm:$0xff] }
 0x7a1   :  { %v5930_v11 = vsel %vm5876_vm8, %v5865_v19, %v5414_v29  ;;  %v5152_v55 = vpop.permute.xlu1 %5151  ;;  %v17486_v19 = vld [vmem:[#allocation26_spill] sm:$0xff] }
 0x7a2   :  { %5257 = vrot.lane.b32.xlu2 %v13903_v4, %s7868_s30  ;;  %7566 = vmatmul.msk.bf16.gmra.mxu2 %vm5977_vm11, %v5930_v11 }
 0x7a4   :  { %v4988_v49 = vpop.permute.xlu2 %4987 }
 0x7a5   :  { %v5582_v37 = vsel %vm1807_vm9, %v5518_v42, %v4988_v49  ;;  %v14016_v54 = vpop.f32.mrf.mxu2  ;;  %v14019_v28 = vpop.f32.mrf.mxu1  ;;  %v5456_v49 = vsel %vm1547_vm4, %v13761_v35, %v17485_v48  ;;  %v17493_v48 = vld [vmem:[#allocation121_spill] sm:$0xff] }
 0x7a6   :  { %17484 = vst [vmem:[#allocation106_spill] sm:$0xff] %v14019_v28  ;;  %v5520_v11 = vsel %vm1677_vm7, %v5456_v49, %v17486_v19  ;;  %v5484_v49 = vsel %vm1547_vm4, %v13850_v41, %v17493_v48  ;;  %v17494_v19 = vld [vmem:[#allocation78_spill] sm:$0xff] }
 0x7a7   :  { %v5082_v24 = vpop.permute.xlu0 %5081 }
 0x7a8   :  { %v5646_v1 = vsel %vm1937_vm10, %v5582_v37, %v5082_v24 }
 0x7a9   :  { %v5390_v58 = vpop.permute.xlu1 %5389  ;;  %v5711_v57 = vsel %vm5681_vm3, %v5646_v1, %v5152_v55 }
 0x7aa   :  { %5021 = vrot.lane.b32.xlu2 %v13903_v4, %s7865_s18 }
 0x7ac   :  { %v5226_v61 = vpop.permute.xlu2 %5225 }
 0x7ad   :  { %v5776_v4 = vsel %vm5746_vm5, %v5711_v57, %v5226_v61  ;;  %v14025_v47 = vpop.f32.mrf.mxu2  ;;  %v14033_v45 = vpop.f32.mrf.mxu1 }
 0x7ae   :  { %17487 = vst [vmem:[#allocation23_spill] sm:$0xff] %v14033_v45 }
 0x7af   :  { %v5320_v13 = vpop.permute.xlu0 %5319 }
 0x7b0   :  { %v5841_v26 = vsel %vm5811_vm6, %v5776_v4, %v5320_v13 }
 0x7b1   :  { %v5906_v27 = vsel %vm5876_vm8, %v5841_v26, %v5390_v58  ;;  %v5178_v63 = vpop.permute.xlu1 %5177 }
 0x7b2   :  { %5259 = vrot.lane.b32.xlu2 %v7708_v0, %s7868_s30  ;;  %7554 = vmatmul.msk.bf16.gmra.mxu1 %vm5977_vm11, %v5906_v27  ;;  %v5544_v0 = vsel %vm1677_vm7, %v5480_v25, %v17482_v6  ;;  %v17489_v27 = vld [vmem:[#allocation116_spill] sm:$0xff] }
 0x7b4   :  { %v5014_v9 = vpop.permute.xlu2 %5013 }
 0x7b5   :  { %v5608_v62 = vsel %vm1807_vm9, %v5544_v0, %v5014_v9  ;;  %v14037_v37 = vpop.f32.mrf.mxu2  ;;  %v14041_v13 = vpop.f32.mrf.mxu1 }
 0x7b6   :  { %17488 = vst [vmem:[#allocation65_spill] sm:$0xff] %v14041_v13 }
 0x7b7   :  { %v5108_v22 = vpop.permute.xlu0 %5107 }
 0x7b8   :  { %v5672_v15 = vsel %vm1937_vm10, %v5608_v62, %v5108_v22 }
 0x7b9   :  { %v5416_v12 = vpop.permute.xlu1 %5415  ;;  %v5737_v16 = vsel %vm5681_vm3, %v5672_v15, %v5178_v63  ;;  %v5482_v63 = vsel %vm1547_vm4, %v13792_v21, %v17489_v27 }
 0x7ba   :  { %v5546_v25 = vsel %vm1677_vm7, %v5482_v63, %v17490_v7 }
 0x7bc   :  { %v5252_v3 = vpop.permute.xlu2 %5251 }
 0x7bd   :  { %v5802_v43 = vsel %vm5746_vm5, %v5737_v16, %v5252_v3  ;;  %v14045_v9 = vpop.f32.mrf.mxu2  ;;  %v14054_v3 = vpop.f32.mrf.mxu1 }
 0x7be   :  { %17491 = vst [vmem:[#allocation123_spill] sm:$0xff] %v14054_v3 }
 0x7bf   :  { %v5346_v34 = vpop.permute.xlu0 %5345 }
 0x7c0   :  { %v5867_v29 = vsel %vm5811_vm6, %v5802_v43, %v5346_v34 }
 0x7c1   :  { %v5932_v52 = vsel %vm5876_vm8, %v5867_v29, %v5416_v12  ;;  %v5154_v5 = vpop.permute.xlu1 %5153 }
 0x7c2   :  { %7567 = vmatmul.msk.bf16.gmra.mxu2 %vm5977_vm11, %v5932_v52 }
 0x7c4   :  { %v4990_v31 = vpop.permute.xlu2 %4989 }
 0x7c5   :  { %v5584_v2 = vsel %vm1807_vm9, %v5520_v11, %v4990_v31  ;;  %v14057_v16 = vpop.f32.mrf.mxu2  ;;  %v14063_v52 = vpop.f32.mrf.mxu1  ;;  %v5548_v11 = vsel %vm1677_vm7, %v5484_v49, %v17494_v19 }
 0x7c6   :  { %17492 = vst [vmem:[#allocation16_spill] sm:$0xff] %v14063_v52 }
 0x7c7   :  { %v5084_v55 = vpop.permute.xlu0 %5083 }
 0x7c8   :  { %v5648_v42 = vsel %vm1937_vm10, %v5584_v2, %v5084_v55 }
 0x7c9   :  { %v5713_v24 = vsel %vm5681_vm3, %v5648_v42, %v5154_v5  ;;  %v5392_v61 = vpop.permute.xlu1 %5391 }
 0x7cc   :  { %v5228_v17 = vpop.permute.xlu2 %5227 }
 0x7cd   :  { %v5778_v58 = vsel %vm5746_vm5, %v5713_v24, %v5228_v17  ;;  %v14070_v55 = vpop.f32.mrf.mxu2 }
 0x7cf   :  { %v5322_v1 = vpop.permute.xlu0 %5321 }
 0x7d0   :  { %v5843_v57 = vsel %vm5811_vm6, %v5778_v58, %v5322_v1  ;;  %v14075_v1 = vpop.f32.mrf.mxu1 }
 0x7d1   :  { %v5908_v4 = vsel %vm5876_vm8, %v5843_v57, %v5392_v61  ;;  %v5180_v26 = vpop.permute.xlu1 %5179  ;;  %17495 = vst [vmem:[#allocation130_spill] sm:$0xff] %v14075_v1 }
 0x7d2   :  { %7555 = vmatmul.msk.bf16.gmra.mxu1 %vm5977_vm11, %v5908_v4 }
 0x7d4   :  { %v5016_v35 = vpop.permute.xlu2 %5015 }
 0x7d5   :  { %v5610_v0 = vsel %vm1807_vm9, %v5546_v25, %v5016_v35  ;;  %v17497_v25 = vld [vmem:[#allocation131_spill] sm:$0xff] }
 0x7d7   :  { %v5110_v6 = vpop.permute.xlu0 %5109 }
 0x7d8   :  { %v5674_v62 = vsel %vm1937_vm10, %v5610_v0, %v5110_v6  ;;  %v14083_v63 = vpop.f32.mrf.mxu1  ;;  %v5486_v6 = vsel %vm1547_vm4, %v13907_v33, %v17497_v25  ;;  %v17498_v0 = vld [vmem:[#allocation104_spill] sm:$0xff] }
 0x7d9   :  { %v5739_v15 = vsel %vm5681_vm3, %v5674_v62, %v5180_v26  ;;  %v5418_v12 = vpop.permute.xlu1 %5417  ;;  %v14079_v26 = vpop.f32.mrf.mxu2  ;;  %17496 = vst [vmem:[#allocation86_spill] sm:$0xff] %v14083_v63 }
 0x7dc   :  { %v5254_v22 = vpop.permute.xlu2 %5253 }
 0x7dd   :  { %v5804_v43 = vsel %vm5746_vm5, %v5739_v15, %v5254_v22  ;;  %v5550_v22 = vsel %vm1677_vm7, %v5486_v6, %v17498_v0 }
 0x7df   :  { %v5348_v34 = vpop.permute.xlu0 %5347 }
 0x7e0   :  { %v5869_v31 = vsel %vm5811_vm6, %v5804_v43, %v5348_v34 }
 0x7e1   :  { %v5934_v29 = vsel %vm5876_vm8, %v5869_v31, %v5418_v12  ;;  %v5182_v5 = vpop.permute.xlu1 %5181  ;;  %v14091_v12 = vpop.f32.mrf.mxu2 }
 0x7e2   :  { %7568 = vmatmul.msk.bf16.gmra.mxu2 %vm5977_vm11, %v5934_v29  ;;  %v14095_v29 = vpop.f32.mrf.mxu1 }
 0x7e3   :  { %17499 = vst [vmem:[#allocation132_spill] sm:$0xff] %v14095_v29 }
 0x7e4   :  { %v5018_v21 = vpop.permute.xlu2 %5017 }
 0x7e5   :  { %v5612_v17 = vsel %vm1807_vm9, %v5548_v11, %v5018_v21 }
 0x7e7   :  { %v5112_v2 = vpop.permute.xlu0 %5111 }
 0x7e8   :  { %v5676_v24 = vsel %vm1937_vm10, %v5612_v17, %v5112_v2  ;;  %v17500_v17 = vld [vmem:[#allocation67_spill] sm:$0xff] }
 0x7e9   :  { %v5741_v61 = vsel %vm5681_vm3, %v5676_v24, %v5182_v5  ;;  %v5420_v58 = vpop.permute.xlu1 %5419  ;;  %v14101_v19 = vpop.f32.mrf.mxu2  ;;  %v17501_v24 = vld [vmem:[#allocation87_spill] sm:$0xff] }
 0x7ec   :  { %v5256_v42 = vpop.permute.xlu2 %5255 }
 0x7ed   :  { %v5806_v57 = vsel %vm5746_vm5, %v5741_v61, %v5256_v42  ;;  %v5488_v42 = vsel %vm1547_vm4, %v13946_v23, %v17500_v17 }
 0x7ee   :  { %v5552_v61 = vsel %vm1677_vm7, %v5488_v42, %v17501_v24 }
 0x7ef   :  { %v5350_v35 = vpop.permute.xlu0 %5349 }
 0x7f0   :  { %v5871_v4 = vsel %vm5811_vm6, %v5806_v57, %v5350_v35 }
 0x7f1   :  { %v5936_v27 = vsel %vm5876_vm8, %v5871_v4, %v5420_v58  ;;  %v5184_v7 = vpop.permute.xlu1 %5183  ;;  %v14108_v58 = vpop.f32.mrf.mxu1 }
 0x7f2   :  { %7569 = vmatmul.msk.bf16.gmra.mxu2 %vm5977_vm11, %v5936_v27  ;;  %17502 = vst [vmem:[#allocation43_spill] sm:$0xff] %v14108_v58  ;;  %v14112_v4 = vpop.f32.mrf.mxu2 }
 0x7f4   :  { %v5020_v41 = vpop.permute.xlu2 %5019 }
 0x7f5   :  { %v5614_v15 = vsel %vm1807_vm9, %v5550_v22, %v5020_v41 }
 0x7f7   :  { %v5114_v62 = vpop.permute.xlu0 %5113 }
 0x7f8   :  { %v5678_v34 = vsel %vm1937_vm10, %v5614_v15, %v5114_v62 }
 0x7f9   :  { %v5743_v21 = vsel %vm5681_vm3, %v5678_v34, %v5184_v7  ;;  %v5422_v31 = vpop.permute.xlu1 %5421  ;;  %v14117_v22 = vpop.f32.mrf.mxu1  ;;  %v6349_v34 = vmul.f32 %v13802_v59, %v13802_v59 }
 0x7fa   :  { %17503 = vst [vmem:[#allocation27_spill] sm:$0xff] %v14117_v22  ;;  %v14121_v15 = vpop.f32.mrf.mxu2 }
 0x7fc   :  { %v5258_v43 = vpop.permute.xlu2 %5257 }
 0x7fd   :  { %v5808_v48 = vsel %vm5746_vm5, %v5743_v21, %v5258_v43  ;;  %v6348_v21 = vmul.f32 %v13787_v20, %v13787_v20 }
 0x7ff   :  { %v5352_v5 = vpop.permute.xlu0 %5351  ;;  %v6412_v42 = vsel %vm1547_vm4, %v6348_v21, 0.0 }
 0x800   :  { %v5873_v33 = vsel %vm5811_vm6, %v5808_v48, %v5352_v5  ;;  %v6350_v5 = vmul.f32 %v13826_v53, %v13826_v53  ;;  %v6215_v48 = vsel %vm1547_vm4, %v13787_v20, 0.0 }
 0x801   :  { %v5938_v49 = vsel %vm5876_vm8, %v5873_v33, %v5422_v31  ;;  %v5186_v2 = vpop.permute.xlu1 %5185  ;;  %v14125_v43 = vpop.f32.mrf.mxu1  ;;  %v6216_v31 = vsel %vm1547_vm4, %v13802_v59, 0.0  ;;  %v6413_v33 = vsel %vm1547_vm4, %v6349_v34, 0.0  ;;  %v6354_v34 = vmul.f32 %v13896_v18, %v13896_v18 }
 0x802   :  { %7570 = vmatmul.msk.bf16.gmra.mxu2 %vm5977_vm11, %v5938_v49  ;;  %17504 = vst [vmem:[#allocation88_spill] sm:$0xff] %v14125_v43  ;;  %v6218_v49 = vsel %vm1547_vm4, %v13826_v53, 0.0  ;;  %v14140_v17 = vpop.f32.mrf.mxu2  ;;  %v6415_v24 = vsel %vm1547_vm4, %v6350_v5, 0.0 }
 0x804   :  { %v5022_v11 = vpop.permute.xlu2 %5021 }
 0x805   :  { %v5616_v57 = vsel %vm1807_vm9, %v5552_v61, %v5022_v11  ;;  %v6351_v11 = vmul.f32 %v13842_v39, %v13842_v39  ;;  %v6220_v61 = vsel %vm1547_vm4, %v13842_v39, 0.0 }
 0x807   :  { %v5116_v35 = vpop.permute.xlu0 %5115 }
 0x808   :  { %v5680_v41 = vsel %vm1937_vm10, %v5616_v57, %v5116_v35  ;;  %v6352_v35 = vmul.f32 %v13858_v36, %v13858_v36 }
 0x809   :  { %v5745_v27 = vsel %vm5681_vm3, %v5680_v41, %v5186_v2  ;;  %v5424_v25 = vpop.permute.xlu1 %5423  ;;  %v6217_v2 = vadd.f32 %v6216_v31, %v6215_v48  ;;  %v6414_v41 = vadd.f32 %v6413_v33, %v6412_v42  ;;  %v14158_v5 = vpop.f32.mrf.mxu1  ;;  %v6226_v33 = vsel %vm1547_vm4, %v13896_v18, 0.0 }
 0x80a   :  { %17505 = vst [vmem:[#allocation68_spill] sm:$0xff] %v14158_v5  ;;  %v6423_v42 = vsel %vm1547_vm4, %v6354_v34, 0.0  ;;  %v6358_v34 = vmul.f32 %v13970_v14, %v13970_v14 }
 0x80b   :  { %v6219_v57 = vadd.f32 %v6218_v49, %v6217_v2  ;;  %v6355_v49 = vmul.f32 %v13914_v40, %v13914_v40 }
 0x80c   :  { %v5260_v7 = vpop.permute.xlu2 %5259 }
 0x80d   :  { %v5810_v6 = vsel %vm5746_vm5, %v5745_v27, %v5260_v7  ;;  %v6417_v27 = vsel %vm1547_vm4, %v6351_v11, 0.0  ;;  %v6222_v7 = vsel %vm1547_vm4, %v13858_v36, 0.0 }
 0x80f   :  { %v5354_v0 = vpop.permute.xlu0 %5353 }
 0x810   :  { %v5875_v23 = vsel %vm5811_vm6, %v5810_v6, %v5354_v0  ;;  %v6416_v6 = vadd.f32 %v6415_v24, %v6414_v41  ;;  %v6221_v0 = vadd.f32 %v6220_v61, %v6219_v57  ;;  %v6228_v24 = vsel %vm1547_vm4, %v13914_v40, 0.0  ;;  %v14170_v41 = vpop.f32.mrf.mxu2 }
 0x811   :  { %v5940_v62 = vsel %vm5876_vm8, %v5875_v23, %v5424_v25  ;;  %v6353_v25 = vmul.f32 %v13876_v8, %v13876_v8  ;;  %v6419_v23 = vsel %vm1547_vm4, %v6352_v35, 0.0  ;;  %v6356_v61 = vmul.f32 %v13932_v60, %v13932_v60 }
 0x812   :  { %7571 = vmatmul.msk.bf16.gmra.mxu2 %vm5977_vm11, %v5940_v62  ;;  %v6224_v62 = vsel %vm1547_vm4, %v13876_v8, 0.0  ;;  %v6223_v21 = vadd.f32 %v6222_v7, %v6221_v0  ;;  %v6418_v31 = vadd.f32 %v6417_v27, %v6416_v6  ;;  %v6425_v27 = vsel %vm1547_vm4, %v6355_v49, 0.0 }
 0x813   :  { %v6421_v48 = vsel %vm1547_vm4, %v6353_v25, 0.0  ;;  %v6230_v7 = vsel %vm1547_vm4, %v13932_v60, 0.0  ;;  %v6357_v25 = vmul.f32 %v13954_v10, %v13954_v10  ;;  %v6234_v49 = vsel %vm1547_vm4, %v13970_v14, 0.0 }
 0x814   :  { %v6420_v11 = vadd.f32 %v6419_v23, %v6418_v31  ;;  %v6225_v2 = vadd.f32 %v6224_v62, %v6223_v21  ;;  %v6427_v23 = vsel %vm1547_vm4, %v6356_v61, 0.0  ;;  %v6232_v62 = vsel %vm1547_vm4, %v13954_v10, 0.0 }
 0x815   :  { %v6236_v61 = vsel %vm1547_vm4, %v13984_v38, 0.0 }
 0x816   :  { %v6227_v35 = vadd.f32 %v6226_v33, %v6225_v2  ;;  %v6422_v57 = vadd.f32 %v6421_v48, %v6420_v11  ;;  %v14182_v48 = vpop.f32.mrf.mxu1  ;;  %v6429_v33 = vsel %vm1547_vm4, %v6357_v25, 0.0  ;;  %v6359_v11 = vmul.f32 %v13984_v38, %v13984_v38 }
 0x817   :  { %17506 = vst [vmem:[#allocation99_spill] sm:$0xff] %v14182_v48 }
 0x818   :  { %v6424_v6 = vadd.f32 %v6423_v42, %v6422_v57  ;;  %v6229_v0 = vadd.f32 %v6228_v24, %v6227_v35  ;;  %v6431_v24 = vsel %vm1547_vm4, %v6358_v34, 0.0  ;;  %v6360_v35 = vmul.f32 %v13998_v30, %v13998_v30 }
 0x819   :  { %v6433_v25 = vsel %vm1547_vm4, %v6359_v11, 0.0 }
 0x81a   :  { %v6231_v21 = vadd.f32 %v6230_v7, %v6229_v0  ;;  %v6426_v31 = vadd.f32 %v6425_v27, %v6424_v6  ;;  %v14194_v7 = vpop.f32.mrf.mxu2  ;;  %v6238_v6 = vsel %vm1547_vm4, %v13998_v30, 0.0  ;;  %v6361_v0 = vmul.f32 %v14012_v44, %v14012_v44 }
 0x81b   :  { %v6435_v34 = vsel %vm1547_vm4, %v6360_v35, 0.0 }
 0x81c   :  { %v6428_v2 = vadd.f32 %v6427_v23, %v6426_v31  ;;  %v6233_v42 = vadd.f32 %v6232_v62, %v6231_v21  ;;  %v6240_v21 = vsel %vm1547_vm4, %v14012_v44, 0.0  ;;  %v6362_v31 = vmul.f32 %v14019_v28, %v14019_v28 }
 0x81d   :  { %v6437_v11 = vsel %vm1547_vm4, %v6361_v0, 0.0 }
 0x81e   :  { %v6430_v57 = vadd.f32 %v6429_v33, %v6428_v2  ;;  %v6235_v27 = vadd.f32 %v6234_v49, %v6233_v42  ;;  %v6242_v2 = vsel %vm1547_vm4, %v14019_v28, 0.0  ;;  %v6363_v42 = vmul.f32 %v14033_v45, %v14033_v45 }
 0x81f   :  { %v6439_v35 = vsel %vm1547_vm4, %v6362_v31, 0.0 }
 0x820   :  { %v6432_v23 = vadd.f32 %v6431_v24, %v6430_v57  ;;  %v6237_v62 = vadd.f32 %v6236_v61, %v6235_v27  ;;  %v14211_v57 = vpop.f32.mrf.mxu1  ;;  %v6244_v27 = vsel %vm1547_vm4, %v14033_v45, 0.0  ;;  %v6248_v45 = vsel %vm1547_vm4, %v14054_v3, 0.0 }
 0x821   :  { %17507 = vst [vmem:[#allocation53_spill] sm:$0xff] %v14211_v57 }
 0x822   :  { %v6434_v33 = vadd.f32 %v6433_v25, %v6432_v23  ;;  %v6239_v49 = vadd.f32 %v6238_v6, %v6237_v62  ;;  %v6364_v25 = vmul.f32 %v14041_v13, %v14041_v13  ;;  %v6441_v23 = vsel %vm1547_vm4, %v6363_v42, 0.0 }
 0x823   :  { %v6246_v62 = vsel %vm1547_vm4, %v14041_v13, 0.0 }
 0x824   :  { %v6436_v24 = vadd.f32 %v6435_v34, %v6434_v33  ;;  %v6241_v61 = vadd.f32 %v6240_v21, %v6239_v49  ;;  %v6365_v34 = vmul.f32 %v14054_v3, %v14054_v3  ;;  %v14223_v49 = vpop.f32.mrf.mxu2  ;;  %v6443_v31 = vsel %vm1547_vm4, %v6364_v25, 0.0 }
 0x825   :  { %v6252_v3 = vsel %vm1547_vm4, %v14075_v1, 0.0 }
 0x826   :  { %v6438_v6 = vadd.f32 %v6437_v11, %v6436_v24  ;;  %v6243_v0 = vadd.f32 %v6242_v2, %v6241_v61  ;;  %v6366_v11 = vmul.f32 %v14063_v52, %v14063_v52  ;;  %v6445_v24 = vsel %vm1547_vm4, %v6365_v34, 0.0 }
 0x827   :  { %v6250_v61 = vsel %vm1547_vm4, %v14063_v52, 0.0 }
 0x828   :  { %v6440_v21 = vadd.f32 %v6439_v35, %v6438_v6  ;;  %v6245_v33 = vadd.f32 %v6244_v27, %v6243_v0  ;;  %v6367_v35 = vmul.f32 %v14075_v1, %v14075_v1  ;;  %v6447_v25 = vsel %vm1547_vm4, %v6366_v11, 0.0 }
 0x829   :  { %v6256_v1 = vsel %vm1547_vm4, %v14095_v29, 0.0 }
 0x82a   :  { %v6442_v2 = vadd.f32 %v6441_v23, %v6440_v21  ;;  %v6247_v42 = vadd.f32 %v6246_v62, %v6245_v33  ;;  %v6368_v23 = vmul.f32 %v14083_v63, %v14083_v63  ;;  %v6449_v21 = vsel %vm1547_vm4, %v6367_v35, 0.0 }
 0x82b   :  { %v6254_v33 = vsel %vm1547_vm4, %v14083_v63, 0.0 }
 0x82c   :  { %v6444_v27 = vadd.f32 %v6443_v31, %v6442_v2  ;;  %v6249_v6 = vadd.f32 %v6248_v45, %v6247_v42  ;;  %v6369_v45 = vmul.f32 %v14095_v29, %v14095_v29  ;;  %v14247_v42 = vpop.f32.mrf.mxu2  ;;  %v6451_v11 = vsel %vm1547_vm4, %v6368_v23, 0.0 }
 0x82d   :  { %v6372_v29 = vmul.f32 %v14125_v43, %v14125_v43 }
 0x82e   :  { %v6446_v62 = vadd.f32 %v6445_v24, %v6444_v27  ;;  %v6251_v34 = vadd.f32 %v6250_v61, %v6249_v6  ;;  %v6370_v24 = vmul.f32 %v14108_v58, %v14108_v58  ;;  %v6453_v27 = vsel %vm1547_vm4, %v6369_v45, 0.0 }
 0x82f   :  { %v14235_v0 = vpop.f32.mrf.mxu1  ;;  %v6258_v6 = vsel %vm1547_vm4, %v14108_v58, 0.0 }
 0x830   :  { %17508 = vst [vmem:[#allocation79_spill] sm:$0xff] %v14235_v0  ;;  %v6448_v31 = vadd.f32 %v6447_v25, %v6446_v62  ;;  %v6253_v2 = vadd.f32 %v6252_v3, %v6251_v34  ;;  %v6371_v3 = vmul.f32 %v14117_v22, %v14117_v22  ;;  %v6455_v23 = vsel %vm1547_vm4, %v6370_v24, 0.0 }
 0x831   :  { %v6260_v34 = vsel %vm1547_vm4, %v14117_v22, 0.0 }
 0x832   :  { %v6450_v61 = vadd.f32 %v6449_v21, %v6448_v31  ;;  %v6255_v35 = vadd.f32 %v6254_v33, %v6253_v2  ;;  %v6457_v45 = vsel %vm1547_vm4, %v6371_v3, 0.0  ;;  %v6262_v2 = vsel %vm1547_vm4, %v14125_v43, 0.0 }
 0x833   :  { %v6266_v43 = vsel %vm1547_vm4, %v14182_v48, 0.0 }
 0x834   :  { %v6452_v25 = vadd.f32 %v6451_v11, %v6450_v61  ;;  %v6257_v62 = vadd.f32 %v6256_v1, %v6255_v35  ;;  %v6373_v1 = vmul.f32 %v14158_v5, %v14158_v5  ;;  %v6459_v61 = vsel %vm1547_vm4, %v6372_v29, 0.0 }
 0x835   :  { %v6264_v35 = vsel %vm1547_vm4, %v14158_v5, 0.0 }
 0x836   :  { %v6454_v21 = vadd.f32 %v6453_v27, %v6452_v25  ;;  %v6259_v33 = vadd.f32 %v6258_v6, %v6257_v62  ;;  %v6374_v27 = vmul.f32 %v14182_v48, %v14182_v48  ;;  %v14276_v62 = vpop.f32.mrf.mxu2  ;;  %v6461_v3 = vsel %vm1547_vm4, %v6373_v1, 0.0 }
 0x837   :  { %v14264_v31 = vpop.f32.mrf.mxu1  ;;  %v6270_v48 = vsel %vm1547_vm4, %v14235_v0, 0.0 }
 0x838   :  { %17509 = vst [vmem:[#allocation30_spill] sm:$0xff] %v14264_v31  ;;  %v6456_v11 = vadd.f32 %v6455_v23, %v6454_v21  ;;  %v6261_v24 = vadd.f32 %v6260_v34, %v6259_v33  ;;  %v6375_v23 = vmul.f32 %v14211_v57, %v14211_v57  ;;  %v6463_v21 = vsel %vm1547_vm4, %v6374_v27, 0.0 }
 0x839   :  { %v6268_v33 = vsel %vm1547_vm4, %v14211_v57, 0.0 }
 0x83a   :  { %v6458_v6 = vadd.f32 %v6457_v45, %v6456_v11  ;;  %v6263_v25 = vadd.f32 %v6262_v2, %v6261_v24  ;;  %v6376_v45 = vmul.f32 %v14235_v0, %v14235_v0  ;;  %v6465_v1 = vsel %vm1547_vm4, %v6375_v23, 0.0 }
 0x83c   :  { %v6460_v34 = vadd.f32 %v6459_v61, %v6458_v6  ;;  %v6265_v29 = vadd.f32 %v6264_v35, %v6263_v25  ;;  %v6377_v61 = vmul.f32 %v14264_v31, %v14264_v31  ;;  %v6467_v6 = vsel %vm1547_vm4, %v6376_v45, 0.0 }
 0x83d   :  { %v6272_v25 = vsel %vm1547_vm4, %v14264_v31, 0.0  ;;  %v6380_v31 = vmul.f32 %v13943_v56, %v13943_v56 }
 0x83e   :  { %v6462_v2 = vadd.f32 %v6461_v3, %v6460_v34  ;;  %v6267_v11 = vadd.f32 %v6266_v43, %v6265_v29  ;;  %v6469_v23 = vsel %vm1547_vm4, %v6377_v61, 0.0 }
 0x840   :  { %v6464_v35 = vadd.f32 %v6463_v21, %v6462_v2  ;;  %v6269_v27 = vadd.f32 %v6268_v33, %v6267_v11 }
 0x842   :  { %v6466_v3 = vadd.f32 %v6465_v1, %v6464_v35  ;;  %v6271_v34 = vadd.f32 %v6270_v48, %v6269_v27  ;;  %v6278_v27 = vsel %vm1547_vm4, %v13943_v56, 0.0  ;;  %v6393_v56 = vmul.f32 %v14101_v19, %v14101_v19 }
 0x844   :  { %v6468_v57 = vadd.f32 %v6467_v6, %v6466_v3  ;;  %v6273_v21 = vadd.f32 %v6272_v25, %v6271_v34  ;;  %v6280_v3 = vsel %vm1547_vm4, %v13965_v32, 0.0  ;;  %v6382_v34 = vmul.f32 %v13978_v50, %v13978_v50 }
 0x845   :  { %v14300_v29 = vpop.f32.mrf.mxu2 }
 0x846   :  { %v6470_v45 = vadd.f32 %v6469_v23, %v6468_v57  ;;  %v6381_v57 = vmul.f32 %v13965_v32, %v13965_v32 }
 0x84d   :  { %v14324_v23 = vpop.f32.mrf.mxu2 }
 0x84f   :  { %v14288_v24 = vpop.f32.mrf.mxu1 }
 0x850   :  { %17510 = vst [vmem:[#allocation73_spill] sm:$0xff] %v14288_v24  ;;  %v6378_v43 = vmul.f32 %v14288_v24, %v14288_v24  ;;  %v6274_v0 = vsel %vm1547_vm4, %v14288_v24, 0.0  ;;  %v6401_v24 = vmul.f32 %v14276_v62, %v14276_v62 }
 0x851   :  { %v6275_v2 = vadd.f32 %v6274_v0, %v6273_v21 }
 0x852   :  { %v6471_v33 = vsel %vm1547_vm4, %v6378_v43, 0.0  ;;  %v6475_v43 = vsel %vm1547_vm4, %v6380_v31, 0.0 }
 0x853   :  { %v6472_v61 = vadd.f32 %v6471_v33, %v6470_v45  ;;  %v6477_v45 = vsel %vm1547_vm4, %v6381_v57, 0.0 }
 0x857   :  { %v14306_v11 = vpop.f32.mrf.mxu1 }
 0x858   :  { %17511 = vst [vmem:[#allocation89_spill] sm:$0xff] %v14306_v11  ;;  %v6276_v48 = vsel %vm1547_vm4, %v14306_v11, 0.0  ;;  %v6379_v1 = vmul.f32 %v14306_v11, %v14306_v11  ;;  %v6397_v11 = vmul.f32 %v14170_v41, %v14170_v41 }
 0x859   :  { %v6277_v35 = vadd.f32 %v6276_v48, %v6275_v2  ;;  %v6282_v2 = vsel %vm1547_vm4, %v13978_v50, 0.0  ;;  %v6383_v48 = vmul.f32 %v13994_v46, %v13994_v46 }
 0x85a   :  { %v6473_v0 = vsel %vm1547_vm4, %v6379_v1, 0.0 }
 0x85b   :  { %v6279_v6 = vadd.f32 %v6278_v27, %v6277_v35  ;;  %v6474_v25 = vadd.f32 %v6473_v0, %v6472_v61  ;;  %v6479_v61 = vsel %vm1547_vm4, %v6382_v34, 0.0  ;;  %v6284_v35 = vsel %vm1547_vm4, %v13994_v46, 0.0 }
 0x85c   :  { %v6384_v27 = vmul.f32 %v14003_v51, %v14003_v51  ;;  %v6481_v57 = vsel %vm1547_vm4, %v6383_v48, 0.0 }
 0x85d   :  { %v6281_v21 = vadd.f32 %v6280_v3, %v6279_v6  ;;  %v6476_v33 = vadd.f32 %v6475_v43, %v6474_v25  ;;  %v6286_v25 = vsel %vm1547_vm4, %v14003_v51, 0.0  ;;  %v6385_v43 = vmul.f32 %v14016_v54, %v14016_v54 }
 0x85e   :  { %v6483_v34 = vsel %vm1547_vm4, %v6384_v27, 0.0 }
 0x85f   :  { %v6283_v1 = vadd.f32 %v6282_v2, %v6281_v21  ;;  %v6478_v31 = vadd.f32 %v6477_v45, %v6476_v33  ;;  %v6288_v33 = vsel %vm1547_vm4, %v14016_v54, 0.0  ;;  %v6386_v45 = vmul.f32 %v14025_v47, %v14025_v47 }
 0x860   :  { %v6485_v48 = vsel %vm1547_vm4, %v6385_v43, 0.0 }
 0x861   :  { %v6285_v0 = vadd.f32 %v6284_v35, %v6283_v1  ;;  %v6480_v6 = vadd.f32 %v6479_v61, %v6478_v31  ;;  %v6290_v61 = vsel %vm1547_vm4, %v14025_v47, 0.0  ;;  %v6387_v35 = vmul.f32 %v14037_v37, %v14037_v37 }
 0x863   :  { %v6287_v3 = vadd.f32 %v6286_v25, %v6285_v0  ;;  %v6482_v21 = vadd.f32 %v6481_v57, %v6480_v6  ;;  %v6487_v6 = vsel %vm1547_vm4, %v6386_v45, 0.0  ;;  %v6292_v57 = vsel %vm1547_vm4, %v14037_v37, 0.0 }
 0x864   :  { %v6388_v25 = vmul.f32 %v14045_v9, %v14045_v9  ;;  %v6489_v43 = vsel %vm1547_vm4, %v6387_v35, 0.0 }
 0x865   :  { %v6289_v2 = vadd.f32 %v6288_v33, %v6287_v3  ;;  %v6484_v1 = vadd.f32 %v6483_v34, %v6482_v21  ;;  %v14346_v31 = vpop.f32.mrf.mxu2  ;;  %v6294_v34 = vsel %vm1547_vm4, %v14045_v9, 0.0  ;;  %v6389_v33 = vmul.f32 %v14057_v16, %v14057_v16 }
 0x866   :  { %v6491_v45 = vsel %vm1547_vm4, %v6388_v25, 0.0 }
 0x867   :  { %v6291_v0 = vadd.f32 %v6290_v61, %v6289_v2  ;;  %v6486_v27 = vadd.f32 %v6485_v48, %v6484_v1  ;;  %v6296_v48 = vsel %vm1547_vm4, %v14057_v16, 0.0  ;;  %v6390_v61 = vmul.f32 %v14070_v55, %v14070_v55 }
 0x868   :  { %v6493_v35 = vsel %vm1547_vm4, %v6389_v33, 0.0 }
 0x869   :  { %v6293_v3 = vadd.f32 %v6292_v57, %v6291_v0  ;;  %v6488_v21 = vadd.f32 %v6487_v6, %v6486_v27  ;;  %v6298_v57 = vsel %vm1547_vm4, %v14070_v55, 0.0 }
 0x86b   :  { %v6295_v2 = vadd.f32 %v6294_v34, %v6293_v3  ;;  %v6490_v1 = vadd.f32 %v6489_v43, %v6488_v21  ;;  %v6391_v3 = vmul.f32 %v14079_v26, %v14079_v26  ;;  %v6495_v43 = vsel %vm1547_vm4, %v6390_v61, 0.0 }
 0x86c   :  { %v6300_v34 = vsel %vm1547_vm4, %v14079_v26, 0.0 }
 0x86d   :  { %v6297_v0 = vadd.f32 %v6296_v48, %v6295_v2  ;;  %v6492_v27 = vadd.f32 %v6491_v45, %v6490_v1  ;;  %v14368_v6 = vpop.f32.mrf.mxu2  ;;  %v6392_v2 = vmul.f32 %v14091_v12, %v14091_v12  ;;  %v6497_v33 = vsel %vm1547_vm4, %v6391_v3, 0.0 }
 0x86e   :  { %v6302_v48 = vsel %vm1547_vm4, %v14091_v12, 0.0  ;;  %v6501_v3 = vsel %vm1547_vm4, %v6393_v56, 0.0  ;;  %v6405_v5 = vmul.f32 %v14368_v6, %v14368_v6 }
 0x86f   :  { %v6299_v21 = vadd.f32 %v6298_v57, %v6297_v0  ;;  %v6494_v25 = vadd.f32 %v6493_v35, %v6492_v27  ;;  %v6499_v61 = vsel %vm1547_vm4, %v6392_v2, 0.0  ;;  %v6304_v35 = vsel %vm1547_vm4, %v14101_v19, 0.0 }
 0x870   :  { %v6394_v57 = vmul.f32 %v14112_v4, %v14112_v4 }
 0x871   :  { %v6301_v1 = vadd.f32 %v6300_v34, %v6299_v21  ;;  %v6496_v45 = vadd.f32 %v6495_v43, %v6494_v25  ;;  %v6306_v34 = vsel %vm1547_vm4, %v14112_v4, 0.0 }
 0x873   :  { %v6498_v0 = vadd.f32 %v6497_v33, %v6496_v45  ;;  %v6303_v27 = vadd.f32 %v6302_v48, %v6301_v1  ;;  %v6395_v1 = vmul.f32 %v14121_v15, %v14121_v15  ;;  %v6503_v33 = vsel %vm1547_vm4, %v6394_v57, 0.0 }
 0x874   :  { %v6308_v48 = vsel %vm1547_vm4, %v14121_v15, 0.0 }
 0x875   :  { %v6305_v21 = vadd.f32 %v6304_v35, %v6303_v27  ;;  %v6500_v25 = vadd.f32 %v6499_v61, %v6498_v0  ;;  %v14390_v43 = vpop.f32.mrf.mxu2  ;;  %v6396_v0 = vmul.f32 %v14140_v17, %v14140_v17  ;;  %v6505_v56 = vsel %vm1547_vm4, %v6395_v1, 0.0 }
 0x876   :  { %v6310_v35 = vsel %vm1547_vm4, %v14140_v17, 0.0  ;;  %v6509_v1 = vsel %vm1547_vm4, %v6397_v11, 0.0 }
 0x877   :  { %v6307_v45 = vadd.f32 %v6306_v34, %v6305_v21  ;;  %v6502_v2 = vadd.f32 %v6501_v3, %v6500_v25  ;;  %v6507_v57 = vsel %vm1547_vm4, %v6396_v0, 0.0  ;;  %v6312_v3 = vsel %vm1547_vm4, %v14170_v41, 0.0 }
 0x878   :  { %v6398_v34 = vmul.f32 %v14194_v7, %v14194_v7 }
 0x879   :  { %v6309_v27 = vadd.f32 %v6308_v48, %v6307_v45  ;;  %v6504_v61 = vadd.f32 %v6503_v33, %v6502_v2  ;;  %v6314_v48 = vsel %vm1547_vm4, %v14194_v7, 0.0 }
 0x87b   :  { %v6311_v21 = vadd.f32 %v6310_v35, %v6309_v27  ;;  %v6506_v25 = vadd.f32 %v6505_v56, %v6504_v61  ;;  %v6399_v27 = vmul.f32 %v14223_v49, %v14223_v49  ;;  %v6511_v56 = vsel %vm1547_vm4, %v6398_v34, 0.0 }
 0x87c   :  { %v6316_v35 = vsel %vm1547_vm4, %v14223_v49, 0.0 }
 0x87d   :  { %v6313_v45 = vadd.f32 %v6312_v3, %v6311_v21  ;;  %v6508_v2 = vadd.f32 %v6507_v57, %v6506_v25  ;;  %v14412_v33 = vpop.f32.mrf.mxu2  ;;  %v6400_v21 = vmul.f32 %v14247_v42, %v14247_v42  ;;  %v6513_v11 = vsel %vm1547_vm4, %v6399_v27, 0.0 }
 0x87e   :  { %v6318_v3 = vsel %vm1547_vm4, %v14247_v42, 0.0  ;;  %v6517_v27 = vsel %vm1547_vm4, %v6401_v24, 0.0 }
 0x87f   :  { %v6315_v61 = vadd.f32 %v6314_v48, %v6313_v45  ;;  %v6510_v0 = vadd.f32 %v6509_v1, %v6508_v2  ;;  %v6515_v34 = vsel %vm1547_vm4, %v6400_v21, 0.0  ;;  %v6320_v1 = vsel %vm1547_vm4, %v14276_v62, 0.0 }
 0x880   :  { %v6402_v48 = vmul.f32 %v14300_v29, %v14300_v29 }
 0x881   :  { %v6317_v25 = vadd.f32 %v6316_v35, %v6315_v61  ;;  %v6512_v57 = vadd.f32 %v6511_v56, %v6510_v0  ;;  %v6322_v35 = vsel %vm1547_vm4, %v14300_v29, 0.0 }
 0x883   :  { %v6319_v45 = vadd.f32 %v6318_v3, %v6317_v25  ;;  %v6514_v2 = vadd.f32 %v6513_v11, %v6512_v57  ;;  %v6403_v25 = vmul.f32 %v14324_v23, %v14324_v23  ;;  %v6519_v11 = vsel %vm1547_vm4, %v6402_v48, 0.0 }
 0x884   :  { %v6324_v3 = vsel %vm1547_vm4, %v14324_v23, 0.0 }
 0x885   :  { %v6321_v61 = vadd.f32 %v6320_v1, %v6319_v45  ;;  %v6516_v0 = vadd.f32 %v6515_v34, %v6514_v2  ;;  %v14434_v56 = vpop.f32.mrf.mxu2  ;;  %v6404_v45 = vmul.f32 %v14346_v31, %v14346_v31  ;;  %v6521_v24 = vsel %vm1547_vm4, %v6403_v25, 0.0 }
 0x886   :  { %v6326_v1 = vsel %vm1547_vm4, %v14346_v31, 0.0  ;;  %v6525_v25 = vsel %vm1547_vm4, %v6405_v5, 0.0  ;;  %v6408_v5 = vmul.f32 %v14434_v56, %v14434_v56 }
 0x887   :  { %v6323_v57 = vadd.f32 %v6322_v35, %v6321_v61  ;;  %v6518_v21 = vadd.f32 %v6517_v27, %v6516_v0  ;;  %v6523_v48 = vsel %vm1547_vm4, %v6404_v45, 0.0  ;;  %v6328_v27 = vsel %vm1547_vm4, %v14368_v6, 0.0 }
 0x888   :  { %v6406_v35 = vmul.f32 %v14390_v43, %v14390_v43 }
 0x889   :  { %v6325_v2 = vadd.f32 %v6324_v3, %v6323_v57  ;;  %v6520_v34 = vadd.f32 %v6519_v11, %v6518_v21  ;;  %v6330_v3 = vsel %vm1547_vm4, %v14390_v43, 0.0 }
 0x88b   :  { %v6327_v61 = vadd.f32 %v6326_v1, %v6325_v2  ;;  %v6522_v0 = vadd.f32 %v6521_v24, %v6520_v34  ;;  %v6407_v2 = vmul.f32 %v14412_v33, %v14412_v33  ;;  %v6527_v24 = vsel %vm1547_vm4, %v6406_v35, 0.0 }
 0x88c   :  { %v6332_v1 = vsel %vm1547_vm4, %v14412_v33, 0.0 }
 0x88d   :  { %v6524_v57 = vadd.f32 %v6523_v48, %v6522_v0  ;;  %v6329_v21 = vadd.f32 %v6328_v27, %v6327_v61  ;;  %v14456_v11 = vpop.f32.mrf.mxu2  ;;  %v6529_v61 = vsel %vm1547_vm4, %v6407_v2, 0.0  ;;  %v6334_v27 = vsel %vm1547_vm4, %v14434_v56, 0.0 }
 0x88e   :  { %v6409_v35 = vmul.f32 %v14456_v11, %v14456_v11 }
 0x88f   :  { %v6526_v34 = vadd.f32 %v6525_v25, %v6524_v57  ;;  %v6331_v45 = vadd.f32 %v6330_v3, %v6329_v21  ;;  %v6531_v57 = vsel %vm1547_vm4, %v6408_v5, 0.0  ;;  %v6336_v25 = vsel %vm1547_vm4, %v14456_v11, 0.0 }
 0x891   :  { %v6528_v22 = vadd.f32 %v6527_v24, %v6526_v34  ;;  %v6333_v0 = vadd.f32 %v6332_v1, %v6331_v45  ;;  %v6533_v34 = vsel %vm1547_vm4, %v6409_v35, 0.0 }
 0x893   :  { %v6530_v48 = vadd.f32 %v6529_v61, %v6528_v22  ;;  %v6335_v58 = vadd.f32 %v6334_v27, %v6333_v0 }
 0x895   :  { %v6210_v63 = vpop.f32.mrf.mxu2  ;;  %v6532_v21 = vadd.f32 %v6531_v57, %v6530_v48  ;;  %v6337_v2 = vadd.f32 %v6336_v25, %v6335_v58 }
 0x896   :  { %v6410_v3 = vmul.f32 %v6210_v63, %v6210_v63  ;;  %v6338_v22 = vsel %vm1547_vm4, %v6210_v63, 0.0 }
 0x897   :  { %v6534_v45 = vadd.f32 %v6533_v34, %v6532_v21  ;;  %v6339_v1 = vadd.f32 %v6338_v22, %v6337_v2 }
 0x898   :  { %v6535_v24 = vsel %vm1547_vm4, %v6410_v3, 0.0 }
 0x899   :  { %v6536_v27 = vadd.f32 %v6535_v24, %v6534_v45 }
 0x89d   :  { %v6212_v0 = vpop.f32.mrf.mxu2 }
 0x89e   :  { %v6340_v61 = vsel %vm1547_vm4, %v6212_v0, 0.0  ;;  %v6411_v5 = vmul.f32 %v6212_v0, %v6212_v0 }
 0x89f   :  { %v6341_v52 = vadd.f32 %v6340_v61, %v6339_v1 }
 0x8a0   :  { %v6537_v48 = vsel %vm1547_vm4, %v6411_v5, 0.0 }
 0x8a1   :  { %v6342_v57 = vrot.slane %v6341_v52, 4  ;;  %v6538_v13 = vadd.f32 %v6537_v48, %v6536_v27 }
 0x8a3   :  { %v6343_v28 = vadd.f32 %v6342_v57, %v6341_v52  ;;  %v6539_v58 = vrot.slane %v6538_v13, 4 }
 0x8a5   :  { %v6344_v25 = vrot.slane %v6343_v28, 2  ;;  %v6540_v35 = vadd.f32 %v6539_v58, %v6538_v13 }
 0x8a7   :  { %v6345_v44 = vadd.f32 %v6344_v25, %v6343_v28  ;;  %v6541_v30 = vrot.slane %v6540_v35, 2  ;;  %v6549_v28 = vld [vmem:[%s15933_s5] sm:$0x1] }
 0x8a9   :  { %v6346_v21 = vrot.slane %v6345_v44, 1  ;;  %v6542_v34 = vadd.f32 %v6541_v30, %v6540_v35 }
 0x8ab   :  { %v6347_v3 = vadd.f32 %v6346_v21, %v6345_v44  ;;  %v6543_v2 = vrot.slane %v6542_v34, 1 }
 0x8ad   :  { %v6544_v22 = vadd.f32 %v6543_v2, %v6542_v34  ;;  %v6545_v38 = vmul.f32 0.001953125, %v6347_v3  ;;  %v7098_v3 = vlaneseq }
 0x8af   :  { %v6546_v14 = vmul.f32 0.001953125, %v6544_v22  ;;  %v6547_v10 = vmul.f32 %v6545_v38, %v6545_v38 }
 0x8b1   :  { %v6548_v45 = vsub.f32 %v6546_v14, %v6547_v10  ;;  %v6562_v10 = vld [vmem:[%s15934_s6] sm:$0x1] }
 0x8b3   :  { %v6550_v24 = vadd.f32 1e-05, %v6548_v45 }
 0x8b5   :  { %7739 = vrsqrt.f32 %v6550_v24  ;;  %vm6557_vm1 = vweird.f32 %v6550_v24 }
 0x8bb   :  { %v7740_v1 = vpop.eup %7739 }
 0x8bc   :  { %v6552_v61 = vmul.f32 %v7740_v1, %v6550_v24  ;;  %vm6558_vm0 = vweird.f32 %v7740_v1 }
 0x8bd   :  { %vm6559_vm7 = vmor %vm6557_vm1, %vm6558_vm0 }
 0x8be   :  { %v6553_v5 = vmul.f32 %v7740_v1, %v6552_v61 }
 0x8c0   :  { %v6554_v52 = vmul.f32 0.5, %v6553_v5 }
 0x8c2   :  { %v6555_v27 = vsub.f32 1.5, %v6554_v52 }
 0x8c4   :  { %v6556_v30 = vmul.f32 %v7740_v1, %v6555_v27 }
 0x8c6   :  { %v6560_v44 = vsel %vm6559_vm7, %v7740_v1, %v6556_v30 }
 0x8c7   :  { %v6561_v13 = vmul.f32 %v6560_v44, %v6549_v28 }
 0x8c9   :  { %v6563_v14 = vmul.f32 %v6561_v13, %v6545_v38  ;;  %v14487_v48 = vperm.slane %v6561_v13, 0 }
 0x8cb   :  { %v6564_v57 = vsub.f32 %v6562_v10, %v6563_v14  ;;  %v6628_v58 = vmul.f32 %v14487_v48, %v14434_v56  ;;  %v6629_v25 = vmul.f32 %v14487_v48, %v14456_v11  ;;  %v6630_v35 = vmul.f32 %v14487_v48, %v6210_v63 }
 0x8cc   :  { %v6631_v21 = vmul.f32 %v14487_v48, %v6212_v0  ;;  %v7099_v11 = vshrl.u32 %v7098_v3, 7  ;;  %v6568_v27 = vmul.f32 %v14487_v48, %v13787_v20  ;;  %v6569_v28 = vmul.f32 %v14487_v48, %v13802_v59 }
 0x8cd   :  { %v14495_v34 = vperm.slane %v6564_v57, 0  ;;  %v6570_v30 = vmul.f32 %v14487_v48, %v13826_v53  ;;  %v6571_v44 = vmul.f32 %v14487_v48, %v13842_v39  ;;  %v6572_v13 = vmul.f32 %v14487_v48, %v13858_v36 }
 0x8ce   :  { %v14517_v63 = vmul.u32 2, %v7099_v11  ;;  %v6573_v10 = vmul.f32 %v14487_v48, %v13876_v8  ;;  %v17513_v57 = vmov 0   ;;  %v14546_v53 = vmul.f32 %v14487_v48, %v13896_v18 }
 0x8cf   :  { %v6695_v2 = vadd.f32 %v14495_v34, %v6628_v58  ;;  %v6696_v38 = vadd.f32 %v14495_v34, %v6629_v25  ;;  %v6697_v22 = vadd.f32 %v14495_v34, %v6630_v35  ;;  %v6698_v45 = vadd.f32 %v14495_v34, %v6631_v21 }
 0x8d0   :  { %v14520_v0 = vadd.s32 224, %v14517_v63  ;;  %v14550_v39 = vmul.f32 %v14487_v48, %v13914_v40  ;;  %v14554_v36 = vmul.f32 %v14487_v48, %v13932_v60  ;;  %v6601_v8 = vmul.f32 %v14487_v48, %v13965_v32 }
 0x8d1   :  { %v6759_v24 = vmax.f32 %v6695_v2, 0.0  ;;  %v6760_v56 = vmax.f32 %v6696_v38, 0.0  ;;  %v6761_v1 = vmax.f32 %v6697_v22, 0.0  ;;  %v6762_v61 = vmax.f32 %v6698_v45, 0.0 }
 0x8d2   :  { %17512 = vst [vmem:[#allocation32_spill] sm:$0xff] %v14520_v0  ;;  %v6602_v58 = vmul.f32 %v14487_v48, %v13978_v50  ;;  %v6603_v40 = vmul.f32 %v14487_v48, %v13994_v46  ;;  %v6604_v21 = vmul.f32 %v14487_v48, %v14003_v51  ;;  %v6605_v60 = vmul.f32 %v14487_v48, %v14016_v54 }
 0x8d3   :  { %6823 = vst.msk [vmem:[%s15935_s7 + $0x1e0] sm:$0xff] %vm1547_vm4, %v6759_v24  ;;  %v6606_v32 = vmul.f32 %v14487_v48, %v14025_v47  ;;  %v6607_v50 = vmul.f32 %v14487_v48, %v14037_v37  ;;  %v6608_v38 = vmul.f32 %v14487_v48, %v14045_v9  ;;  %v6609_v46 = vmul.f32 %v14487_v48, %v14057_v16 }
 0x8d4   :  { %6824 = vst.msk [vmem:[%s15935_s7 + $0x1e8] sm:$0xff] %vm1547_vm4, %v6760_v56  ;;  %v6610_v54 = vmul.f32 %v14487_v48, %v14070_v55  ;;  %v6611_v47 = vmul.f32 %v14487_v48, %v14079_v26  ;;  %v6612_v37 = vmul.f32 %v14487_v48, %v14091_v12  ;;  %v6613_v22 = vmul.f32 %v14487_v48, %v14101_v19 }
 0x8d5   :  { %6825 = vst.msk [vmem:[%s15935_s7 + $0x1f0] sm:$0xff] %vm1547_vm4, %v6761_v1  ;;  %v6614_v9 = vmul.f32 %v14487_v48, %v14112_v4  ;;  %v6615_v16 = vmul.f32 %v14487_v48, %v14121_v15  ;;  %v6616_v45 = vmul.f32 %v14487_v48, %v14140_v17  ;;  %v6617_v55 = vmul.f32 %v14487_v48, %v14170_v41 }
 0x8d6   :  { %6826 = vst.msk [vmem:[%s15935_s7 + $0x1f8] sm:$0xff] %vm1547_vm4, %v6762_v61  ;;  %v6618_v26 = vmul.f32 %v14487_v48, %v14194_v7  ;;  %v6619_v12 = vmul.f32 %v14487_v48, %v14223_v49  ;;  %v6620_v19 = vmul.f32 %v14487_v48, %v14247_v42  ;;  %v6621_v4 = vmul.f32 %v14487_v48, %v14276_v62 }
 0x8d7   :  { %v6622_v15 = vmul.f32 %v14487_v48, %v14300_v29  ;;  %v6623_v17 = vmul.f32 %v14487_v48, %v14324_v23  ;;  %v6624_v41 = vmul.f32 %v14487_v48, %v14346_v31  ;;  %v6625_v7 = vmul.f32 %v14487_v48, %v14368_v6 }
 0x8d8   :  { %v6626_v49 = vmul.f32 %v14487_v48, %v14390_v43  ;;  %v6627_v42 = vmul.f32 %v14487_v48, %v14412_v33  ;;  %v6635_v62 = vadd.f32 %v14495_v34, %v6568_v27  ;;  %v6636_v24 = vadd.f32 %v14495_v34, %v6569_v28 }
 0x8d9   :  { %v6637_v29 = vadd.f32 %v14495_v34, %v6570_v30  ;;  %v6638_v23 = vadd.f32 %v14495_v34, %v6571_v44  ;;  %v6639_v56 = vadd.f32 %v14495_v34, %v6572_v13  ;;  %v6640_v31 = vadd.f32 %v14495_v34, %v6573_v10 }
 0x8da   :  { %v14623_v6 = vadd.f32 %v14495_v34, %v6601_v8  ;;  %v14626_v43 = vadd.f32 %v14495_v34, %v6602_v58  ;;  %v14629_v33 = vadd.f32 %v14495_v34, %v6603_v40  ;;  %v14632_v1 = vadd.f32 %v14495_v34, %v6604_v21 }
 0x8db   :  { %v7601_v5 = vld [vmem:[%s15935_s7 + $0x1e0] ss:$2 sm:$0xff]  ;;  %v7633_v52 = vld [vmem:[%s15935_s7 + $0x1e1] ss:$2 sm:$0xff]  ;;  %v14635_v61 = vadd.f32 %v14495_v34, %v6605_v60  ;;  %v14638_v11 = vadd.f32 %v14495_v34, %v6606_v32  ;;  %v14647_v27 = vadd.f32 %v14495_v34, %v6609_v46  ;;  %v14650_v28 = vadd.f32 %v14495_v34, %v6610_v54 }
 0x8dc   :  { %vm6969_vm9 = vcmp.gt.f32.partialorder %v7633_v52, %v7601_v5  ;;  %v14653_v30 = vadd.f32 %v14495_v34, %v6611_v47  ;;  %v14656_v44 = vadd.f32 %v14495_v34, %v6612_v37  ;;  %v14659_v13 = vadd.f32 %v14495_v34, %v6613_v22  ;;  %v17515_v22 = vld [vmem:[#allocation36_spill] sm:$0xff] }
 0x8dd   :  { %v7602_v20 = vld [vmem:[%s15935_s7 + $0x1f0] ss:$2 sm:$0xff]  ;;  %v6985_v14 = vsel %vm6969_vm9, %v7633_v52, %v7601_v5  ;;  %v7001_v59 = vsel %vm6969_vm9, 1, %v17513_v57  ;;  %v7634_v18 = vld [vmem:[%s15935_s7 + $0x1f1] ss:$2 sm:$0xff]  ;;  %v14641_v5 = vadd.f32 %v14495_v34, %v6607_v50  ;;  %v14644_v52 = vadd.f32 %v14495_v34, %v6608_v38 }
 0x8de   :  { %vm7017_vm10 = vcmp.gt.f32.partialorder %v7602_v20, %v6985_v14  ;;  %v14662_v10 = vadd.f32 %v14495_v34, %v6614_v9  ;;  %v14674_v8 = vadd.f32 %v14495_v34, %v6618_v26  ;;  %v14677_v58 = vadd.f32 %v14495_v34, %v6619_v12 }
 0x8df   :  { %v7033_v25 = vsel %vm7017_vm10, %v7602_v20, %v6985_v14  ;;  %v7049_v35 = vsel %vm7017_vm10, 16, %v7001_v59  ;;  %v14665_v20 = vadd.f32 %v14495_v34, %v6615_v16  ;;  %v14668_v14 = vadd.f32 %v14495_v34, %v6616_v45 }
 0x8e0   :  { %vm7065_vm14 = vcmp.gt.f32.partialorder %v7634_v18, %v7033_v25  ;;  %v14671_v59 = vadd.f32 %v14495_v34, %v6617_v55  ;;  %v14689_v40 = vadd.f32 %v14495_v34, %v6623_v17  ;;  %v14692_v21 = vadd.f32 %v14495_v34, %v6624_v41 }
 0x8e1   :  { %v7081_v3 = vsel %vm7065_vm14, %v7634_v18, %v7033_v25  ;;  %v7097_v2 = vsel %vm7065_vm14, 17, %v7049_v35  ;;  %v14680_v18 = vadd.f32 %v14495_v34, %v6620_v19  ;;  %v14683_v25 = vadd.f32 %v14495_v34, %v6621_v4 }
 0x8e2   :  { %7115 = vst.msk [vmem:[#allocation3 + $0x78] sm:$0xff] %vm1547_vm4, %v7081_v3  ;;  %v7139_v51 = vadd.s32 %v14520_v0, %v7097_v2  ;;  %v14686_v35 = vadd.f32 %v14495_v34, %v6622_v15  ;;  %v14695_v60 = vadd.f32 %v14495_v34, %v6625_v7  ;;  %v14698_v32 = vadd.f32 %v14495_v34, %v6626_v49  ;;  %v17518_v15 = vld [vmem:[#allocation77_spill] sm:$0xff]  ;;  %v17519_v49 = vld [vmem:[#allocation106_spill] sm:$0xff] }
 0x8e3   :  { %v14701_v50 = vadd.f32 %v14495_v34, %v6627_v42  ;;  %v6641_v3 = vadd.f32 %v14495_v34, %v14546_v53  ;;  %v6699_v2 = vmax.f32 %v6635_v62, 0.0  ;;  %v6700_v38 = vmax.f32 %v6636_v24, 0.0  ;;  %v17516_v53 = vld [vmem:[#allocation17_spill] sm:$0xff] }
 0x8e4   :  { %7155 = vst.msk [vmem:[#allocation5 + $0x78] sm:$0xff] %vm1547_vm4, %v7139_v51  ;;  %v6701_v46 = vmax.f32 %v6637_v29, 0.0  ;;  %v17514_v51 = vld [vmem:[#allocation115_spill] sm:$0xff]  ;;  %v6642_v47 = vadd.f32 %v14495_v34, %v14550_v39  ;;  %v6702_v37 = vmax.f32 %v6638_v23, 0.0  ;;  %v6578_v9 = vmul.f32 %v14487_v48, %v17515_v22  ;;  %v17523_v22 = vld [vmem:[#allocation16_spill] sm:$0xff] }
 0x8e5   :  { %v6577_v54 = vmul.f32 %v14487_v48, %v17514_v51  ;;  %v6643_v16 = vadd.f32 %v14495_v34, %v14554_v36  ;;  %v6703_v45 = vmax.f32 %v6639_v56, 0.0  ;;  %6763 = vst.msk [vmem:[%s15935_s7] sm:$0xff] %vm1547_vm4, %v6699_v2  ;;  %v6579_v55 = vmul.f32 %v14487_v48, %v17516_v53  ;;  %v17517_v39 = vld [vmem:[#allocation35_spill] sm:$0xff]  ;;  %v17524_v53 = vld [vmem:[#allocation130_spill] sm:$0xff] }
 0x8e6   :  { %v6704_v12 = vmax.f32 %v6640_v31, 0.0  ;;  %6764 = vst.msk [vmem:[%s15935_s7 + $0x8] sm:$0xff] %vm1547_vm4, %v6700_v38  ;;  %v6580_v36 = vmul.f32 %v14487_v48, %v17517_v39  ;;  %v6645_v19 = vadd.f32 %v14495_v34, %v6578_v9  ;;  %v6705_v4 = vmax.f32 %v6641_v3, 0.0  ;;  %v17520_v29 = vld [vmem:[#allocation23_spill] sm:$0xff]  ;;  %v17521_v3 = vld [vmem:[#allocation65_spill] sm:$0xff]  ;;  %v17525_v39 = vld [vmem:[#allocation86_spill] sm:$0xff] }
 0x8e7   :  { %v6644_v26 = vadd.f32 %v14495_v34, %v6577_v54  ;;  %6765 = vst.msk [vmem:[%s15935_s7 + $0x10] sm:$0xff] %vm1547_vm4, %v6701_v46  ;;  %v6581_v17 = vmul.f32 %v14487_v48, %v17518_v15  ;;  %v6646_v41 = vadd.f32 %v14495_v34, %v6579_v55  ;;  %v6706_v7 = vmax.f32 %v6642_v47, 0.0  ;;  %v17522_v51 = vld [vmem:[#allocation123_spill] sm:$0xff]  ;;  %v17526_v15 = vld [vmem:[#allocation132_spill] sm:$0xff] }
 0x8e8   :  { %6766 = vst.msk [vmem:[%s15935_s7 + $0x18] sm:$0xff] %vm1547_vm4, %v6702_v37  ;;  %v6582_v42 = vmul.f32 %v14487_v48, %v17519_v49  ;;  %v6647_v62 = vadd.f32 %v14495_v34, %v6580_v36  ;;  %v6707_v24 = vmax.f32 %v6643_v16, 0.0  ;;  %v6583_v23 = vmul.f32 %v14487_v48, %v17520_v29  ;;  %v17527_v49 = vld [vmem:[#allocation43_spill] sm:$0xff] }
 0x8e9   :  { %6767 = vst.msk [vmem:[%s15935_s7 + $0x20] sm:$0xff] %vm1547_vm4, %v6703_v45  ;;  %v6648_v56 = vadd.f32 %v14495_v34, %v6581_v17  ;;  %v6708_v31 = vmax.f32 %v6644_v26, 0.0  ;;  %v6584_v2 = vmul.f32 %v14487_v48, %v17521_v3  ;;  %v6709_v46 = vmax.f32 %v6645_v19, 0.0  ;;  %v17528_v29 = vld [vmem:[#allocation27_spill] sm:$0xff]  ;;  %v17529_v3 = vld [vmem:[#allocation88_spill] sm:$0xff] }
 0x8ea   :  { %6768 = vst.msk [vmem:[%s15935_s7 + $0x28] sm:$0xff] %vm1547_vm4, %v6704_v12  ;;  %v6649_v38 = vadd.f32 %v14495_v34, %v6582_v42  ;;  %v6585_v54 = vmul.f32 %v14487_v48, %v17522_v51  ;;  %v6650_v47 = vadd.f32 %v14495_v34, %v6583_v23  ;;  %v6710_v37 = vmax.f32 %v6646_v41, 0.0  ;;  %v17530_v51 = vld [vmem:[#allocation68_spill] sm:$0xff] }
 0x8eb   :  { %6769 = vst.msk [vmem:[%s15935_s7 + $0x30] sm:$0xff] %vm1547_vm4, %v6705_v4  ;;  %v6586_v9 = vmul.f32 %v14487_v48, %v17523_v22  ;;  %v6651_v16 = vadd.f32 %v14495_v34, %v6584_v2  ;;  %v6711_v45 = vmax.f32 %v6647_v62, 0.0  ;;  %v6587_v55 = vmul.f32 %v14487_v48, %v17524_v53  ;;  %v17531_v22 = vld [vmem:[#allocation99_spill] sm:$0xff]  ;;  %v17532_v53 = vld [vmem:[#allocation53_spill] sm:$0xff] }
 0x8ec   :  { %6770 = vst.msk [vmem:[%s15935_s7 + $0x38] sm:$0xff] %vm1547_vm4, %v6706_v7  ;;  %v6652_v26 = vadd.f32 %v14495_v34, %v6585_v54  ;;  %v6712_v12 = vmax.f32 %v6648_v56, 0.0  ;;  %v6588_v36 = vmul.f32 %v14487_v48, %v17525_v39  ;;  %v6713_v4 = vmax.f32 %v6649_v38, 0.0  ;;  %v17533_v39 = vld [vmem:[#allocation79_spill] sm:$0xff] }
 0x8ed   :  { %6771 = vst.msk [vmem:[%s15935_s7 + $0x40] sm:$0xff] %vm1547_vm4, %v6707_v24  ;;  %v6653_v19 = vadd.f32 %v14495_v34, %v6586_v9  ;;  %v6589_v17 = vmul.f32 %v14487_v48, %v17526_v15  ;;  %v6654_v41 = vadd.f32 %v14495_v34, %v6587_v55  ;;  %v6714_v7 = vmax.f32 %v6650_v47, 0.0  ;;  %v17534_v15 = vld [vmem:[#allocation30_spill] sm:$0xff] }
 0x8ee   :  { %6772 = vst.msk [vmem:[%s15935_s7 + $0x48] sm:$0xff] %vm1547_vm4, %v6708_v31  ;;  %v6590_v42 = vmul.f32 %v14487_v48, %v17527_v49  ;;  %v6655_v62 = vadd.f32 %v14495_v34, %v6588_v36  ;;  %v6715_v24 = vmax.f32 %v6651_v16, 0.0  ;;  %v6591_v23 = vmul.f32 %v14487_v48, %v17528_v29  ;;  %v17535_v49 = vld [vmem:[#allocation73_spill] sm:$0xff] }
 0x8ef   :  { %6773 = vst.msk [vmem:[%s15935_s7 + $0x50] sm:$0xff] %vm1547_vm4, %v6709_v46  ;;  %v6656_v56 = vadd.f32 %v14495_v34, %v6589_v17  ;;  %v6716_v31 = vmax.f32 %v6652_v26, 0.0  ;;  %v6592_v2 = vmul.f32 %v14487_v48, %v17529_v3  ;;  %v6717_v46 = vmax.f32 %v6653_v19, 0.0  ;;  %v17536_v29 = vld [vmem:[#allocation89_spill] sm:$0xff]  ;;  %v17537_v3 = vld [vmem:[#allocation95_spill] sm:$0xff] }
 0x8f0   :  { %6774 = vst.msk [vmem:[%s15935_s7 + $0x58] sm:$0xff] %vm1547_vm4, %v6710_v37  ;;  %v6657_v38 = vadd.f32 %v14495_v34, %v6590_v42  ;;  %v6593_v54 = vmul.f32 %v14487_v48, %v17530_v51  ;;  %v6658_v47 = vadd.f32 %v14495_v34, %v6591_v23  ;;  %v6718_v37 = vmax.f32 %v6654_v41, 0.0 }
 0x8f1   :  { %6775 = vst.msk [vmem:[%s15935_s7 + $0x60] sm:$0xff] %vm1547_vm4, %v6711_v45  ;;  %v6594_v9 = vmul.f32 %v14487_v48, %v17531_v22  ;;  %v6659_v16 = vadd.f32 %v14495_v34, %v6592_v2  ;;  %v6719_v45 = vmax.f32 %v6655_v62, 0.0  ;;  %v6595_v55 = vmul.f32 %v14487_v48, %v17532_v53 }
 0x8f2   :  { %6776 = vst.msk [vmem:[%s15935_s7 + $0x68] sm:$0xff] %vm1547_vm4, %v6712_v12  ;;  %v6660_v26 = vadd.f32 %v14495_v34, %v6593_v54  ;;  %v6720_v12 = vmax.f32 %v6656_v56, 0.0  ;;  %v6596_v36 = vmul.f32 %v14487_v48, %v17533_v39  ;;  %v6597_v17 = vmul.f32 %v14487_v48, %v17534_v15 }
 0x8f3   :  { %6777 = vst.msk [vmem:[%s15935_s7 + $0x70] sm:$0xff] %vm1547_vm4, %v6713_v4  ;;  %v6661_v19 = vadd.f32 %v14495_v34, %v6594_v9  ;;  %v6721_v4 = vmax.f32 %v6657_v38, 0.0  ;;  %v6662_v41 = vadd.f32 %v14495_v34, %v6595_v55  ;;  %v6598_v42 = vmul.f32 %v14487_v48, %v17535_v49 }
 0x8f4   :  { %6778 = vst.msk [vmem:[%s15935_s7 + $0x78] sm:$0xff] %vm1547_vm4, %v6714_v7  ;;  %v6722_v7 = vmax.f32 %v6658_v47, 0.0  ;;  %v6663_v62 = vadd.f32 %v14495_v34, %v6596_v36  ;;  %v6599_v23 = vmul.f32 %v14487_v48, %v17536_v29  ;;  %v6664_v56 = vadd.f32 %v14495_v34, %v6597_v17 }
 0x8f5   :  { %6779 = vst.msk [vmem:[%s15935_s7 + $0x80] sm:$0xff] %vm1547_vm4, %v6715_v24  ;;  %v6723_v24 = vmax.f32 %v6659_v16, 0.0  ;;  %v6600_v2 = vmul.f32 %v14487_v48, %v17537_v3  ;;  %v6665_v38 = vadd.f32 %v14495_v34, %v6598_v42  ;;  %v6726_v54 = vmax.f32 %v6662_v41, 0.0 }
 0x8f6   :  { %6780 = vst.msk [vmem:[%s15935_s7 + $0x88] sm:$0xff] %vm1547_vm4, %v6716_v31  ;;  %v6724_v31 = vmax.f32 %v6660_v26, 0.0  ;;  %v6666_v51 = vadd.f32 %v14495_v34, %v6599_v23  ;;  %v6728_v48 = vmax.f32 %v6664_v56, 0.0  ;;  %v6732_v16 = vmax.f32 %v14623_v6, 0.0 }
 0x8f7   :  { %6781 = vst.msk [vmem:[%s15935_s7 + $0x90] sm:$0xff] %vm1547_vm4, %v6717_v46  ;;  %v6725_v46 = vmax.f32 %v6661_v19, 0.0  ;;  %v6667_v47 = vadd.f32 %v14495_v34, %v6600_v2  ;;  %v6729_v22 = vmax.f32 %v6665_v38, 0.0  ;;  %v6734_v53 = vmax.f32 %v14629_v33, 0.0  ;;  %v7572_v2 = vld [vmem:[%s15935_s7 + $0x10] ss:$2 sm:$0xff] }
 0x8f8   :  { %6782 = vst.msk [vmem:[%s15935_s7 + $0x98] sm:$0xff] %vm1547_vm4, %v6718_v37  ;;  %v6727_v37 = vmax.f32 %v6663_v62, 0.0  ;;  %v6730_v9 = vmax.f32 %v6666_v51, 0.0  ;;  %v6735_v6 = vmax.f32 %v14632_v1, 0.0  ;;  %v6736_v55 = vmax.f32 %v14635_v61, 0.0 }
 0x8f9   :  { %6783 = vst.msk [vmem:[%s15935_s7 + $0xa0] sm:$0xff] %vm1547_vm4, %v6719_v45  ;;  %v6731_v34 = vmax.f32 %v6667_v47, 0.0  ;;  %v6733_v45 = vmax.f32 %v14626_v43, 0.0  ;;  %v14918_v43 = vadd.s32 32, %v14517_v63  ;;  %v14926_v33 = vadd.s32 64, %v14517_v63 }
 0x8fa   :  { %6784 = vst.msk [vmem:[%s15935_s7 + $0xa8] sm:$0xff] %vm1547_vm4, %v6720_v12  ;;  %v14929_v1 = vadd.s32 96, %v14517_v63  ;;  %v14932_v26 = vadd.s32 128, %v14517_v63  ;;  %v6737_v12 = vmax.f32 %v14638_v11, 0.0  ;;  %v14940_v61 = vadd.s32 160, %v14517_v63 }
 0x8fb   :  { %6785 = vst.msk [vmem:[%s15935_s7 + $0xb0] sm:$0xff] %vm1547_vm4, %v6721_v4  ;;  %v14943_v39 = vadd.s32 192, %v14517_v63  ;;  %v6738_v36 = vmax.f32 %v14641_v5, 0.0  ;;  %v6739_v19 = vmax.f32 %v14644_v52, 0.0  ;;  %v6740_v11 = vmax.f32 %v14647_v27, 0.0 }
 0x8fc   :  { %6786 = vst.msk [vmem:[%s15935_s7 + $0xb8] sm:$0xff] %vm1547_vm4, %v6722_v7  ;;  %v6827_v4 = vld [vmem:[%s15935_s7] ss:$2 sm:$0xff]  ;;  %v7603_v5 = vld [vmem:[%s15935_s7 + $0x1] ss:$2 sm:$0xff]  ;;  %v6741_v52 = vmax.f32 %v14650_v28, 0.0 }
 0x8fd   :  { %6787 = vst.msk [vmem:[%s15935_s7 + $0xc0] sm:$0xff] %vm1547_vm4, %v6723_v24  ;;  %v6742_v15 = vmax.f32 %v14653_v30, 0.0  ;;  %v6743_v17 = vmax.f32 %v14656_v44, 0.0  ;;  %v6744_v27 = vmax.f32 %v14659_v13, 0.0  ;;  %v6745_v41 = vmax.f32 %v14662_v10, 0.0 }
 0x8fe   :  { %6788 = vst.msk [vmem:[%s15935_s7 + $0xc8] sm:$0xff] %vm1547_vm4, %v6724_v31  ;;  %v6746_v7 = vmax.f32 %v14665_v20, 0.0  ;;  %v6747_v49 = vmax.f32 %v14668_v14, 0.0  ;;  %v6748_v42 = vmax.f32 %v14671_v59, 0.0  ;;  %v6749_v28 = vmax.f32 %v14674_v8, 0.0 }
 0x8ff   :  { %6789 = vst.msk [vmem:[%s15935_s7 + $0xd0] sm:$0xff] %vm1547_vm4, %v6725_v46  ;;  %v7573_v30 = vld [vmem:[%s15935_s7 + $0x20] ss:$2 sm:$0xff]  ;;  %vm6954_vm2 = vcmp.gt.f32.partialorder %v7603_v5, %v6827_v4  ;;  %v6750_v13 = vmax.f32 %v14677_v58, 0.0  ;;  %v7605_v20 = vld [vmem:[%s15935_s7 + $0x21] ss:$2 sm:$0xff] }
 0x900   :  { %6790 = vst.msk [vmem:[%s15935_s7 + $0xd8] sm:$0xff] %vm1547_vm4, %v6726_v54  ;;  %v7575_v44 = vld [vmem:[%s15935_s7 + $0x40] ss:$2 sm:$0xff]  ;;  %v6751_v14 = vmax.f32 %v14680_v18, 0.0  ;;  %v7607_v8 = vld [vmem:[%s15935_s7 + $0x41] ss:$2 sm:$0xff]  ;;  %v6970_v29 = vsel %vm6954_vm2, %v7603_v5, %v6827_v4  ;;  %vm6955_vm12 = vcmp.gt.f32.partialorder %v7605_v20, %v7573_v30 }
 0x901   :  { %6791 = vst.msk [vmem:[%s15935_s7 + $0xe0] sm:$0xff] %vm1547_vm4, %v6727_v37  ;;  %v14997_v10 = vld [vmem:[%s15935_s7 + $0x60] ss:$2 sm:$0xff]  ;;  %v6752_v58 = vmax.f32 %v14683_v25, 0.0  ;;  %v7609_v62 = vld [vmem:[%s15935_s7 + $0x61] ss:$2 sm:$0xff]  ;;  %vm6956_vm13 = vcmp.gt.f32.partialorder %v7607_v8, %v7575_v44  ;;  %vm7002_vm5 = vcmp.gt.f32.partialorder %v7572_v2, %v6970_v29 }
 0x902   :  { %6792 = vst.msk [vmem:[%s15935_s7 + $0xe8] sm:$0xff] %vm1547_vm4, %v6728_v48  ;;  %v15010_v59 = vld [vmem:[%s15935_s7 + $0x80] ss:$2 sm:$0xff]  ;;  %v15026_v24 = vld [vmem:[%s15935_s7 + $0x81] ss:$2 sm:$0xff]  ;;  %v6753_v23 = vmax.f32 %v14686_v35, 0.0  ;;  %vm6957_vm15 = vcmp.gt.f32.partialorder %v7609_v62, %v14997_v10 }
 0x903   :  { %6793 = vst.msk [vmem:[%s15935_s7 + $0xf0] sm:$0xff] %vm1547_vm4, %v6729_v22  ;;  %v6754_v56 = vmax.f32 %v14689_v40, 0.0  ;;  %v6755_v31 = vmax.f32 %v14692_v21, 0.0  ;;  %v6756_v3 = vmax.f32 %v14695_v60, 0.0  ;;  %v15047_v38 = vld [vmem:[%s15935_s7 + $0xa0] ss:$2 sm:$0xff]  ;;  %vm6958_vm3 = vcmp.gt.f32.partialorder %v15026_v24, %v15010_v59 }
 0x904   :  { %6794 = vst.msk [vmem:[%s15935_s7 + $0xf8] sm:$0xff] %vm1547_vm4, %v6730_v9  ;;  %v6986_v47 = vsel %vm6954_vm2, 1, %v17513_v57  ;;  %v6757_v37 = vmax.f32 %v14698_v32, 0.0  ;;  %v15081_v48 = vld [vmem:[%s15935_s7 + $0x30] ss:$2 sm:$0xff] }
 0x905   :  { %6795 = vst.msk [vmem:[%s15935_s7 + $0x100] sm:$0xff] %vm1547_vm4, %v6731_v34  ;;  %v15056_v46 = vld [vmem:[%s15935_s7 + $0xc0] ss:$2 sm:$0xff]  ;;  %v15086_v22 = vld [vmem:[%s15935_s7 + $0xa1] ss:$2 sm:$0xff]  ;;  %v15094_v34 = vsel %vm6955_vm12, %v7605_v20, %v7573_v30 }
 0x906   :  { %17538 = vst [vmem:[#allocation56_spill] sm:$0xff] %v14918_v43  ;;  %v15091_v9 = vld [vmem:[%s15935_s7 + $0xc1] ss:$2 sm:$0xff]  ;;  %vm6959_vm6 = vcmp.gt.f32.partialorder %v15086_v22, %v15047_v38  ;;  %vm7003_vm8 = vcmp.gt.f32.partialorder %v15081_v48, %v15094_v34  ;;  %v15269_v20 = vld [vmem:[%s15935_s7 + $0x11] ss:$2 sm:$0xff] }
 0x907   :  { %6796 = vst.msk [vmem:[%s15935_s7 + $0x108] sm:$0xff] %vm1547_vm4, %v6732_v16  ;;  %vm6960_vm11 = vcmp.gt.f32.partialorder %v15091_v9, %v15056_v46  ;;  %v15240_v18 = vsel %vm6959_vm6, %v15086_v22, %v15047_v38  ;;  %v15432_v16 = vld [vmem:[%s15935_s7 + $0xb1] ss:$2 sm:$0xff] }
 0x908   :  { %17539 = vst [vmem:[#allocation22_spill] sm:$0xff] %v14926_v33  ;;  %v15281_v25 = vsel %vm6960_vm11, %v15091_v9, %v15056_v46  ;;  %v6992_v38 = vsel %vm6960_vm11, 1, %v17513_v57 }
 0x909   :  { %17540 = vst [vmem:[#allocation91_spill] sm:$0xff] %v14929_v1  ;;  %v15061_v51 = vld [vmem:[%s15935_s7 + $0xe0] ss:$2 sm:$0xff] }
 0x90a   :  { %17541 = vst [vmem:[#allocation9_spill] sm:$0xff] %v14932_v26 }
 0x90b   :  { %6797 = vst.msk [vmem:[%s15935_s7 + $0x110] sm:$0xff] %vm1547_vm4, %v6733_v45  ;;  %v15104_v45 = vld [vmem:[%s15935_s7 + $0xe1] ss:$2 sm:$0xff] }
 0x90c   :  { %17542 = vst [vmem:[#allocation49_spill] sm:$0xff] %v14940_v61  ;;  %vm6961_vm0 = vcmp.gt.f32.partialorder %v15104_v45, %v15061_v51 }
 0x90d   :  { %17543 = vst [vmem:[#allocation39_spill] sm:$0xff] %v14943_v39  ;;  %v17555_v39 = vmax.f32 %v14701_v50, 0.0  ;;  %v6993_v9 = vsel %vm6961_vm0, 1, %v17513_v57 }
 0x90e   :  { %6798 = vst.msk [vmem:[%s15935_s7 + $0x118] sm:$0xff] %vm1547_vm4, %v6734_v53  ;;  %v15066_v54 = vld [vmem:[%s15935_s7 + $0x100] ss:$2 sm:$0xff]  ;;  %v15109_v53 = vld [vmem:[%s15935_s7 + $0x101] ss:$2 sm:$0xff] }
 0x90f   :  { %6799 = vst.msk [vmem:[%s15935_s7 + $0x120] sm:$0xff] %vm1547_vm4, %v6735_v6  ;;  %v15112_v6 = vsel %vm6956_vm13, %v7607_v8, %v7575_v44  ;;  %vm16346_vm1 = vcmp.gt.f32.partialorder %v15109_v53, %v15066_v54  ;;  %v15246_v44 = vsel %vm6958_vm3, 1, %v17513_v57 }
 0x910   :  { %6800 = vst.msk [vmem:[%s15935_s7 + $0x128] sm:$0xff] %vm1547_vm4, %v6736_v55  ;;  %v15121_v55 = vld [vmem:[%s15935_s7 + $0x50] ss:$2 sm:$0xff]  ;;  %v15295_v8 = vsel %vm16346_vm1, %v15109_v53, %v15066_v54 }
 0x911   :  { %6801 = vst.msk [vmem:[%s15935_s7 + $0x130] sm:$0xff] %vm1547_vm4, %v6737_v12  ;;  %v15126_v12 = vsel %vm6957_vm15, %v7609_v62, %v14997_v10  ;;  %vm16348_vm7 = vcmp.gt.f32.partialorder %v15121_v55, %v15112_v6  ;;  %v15264_v10 = vld [vmem:[%s15935_s7 + $0xd0] ss:$2 sm:$0xff]  ;;  %vm17568_vm11 = vcmp.gt.f32.partialorder %v15121_v55, %v15112_v6 }
 0x912   :  { %6802 = vst.msk [vmem:[%s15935_s7 + $0x138] sm:$0xff] %vm1547_vm4, %v6738_v36  ;;  %v15133_v36 = vsel %vm6958_vm3, %v15026_v24, %v15010_v59  ;;  %v15288_v59 = vsel %vm6961_vm0, %v15104_v45, %v15061_v51  ;;  %v15313_v62 = vld [vmem:[%s15935_s7 + $0xf0] ss:$2 sm:$0xff]  ;;  %v15318_v24 = vld [vmem:[%s15935_s7 + $0x51] ss:$2 sm:$0xff] }
 0x913   :  { %6803 = vst.msk [vmem:[%s15935_s7 + $0x140] sm:$0xff] %vm1547_vm4, %v6739_v19  ;;  %v15137_v19 = vsel %vm6955_vm12, 1, %v17513_v57 }
 0x914   :  { %6804 = vst.msk [vmem:[%s15935_s7 + $0x148] sm:$0xff] %vm1547_vm4, %v6740_v11  ;;  %v15140_v11 = vsel %vm7002_vm5, 16, %v6986_v47 }
 0x915   :  { %6805 = vst.msk [vmem:[%s15935_s7 + $0x150] sm:$0xff] %vm1547_vm4, %v6741_v52  ;;  %v15160_v52 = vsel %vm6956_vm13, 1, %v17513_v57 }
 0x916   :  { %6806 = vst.msk [vmem:[%s15935_s7 + $0x158] sm:$0xff] %vm1547_vm4, %v6742_v15  ;;  %v15171_v15 = vld [vmem:[%s15935_s7 + $0x70] ss:$2 sm:$0xff] }
 0x917   :  { %6807 = vst.msk [vmem:[%s15935_s7 + $0x160] sm:$0xff] %vm1547_vm4, %v6743_v17  ;;  %v15149_v4 = vld [vmem:[%s15935_s7 + $0x120] ss:$2 sm:$0xff]  ;;  %v15154_v5 = vld [vmem:[%s15935_s7 + $0x121] ss:$2 sm:$0xff]  ;;  %vm16347_vm9 = vcmp.gt.f32.partialorder %v15171_v15, %v15126_v12  ;;  %vm17569_vm0 = vcmp.gt.f32.partialorder %v15171_v15, %v15126_v12 }
 0x918   :  { %6808 = vst.msk [vmem:[%s15935_s7 + $0x168] sm:$0xff] %vm1547_vm4, %v6744_v27  ;;  %v15176_v17 = vld [vmem:[%s15935_s7 + $0x90] ss:$2 sm:$0xff]  ;;  %vm16344_vm14 = vcmp.gt.f32.partialorder %v15154_v5, %v15149_v4  ;;  %v15327_v35 = vsel %vm16347_vm9, %v15171_v15, %v15126_v12 }
 0x919   :  { %6809 = vst.msk [vmem:[%s15935_s7 + $0x170] sm:$0xff] %vm1547_vm4, %v6745_v41  ;;  %vm16345_vm10 = vcmp.gt.f32.partialorder %v15176_v17, %v15133_v36  ;;  %v15361_v40 = vsel %vm16344_vm14, %v15154_v5, %v15149_v4  ;;  %vm16365_vm14 = vcmp.gt.f32.partialorder %v15313_v62, %v15288_v59  ;;  %v15400_v21 = vld [vmem:[%s15935_s7 + $0x130] ss:$2 sm:$0xff] }
 0x91a   :  { %6810 = vst.msk [vmem:[%s15935_s7 + $0x178] sm:$0xff] %vm1547_vm4, %v6746_v7  ;;  %v15203_v7 = vsel %vm6957_vm15, 1, %v17513_v57  ;;  %v15509_v33 = vsel %vm16365_vm14, %v15313_v62, %v15288_v59 }
 0x91b   :  { %6811 = vst.msk [vmem:[%s15935_s7 + $0x180] sm:$0xff] %vm1547_vm4, %v6747_v49  ;;  %v15193_v27 = vld [vmem:[%s15935_s7 + $0x140] ss:$2 sm:$0xff]  ;;  %v15198_v41 = vld [vmem:[%s15935_s7 + $0x141] ss:$2 sm:$0xff]  ;;  %v15210_v49 = vsel %vm7002_vm5, %v7572_v2, %v6970_v29  ;;  %v15334_v29 = vsel %vm16345_vm10, %v15176_v17, %v15133_v36  ;;  %vm16371_vm5 = vcmp.gt.f32.partialorder %v15264_v10, %v15281_v25  ;;  %v7037_v51 = vsel %vm17569_vm0, 16, %v15203_v7 }
 0x91c   :  { %6812 = vst.msk [vmem:[%s15935_s7 + $0x188] sm:$0xff] %vm1547_vm4, %v6748_v42  ;;  %v15221_v42 = vld [vmem:[%s15935_s7 + $0xb0] ss:$2 sm:$0xff]  ;;  %vm16349_vm2 = vcmp.gt.f32.partialorder %v15198_v41, %v15193_v27  ;;  %vm7050_vm12 = vcmp.gt.f32.partialorder %v15269_v20, %v15210_v49  ;;  %v15352_v2 = vld [vmem:[%s15935_s7 + $0x71] ss:$2 sm:$0xff]  ;;  %vm17571_vm0 = vcmp.gt.f32.partialorder %v15176_v17, %v15133_v36 }
 0x91d   :  { %6813 = vst.msk [vmem:[%s15935_s7 + $0x190] sm:$0xff] %vm1547_vm4, %v6749_v28  ;;  %vm7007_vm15 = vcmp.gt.f32.partialorder %v15221_v42, %v15240_v18  ;;  %v7066_v60 = vsel %vm7050_vm12, %v15269_v20, %v15210_v49  ;;  %v15464_v61 = vld [vmem:[%s15935_s7 + $0x150] ss:$2 sm:$0xff]  ;;  %v7038_v12 = vsel %vm17571_vm0, 16, %v15246_v44  ;;  %v17579_v44 = vld [vmem:[#allocation56_spill] sm:$0xff] }
 0x91e   :  { %6814 = vst.msk [vmem:[%s15935_s7 + $0x198] sm:$0xff] %vm1547_vm4, %v6750_v13  ;;  %v15253_v13 = vsel %vm7003_vm8, %v15081_v48, %v15094_v34 }
 0x91f   :  { %6815 = vst.msk [vmem:[%s15935_s7 + $0x1a0] sm:$0xff] %vm1547_vm4, %v6751_v14  ;;  %v15226_v28 = vld [vmem:[%s15935_s7 + $0x160] ss:$2 sm:$0xff]  ;;  %v15231_v30 = vld [vmem:[%s15935_s7 + $0x161] ss:$2 sm:$0xff] }
 0x920   :  { %17544 = vst [vmem:[#allocation61_spill] sm:$0xff] %v15226_v28  ;;  %v15274_v14 = vld [vmem:[%s15935_s7 + $0x31] ss:$2 sm:$0xff]  ;;  %vm16354_vm13 = vcmp.gt.f32.partialorder %v15231_v30, %v15226_v28 }
 0x921   :  { %17545 = vst [vmem:[#allocation90_spill] sm:$0xff] %v15231_v30  ;;  %vm7051_vm3 = vcmp.gt.f32.partialorder %v15274_v14, %v15253_v13  ;;  %v15439_v32 = vsel %vm16354_vm13, %v15231_v30, %v15226_v28  ;;  %v15469_v26 = vld [vmem:[%s15935_s7 + $0x170] ss:$2 sm:$0xff] }
 0x922   :  { %6816 = vst.msk [vmem:[%s15935_s7 + $0x1a8] sm:$0xff] %vm1547_vm4, %v6752_v58  ;;  %v15302_v58 = vsel %vm16348_vm7, %v15121_v55, %v15112_v6  ;;  %vm16366_vm7 = vcmp.gt.f32.partialorder %v15352_v2, %v15327_v35  ;;  %v7067_v0 = vsel %vm7051_vm3, %v15274_v14, %v15253_v13  ;;  %vm16380_vm14 = vcmp.gt.f32.partialorder %v15469_v26, %v15439_v32 }
 0x923   :  { %17546 = vst [vmem:[#allocation38_spill] sm:$0xff] %v15288_v59  ;;  %v15381_v47 = vld [vmem:[%s15935_s7 + $0x181] ss:$2 sm:$0xff]  ;;  %vm7052_vm1 = vcmp.gt.f32.partialorder %v15318_v24, %v15302_v58  ;;  %v7069_v30 = vsel %vm16366_vm7, %v15352_v2, %v15327_v35  ;;  %v15532_v59 = vld [vmem:[%s15935_s7 + $0xd1] ss:$2 sm:$0xff]  ;;  %v15616_v34 = vsel %vm16380_vm14, %v15469_v26, %v15439_v32  ;;  %v7082_v6 = vsel %vm7050_vm12, 17, %v15140_v11 }
 0x924   :  { %17547 = vst [vmem:[#allocation119_spill] sm:$0xff] %v15295_v8  ;;  %v7068_v1 = vsel %vm7052_vm1, %v15318_v24, %v15302_v58  ;;  %vm17572_vm12 = vcmp.gt.f32.partialorder %v15154_v5, %v15149_v4  ;;  %v17586_v58 = vld [vmem:[#allocation22_spill] sm:$0xff] }
 0x925   :  { %6817 = vst.msk [vmem:[%s15935_s7 + $0x1b0] sm:$0xff] %vm1547_vm4, %v6753_v23  ;;  %v15347_v23 = vld [vmem:[%s15935_s7 + $0x110] ss:$2 sm:$0xff] }
 0x926   :  { %6818 = vst.msk [vmem:[%s15935_s7 + $0x1b8] sm:$0xff] %vm1547_vm4, %v6754_v56  ;;  %v15376_v56 = vld [vmem:[%s15935_s7 + $0x180] ss:$2 sm:$0xff]  ;;  %vm16364_vm10 = vcmp.gt.f32.partialorder %v15347_v23, %v15295_v8  ;;  %v15527_v43 = vld [vmem:[%s15935_s7 + $0x190] ss:$2 sm:$0xff] }
 0x927   :  { %17548 = vst [vmem:[#allocation41_spill] sm:$0xff] %v15347_v23  ;;  %vm16358_vm9 = vcmp.gt.f32.partialorder %v15381_v47, %v15376_v56  ;;  %v15516_v28 = vsel %vm16364_vm10, %v15347_v23, %v15295_v8  ;;  %v15556_v23 = vld [vmem:[%s15935_s7 + $0xf1] ss:$2 sm:$0xff] }
 0x928   :  { %17549 = vst [vmem:[#allocation139_spill] sm:$0xff] %v15361_v40  ;;  %v15476_v50 = vsel %vm16358_vm9, %v15381_v47, %v15376_v56  ;;  %v17581_v20 = vld [vmem:[#allocation61_spill] sm:$0xff] }
 0x929   :  { %6819 = vst.msk [vmem:[%s15935_s7 + $0x1c0] sm:$0xff] %vm1547_vm4, %v6755_v31  ;;  %v15409_v31 = vsel %vm16349_vm2, %v15198_v41, %v15193_v27  ;;  %vm16370_vm2 = vcmp.gt.f32.partialorder %v15400_v21, %v15361_v40 }
 0x92a   :  { %17550 = vst [vmem:[#allocation109_spill] sm:$0xff] %v15376_v56  ;;  %v15495_v56 = vld [vmem:[%s15935_s7 + $0x1a0] ss:$2 sm:$0xff]  ;;  %vm16378_vm9 = vcmp.gt.f32.partialorder %v15464_v61, %v15409_v31  ;;  %v17576_v49 = vld [vmem:[#allocation38_spill] sm:$0xff] }
 0x92b   :  { %17551 = vst [vmem:[#allocation142_spill] sm:$0xff] %v15381_v47  ;;  %v15500_v47 = vld [vmem:[%s15935_s7 + $0x1a1] ss:$2 sm:$0xff] }
 0x92c   :  { %6820 = vst.msk [vmem:[%s15935_s7 + $0x1c8] sm:$0xff] %vm1547_vm4, %v6756_v3  ;;  %v15427_v3 = vld [vmem:[%s15935_s7 + $0x91] ss:$2 sm:$0xff]  ;;  %vm16373_vm10 = vcmp.gt.f32.partialorder %v15500_v47, %v15495_v56 }
 0x92d   :  { %17552 = vst [vmem:[#allocation75_spill] sm:$0xff] %v15400_v21  ;;  %vm16375_vm13 = vcmp.gt.f32.partialorder %v15427_v3, %v15334_v29  ;;  %v15551_v8 = vld [vmem:[%s15935_s7 + $0x1b0] ss:$2 sm:$0xff]  ;;  %vm17578_vm0 = vcmp.gt.f32.partialorder %v15427_v3, %v15334_v29 }
 0x92e   :  { %17553 = vst [vmem:[#allocation110_spill] sm:$0xff] %v15409_v31 }
 0x92f   :  { %6821 = vst.msk [vmem:[%s15935_s7 + $0x1d0] sm:$0xff] %vm1547_vm4, %v6757_v37  ;;  %v15448_v37 = vsel %vm7007_vm15, %v15221_v42, %v15240_v18  ;;  %v7086_v18 = vsel %vm17578_vm0, 17, %v7038_v12 }
 0x930   :  { %17554 = vst [vmem:[#allocation45_spill] sm:$0xff] %v15439_v32  ;;  %vm7055_vm7 = vcmp.gt.f32.partialorder %v15432_v16, %v15448_v37 }
 0x931   :  { %6822 = vst.msk [vmem:[%s15935_s7 + $0x1d8] sm:$0xff] %vm1547_vm4, %v17555_v39  ;;  %v15483_v39 = vsel %vm16371_vm5, %v15264_v10, %v15281_v25 }
 0x932   :  { %17556 = vst [vmem:[#allocation31_spill] sm:$0xff] %v15464_v61  ;;  %vm7056_vm5 = vcmp.gt.f32.partialorder %v15532_v59, %v15483_v39  ;;  %v17587_v24 = vld [vmem:[#allocation142_spill] sm:$0xff] }
 0x933   :  { %17557 = vst [vmem:[#allocation113_spill] sm:$0xff] %v15469_v26  ;;  %v15609_v48 = vld [vmem:[%s15935_s7 + $0x1c1] ss:$2 sm:$0xff]  ;;  %v7072_v26 = vsel %vm7056_vm5, %v15532_v59, %v15483_v39 }
 0x934   :  { %17558 = vst [vmem:[#allocation54_spill] sm:$0xff] %v15476_v50 }
 0x935   :  { %17559 = vst [vmem:[#allocation98_spill] sm:$0xff] %v15483_v39 }
 0x936   :  { %17560 = vst [vmem:[#allocation133_spill] sm:$0xff] %v15495_v56 }
 0x937   :  { %17561 = vst [vmem:[#allocation10_spill] sm:$0xff] %v15500_v47 }
 0x938   :  { %7100 = vst.msk [vmem:[#allocation3] sm:$0xff] %vm1547_vm4, %v7066_v60  ;;  %v15543_v60 = vsel %vm16370_vm2, %v15400_v21, %v15361_v40  ;;  %v15563_v40 = vsel %vm16373_vm10, %v15500_v47, %v15495_v56  ;;  %vm16385_vm2 = vcmp.gt.f32.partialorder %v15527_v43, %v15476_v50  ;;  %v15578_v21 = vld [vmem:[%s15935_s7 + $0x111] ss:$2 sm:$0xff]  ;;  %v15587_v56 = vsel %vm16378_vm9, %v15464_v61, %v15409_v31  ;;  %v15599_v47 = vld [vmem:[%s15935_s7 + $0x1c0] ss:$2 sm:$0xff] }
 0x939   :  { %17562 = vst [vmem:[#allocation122_spill] sm:$0xff] %v15527_v43  ;;  %vm16389_vm10 = vcmp.gt.f32.partialorder %v15551_v8, %v15563_v40  ;;  %v15604_v31 = vld [vmem:[%s15935_s7 + $0x131] ss:$2 sm:$0xff]  ;;  %vm16390_vm9 = vcmp.gt.f32.partialorder %v15609_v48, %v15599_v47  ;;  %v15637_v32 = vsel %vm16385_vm2, %v15527_v43, %v15476_v50  ;;  %v15650_v61 = vld [vmem:[%s15935_s7 + $0x1d0] ss:$2 sm:$0xff] }
 0x93a   :  { %7101 = vst.msk [vmem:[#allocation3 + $0x8] sm:$0xff] %vm1547_vm4, %v7067_v0  ;;  %v7070_v0 = vsel %vm16375_vm13, %v15427_v3, %v15334_v29  ;;  %vm7057_vm13 = vcmp.gt.f32.partialorder %v15556_v23, %v15509_v33  ;;  %vm16395_vm14 = vcmp.gt.f32.partialorder %v15604_v31, %v15543_v60  ;;  %v15655_v50 = vld [vmem:[%s15935_s7 + $0x171] ss:$2 sm:$0xff]  ;;  %v15662_v43 = vsel %vm16390_vm9, %v15609_v48, %v15599_v47 }
 0x93b   :  { %17563 = vst [vmem:[#allocation80_spill] sm:$0xff] %v15551_v8  ;;  %v7073_v39 = vsel %vm7057_vm13, %v15556_v23, %v15509_v33  ;;  %vm7061_vm9 = vcmp.gt.f32.partialorder %v15655_v50, %v15616_v34  ;;  %v15724_v46 = vld [vmem:[%s15935_s7 + $0x1d1] ss:$2 sm:$0xff] }
 0x93c   :  { %17564 = vst [vmem:[#allocation94_spill] sm:$0xff] %v15563_v40  ;;  %v7077_v45 = vsel %vm7061_vm9, %v15655_v50, %v15616_v34  ;;  %v17608_v23 = vld [vmem:[#allocation49_spill] sm:$0xff] }
 0x93d   :  { %7102 = vst.msk [vmem:[#allocation3 + $0x10] sm:$0xff] %vm1547_vm4, %v7068_v1  ;;  %v7035_v1 = vsel %vm7003_vm8, 16, %v15137_v19  ;;  %vm7058_vm8 = vcmp.gt.f32.partialorder %v15578_v21, %v15516_v28  ;;  %v7071_v19 = vsel %vm7055_vm7, %v15432_v16, %v15448_v37  ;;  %v17594_v16 = vld [vmem:[#allocation91_spill] sm:$0xff] }
 0x93e   :  { %7103 = vst.msk [vmem:[#allocation3 + $0x18] sm:$0xff] %vm1547_vm4, %v7069_v30  ;;  %v15628_v30 = vld [vmem:[%s15935_s7 + $0x151] ss:$2 sm:$0xff] }
 0x93f   :  { %17565 = vst [vmem:[#allocation44_spill] sm:$0xff] %v15599_v47  ;;  %vm7060_vm2 = vcmp.gt.f32.partialorder %v15628_v30, %v15587_v56  ;;  %v15681_v47 = vld [vmem:[%s15935_s7 + $0x191] ss:$2 sm:$0xff] }
 0x940   :  { %17566 = vst [vmem:[#allocation137_spill] sm:$0xff] %v15609_v48  ;;  %v15700_v48 = vld [vmem:[%s15935_s7 + $0x1b1] ss:$2 sm:$0xff]  ;;  %s7871_s7 = smov [#allocation3]  }
 0x941   :  { %7104 = vst.msk [vmem:[#allocation3 + $0x20] sm:$0xff] %vm1547_vm4, %v7070_v0  ;;  %v15669_v0 = vsel %vm16389_vm10, %v15551_v8, %v15563_v40  ;;  %v6991_v40 = vsel %vm6959_vm6, 1, %v17513_v57  ;;  %vm16394_vm10 = vcmp.gt.f32.partialorder %v15650_v61, %v15662_v43  ;;  %v7074_v8 = vsel %vm7058_vm8, %v15578_v21, %v15516_v28  ;;  %s15758_s29 = sshll.u32 %s7871_s7, 4  ;;  %s7163_s29 = int_to_ptr.vmem [resolvable:$true] %s15758_s29 }
 0x942   :  { %17567 = vst [vmem:[#allocation37_spill] sm:$0xff] %v15662_v43  ;;  %v15711_v22 = vsel %vm16394_vm10, %v15650_v61, %v15662_v43  ;;  %vm7062_vm6 = vcmp.gt.f32.partialorder %v15681_v47, %v15637_v32  ;;  %v7036_v43 = vsel %vm17568_vm11, 16, %v15160_v52  ;;  %vm7063_vm10 = vcmp.gt.f32.partialorder %v15700_v48, %v15669_v0 }
 0x943   :  { %7105 = vst.msk [vmem:[#allocation3 + $0x28] sm:$0xff] %vm1547_vm4, %v7071_v19  ;;  %v7075_v19 = vsel %vm16395_vm14, %v15604_v31, %v15543_v60  ;;  %vm7064_vm14 = vcmp.gt.f32.partialorder %v15724_v46, %v15711_v22  ;;  %vm17570_vm11 = vcmp.gt.f32.partialorder %v15109_v53, %v15066_v54  ;;  %v7078_v11 = vsel %vm7062_vm6, %v15681_v47, %v15637_v32 }
 0x944   :  { %7106 = vst.msk [vmem:[#allocation3 + $0x30] sm:$0xff] %vm1547_vm4, %v7072_v26  ;;  %v7076_v26 = vsel %vm7060_vm2, %v15628_v30, %v15587_v56  ;;  %v6994_v55 = vsel %vm17570_vm11, 1, %v17513_v57  ;;  %v7083_v52 = vsel %vm7051_vm3, 17, %v7035_v1  ;;  %v6995_v54 = vsel %vm17572_vm12, 1, %v17513_v57 }
 0x945   :  { %7107 = vst.msk [vmem:[#allocation3 + $0x38] sm:$0xff] %vm1547_vm4, %v7073_v39  ;;  %v7039_v53 = vsel %vm7007_vm15, 16, %v6991_v40  ;;  %v7079_v36 = vsel %vm7063_vm10, %v15700_v48, %v15669_v0  ;;  %v7084_v15 = vsel %vm7052_vm1, 17, %v7036_v43  ;;  %vm17573_vm3 = vcmp.gt.f32.partialorder %v15264_v10, %v15281_v25  ;;  %v17580_v10 = vld [vmem:[#allocation90_spill] sm:$0xff]  ;;  %v17591_v40 = vld [vmem:[#allocation139_spill] sm:$0xff] }
 0x946   :  { %7108 = vst.msk [vmem:[#allocation3 + $0x40] sm:$0xff] %vm1547_vm4, %v7074_v8  ;;  %v7040_v4 = vsel %vm17573_vm3, 16, %v6992_v38  ;;  %v7080_v5 = vsel %vm7064_vm14, %v15724_v46, %v15711_v22  ;;  %vm17574_vm15 = vcmp.gt.f32.partialorder %v15352_v2, %v15327_v35  ;;  %v7124_v43 = vadd.s32 %v14517_v63, %v7082_v6  ;;  %v17588_v35 = vld [vmem:[#allocation109_spill] sm:$0xff]  ;;  %v17590_v2 = vld [vmem:[#allocation75_spill] sm:$0xff]  ;;  %v17595_v38 = vld [vmem:[#allocation10_spill] sm:$0xff] }
 0x947   :  { %7109 = vst.msk [vmem:[#allocation3 + $0x48] sm:$0xff] %vm1547_vm4, %v7075_v19  ;;  %v7085_v17 = vsel %vm17574_vm15, 17, %v7037_v51  ;;  %vm17575_vm1 = vcmp.gt.f32.partialorder %v15198_v41, %v15193_v27  ;;  %vm17577_vm11 = vcmp.gt.f32.partialorder %v15313_v62, %v17576_v49  ;;  %v7125_v13 = vadd.s32 %v17579_v44, %v7083_v52  ;;  %v17583_v27 = vld [vmem:[#allocation41_spill] sm:$0xff]  ;;  %v17584_v41 = vld [vmem:[#allocation119_spill] sm:$0xff]  ;;  %v17599_v51 = vld [vmem:[#allocation110_spill] sm:$0xff] }
 0x948   :  { %7110 = vst.msk [vmem:[#allocation3 + $0x50] sm:$0xff] %vm1547_vm4, %v7076_v26  ;;  %v6996_v7 = vsel %vm17575_vm1, 1, %v17513_v57  ;;  %v7041_v42 = vsel %vm17577_vm11, 16, %v6993_v9  ;;  %vm17582_vm12 = vcmp.gt.f32.partialorder %v17580_v10, %v17581_v20  ;;  %vm17585_vm3 = vcmp.gt.f32.partialorder %v17583_v27, %v17584_v41  ;;  %v17596_v19 = vld [vmem:[#allocation133_spill] sm:$0xff]  ;;  %v17598_v26 = vld [vmem:[#allocation31_spill] sm:$0xff]  ;;  %v17614_v49 = vld [vmem:[#allocation80_spill] sm:$0xff] }
 0x949   :  { %7111 = vst.msk [vmem:[#allocation3 + $0x58] sm:$0xff] %vm1547_vm4, %v7077_v45  ;;  %v6997_v14 = vsel %vm17582_vm12, 1, %v17513_v57  ;;  %v7042_v25 = vsel %vm17585_vm3, 16, %v6994_v55  ;;  %v7087_v8 = vsel %vm7055_vm7, 17, %v7039_v53  ;;  %v7126_v62 = vadd.s32 %v17586_v58, %v7084_v15  ;;  %v17601_v55 = vld [vmem:[#allocation9_spill] sm:$0xff] }
 0x94a   :  { %7112 = vst.msk [vmem:[#allocation3 + $0x60] sm:$0xff] %vm1547_vm4, %v7078_v11  ;;  %vm17589_vm15 = vcmp.gt.f32.partialorder %v17587_v24, %v17588_v35  ;;  %vm17592_vm1 = vcmp.gt.f32.partialorder %v17590_v2, %v17591_v40  ;;  %v7088_v1 = vsel %vm7056_vm5, 17, %v7040_v4  ;;  %v7127_v37 = vadd.s32 %v17594_v16, %v7085_v17  ;;  %v17602_v12 = vld [vmem:[#allocation137_spill] sm:$0xff]  ;;  %v17603_v11 = vld [vmem:[#allocation44_spill] sm:$0xff]  ;;  %v17609_v4 = vld [vmem:[#allocation122_spill] sm:$0xff] }
 0x94b   :  { %7113 = vst.msk [vmem:[#allocation3 + $0x68] sm:$0xff] %vm1547_vm4, %v7079_v36  ;;  %v6998_v29 = vsel %vm17589_vm15, 1, %v17513_v57  ;;  %v7043_v3 = vsel %vm17592_vm1, 16, %v6995_v54  ;;  %vm17597_vm7 = vcmp.gt.f32.partialorder %v17595_v38, %v17596_v19  ;;  %vm17600_vm11 = vcmp.gt.f32.partialorder %v17598_v26, %v17599_v51  ;;  %v17605_v54 = vld [vmem:[#allocation113_spill] sm:$0xff] }
 0x94c   :  { %7114 = vst.msk [vmem:[#allocation3 + $0x70] sm:$0xff] %vm1547_vm4, %v7080_v5  ;;  %v6999_v9 = vsel %vm17597_vm7, 1, %v17513_v57  ;;  %v7044_v45 = vsel %vm17600_vm11, 16, %v6996_v7  ;;  %v7089_v6 = vsel %vm7057_vm13, 17, %v7041_v42  ;;  %v7128_v59 = vadd.s32 %v17601_v55, %v7086_v18  ;;  %v17606_v53 = vld [vmem:[#allocation45_spill] sm:$0xff]  ;;  %v17610_v5 = vld [vmem:[#allocation54_spill] sm:$0xff] }
 0x94d   :  { %7140 = vst.msk [vmem:[#allocation5] sm:$0xff] %vm1547_vm4, %v7124_v43  ;;  %7170 = dma.vmem_to_hbm [thread:$0]  %s7163_s29, 2048, %s7165_s12, [#allocation4], %s7872_s8, %s7872_s8, %s7859_s17   ;;  %vm17604_vm5 = vcmp.gt.f32.partialorder %v17602_v12, %v17603_v11  ;;  %vm17607_vm0 = vcmp.gt.f32.partialorder %v17605_v54, %v17606_v53  ;;  %v7090_v33 = vsel %vm7058_vm8, 17, %v7042_v25  ;;  %v7129_v15 = vadd.s32 %v17608_v23, %v7087_v8  ;;  %v17613_v43 = vld [vmem:[#allocation39_spill] sm:$0xff]  ;;  %v17615_v42 = vld [vmem:[#allocation94_spill] sm:$0xff] }
 0x94e   :  { %v7000_v52 = vsel %vm17604_vm5, 1, %v17513_v57  ;;  %v7045_v36 = vsel %vm17607_vm0, 16, %v6997_v14  ;;  %7141 = vst.msk [vmem:[#allocation5 + $0x8] sm:$0xff] %vm1547_vm4, %v7125_v13  ;;  %vm17611_vm13 = vcmp.gt.f32.partialorder %v17609_v4, %v17610_v5  ;;  %vm17612_vm12 = vcmp.gt.f32.partialorder %v15604_v31, %v15543_v60  ;;  %v17617_v18 = vld [vmem:[#allocation32_spill] sm:$0xff]  ;;  %v17618_v10 = vld [vmem:[#allocation37_spill] sm:$0xff] }
 0x94f   :  { %v7046_v17 = vsel %vm17611_vm13, 16, %v6998_v29  ;;  %v7091_v57 = vsel %vm17612_vm12, 17, %v7043_v3  ;;  %v7130_v7 = vadd.s32 %v17613_v43, %v7088_v1  ;;  %7142 = vst.msk [vmem:[#allocation5 + $0x10] sm:$0xff] %vm1547_vm4, %v7126_v62  ;;  %vm17616_vm3 = vcmp.gt.f32.partialorder %v17614_v49, %v17615_v42 }
 0x950   :  { %v7047_v28 = vsel %vm17616_vm3, 16, %v6999_v9  ;;  %v7092_v21 = vsel %vm7060_vm2, 17, %v7044_v45  ;;  %v7131_v13 = vadd.s32 %v17617_v18, %v7089_v6  ;;  %7143 = vst.msk [vmem:[#allocation5 + $0x18] sm:$0xff] %vm1547_vm4, %v7127_v37  ;;  %vm17619_vm8 = vcmp.gt.f32.partialorder %v15650_v61, %v17618_v10 }
 0x951   :  { %v7048_v31 = vsel %vm17619_vm8, 16, %v7000_v52  ;;  %v7093_v60 = vsel %vm7061_vm9, 17, %v7045_v36  ;;  %v7132_v20 = vadd.s32 %v14517_v63, %v7090_v33  ;;  %7144 = vst.msk [vmem:[#allocation5 + $0x20] sm:$0xff] %vm1547_vm4, %v7128_v59  ;;  %v7094_v56 = vsel %vm7062_vm6, 17, %v7046_v17 }
 0x952   :  { %v7133_v30 = vadd.s32 %v17579_v44, %v7091_v57  ;;  %7145 = vst.msk [vmem:[#allocation5 + $0x28] sm:$0xff] %vm1547_vm4, %v7129_v15  ;;  %v7095_v61 = vsel %vm7063_vm10, 17, %v7047_v28  ;;  %v7134_v14 = vadd.s32 %v17586_v58, %v7092_v21  ;;  %v7096_v63 = vsel %vm7064_vm14, 17, %v7048_v31 }
 0x953   :  { %7146 = vst.msk [vmem:[#allocation5 + $0x30] sm:$0xff] %vm1547_vm4, %v7130_v7  ;;  %v7135_v50 = vadd.s32 %v17594_v16, %v7093_v60  ;;  %v7136_v47 = vadd.s32 %v17601_v55, %v7094_v56  ;;  %v7137_v32 = vadd.s32 %v17608_v23, %v7095_v61  ;;  %v7138_v48 = vadd.s32 %v17613_v43, %v7096_v63 }
 0x954   :  { %7147 = vst.msk [vmem:[#allocation5 + $0x38] sm:$0xff] %vm1547_vm4, %v7131_v13 }
 0x955   :  { %7148 = vst.msk [vmem:[#allocation5 + $0x40] sm:$0xff] %vm1547_vm4, %v7132_v20 }
 0x956   :  { %7149 = vst.msk [vmem:[#allocation5 + $0x48] sm:$0xff] %vm1547_vm4, %v7133_v30 }
 0x957   :  { %7150 = vst.msk [vmem:[#allocation5 + $0x50] sm:$0xff] %vm1547_vm4, %v7134_v14 }
 0x958   :  { %7151 = vst.msk [vmem:[#allocation5 + $0x58] sm:$0xff] %vm1547_vm4, %v7135_v50 }
 0x959   :  { %7152 = vst.msk [vmem:[#allocation5 + $0x60] sm:$0xff] %vm1547_vm4, %v7136_v47 }
 0x95a   :  { %7153 = vst.msk [vmem:[#allocation5 + $0x68] sm:$0xff] %vm1547_vm4, %v7137_v32 }
 0x95b   :  { %7154 = vst.msk [vmem:[#allocation5 + $0x70] sm:$0xff] %vm1547_vm4, %v7138_v48 }
 0x95c   :  { %7183 = dma.vmem_to_hbm [thread:$0]  %s7176_s13, 2048, %s7178_s21, [#allocation6], %s7872_s8, %s7872_s8, %s7859_s17  }
 0x95d   :  { %7854 = dma.done.wait [#allocation4], 2048  }
 0x95e   :  { %7855 = vsyncadd [#allocation4], 4294965248 }
 0x95f   :  { %7856 = dma.done.wait [#allocation6], 2048  }
 0x960   :  { %7857 = vsyncadd [#allocation6], 4294965248 }
 0x961   :  { %7194 = vsyncpa [#allocation4], 1 }
 0x962   :  { %7195 = vsyncpa [#allocation6], 1 }

</bundles_post_ra>
